<compile_context>
chip_gen: v5e
topology: v5e:2x2
jax: 0.10.0
libtpu: 0.0.40
codegen_flags: <defaults>
</compile_context>

<pallas_src>
import jax
import jax.numpy as jnp
from jax.experimental import pallas as pl
from jax.experimental.pallas import tpu as pltpu

IN_DIM, HID_DIM, LAT_DIM = 784, 400, 20      # logical dims (match nn.Linear)
HID_PAD = 512                                # 400 -> 512 lanes (lane-dense h1 / h3)
LAT_PACK = 128                               # packed latent lanes
LAT_HALF = 64                                # logvar lives at lanes [64:84]
TB_MAX = 512                                 # max batch rows per grid step


def _round_up(n, m):
    return ((n + m - 1) // m) * m


def _cdiv(a, b):
    return -(-a // b)


# ----------------------------------------------------------------------------- kernel
def vae_kernel(x_ref, eps_ref,
               w1_ref, b1_ref, wlat_ref, blat_ref,
               w3_ref, b3_ref, w4_ref, b4_ref,
               recon_ref, mulv_ref):
    # encode: fc1 + relu (x cast to bf16 in-kernel, f32 accumulate, K = 784 unpadded)
    x = x_ref[...].astype(jnp.bfloat16)                               # (TB, 784)
    h1 = jnp.dot(x, w1_ref[...], preferred_element_type=jnp.float32) + b1_ref[...]
    h1 = jnp.maximum(h1, 0.0)                                         # (TB, 512) f32

    # fused compact latent head: mu in lanes [0:20], logvar in lanes [64:84]
    lat = jnp.dot(h1.astype(jnp.bfloat16), wlat_ref[...],
                  preferred_element_type=jnp.float32) + blat_ref[...]  # (TB, 128) f32
    mulv_ref[...] = lat                                               # packed [mu|logvar]

    # reparameterize: align logvar with mu via a half-lane rotation (XLU slot)
    logvar_aligned = pltpu.roll(lat, shift=LAT_HALF, axis=1)          # lanes 0..19 = logvar
    std = jnp.exp(0.5 * logvar_aligned)
    z = lat + eps_ref[...] * std                                      # lanes 0..19 = mu + eps*std
    # lanes >= 20 of z carry logvar/zeros; they hit zero rows of w3 and contribute nothing

    # decode: fc3 + relu, fc4 + sigmoid
    h3 = jnp.dot(z.astype(jnp.bfloat16), w3_ref[...],
                 preferred_element_type=jnp.float32) + b3_ref[...]
    h3 = jnp.maximum(h3, 0.0)                                         # (TB, 512) f32
    logits = jnp.dot(h3.astype(jnp.bfloat16), w4_ref[...],
                     preferred_element_type=jnp.float32) + b4_ref[...]  # (TB, 784) f32

    # sigmoid(x) = 0.5*tanh(0.5*x) + 0.5  (single EUP op), stored bf16
    recon_ref[...] = (0.5 * jnp.tanh(0.5 * logits) + 0.5).astype(recon_ref.dtype)


# ----------------------------------------------------------------------------- wrapper
def _choose_tiling(B):
    """Return (Bp, tb, nb): padded batch, batch tile, number of grid steps."""
    if B <= 8:
        return B, B, 1                       # block dim == full array dim is legal
    Bp = _round_up(B, 8)
    nb = max(_cdiv(Bp, TB_MAX), 2)           # >= 2 tiles so both v7x TCs get work
    tb = _round_up(_cdiv(Bp, nb), 8)         # balanced tiles, no near-empty tail
    nb = _cdiv(Bp, tb)
    return tb * nb, tb, nb


def _pallas_forward(x2d, eps_p, packed, Bp, tb, nb, single_buffer_weights):
    w_kwargs = {"pipeline_mode": pl.Buffered(1)} if single_buffer_weights else {}

    def wspec(shape):
        return pl.BlockSpec(shape, lambda i: (0, 0), **w_kwargs)

    return pl.pallas_call(
        vae_kernel,
        out_shape=(
            jax.ShapeDtypeStruct((Bp, IN_DIM), jnp.bfloat16),     # recon (bf16, unpadded lanes)
            jax.ShapeDtypeStruct((Bp, LAT_PACK), jnp.float32),    # packed [mu | logvar]
        ),
        grid=(nb,),
        in_specs=[
            pl.BlockSpec((tb, IN_DIM), lambda i: (i, 0)),         # x tile (f32)
            pl.BlockSpec((tb, LAT_PACK), lambda i: (i, 0)),       # eps tile
            wspec((IN_DIM, HID_PAD)),                             # w1 (resident)
            wspec((1, HID_PAD)),                                  # b1
            wspec((HID_PAD, LAT_PACK)),                           # fused w21|w22
            wspec((1, LAT_PACK)),                                 # fused b21|b22
            wspec((LAT_PACK, HID_PAD)),                           # w3
            wspec((1, HID_PAD)),                                  # b3
            wspec((HID_PAD, IN_DIM)),                             # w4
            wspec((1, IN_DIM)),                                   # b4
        ],
        out_specs=(
            pl.BlockSpec((tb, IN_DIM), lambda i: (i, 0)),
            pl.BlockSpec((tb, LAT_PACK), lambda i: (i, 0)),
        ),
        compiler_params=pltpu.CompilerParams(
            dimension_semantics=("parallel",),
            vmem_limit_bytes=32 * 1024 * 1024),
    )(x2d, eps_p, *packed)


def vae_forward(x_nchw, eps, packed):
    B = x_nchw.shape[0]
    x2d = x_nchw.reshape(B, IN_DIM)                               # == x.view(-1, 784)
    Bp, tb, nb = _choose_tiling(B)

    if Bp != B:
        x2d = jnp.zeros((Bp, IN_DIM), x2d.dtype).at[:B].set(x2d)
    eps_p = jnp.zeros((Bp, LAT_PACK), jnp.float32).at[:B, :LAT_DIM].set(eps)

    try:
        recon, mulv = _pallas_forward(x2d, eps_p, packed, Bp, tb, nb,
                                      single_buffer_weights=True)
        jax.block_until_ready((recon, mulv))
    except Exception:
        # Fallback if this jax build rejects pl.Buffered(1) single-buffering.
        recon, mulv = _pallas_forward(x2d, eps_p, packed, Bp, tb, nb,
                                      single_buffer_weights=False)

    if Bp != B:
        recon = recon[:B]
        mulv = mulv[:B]
    mu = mulv[:, :LAT_DIM]
    logvar = mulv[:, LAT_HALF:LAT_HALF + LAT_DIM]
    return recon, mu, logvar


# ----------------------------------------------------------------------------- params
def pack_params(raw):
    """Pad N dims to lane multiples, fuse fc21/fc22 into a compact 128-lane head,
    cast weights to bf16 (biases stay f32)."""
    w1, b1, w21, b21, w22, b22, w3, b3, w4, b4 = raw

    w1_p = jnp.zeros((IN_DIM, HID_PAD), jnp.float32).at[:, :HID_DIM].set(w1)
    b1_p = jnp.zeros((1, HID_PAD), jnp.float32).at[:, :HID_DIM].set(b1)

    wlat = jnp.zeros((HID_PAD, LAT_PACK), jnp.float32)
    wlat = wlat.at[:HID_DIM, :LAT_DIM].set(w21)
    wlat = wlat.at[:HID_DIM, LAT_HALF:LAT_HALF + LAT_DIM].set(w22)
    blat = (jnp.zeros((1, LAT_PACK), jnp.float32)
            .at[:, :LAT_DIM].set(b21)
            .at[:, LAT_HALF:LAT_HALF + LAT_DIM].set(b22))

    w3_p = jnp.zeros((LAT_PACK, HID_PAD), jnp.float32).at[:LAT_DIM, :HID_DIM].set(w3)
    b3_p = jnp.zeros((1, HID_PAD), jnp.float32).at[:, :HID_DIM].set(b3)

    w4_p = jnp.zeros((HID_PAD, IN_DIM), jnp.float32).at[:HID_DIM, :].set(w4)
    b4_p = b4.reshape(1, IN_DIM).astype(jnp.float32)

    return (w1_p.astype(jnp.bfloat16), b1_p,
            wlat.astype(jnp.bfloat16), blat,
            w3_p.astype(jnp.bfloat16), b3_p,
            w4_p.astype(jnp.bfloat16), b4_p)


def init_params(key):
    """Deterministic synthetic init matching nn.Linear's default range.
    Weights stored transposed as (in_features, out_features) so each layer is x @ W + b."""
    dims = [(IN_DIM, HID_DIM), (HID_DIM, LAT_DIM), (HID_DIM, LAT_DIM),
            (LAT_DIM, HID_DIM), (HID_DIM, IN_DIM)]
    raw = []
    keys = jax.random.split(key, len(dims) * 2)
    for i, (fan_in, fan_out) in enumerate(dims):
        bound = 1.0 / (fan_in ** 0.5)
        w = jax.random.uniform(keys[2 * i], (fan_in, fan_out), jnp.float32, -bound, bound)
        b = jax.random.uniform(keys[2 * i + 1], (1, fan_out), jnp.float32, -bound, bound)
        raw.extend([w, b])
    raw = tuple(raw)
    return raw, pack_params(raw)


# ----------------------------------------------------------------------------- reference
def vae_reference(x_nchw, eps, raw):
    """Pure-JAX reference with the same precision policy (bf16 matmul operands, f32 accum)."""
    w1, b1, w21, b21, w22, b22, w3, b3, w4, b4 = raw
    bf = jnp.bfloat16
    x = x_nchw.reshape(-1, IN_DIM).astype(bf)
    h1 = jnp.maximum(jnp.dot(x, w1.astype(bf), preferred_element_type=jnp.float32) + b1, 0.0)
    h1b = h1.astype(bf)
    mu = jnp.dot(h1b, w21.astype(bf), preferred_element_type=jnp.float32) + b21
    logvar = jnp.dot(h1b, w22.astype(bf), preferred_element_type=jnp.float32) + b22
    z = mu + eps * jnp.exp(0.5 * logvar)
    h3 = jnp.maximum(jnp.dot(z.astype(bf), w3.astype(bf),
                             preferred_element_type=jnp.float32) + b3, 0.0)
    logits = jnp.dot(h3.astype(bf), w4.astype(bf),
                     preferred_element_type=jnp.float32) + b4
    return jax.nn.sigmoid(logits), mu, logvar


if __name__ == "__main__":
    key = jax.random.PRNGKey(0)
    k_param, k_x, k_eps = jax.random.split(key, 3)

    raw_params, packed_params = init_params(k_param)

    B = 2
    x = jax.random.uniform(k_x, (B, 1, 28, 28), jnp.float32)      # NCHW, MNIST-like
    eps = jax.random.normal(k_eps, (B, LAT_DIM), jnp.float32)     # randn_like(std)

    recon, mu, logvar = vae_forward(x, eps, packed_params)
    jax.block_until_ready((recon, mu, logvar))

    assert recon.shape == (B, 784)
    assert mu.shape == (B, 20)
    assert logvar.shape == (B, 20)

    # correctness vs. precision-matched pure-JAX reference (recon is bf16 -> looser tol)
    recon_r, mu_r, logvar_r = vae_reference(x, eps, raw_params)
    assert float(jnp.max(jnp.abs(recon.astype(jnp.float32) - recon_r))) < 2e-2
    assert float(jnp.max(jnp.abs(mu - mu_r))) < 2e-2
    assert float(jnp.max(jnp.abs(logvar - logvar_r))) < 2e-2

    print("KERNEL_OK")
</pallas_src>

<mosaic_0001>
module attributes {stable_mosaic.version = 11 : i64} {
  func.func @vae_kernel(%arg0: i32, %arg1: memref<2x784xf32, #tpu.memory_space<vmem>>, %arg2: memref<2x128xf32, #tpu.memory_space<vmem>>, %arg3: memref<784x512xbf16, #tpu.memory_space<vmem>>, %arg4: memref<1x512xf32, #tpu.memory_space<vmem>>, %arg5: memref<512x128xbf16, #tpu.memory_space<vmem>>, %arg6: memref<1x128xf32, #tpu.memory_space<vmem>>, %arg7: memref<128x512xbf16, #tpu.memory_space<vmem>>, %arg8: memref<1x512xf32, #tpu.memory_space<vmem>>, %arg9: memref<512x784xbf16, #tpu.memory_space<vmem>>, %arg10: memref<1x784xf32, #tpu.memory_space<vmem>>, %arg11: memref<2x784xbf16, #tpu.memory_space<vmem>>, %arg12: memref<2x128xf32, #tpu.memory_space<vmem>>) attributes {dimension_semantics = [#tpu.dimension_semantics<parallel>], iteration_bounds = array<i64: 1>, scalar_prefetch = 0 : i64, scratch_operands = 0 : i64, tpu.core_type = #tpu.core_type<tc>, window_params = [{transform_indices = @transform_0, window_bounds = array<i64: 2, 784>}, {transform_indices = @transform_1, window_bounds = array<i64: 2, 128>}, {pipeline_mode = #tpu.pipeline_mode<synchronous>, transform_indices = @transform_2, window_bounds = array<i64: 784, 512>}, {pipeline_mode = #tpu.pipeline_mode<synchronous>, transform_indices = @transform_3, window_bounds = array<i64: 1, 512>}, {pipeline_mode = #tpu.pipeline_mode<synchronous>, transform_indices = @transform_4, window_bounds = array<i64: 512, 128>}, {pipeline_mode = #tpu.pipeline_mode<synchronous>, transform_indices = @transform_5, window_bounds = array<i64: 1, 128>}, {pipeline_mode = #tpu.pipeline_mode<synchronous>, transform_indices = @transform_6, window_bounds = array<i64: 128, 512>}, {pipeline_mode = #tpu.pipeline_mode<synchronous>, transform_indices = @transform_7, window_bounds = array<i64: 1, 512>}, {pipeline_mode = #tpu.pipeline_mode<synchronous>, transform_indices = @transform_8, window_bounds = array<i64: 512, 784>}, {pipeline_mode = #tpu.pipeline_mode<synchronous>, transform_indices = @transform_9, window_bounds = array<i64: 1, 784>}, {transform_indices = @transform_10, window_bounds = array<i64: 2, 784>}, {transform_indices = @transform_11, window_bounds = array<i64: 2, 128>}]} {
    %c0 = arith.constant 0 : index
    %c0_0 = arith.constant 0 : index
    %0 = vector.load %arg1[%c0, %c0_0] : memref<2x784xf32, #tpu.memory_space<vmem>>, vector<2x784xf32>
    %1 = arith.truncf %0 : vector<2x784xf32> to vector<2x784xbf16>
    %c0_1 = arith.constant 0 : index
    %c0_2 = arith.constant 0 : index
    %2 = vector.load %arg3[%c0_1, %c0_2] : memref<784x512xbf16, #tpu.memory_space<vmem>>, vector<784x512xbf16>
    %cst = arith.constant dense<0.000000e+00> : vector<2x512xf32>
    %3 = tpu.matmul %1, %2, %cst {dimension_numbers = #tpu.dot_dimension_numbers<[1], [0], [0], [1], [0, 0, 1, 1], [], []>} : vector<2x784xbf16>, vector<784x512xbf16>, vector<2x512xf32> -> vector<2x512xf32>
    %c0_3 = arith.constant 0 : index
    %c0_4 = arith.constant 0 : index
    %4 = vector.load %arg4[%c0_3, %c0_4] : memref<1x512xf32, #tpu.memory_space<vmem>>, vector<1x512xf32>
    %5 = vector.broadcast %4 : vector<1x512xf32> to vector<2x512xf32>
    %6 = arith.addf %3, %5 : vector<2x512xf32>
    %cst_5 = arith.constant 0.000000e+00 : f32
    %7 = vector.broadcast %cst_5 : f32 to vector<2x512xf32>
    %8 = arith.maximumf %6, %7 : vector<2x512xf32>
    %9 = arith.truncf %8 : vector<2x512xf32> to vector<2x512xbf16>
    %c0_6 = arith.constant 0 : index
    %c0_7 = arith.constant 0 : index
    %10 = vector.load %arg5[%c0_6, %c0_7] : memref<512x128xbf16, #tpu.memory_space<vmem>>, vector<512x128xbf16>
    %cst_8 = arith.constant dense<0.000000e+00> : vector<2x128xf32>
    %11 = tpu.matmul %9, %10, %cst_8 {dimension_numbers = #tpu.dot_dimension_numbers<[1], [0], [0], [1], [0, 0, 1, 1], [], []>} : vector<2x512xbf16>, vector<512x128xbf16>, vector<2x128xf32> -> vector<2x128xf32>
    %c0_9 = arith.constant 0 : index
    %c0_10 = arith.constant 0 : index
    %12 = vector.load %arg6[%c0_9, %c0_10] : memref<1x128xf32, #tpu.memory_space<vmem>>, vector<1x128xf32>
    %13 = vector.broadcast %12 : vector<1x128xf32> to vector<2x128xf32>
    %14 = arith.addf %11, %13 : vector<2x128xf32>
    %c0_11 = arith.constant 0 : index
    %c0_12 = arith.constant 0 : index
    %15 = vector.load %arg12[%c0_11, %c0_12] : memref<2x128xf32, #tpu.memory_space<vmem>>, vector<2x128xf32>
    tpu.vector_store %arg12[%c0_11, %c0_12], %14 {strides = array<i32>} : memref<2x128xf32, #tpu.memory_space<vmem>>, vector<2x128xf32>,
    %c64_i32 = arith.constant 64 : i32
    %16 = tpu.dynamic_rotate %14 by %c64_i32 dim 1 : vector<2x128xf32>, i32 -> vector<2x128xf32>
    %cst_13 = arith.constant 5.000000e-01 : f32
    %17 = vector.broadcast %cst_13 : f32 to vector<2x128xf32>
    %18 = arith.mulf %17, %16 : vector<2x128xf32>
    %19 = math.exp %18 : vector<2x128xf32>
    %c0_14 = arith.constant 0 : index
    %c0_15 = arith.constant 0 : index
    %20 = vector.load %arg2[%c0_14, %c0_15] : memref<2x128xf32, #tpu.memory_space<vmem>>, vector<2x128xf32>
    %21 = arith.mulf %20, %19 : vector<2x128xf32>
    %22 = arith.addf %14, %21 : vector<2x128xf32>
    %23 = arith.truncf %22 : vector<2x128xf32> to vector<2x128xbf16>
    %c0_16 = arith.constant 0 : index
    %c0_17 = arith.constant 0 : index
    %24 = vector.load %arg7[%c0_16, %c0_17] : memref<128x512xbf16, #tpu.memory_space<vmem>>, vector<128x512xbf16>
    %cst_18 = arith.constant dense<0.000000e+00> : vector<2x512xf32>
    %25 = tpu.matmul %23, %24, %cst_18 {dimension_numbers = #tpu.dot_dimension_numbers<[1], [0], [0], [1], [0, 0, 1, 1], [], []>} : vector<2x128xbf16>, vector<128x512xbf16>, vector<2x512xf32> -> vector<2x512xf32>
    %c0_19 = arith.constant 0 : index
    %c0_20 = arith.constant 0 : index
    %26 = vector.load %arg8[%c0_19, %c0_20] : memref<1x512xf32, #tpu.memory_space<vmem>>, vector<1x512xf32>
    %27 = vector.broadcast %26 : vector<1x512xf32> to vector<2x512xf32>
    %28 = arith.addf %25, %27 : vector<2x512xf32>
    %cst_21 = arith.constant 0.000000e+00 : f32
    %29 = vector.broadcast %cst_21 : f32 to vector<2x512xf32>
    %30 = arith.maximumf %28, %29 : vector<2x512xf32>
    %31 = arith.truncf %30 : vector<2x512xf32> to vector<2x512xbf16>
    %c0_22 = arith.constant 0 : index
    %c0_23 = arith.constant 0 : index
    %32 = vector.load %arg9[%c0_22, %c0_23] : memref<512x784xbf16, #tpu.memory_space<vmem>>, vector<512x784xbf16>
    %cst_24 = arith.constant dense<0.000000e+00> : vector<2x784xf32>
    %33 = tpu.matmul %31, %32, %cst_24 {dimension_numbers = #tpu.dot_dimension_numbers<[1], [0], [0], [1], [0, 0, 1, 1], [], []>} : vector<2x512xbf16>, vector<512x784xbf16>, vector<2x784xf32> -> vector<2x784xf32>
    %c0_25 = arith.constant 0 : index
    %c0_26 = arith.constant 0 : index
    %34 = vector.load %arg10[%c0_25, %c0_26] : memref<1x784xf32, #tpu.memory_space<vmem>>, vector<1x784xf32>
    %35 = vector.broadcast %34 : vector<1x784xf32> to vector<2x784xf32>
    %36 = arith.addf %33, %35 : vector<2x784xf32>
    %cst_27 = arith.constant 5.000000e-01 : f32
    %37 = vector.broadcast %cst_27 : f32 to vector<2x784xf32>
    %38 = arith.mulf %37, %36 : vector<2x784xf32>
    %39 = math.tanh %38 : vector<2x784xf32>
    %cst_28 = arith.constant 5.000000e-01 : f32
    %40 = vector.broadcast %cst_28 : f32 to vector<2x784xf32>
    %41 = arith.mulf %40, %39 : vector<2x784xf32>
    %cst_29 = arith.constant 5.000000e-01 : f32
    %42 = vector.broadcast %cst_29 : f32 to vector<2x784xf32>
    %43 = arith.addf %41, %42 : vector<2x784xf32>
    %44 = arith.truncf %43 : vector<2x784xf32> to vector<2x784xbf16>
    %c0_30 = arith.constant 0 : index
    %c0_31 = arith.constant 0 : index
    %45 = vector.load %arg11[%c0_30, %c0_31] : memref<2x784xbf16, #tpu.memory_space<vmem>>, vector<2x784xbf16>
    tpu.vector_store %arg11[%c0_30, %c0_31], %44 {strides = array<i32>} : memref<2x784xbf16, #tpu.memory_space<vmem>>, vector<2x784xbf16>,
    return
  }
  func.func @transform_0(%arg0: i32) -> (i32, i32) {
    %c0_i32 = arith.constant 0 : i32
    %c0_i32_0 = arith.constant 0 : i32
    return %arg0, %c0_i32 : i32, i32
  }
  func.func @transform_1(%arg0: i32) -> (i32, i32) {
    %c0_i32 = arith.constant 0 : i32
    %c0_i32_0 = arith.constant 0 : i32
    return %arg0, %c0_i32 : i32, i32
  }
  func.func @transform_2(%arg0: i32) -> (i32, i32) {
    %c0_i32 = arith.constant 0 : i32
    %c0_i32_0 = arith.constant 0 : i32
    %c0_i32_1 = arith.constant 0 : i32
    return %c0_i32, %c0_i32_0 : i32, i32
  }
  func.func @transform_3(%arg0: i32) -> (i32, i32) {
    %c0_i32 = arith.constant 0 : i32
    %c0_i32_0 = arith.constant 0 : i32
    %c0_i32_1 = arith.constant 0 : i32
    return %c0_i32, %c0_i32_0 : i32, i32
  }
  func.func @transform_4(%arg0: i32) -> (i32, i32) {
    %c0_i32 = arith.constant 0 : i32
    %c0_i32_0 = arith.constant 0 : i32
    %c0_i32_1 = arith.constant 0 : i32
    return %c0_i32, %c0_i32_0 : i32, i32
  }
  func.func @transform_5(%arg0: i32) -> (i32, i32) {
    %c0_i32 = arith.constant 0 : i32
    %c0_i32_0 = arith.constant 0 : i32
    %c0_i32_1 = arith.constant 0 : i32
    return %c0_i32, %c0_i32_0 : i32, i32
  }
  func.func @transform_6(%arg0: i32) -> (i32, i32) {
    %c0_i32 = arith.constant 0 : i32
    %c0_i32_0 = arith.constant 0 : i32
    %c0_i32_1 = arith.constant 0 : i32
    return %c0_i32, %c0_i32_0 : i32, i32
  }
  func.func @transform_7(%arg0: i32) -> (i32, i32) {
    %c0_i32 = arith.constant 0 : i32
    %c0_i32_0 = arith.constant 0 : i32
    %c0_i32_1 = arith.constant 0 : i32
    return %c0_i32, %c0_i32_0 : i32, i32
  }
  func.func @transform_8(%arg0: i32) -> (i32, i32) {
    %c0_i32 = arith.constant 0 : i32
    %c0_i32_0 = arith.constant 0 : i32
    %c0_i32_1 = arith.constant 0 : i32
    return %c0_i32, %c0_i32_0 : i32, i32
  }
  func.func @transform_9(%arg0: i32) -> (i32, i32) {
    %c0_i32 = arith.constant 0 : i32
    %c0_i32_0 = arith.constant 0 : i32
    %c0_i32_1 = arith.constant 0 : i32
    return %c0_i32, %c0_i32_0 : i32, i32
  }
  func.func @transform_10(%arg0: i32) -> (i32, i32) {
    %c0_i32 = arith.constant 0 : i32
    %c0_i32_0 = arith.constant 0 : i32
    return %arg0, %c0_i32 : i32, i32
  }
  func.func @transform_11(%arg0: i32) -> (i32, i32) {
    %c0_i32 = arith.constant 0 : i32
    %c0_i32_0 = arith.constant 0 : i32
    return %arg0, %c0_i32 : i32, i32
  }
}

module attributes {stable_mosaic.version = 11 : i64} {
  func.func @vae_kernel(%arg0: i32, %arg1: memref<2x784xf32, #tpu.memory_space<vmem>>, %arg2: memref<2x128xf32, #tpu.memory_space<vmem>>, %arg3: memref<784x512xbf16, #tpu.memory_space<vmem>>, %arg4: memref<1x512xf32, #tpu.memory_space<vmem>>, %arg5: memref<512x128xbf16, #tpu.memory_space<vmem>>, %arg6: memref<1x128xf32, #tpu.memory_space<vmem>>, %arg7: memref<128x512xbf16, #tpu.memory_space<vmem>>, %arg8: memref<1x512xf32, #tpu.memory_space<vmem>>, %arg9: memref<512x784xbf16, #tpu.memory_space<vmem>>, %arg10: memref<1x784xf32, #tpu.memory_space<vmem>>, %arg11: memref<2x784xbf16, #tpu.memory_space<vmem>>, %arg12: memref<2x128xf32, #tpu.memory_space<vmem>>) attributes {dimension_semantics = [#tpu.dimension_semantics<parallel>], iteration_bounds = array<i64: 1>, scalar_prefetch = 0 : i64, scratch_operands = 0 : i64, tpu.core_type = #tpu.core_type<tc>, window_params = [{transform_indices = @transform_0, window_bounds = array<i64: 2, 784>}, {transform_indices = @transform_1, window_bounds = array<i64: 2, 128>}, {pipeline_mode = #tpu.pipeline_mode<synchronous>, transform_indices = @transform_2, window_bounds = array<i64: 784, 512>}, {pipeline_mode = #tpu.pipeline_mode<synchronous>, transform_indices = @transform_3, window_bounds = array<i64: 1, 512>}, {pipeline_mode = #tpu.pipeline_mode<synchronous>, transform_indices = @transform_4, window_bounds = array<i64: 512, 128>}, {pipeline_mode = #tpu.pipeline_mode<synchronous>, transform_indices = @transform_5, window_bounds = array<i64: 1, 128>}, {pipeline_mode = #tpu.pipeline_mode<synchronous>, transform_indices = @transform_6, window_bounds = array<i64: 128, 512>}, {pipeline_mode = #tpu.pipeline_mode<synchronous>, transform_indices = @transform_7, window_bounds = array<i64: 1, 512>}, {pipeline_mode = #tpu.pipeline_mode<synchronous>, transform_indices = @transform_8, window_bounds = array<i64: 512, 784>}, {pipeline_mode = #tpu.pipeline_mode<synchronous>, transform_indices = @transform_9, window_bounds = array<i64: 1, 784>}, {transform_indices = @transform_10, window_bounds = array<i64: 2, 784>}, {transform_indices = @transform_11, window_bounds = array<i64: 2, 128>}]} {
    %c0 = arith.constant 0 : index
    %c0_0 = arith.constant 0 : index
    %0 = vector.load %arg1[%c0, %c0_0] : memref<2x784xf32, #tpu.memory_space<vmem>>, vector<2x784xf32>
    %1 = arith.truncf %0 : vector<2x784xf32> to vector<2x784xbf16>
    %c0_1 = arith.constant 0 : index
    %c0_2 = arith.constant 0 : index
    %2 = vector.load %arg3[%c0_1, %c0_2] : memref<784x512xbf16, #tpu.memory_space<vmem>>, vector<784x512xbf16>
    %cst = arith.constant dense<0.000000e+00> : vector<2x512xf32>
    %3 = tpu.matmul %1, %2, %cst {dimension_numbers = #tpu.dot_dimension_numbers<[1], [0], [0], [1], [0, 0, 1, 1], [], []>} : vector<2x784xbf16>, vector<784x512xbf16>, vector<2x512xf32> -> vector<2x512xf32>
    %c0_3 = arith.constant 0 : index
    %c0_4 = arith.constant 0 : index
    %4 = vector.load %arg4[%c0_3, %c0_4] : memref<1x512xf32, #tpu.memory_space<vmem>>, vector<1x512xf32>
    %5 = vector.broadcast %4 : vector<1x512xf32> to vector<2x512xf32>
    %6 = arith.addf %3, %5 : vector<2x512xf32>
    %cst_5 = arith.constant 0.000000e+00 : f32
    %7 = vector.broadcast %cst_5 : f32 to vector<2x512xf32>
    %8 = arith.maximumf %6, %7 : vector<2x512xf32>
    %9 = arith.truncf %8 : vector<2x512xf32> to vector<2x512xbf16>
    %c0_6 = arith.constant 0 : index
    %c0_7 = arith.constant 0 : index
    %10 = vector.load %arg5[%c0_6, %c0_7] : memref<512x128xbf16, #tpu.memory_space<vmem>>, vector<512x128xbf16>
    %cst_8 = arith.constant dense<0.000000e+00> : vector<2x128xf32>
    %11 = tpu.matmul %9, %10, %cst_8 {dimension_numbers = #tpu.dot_dimension_numbers<[1], [0], [0], [1], [0, 0, 1, 1], [], []>} : vector<2x512xbf16>, vector<512x128xbf16>, vector<2x128xf32> -> vector<2x128xf32>
    %c0_9 = arith.constant 0 : index
    %c0_10 = arith.constant 0 : index
    %12 = vector.load %arg6[%c0_9, %c0_10] : memref<1x128xf32, #tpu.memory_space<vmem>>, vector<1x128xf32>
    %13 = vector.broadcast %12 : vector<1x128xf32> to vector<2x128xf32>
    %14 = arith.addf %11, %13 : vector<2x128xf32>
    %c0_11 = arith.constant 0 : index
    %c0_12 = arith.constant 0 : index
    %15 = vector.load %arg12[%c0_11, %c0_12] : memref<2x128xf32, #tpu.memory_space<vmem>>, vector<2x128xf32>
    tpu.vector_store %arg12[%c0_11, %c0_12], %14 {strides = array<i32>} : memref<2x128xf32, #tpu.memory_space<vmem>>, vector<2x128xf32>,
    %c64_i32 = arith.constant 64 : i32
    %16 = tpu.dynamic_rotate %14 by %c64_i32 dim 1 : vector<2x128xf32>, i32 -> vector<2x128xf32>
    %cst_13 = arith.constant 5.000000e-01 : f32
    %17 = vector.broadcast %cst_13 : f32 to vector<2x128xf32>
    %18 = arith.mulf %17, %16 : vector<2x128xf32>
    %19 = math.exp %18 : vector<2x128xf32>
    %c0_14 = arith.constant 0 : index
    %c0_15 = arith.constant 0 : index
    %20 = vector.load %arg2[%c0_14, %c0_15] : memref<2x128xf32, #tpu.memory_space<vmem>>, vector<2x128xf32>
    %21 = arith.mulf %20, %19 : vector<2x128xf32>
    %22 = arith.addf %14, %21 : vector<2x128xf32>
    %23 = arith.truncf %22 : vector<2x128xf32> to vector<2x128xbf16>
    %c0_16 = arith.constant 0 : index
    %c0_17 = arith.constant 0 : index
    %24 = vector.load %arg7[%c0_16, %c0_17] : memref<128x512xbf16, #tpu.memory_space<vmem>>, vector<128x512xbf16>
    %cst_18 = arith.constant dense<0.000000e+00> : vector<2x512xf32>
    %25 = tpu.matmul %23, %24, %cst_18 {dimension_numbers = #tpu.dot_dimension_numbers<[1], [0], [0], [1], [0, 0, 1, 1], [], []>} : vector<2x128xbf16>, vector<128x512xbf16>, vector<2x512xf32> -> vector<2x512xf32>
    %c0_19 = arith.constant 0 : index
    %c0_20 = arith.constant 0 : index
    %26 = vector.load %arg8[%c0_19, %c0_20] : memref<1x512xf32, #tpu.memory_space<vmem>>, vector<1x512xf32>
    %27 = vector.broadcast %26 : vector<1x512xf32> to vector<2x512xf32>
    %28 = arith.addf %25, %27 : vector<2x512xf32>
    %cst_21 = arith.constant 0.000000e+00 : f32
    %29 = vector.broadcast %cst_21 : f32 to vector<2x512xf32>
    %30 = arith.maximumf %28, %29 : vector<2x512xf32>
    %31 = arith.truncf %30 : vector<2x512xf32> to vector<2x512xbf16>
    %c0_22 = arith.constant 0 : index
    %c0_23 = arith.constant 0 : index
    %32 = vector.load %arg9[%c0_22, %c0_23] : memref<512x784xbf16, #tpu.memory_space<vmem>>, vector<512x784xbf16>
    %cst_24 = arith.constant dense<0.000000e+00> : vector<2x784xf32>
    %33 = tpu.matmul %31, %32, %cst_24 {dimension_numbers = #tpu.dot_dimension_numbers<[1], [0], [0], [1], [0, 0, 1, 1], [], []>} : vector<2x512xbf16>, vector<512x784xbf16>, vector<2x784xf32> -> vector<2x784xf32>
    %c0_25 = arith.constant 0 : index
    %c0_26 = arith.constant 0 : index
    %34 = vector.load %arg10[%c0_25, %c0_26] : memref<1x784xf32, #tpu.memory_space<vmem>>, vector<1x784xf32>
    %35 = vector.broadcast %34 : vector<1x784xf32> to vector<2x784xf32>
    %36 = arith.addf %33, %35 : vector<2x784xf32>
    %cst_27 = arith.constant 5.000000e-01 : f32
    %37 = vector.broadcast %cst_27 : f32 to vector<2x784xf32>
    %38 = arith.mulf %37, %36 : vector<2x784xf32>
    %39 = math.tanh %38 : vector<2x784xf32>
    %cst_28 = arith.constant 5.000000e-01 : f32
    %40 = vector.broadcast %cst_28 : f32 to vector<2x784xf32>
    %41 = arith.mulf %40, %39 : vector<2x784xf32>
    %cst_29 = arith.constant 5.000000e-01 : f32
    %42 = vector.broadcast %cst_29 : f32 to vector<2x784xf32>
    %43 = arith.addf %41, %42 : vector<2x784xf32>
    %44 = arith.truncf %43 : vector<2x784xf32> to vector<2x784xbf16>
    %c0_30 = arith.constant 0 : index
    %c0_31 = arith.constant 0 : index
    %45 = vector.load %arg11[%c0_30, %c0_31] : memref<2x784xbf16, #tpu.memory_space<vmem>>, vector<2x784xbf16>
    tpu.vector_store %arg11[%c0_30, %c0_31], %44 {strides = array<i32>} : memref<2x784xbf16, #tpu.memory_space<vmem>>, vector<2x784xbf16>,
    return
  }
  func.func @transform_0(%arg0: i32) -> (i32, i32) {
    %c0_i32 = arith.constant 0 : i32
    %c0_i32_0 = arith.constant 0 : i32
    return %arg0, %c0_i32 : i32, i32
  }
  func.func @transform_1(%arg0: i32) -> (i32, i32) {
    %c0_i32 = arith.constant 0 : i32
    %c0_i32_0 = arith.constant 0 : i32
    return %arg0, %c0_i32 : i32, i32
  }
  func.func @transform_2(%arg0: i32) -> (i32, i32) {
    %c0_i32 = arith.constant 0 : i32
    %c0_i32_0 = arith.constant 0 : i32
    %c0_i32_1 = arith.constant 0 : i32
    return %c0_i32, %c0_i32_0 : i32, i32
  }
  func.func @transform_3(%arg0: i32) -> (i32, i32) {
    %c0_i32 = arith.constant 0 : i32
    %c0_i32_0 = arith.constant 0 : i32
    %c0_i32_1 = arith.constant 0 : i32
    return %c0_i32, %c0_i32_0 : i32, i32
  }
  func.func @transform_4(%arg0: i32) -> (i32, i32) {
    %c0_i32 = arith.constant 0 : i32
    %c0_i32_0 = arith.constant 0 : i32
    %c0_i32_1 = arith.constant 0 : i32
    return %c0_i32, %c0_i32_0 : i32, i32
  }
  func.func @transform_5(%arg0: i32) -> (i32, i32) {
    %c0_i32 = arith.constant 0 : i32
    %c0_i32_0 = arith.constant 0 : i32
    %c0_i32_1 = arith.constant 0 : i32
    return %c0_i32, %c0_i32_0 : i32, i32
  }
  func.func @transform_6(%arg0: i32) -> (i32, i32) {
    %c0_i32 = arith.constant 0 : i32
    %c0_i32_0 = arith.constant 0 : i32
    %c0_i32_1 = arith.constant 0 : i32
    return %c0_i32, %c0_i32_0 : i32, i32
  }
  func.func @transform_7(%arg0: i32) -> (i32, i32) {
    %c0_i32 = arith.constant 0 : i32
    %c0_i32_0 = arith.constant 0 : i32
    %c0_i32_1 = arith.constant 0 : i32
    return %c0_i32, %c0_i32_0 : i32, i32
  }
  func.func @transform_8(%arg0: i32) -> (i32, i32) {
    %c0_i32 = arith.constant 0 : i32
    %c0_i32_0 = arith.constant 0 : i32
    %c0_i32_1 = arith.constant 0 : i32
    return %c0_i32, %c0_i32_0 : i32, i32
  }
  func.func @transform_9(%arg0: i32) -> (i32, i32) {
    %c0_i32 = arith.constant 0 : i32
    %c0_i32_0 = arith.constant 0 : i32
    %c0_i32_1 = arith.constant 0 : i32
    return %c0_i32, %c0_i32_0 : i32, i32
  }
  func.func @transform_10(%arg0: i32) -> (i32, i32) {
    %c0_i32 = arith.constant 0 : i32
    %c0_i32_0 = arith.constant 0 : i32
    return %arg0, %c0_i32 : i32, i32
  }
  func.func @transform_11(%arg0: i32) -> (i32, i32) {
    %c0_i32 = arith.constant 0 : i32
    %c0_i32_0 = arith.constant 0 : i32
    return %arg0, %c0_i32 : i32, i32
  }
}

</mosaic_0001>

<bundles_post_ra>
// kernel: tpu_custom_call.1
= control target key start
LH: loop header
LB: loop body
LE: loop exit
PB: predicated region body
PF: predicated region fallthrough
CT: control target
= control target key end

     0   :  { %17 = vsyncpa [#allocation3], 0  ;;  %vm1254_vm0 = vcmask 130048   ;;  %s9640_s0 = inlined_call_operand.vmem [shape: f32[2,784], index: 0, kind: input, shape index: {}]   ;;  %s9641_s1 = inlined_call_operand.vmem [shape: f32[2,128], index: 1, kind: input, shape index: {}]   ;;  %s9642_s2 = inlined_call_operand.vmem [shape: bf16[784,512], index: 2, kind: input, shape index: {}]   ;;  %s9643_s3 = inlined_call_operand.vmem [shape: f32[1,512], index: 3, kind: input, shape index: {}]   ;;  %s9644_s4 = inlined_call_operand.vmem [shape: bf16[512,128], index: 4, kind: input, shape index: {}]   ;;  %s9645_s5 = inlined_call_operand.vmem [shape: f32[1,128], index: 5, kind: input, shape index: {}]   ;;  %s9646_s6 = inlined_call_operand.vmem [shape: bf16[128,512], index: 6, kind: input, shape index: {}]   ;;  %s9647_s7 = inlined_call_operand.vmem [shape: f32[1,512], index: 7, kind: input, shape index: {}]   ;;  %s9648_s8 = inlined_call_operand.vmem [shape: bf16[512,784], index: 8, kind: input, shape index: {}]   ;;  %s9649_s9 = inlined_call_operand.vmem [shape: f32[1,784], index: 9, kind: input, shape index: {}]   ;;  %s9650_s10 = inlined_call_operand.hbm [shape: bf16[2,784], index: 10, kind: output, shape index: {0}]   ;;  %s9651_s11 = inlined_call_operand.hbm [shape: f32[2,128], index: 11, kind: output, shape index: {1}]  }
   0x1   :  { %v4225_v0 = vld [vmem:[%s9642_s2 + $0xe0] sm:$0xf]  ;;  %v6081_v1 = vld [vmem:[%s9642_s2 + $0xec] sm:$0xf0] }
   0x2   :  { %v4353_v2 = vld [vmem:[%s9642_s2 + $0x1e0] sm:$0xf]  ;;  %v4226_v3 = vor.u32 %v6081_v1, %v4225_v0  ;;  %v6113_v4 = vld [vmem:[%s9642_s2 + $0x1ec] sm:$0xf0] }
   0x3   :  { %v4481_v5 = vld [vmem:[%s9642_s2 + $0x2e0] sm:$0xf]  ;;  %v6145_v6 = vld [vmem:[%s9642_s2 + $0x2ec] sm:$0xf0]  ;;  %v4354_v7 = vor.u32 %v6113_v4, %v4353_v2 }
   0x4   :  { %v4482_v8 = vor.u32 %v6145_v6, %v4481_v5  ;;  %v4609_v9 = vld [vmem:[%s9642_s2 + $0x3e0] sm:$0xf]  ;;  %v6177_v10 = vld [vmem:[%s9642_s2 + $0x3ec] sm:$0xf0]  ;;  %1258 = vmatpush.bf16.msra.mxu0 %v4226_v3 }
   0x5   :  { %v4209_v11 = vld [vmem:[%s9642_s2 + $0xc0] sm:$0xf]  ;;  %v4610_v12 = vor.u32 %v6177_v10, %v4609_v9  ;;  %v6077_v13 = vld [vmem:[%s9642_s2 + $0xcc] sm:$0xf0]  ;;  %1271 = vmatpush.bf16.msra.mxu1 %v4354_v7 }
   0x6   :  { %v4337_v14 = vld [vmem:[%s9642_s2 + $0x1c0] sm:$0xf]  ;;  %v6109_v15 = vld [vmem:[%s9642_s2 + $0x1cc] sm:$0xf0]  ;;  %1284 = vmatpush.bf16.msra.mxu2 %v4482_v8  ;;  %v4210_v16 = vor.u32 %v6077_v13, %v4209_v11 }
   0x7   :  { %v4338_v17 = vor.u32 %v6109_v15, %v4337_v14  ;;  %v4465_v18 = vld [vmem:[%s9642_s2 + $0x2c0] sm:$0xf]  ;;  %v6141_v19 = vld [vmem:[%s9642_s2 + $0x2cc] sm:$0xf0]  ;;  %1297 = vmatpush.bf16.msra.mxu3 %v4610_v12 }
   0x8   :  { %v4593_v20 = vld [vmem:[%s9642_s2 + $0x3c0] sm:$0xf]  ;;  %v4466_v21 = vor.u32 %v6141_v19, %v4465_v18  ;;  %v6173_v22 = vld [vmem:[%s9642_s2 + $0x3cc] sm:$0xf0]  ;;  %1259 = vmatpush.bf16.msra.mxu0 %v4210_v16 }
   0x9   :  { %v4193_v23 = vld [vmem:[%s9642_s2 + $0xa0] sm:$0xf]  ;;  %v6073_v24 = vld [vmem:[%s9642_s2 + $0xac] sm:$0xf0]  ;;  %v4594_v25 = vor.u32 %v6173_v22, %v4593_v20  ;;  %1272 = vmatpush.bf16.msra.mxu1 %v4338_v17 }
   0xa   :  { %v4321_v26 = vld [vmem:[%s9642_s2 + $0x1a0] sm:$0xf]  ;;  %v6105_v27 = vld [vmem:[%s9642_s2 + $0x1ac] sm:$0xf0]  ;;  %v4194_v29 = vor.u32 %v6073_v24, %v4193_v23  ;;  %1285 = vmatpush.bf16.msra.mxu2 %v4466_v21 }
   0xb   :  { %v4449_v28 = vld [vmem:[%s9642_s2 + $0x2a0] sm:$0xf]  ;;  %v6137_v30 = vld [vmem:[%s9642_s2 + $0x2ac] sm:$0xf0]  ;;  %v4322_v33 = vor.u32 %v6105_v27, %v4321_v26  ;;  %1298 = vmatpush.bf16.msra.mxu3 %v4594_v25 }
   0xc   :  { %v4577_v31 = vld [vmem:[%s9642_s2 + $0x3a0] sm:$0xf]  ;;  %v6169_v32 = vld [vmem:[%s9642_s2 + $0x3ac] sm:$0xf0]  ;;  %v4450_v34 = vor.u32 %v6137_v30, %v4449_v28  ;;  %1260 = vmatpush.bf16.msra.mxu0 %v4194_v29 }
   0xd   :  { %v4177_v35 = vld [vmem:[%s9642_s2 + $0x80] sm:$0xf]  ;;  %v6069_v36 = vld [vmem:[%s9642_s2 + $0x8c] sm:$0xf0]  ;;  %v4578_v38 = vor.u32 %v6169_v32, %v4577_v31  ;;  %1273 = vmatpush.bf16.msra.mxu1 %v4322_v33 }
   0xe   :  { %v4305_v37 = vld [vmem:[%s9642_s2 + $0x180] sm:$0xf]  ;;  %v6101_v39 = vld [vmem:[%s9642_s2 + $0x18c] sm:$0xf0]  ;;  %v4178_v44 = vor.u32 %v6069_v36, %v4177_v35  ;;  %1286 = vmatpush.bf16.msra.mxu2 %v4450_v34  ;;  %v6079_v34 = vld [vmem:[%s9642_s2 + $0xe4] sm:$0xf] }
   0xf   :  { %v4433_v40 = vld [vmem:[%s9642_s2 + $0x280] sm:$0xf]  ;;  %v6133_v41 = vld [vmem:[%s9642_s2 + $0x28c] sm:$0xf0]  ;;  %v4306_v45 = vor.u32 %v6101_v39, %v4305_v37  ;;  %1299 = vmatpush.bf16.msra.mxu3 %v4578_v38  ;;  %v4227_v35 = vld [vmem:[%s9642_s2 + $0xf0] sm:$0xf0] }
  0x10   :  { %v4561_v42 = vld [vmem:[%s9642_s2 + $0x380] sm:$0xf]  ;;  %v6165_v43 = vld [vmem:[%s9642_s2 + $0x38c] sm:$0xf0]  ;;  %v4434_v46 = vor.u32 %v6133_v41, %v4433_v40  ;;  %1261 = vmatpush.bf16.msra.mxu0 %v4178_v44  ;;  %v6111_v40 = vld [vmem:[%s9642_s2 + $0x1e4] sm:$0xf] }
  0x11   :  { %v4161_v47 = vld [vmem:[%s9642_s2 + $0x60] sm:$0xf]  ;;  %v6065_v48 = vld [vmem:[%s9642_s2 + $0x6c] sm:$0xf0]  ;;  %v4562_v50 = vor.u32 %v6165_v43, %v4561_v42  ;;  %1274 = vmatpush.bf16.msra.mxu1 %v4306_v45  ;;  %v4355_v41 = vld [vmem:[%s9642_s2 + $0x1f0] sm:$0xf0] }
  0x12   :  { %v4289_v49 = vld [vmem:[%s9642_s2 + $0x160] sm:$0xf]  ;;  %v6097_v51 = vld [vmem:[%s9642_s2 + $0x16c] sm:$0xf0]  ;;  %v4162_v56 = vor.u32 %v6065_v48, %v4161_v47  ;;  %1287 = vmatpush.bf16.msra.mxu2 %v4434_v46  ;;  %v4230_v48 = vor.u32 %v6079_v34, %v4227_v35 }
  0x13   :  { %v4417_v52 = vld [vmem:[%s9642_s2 + $0x260] sm:$0xf]  ;;  %v6129_v53 = vld [vmem:[%s9642_s2 + $0x26c] sm:$0xf0]  ;;  %v4290_v57 = vor.u32 %v6097_v51, %v4289_v49  ;;  %1300 = vmatpush.bf16.msra.mxu3 %v4562_v50  ;;  %v6075_v50 = vld [vmem:[%s9642_s2 + $0xc4] sm:$0xf] }
  0x14   :  { %v4545_v54 = vld [vmem:[%s9642_s2 + $0x360] sm:$0xf]  ;;  %v6161_v55 = vld [vmem:[%s9642_s2 + $0x36c] sm:$0xf0]  ;;  %v4418_v58 = vor.u32 %v6129_v53, %v4417_v52  ;;  %1262 = vmatpush.bf16.msra.mxu0 %v4162_v56  ;;  %v4211_v51 = vld [vmem:[%s9642_s2 + $0xd0] sm:$0xf0] }
  0x15   :  { %v4145_v59 = vld [vmem:[%s9642_s2 + $0x40] sm:$0xf]  ;;  %v6061_v60 = vld [vmem:[%s9642_s2 + $0x4c] sm:$0xf0]  ;;  %v4546_v62 = vor.u32 %v6161_v55, %v4545_v54  ;;  %1275 = vmatpush.bf16.msra.mxu1 %v4290_v57 }
  0x16   :  { %v4273_v61 = vld [vmem:[%s9642_s2 + $0x140] sm:$0xf]  ;;  %v6093_v63 = vld [vmem:[%s9642_s2 + $0x14c] sm:$0xf0]  ;;  %v4146_v4 = vor.u32 %v6061_v60, %v4145_v59  ;;  %1288 = vmatpush.bf16.msra.mxu2 %v4418_v58  ;;  %v4358_v59 = vor.u32 %v6111_v40, %v4355_v41 }
  0x17   :  { %v4401_v0 = vld [vmem:[%s9642_s2 + $0x240] sm:$0xf]  ;;  %v6125_v1 = vld [vmem:[%s9642_s2 + $0x24c] sm:$0xf0]  ;;  %v4274_v6 = vor.u32 %v6093_v63, %v4273_v61  ;;  %1301 = vmatpush.bf16.msra.mxu3 %v4546_v62  ;;  %v6107_v61 = vld [vmem:[%s9642_s2 + $0x1c4] sm:$0xf] }
  0x18   :  { %v4529_v2 = vld [vmem:[%s9642_s2 + $0x340] sm:$0xf]  ;;  %v6157_v3 = vld [vmem:[%s9642_s2 + $0x34c] sm:$0xf0]  ;;  %v4402_v7 = vor.u32 %v6125_v1, %v4401_v0  ;;  %1263 = vmatpush.bf16.msra.mxu0 %v4146_v4  ;;  %v4339_v62 = vld [vmem:[%s9642_s2 + $0x1d0] sm:$0xf0]  ;;  %v4214_v1 = vor.u32 %v6075_v50, %v4211_v51 }
  0x19   :  { %v4129_v5 = vld [vmem:[%s9642_s2 + $0x20] sm:$0xf]  ;;  %v6057_v8 = vld [vmem:[%s9642_s2 + $0x2c] sm:$0xf0]  ;;  %v4530_v11 = vor.u32 %v6157_v3, %v4529_v2  ;;  %1276 = vmatpush.bf16.msra.mxu1 %v4274_v6  ;;  %v6071_v6 = vld [vmem:[%s9642_s2 + $0xa4] sm:$0xf] }
  0x1a   :  { %v4257_v9 = vld [vmem:[%s9642_s2 + $0x120] sm:$0xf]  ;;  %v6089_v10 = vld [vmem:[%s9642_s2 + $0x12c] sm:$0xf0]  ;;  %v4130_v18 = vor.u32 %v6057_v8, %v4129_v5  ;;  %1289 = vmatpush.bf16.msra.mxu2 %v4402_v7  ;;  %v4195_v7 = vld [vmem:[%s9642_s2 + $0xb0] sm:$0xf0] }
  0x1b   :  { %v4385_v12 = vld [vmem:[%s9642_s2 + $0x220] sm:$0xf]  ;;  %v6121_v13 = vld [vmem:[%s9642_s2 + $0x22c] sm:$0xf0]  ;;  %v4258_v22 = vor.u32 %v6089_v10, %v4257_v9  ;;  %1302 = vmatpush.bf16.msra.mxu3 %v4530_v11  ;;  %v4342_v9 = vor.u32 %v6107_v61, %v4339_v62  ;;  %v6103_v11 = vld [vmem:[%s9642_s2 + $0x1a4] sm:$0xf] }
  0x1c   :  { %v4513_v14 = vld [vmem:[%s9642_s2 + $0x320] sm:$0xf]  ;;  %v6153_v15 = vld [vmem:[%s9642_s2 + $0x32c] sm:$0xf0]  ;;  %v4386_v23 = vor.u32 %v6121_v13, %v4385_v12  ;;  %1264 = vmatpush.bf16.msra.mxu0 %v4130_v18  ;;  %v4323_v12 = vld [vmem:[%s9642_s2 + $0x1b0] sm:$0xf0] }
  0x1d   :  { %v4113_v16 = vld [vmem:[%s9642_s2] sm:$0xf]  ;;  %v6053_v17 = vld [vmem:[%s9642_s2 + $0xc] sm:$0xf0]  ;;  %v4514_v26 = vor.u32 %v6153_v15, %v4513_v14  ;;  %1277 = vmatpush.bf16.msra.mxu1 %v4258_v22  ;;  %v4198_v14 = vor.u32 %v6071_v6, %v4195_v7  ;;  %v4326_v22 = vor.u32 %v6103_v11, %v4323_v12  ;;  %v6087_v62 = vld [vmem:[%s9642_s2 + $0x124] sm:$0xf] }
  0x1e   :  { %v4241_v19 = vld [vmem:[%s9642_s2 + $0x100] sm:$0xf]  ;;  %v6085_v20 = vld [vmem:[%s9642_s2 + $0x10c] sm:$0xf0]  ;;  %v4114_v33 = vor.u32 %v6053_v17, %v4113_v16  ;;  %1290 = vmatpush.bf16.msra.mxu2 %v4386_v23  ;;  %v4115_v11 = vld [vmem:[%s9642_s2 + $0x10] sm:$0xf0] }
  0x1f   :  { %v40_v21 = vld [vmem:[%s9640_s0] sm:$0xff]  ;;  %v6117_v25 = vld [vmem:[%s9642_s2 + $0x20c] sm:$0xf0]  ;;  %v4242_v37 = vor.u32 %v6085_v20, %v4241_v19  ;;  %1303 = vmatpush.bf16.msra.mxu3 %v4514_v26  ;;  %v4179_v20 = vld [vmem:[%s9642_s2 + $0x90] sm:$0xf0] }
  0x20   :  { %v4369_v24 = vld [vmem:[%s9642_s2 + $0x200] sm:$0xf]  ;;  %44 = vst [vmem:[#allocation1] ss:$4 sm:$0xff] %v40_v21  ;;  %v6149_v28 = vld [vmem:[%s9642_s2 + $0x30c] sm:$0xf0]  ;;  %1265 = vmatpush.bf16.msra.mxu0 %v4114_v33 }
  0x21   :  { %v4497_v27 = vld [vmem:[%s9642_s2 + $0x300] sm:$0xf]  ;;  %v6209_v30 = vld [vmem:[%s9642_s2 + $0x4ec] sm:$0xf0]  ;;  %v4370_v38 = vor.u32 %v6117_v25, %v4369_v24  ;;  %1278 = vmatpush.bf16.msra.mxu1 %v4242_v37  ;;  %v6067_v19 = vld [vmem:[%s9642_s2 + $0x84] sm:$0xf] }
  0x22   :  { %v4737_v29 = vld [vmem:[%s9642_s2 + $0x4e0] sm:$0xf]  ;;  %v6241_v32 = vld [vmem:[%s9642_s2 + $0x5ec] sm:$0xf0]  ;;  %v4498_v42 = vor.u32 %v6149_v28, %v4497_v27  ;;  %v6099_v21 = vld [vmem:[%s9642_s2 + $0x184] sm:$0xf]  ;;  %v4182_v28 = vor.u32 %v6067_v19, %v4179_v20 }
  0x23   :  { %v4865_v31 = vld [vmem:[%s9642_s2 + $0x5e0] sm:$0xf]  ;;  %v6245_v39 = vld [vmem:[%s9642_s2 + $0x60c] sm:$0xf0]  ;;  %v4738_v43 = vor.u32 %v6209_v30, %v4737_v29  ;;  %1291 = vmatpush.bf16.msra.mxu2 %v4370_v38  ;;  %v4307_v24 = vld [vmem:[%s9642_s2 + $0x190] sm:$0xf0] }
  0x24   :  { %v4881_v36 = vld [vmem:[%s9642_s2 + $0x600] sm:$0xf]  ;;  %v6205_v45 = vld [vmem:[%s9642_s2 + $0x4cc] sm:$0xf0]  ;;  %v4866_v47 = vor.u32 %v6241_v32, %v4865_v31  ;;  %1304 = vmatpush.bf16.msra.mxu3 %v4498_v42  ;;  %v41_v31 = vld [vmem:[%s9640_s0 + $0x8] sm:$0x3f]  ;;  %v4310_v34 = vor.u32 %v6099_v21, %v4307_v24 }
  0x25   :  { %v4721_v44 = vld [vmem:[%s9642_s2 + $0x4c0] sm:$0xf]  ;;  %v6237_v49 = vld [vmem:[%s9642_s2 + $0x5cc] sm:$0xf0]  ;;  %v4882_v55 = vor.u32 %v6245_v39, %v4881_v36  ;;  %1310 = vmatpush.bf16.msrb.mxu0 %v4738_v43  ;;  %v6063_v32 = vld [vmem:[%s9642_s2 + $0x64] sm:$0xf] }
  0x26   :  { %v4849_v46 = vld [vmem:[%s9642_s2 + $0x5c0] sm:$0xf]  ;;  %v4722_v60 = vor.u32 %v6205_v45, %v4721_v44  ;;  %1323 = vmatpush.bf16.msrb.mxu1 %v4866_v47  ;;  %v6201_v3 = vld [vmem:[%s9642_s2 + $0x4ac] sm:$0xf0]  ;;  %v4163_v33 = vld [vmem:[%s9642_s2 + $0x70] sm:$0xf0] }
  0x27   :  { %v49_v52 = vld.sshfl [vmem:[#allocation1 + $0x10] sm:$0xff pattern:$0x73625140]  ;;  %v47_v53 = vld.sshfl [vmem:[#allocation1] sm:$0xff pattern:$0x73625140]  ;;  %v4850_v0 = vor.u32 %v6237_v49, %v4849_v46  ;;  %1343 = vmatpush.bf16.msrb.mxu2 %v4882_v55  ;;  %v4166_v39 = vor.u32 %v6063_v32, %v4163_v33 }
  0x28   :  { %v6913_v54 = vpack.c.bf16 %v49_v52, %v49_v52  ;;  %v6915_v56 = vpack.c.bf16 %v47_v53, %v47_v53  ;;  %v50_v57 = vld.sshfl [vmem:[#allocation1 + $0x18] sm:$0xff pattern:$0x73625140]  ;;  %v48_v58 = vld.sshfl [vmem:[#allocation1 + $0x8] sm:$0xff pattern:$0x73625140]  ;;  %1349 = vmatpush.bf16.msrb.mxu3 %v4230_v48 }
  0x29   :  { %v6923_v63 = vpack.c.bf16 %v50_v57, %v50_v57  ;;  %v4705_v2 = vld [vmem:[%s9642_s2 + $0x4a0] sm:$0xf]  ;;  %v6233_v5 = vld [vmem:[%s9642_s2 + $0x5ac] sm:$0xf0]  ;;  %v6945_v8 = vpack.c.bf16 %v48_v58, %v48_v58  ;;  %1311 = vmatpush.bf16.msrb.mxu0 %v4722_v60  ;;  %46 = vst [vmem:[#allocation1 + $0x20] ss:$4 sm:$0xff] %v41_v31 }
  0x2a   :  { %v4833_v4 = vld [vmem:[%s9642_s2 + $0x5a0] sm:$0xf]  ;;  %1292 = vmatmul.bf16.vlgmr.msra.gmra.mxu2 %v6913_v54  ;;  %1266 = vmatmul.bf16.vlgmr.msra.gmra.mxu0 %v6915_v56  ;;  %v4706_v10 = vor.u32 %v6201_v3, %v4705_v2  ;;  %v6197_v16 = vld [vmem:[%s9642_s2 + $0x48c] sm:$0xf0]  ;;  %v6095_v36 = vld [vmem:[%s9642_s2 + $0x164] sm:$0xf] }
  0x2b   :  { %1305 = vmatmul.bf16.vlgmr.msra.gmra.mxu3 %v6923_v63  ;;  %1362 = vmatpush.bf16.msra.mxu2 %v4358_v59  ;;  %v4834_v13 = vor.u32 %v6233_v5, %v4833_v4  ;;  %v4689_v15 = vld [vmem:[%s9642_s2 + $0x480] sm:$0xf]  ;;  %v6229_v18 = vld [vmem:[%s9642_s2 + $0x58c] sm:$0xf0]  ;;  %v4291_v37 = vld [vmem:[%s9642_s2 + $0x170] sm:$0xf0] }
  0x2c   :  { %1324 = vmatpush.bf16.msrb.mxu1 %v4850_v0  ;;  %1350 = vmatpush.bf16.msrb.mxu3 %v4214_v1  ;;  %v4817_v17 = vld [vmem:[%s9642_s2 + $0x580] sm:$0xf]  ;;  %v4690_v23 = vor.u32 %v6197_v16, %v4689_v15  ;;  %v6193_v26 = vld [vmem:[%s9642_s2 + $0x46c] sm:$0xf0]  ;;  %v6059_v44 = vld [vmem:[%s9642_s2 + $0x44] sm:$0xf]  ;;  %v4294_v47 = vor.u32 %v6095_v36, %v4291_v37 }
  0x2d   :  { %1279 = vmatmul.bf16.vlgmr.msra.gmra.mxu1 %v6945_v8  ;;  %1312 = vmatpush.bf16.msrb.mxu0 %v4706_v10  ;;  %v4673_v25 = vld [vmem:[%s9642_s2 + $0x460] sm:$0xf]  ;;  %v4818_v27 = vor.u32 %v6229_v18, %v4817_v17  ;;  %v6225_v30 = vld [vmem:[%s9642_s2 + $0x56c] sm:$0xf0]  ;;  %v4147_v45 = vld [vmem:[%s9642_s2 + $0x50] sm:$0xf0] }
  0x2e   :  { %v4801_v29 = vld [vmem:[%s9642_s2 + $0x560] sm:$0xf]  ;;  %v4674_v35 = vor.u32 %v6193_v26, %v4673_v25  ;;  %v6189_v41 = vld [vmem:[%s9642_s2 + $0x44c] sm:$0xf0]  ;;  %v6091_v46 = vld [vmem:[%s9642_s2 + $0x144] sm:$0xf]  ;;  %v4150_v53 = vor.u32 %v6059_v44, %v4147_v45 }
  0x2f   :  { %1363 = vmatpush.bf16.msra.mxu2 %v4342_v9  ;;  %v4802_v38 = vor.u32 %v6225_v30, %v4801_v29  ;;  %v4657_v40 = vld [vmem:[%s9642_s2 + $0x440] sm:$0xf]  ;;  %v6221_v43 = vld [vmem:[%s9642_s2 + $0x54c] sm:$0xf0]  ;;  %v4275_v49 = vld [vmem:[%s9642_s2 + $0x150] sm:$0xf0] }
  0x30   :  { %1325 = vmatpush.bf16.msrb.mxu1 %v4834_v13  ;;  %1351 = vmatpush.bf16.msrb.mxu3 %v4198_v14  ;;  %v4785_v42 = vld [vmem:[%s9642_s2 + $0x540] sm:$0xf]  ;;  %v4658_v48 = vor.u32 %v6189_v41, %v4657_v40  ;;  %v6185_v51 = vld [vmem:[%s9642_s2 + $0x42c] sm:$0xf0]  ;;  %v6055_v59 = vld [vmem:[%s9642_s2 + $0x24] sm:$0xf]  ;;  %v4278_v1 = vor.u32 %v6091_v46, %v4275_v49 }
  0x31   :  { %1313 = vmatpush.bf16.msrb.mxu0 %v4690_v23  ;;  %v4641_v50 = vld [vmem:[%s9642_s2 + $0x420] sm:$0xf]  ;;  %v4786_v52 = vor.u32 %v6221_v43, %v4785_v42  ;;  %v53_v57 = vld.sshfl [vmem:[#allocation1 + $0x30] sm:$0xff pattern:$0x73625140] }
  0x32   :  { %v4769_v55 = vld [vmem:[%s9642_s2 + $0x520] sm:$0xf]  ;;  %v6217_v58 = vld [vmem:[%s9642_s2 + $0x52c] sm:$0xf0]  ;;  %v4131_v60 = vld [vmem:[%s9642_s2 + $0x30] sm:$0xf0]  ;;  %v7048_v61 = vpack.c.bf16 %v53_v57, %v53_v57  ;;  %v4642_v2 = vor.u32 %v6185_v51, %v4641_v50 }
  0x33   :  { %1364 = vmatpush.bf16.msra.mxu2 %v4326_v22  ;;  %v4259_v0 = vld [vmem:[%s9642_s2 + $0x130] sm:$0xf0]  ;;  %v4625_v3 = vld [vmem:[%s9642_s2 + $0x400] sm:$0xf]  ;;  %v6181_v4 = vld [vmem:[%s9642_s2 + $0x40c] sm:$0xf0]  ;;  %v4770_v6 = vor.u32 %v6217_v58, %v4769_v55  ;;  %v4134_v7 = vor.u32 %v6055_v59, %v4131_v60 }
  0x34   :  { %1326 = vmatpush.bf16.msrb.mxu1 %v4818_v27  ;;  %1352 = vmatpush.bf16.msrb.mxu3 %v4182_v28  ;;  %v4753_v5 = vld [vmem:[%s9642_s2 + $0x500] sm:$0xf]  ;;  %v6213_v9 = vld [vmem:[%s9642_s2 + $0x50c] sm:$0xf0]  ;;  %v6051_v10 = vld [vmem:[%s9642_s2 + $0x4] sm:$0xf]  ;;  %v4262_v18 = vor.u32 %v6087_v62, %v4259_v0  ;;  %v4626_v19 = vor.u32 %v6181_v4, %v4625_v3 }
  0x35   :  { %1314 = vmatpush.bf16.msrb.mxu0 %v4674_v35  ;;  %v6143_v12 = vld [vmem:[%s9642_s2 + $0x2e4] sm:$0xf]  ;;  %v4483_v13 = vld [vmem:[%s9642_s2 + $0x2f0] sm:$0xf0]  ;;  %v4754_v22 = vor.u32 %v6213_v9, %v4753_v5  ;;  %v4118_v23 = vor.u32 %v6051_v10, %v4115_v11 }
  0x36   :  { %v6175_v14 = vld [vmem:[%s9642_s2 + $0x3e4] sm:$0xf]  ;;  %v4611_v15 = vld [vmem:[%s9642_s2 + $0x3f0] sm:$0xf0]  ;;  %v4486_v26 = vor.u32 %v6143_v12, %v4483_v13 }
  0x37   :  { %1365 = vmatpush.bf16.msra.mxu2 %v4310_v34  ;;  %v6207_v16 = vld [vmem:[%s9642_s2 + $0x4e4] sm:$0xf]  ;;  %v4739_v17 = vld [vmem:[%s9642_s2 + $0x4f0] sm:$0xf0]  ;;  %v4614_v27 = vor.u32 %v6175_v14, %v4611_v15 }
  0x38   :  { %1327 = vmatpush.bf16.msrb.mxu1 %v4802_v38  ;;  %1353 = vmatpush.bf16.msrb.mxu3 %v4166_v39  ;;  %v51_v20 = vld.sshfl [vmem:[#allocation1 + $0x20] sm:$0xff pattern:$0x73625140]  ;;  %v4243_v24 = vld [vmem:[%s9642_s2 + $0x110] sm:$0xf0]  ;;  %v4742_v31 = vor.u32 %v6207_v16, %v4739_v17 }
  0x39   :  { %1315 = vmatpush.bf16.msrb.mxu0 %v4658_v48  ;;  %v6083_v21 = vld [vmem:[%s9642_s2 + $0x104] sm:$0xf]  ;;  %v52_v25 = vld.sshfl [vmem:[#allocation1 + $0x28] sm:$0xff pattern:$0x73625140]  ;;  %v7109_v32 = vpack.c.bf16 %v51_v20, %v51_v20 }
  0x3a   :  { %4895 = vmatmul.msk.bf16.vlgmr.msrb.gmra.mxu2 %vm1254_vm0, %v7048_v61  ;;  %v6239_v28 = vld [vmem:[%s9642_s2 + $0x5e4] sm:$0xf]  ;;  %v4867_v29 = vld [vmem:[%s9642_s2 + $0x5f0] sm:$0xf0]  ;;  %v4246_v36 = vor.u32 %v6083_v21, %v4243_v24  ;;  %v7120_v37 = vpack.c.bf16 %v52_v25, %v52_v25 }
  0x3b   :  { %1366 = vmatpush.bf16.msra.mxu2 %v4294_v47  ;;  %v6139_v30 = vld [vmem:[%s9642_s2 + $0x2c4] sm:$0xf]  ;;  %v4467_v33 = vld [vmem:[%s9642_s2 + $0x2d0] sm:$0xf0]  ;;  %v4870_v40 = vor.u32 %v6239_v28, %v4867_v29 }
  0x3c   :  { %1328 = vmatpush.bf16.msrb.mxu1 %v4786_v52  ;;  %1354 = vmatpush.bf16.msrb.mxu3 %v4150_v53  ;;  %v6171_v34 = vld [vmem:[%s9642_s2 + $0x3c4] sm:$0xf]  ;;  %v4595_v35 = vld [vmem:[%s9642_s2 + $0x3d0] sm:$0xf0]  ;;  %v4470_v41 = vor.u32 %v6139_v30, %v4467_v33 }
  0x3d   :  { %1316 = vmatpush.bf16.msrb.mxu0 %v4642_v2  ;;  %v6203_v38 = vld [vmem:[%s9642_s2 + $0x4c4] sm:$0xf]  ;;  %v4723_v39 = vld [vmem:[%s9642_s2 + $0x4d0] sm:$0xf0]  ;;  %v4598_v42 = vor.u32 %v6171_v34, %v4595_v35 }
  0x3e   :  { %v6235_v43 = vld [vmem:[%s9642_s2 + $0x5c4] sm:$0xf]  ;;  %v4851_v44 = vld [vmem:[%s9642_s2 + $0x5d0] sm:$0xf0]  ;;  %v4726_v46 = vor.u32 %v6203_v38, %v4723_v39 }
  0x3f   :  { %1367 = vmatpush.bf16.msra.mxu2 %v4278_v1  ;;  %v6135_v45 = vld [vmem:[%s9642_s2 + $0x2a4] sm:$0xf]  ;;  %v4451_v47 = vld [vmem:[%s9642_s2 + $0x2b0] sm:$0xf0]  ;;  %v4854_v52 = vor.u32 %v6235_v43, %v4851_v44 }
  0x40   :  { %1329 = vmatpush.bf16.msrb.mxu1 %v4770_v6  ;;  %1355 = vmatpush.bf16.msrb.mxu3 %v4134_v7  ;;  %v6167_v48 = vld [vmem:[%s9642_s2 + $0x3a4] sm:$0xf]  ;;  %v4579_v49 = vld [vmem:[%s9642_s2 + $0x3b0] sm:$0xf0]  ;;  %v4454_v53 = vor.u32 %v6135_v45, %v4451_v47 }
  0x41   :  { %1317 = vmatpush.bf16.msrb.mxu0 %v4626_v19  ;;  %v6199_v50 = vld [vmem:[%s9642_s2 + $0x4a4] sm:$0xf]  ;;  %v4707_v51 = vld [vmem:[%s9642_s2 + $0x4b0] sm:$0xf0]  ;;  %v4582_v55 = vor.u32 %v6167_v48, %v4579_v49 }
  0x42   :  { %v6231_v57 = vld [vmem:[%s9642_s2 + $0x5a4] sm:$0xf]  ;;  %v4835_v58 = vld [vmem:[%s9642_s2 + $0x5b0] sm:$0xf0]  ;;  %v4710_v60 = vor.u32 %v6199_v50, %v4707_v51 }
  0x43   :  { %1368 = vmatpush.bf16.msra.mxu2 %v4262_v18  ;;  %v6131_v59 = vld [vmem:[%s9642_s2 + $0x284] sm:$0xf]  ;;  %v4435_v62 = vld [vmem:[%s9642_s2 + $0x290] sm:$0xf0]  ;;  %v4838_v4 = vor.u32 %v6231_v57, %v4835_v58  ;;  %v4233_v57 = vld [vmem:[%s9642_s2 + $0xe8] sm:$0xf] }
  0x44   :  { %1330 = vmatpush.bf16.msrb.mxu1 %v4754_v22  ;;  %1356 = vmatpush.bf16.msrb.mxu3 %v4118_v23  ;;  %v6163_v0 = vld [vmem:[%s9642_s2 + $0x384] sm:$0xf]  ;;  %v4563_v1 = vld [vmem:[%s9642_s2 + $0x390] sm:$0xf0]  ;;  %v4438_v5 = vor.u32 %v6131_v59, %v4435_v62  ;;  %v6082_v58 = vld [vmem:[%s9642_s2 + $0xf4] sm:$0xf0] }
  0x45   :  { %1375 = vmatpush.bf16.msra.mxu0 %v4486_v26  ;;  %v6195_v2 = vld [vmem:[%s9642_s2 + $0x484] sm:$0xf]  ;;  %v4691_v3 = vld [vmem:[%s9642_s2 + $0x490] sm:$0xf0]  ;;  %v4566_v6 = vor.u32 %v6163_v0, %v4563_v1  ;;  %v4489_v0 = vld [vmem:[%s9642_s2 + $0x2e8] sm:$0xf] }
  0x46   :  { %1318 = vmatmul.bf16.vlgmr.msrb.gmra.mxu0 %v7109_v32  ;;  %v6227_v7 = vld [vmem:[%s9642_s2 + $0x584] sm:$0xf]  ;;  %v4819_v9 = vld [vmem:[%s9642_s2 + $0x590] sm:$0xf0]  ;;  %v4694_v11 = vor.u32 %v6195_v2, %v4691_v3  ;;  %v6146_v1 = vld [vmem:[%s9642_s2 + $0x2f4] sm:$0xf0] }
  0x47   :  { %1369 = vmatpush.bf16.msra.mxu2 %v4246_v36  ;;  %1331 = vmatmul.bf16.vlgmr.msrb.gmra.mxu1 %v7120_v37  ;;  %v6127_v10 = vld [vmem:[%s9642_s2 + $0x264] sm:$0xf]  ;;  %v4419_v12 = vld [vmem:[%s9642_s2 + $0x270] sm:$0xf0]  ;;  %v4822_v17 = vor.u32 %v6227_v7, %v4819_v9  ;;  %v4234_v7 = vor.u32 %v6082_v58, %v4233_v57  ;;  %v4617_v9 = vld [vmem:[%s9642_s2 + $0x3e8] sm:$0xf] }
  0x48   :  { %1388 = vmatpush.bf16.msra.mxu1 %v4614_v27  ;;  %1401 = vmatpush.bf16.msra.mxu3 %v4742_v31  ;;  %v6159_v13 = vld [vmem:[%s9642_s2 + $0x364] sm:$0xf]  ;;  %v4547_v14 = vld [vmem:[%s9642_s2 + $0x370] sm:$0xf0]  ;;  %v4422_v18 = vor.u32 %v6127_v10, %v4419_v12  ;;  %v6178_v10 = vld [vmem:[%s9642_s2 + $0x3f4] sm:$0xf0] }
  0x49   :  { %1357 = vmatmul.bf16.vlgmr.msrb.gmra.mxu3 %v6915_v56  ;;  %1376 = vmatpush.bf16.msra.mxu0 %v4470_v41  ;;  %v6191_v15 = vld [vmem:[%s9642_s2 + $0x464] sm:$0xf]  ;;  %v4675_v16 = vld [vmem:[%s9642_s2 + $0x470] sm:$0xf0]  ;;  %v4550_v19 = vor.u32 %v6159_v13, %v4547_v14  ;;  %v4361_v12 = vld [vmem:[%s9642_s2 + $0x1e8] sm:$0xf]  ;;  %v4490_v14 = vor.u32 %v6146_v1, %v4489_v0 }
  0x4a   :  { %1370 = vmatmul.bf16.vlgmr.msra.gmra.mxu2 %v6945_v8  ;;  %v6223_v20 = vld [vmem:[%s9642_s2 + $0x564] sm:$0xf]  ;;  %v4803_v21 = vld [vmem:[%s9642_s2 + $0x570] sm:$0xf0]  ;;  %v4678_v23 = vor.u32 %v6191_v15, %v4675_v16  ;;  %v6114_v13 = vld [vmem:[%s9642_s2 + $0x1f4] sm:$0xf0] }
  0x4b   :  { %1414 = vmatpush.bf16.msrb.mxu2 %v4870_v40  ;;  %v6123_v22 = vld [vmem:[%s9642_s2 + $0x244] sm:$0xf]  ;;  %v4403_v24 = vld [vmem:[%s9642_s2 + $0x250] sm:$0xf0]  ;;  %v4806_v29 = vor.u32 %v6223_v20, %v4803_v21  ;;  %v4217_v16 = vld [vmem:[%s9642_s2 + $0xc8] sm:$0xf]  ;;  %v4362_v21 = vor.u32 %v6114_v13, %v4361_v12 }
  0x4c   :  { %1389 = vmatpush.bf16.msra.mxu1 %v4598_v42  ;;  %1402 = vmatpush.bf16.msra.mxu3 %v4726_v46  ;;  %v6155_v25 = vld [vmem:[%s9642_s2 + $0x344] sm:$0xf]  ;;  %v4531_v26 = vld [vmem:[%s9642_s2 + $0x350] sm:$0xf0]  ;;  %v4406_v30 = vor.u32 %v6123_v22, %v4403_v24  ;;  %v6142_v20 = vld [vmem:[%s9642_s2 + $0x2d4] sm:$0xf0] }
  0x4d   :  { %1377 = vmatpush.bf16.msra.mxu0 %v4454_v53  ;;  %v6187_v27 = vld [vmem:[%s9642_s2 + $0x444] sm:$0xf]  ;;  %v4659_v28 = vld [vmem:[%s9642_s2 + $0x450] sm:$0xf0]  ;;  %v4534_v31 = vor.u32 %v6155_v25, %v4531_v26  ;;  %v4601_v22 = vld [vmem:[%s9642_s2 + $0x3c8] sm:$0xf] }
  0x4e   :  { %v6219_v33 = vld [vmem:[%s9642_s2 + $0x544] sm:$0xf]  ;;  %v4787_v34 = vld [vmem:[%s9642_s2 + $0x550] sm:$0xf0]  ;;  %v4662_v36 = vor.u32 %v6187_v27, %v4659_v28  ;;  %v4345_v25 = vld [vmem:[%s9642_s2 + $0x1c8] sm:$0xf] }
  0x4f   :  { %1415 = vmatpush.bf16.msrb.mxu2 %v4854_v52  ;;  %v6119_v35 = vld [vmem:[%s9642_s2 + $0x224] sm:$0xf]  ;;  %v4387_v38 = vld [vmem:[%s9642_s2 + $0x230] sm:$0xf0]  ;;  %v4790_v43 = vor.u32 %v6219_v33, %v4787_v34  ;;  %v6110_v26 = vld [vmem:[%s9642_s2 + $0x1d4] sm:$0xf0] }
  0x50   :  { %1390 = vmatpush.bf16.msra.mxu1 %v4582_v55  ;;  %1403 = vmatpush.bf16.msra.mxu3 %v4710_v60  ;;  %v6151_v39 = vld [vmem:[%s9642_s2 + $0x324] sm:$0xf]  ;;  %v4515_v40 = vld [vmem:[%s9642_s2 + $0x330] sm:$0xf0]  ;;  %v4390_v46 = vor.u32 %v6119_v35, %v4387_v38  ;;  %v4201_v28 = vld [vmem:[%s9642_s2 + $0xa8] sm:$0xf]  ;;  %v4346_v34 = vor.u32 %v6110_v26, %v4345_v25 }
  0x51   :  { %1378 = vmatpush.bf16.msra.mxu0 %v4438_v5  ;;  %v6183_v41 = vld [vmem:[%s9642_s2 + $0x424] sm:$0xf]  ;;  %v4643_v42 = vld [vmem:[%s9642_s2 + $0x430] sm:$0xf0]  ;;  %v4518_v47 = vor.u32 %v6151_v39, %v4515_v40  ;;  %v6138_v33 = vld [vmem:[%s9642_s2 + $0x2b4] sm:$0xf0] }
  0x52   :  { %v6215_v44 = vld [vmem:[%s9642_s2 + $0x524] sm:$0xf]  ;;  %v4771_v45 = vld [vmem:[%s9642_s2 + $0x530] sm:$0xf0]  ;;  %v4646_v51 = vor.u32 %v6183_v41, %v4643_v42  ;;  %v4585_v35 = vld [vmem:[%s9642_s2 + $0x3a8] sm:$0xf] }
  0x53   :  { %1416 = vmatpush.bf16.msrb.mxu2 %v4838_v4  ;;  %v6115_v48 = vld [vmem:[%s9642_s2 + $0x204] sm:$0xf]  ;;  %v4371_v49 = vld [vmem:[%s9642_s2 + $0x210] sm:$0xf0]  ;;  %v4774_v60 = vor.u32 %v6215_v44, %v4771_v45  ;;  %v4329_v39 = vld [vmem:[%s9642_s2 + $0x1a8] sm:$0xf] }
  0x54   :  { %1391 = vmatpush.bf16.msra.mxu1 %v4566_v6  ;;  %1404 = vmatpush.bf16.msra.mxu3 %v4694_v11  ;;  %v6147_v50 = vld [vmem:[%s9642_s2 + $0x304] sm:$0xf]  ;;  %v4499_v52 = vld [vmem:[%s9642_s2 + $0x310] sm:$0xf0]  ;;  %v4374_v2 = vor.u32 %v6115_v48, %v4371_v49  ;;  %v6106_v40 = vld [vmem:[%s9642_s2 + $0x1b4] sm:$0xf0] }
  0x55   :  { %1379 = vmatpush.bf16.msra.mxu0 %v4422_v18  ;;  %v6179_v53 = vld [vmem:[%s9642_s2 + $0x404] sm:$0xf]  ;;  %v4627_v55 = vld [vmem:[%s9642_s2 + $0x410] sm:$0xf0]  ;;  %v4502_v3 = vor.u32 %v6147_v50, %v4499_v52  ;;  %v4618_v18 = vor.u32 %v6178_v10, %v4617_v9  ;;  %v4185_v42 = vld [vmem:[%s9642_s2 + $0x88] sm:$0xf] }
  0x56   :  { %v6243_v59 = vld [vmem:[%s9642_s2 + $0x604] sm:$0xf]  ;;  %v4883_v62 = vld [vmem:[%s9642_s2 + $0x610] sm:$0xf0]  ;;  %v4630_v6 = vor.u32 %v6179_v53, %v4627_v55  ;;  %v4441_v45 = vld [vmem:[%s9642_s2 + $0x288] sm:$0xf] }
  0x57   :  { %1417 = vmatpush.bf16.msrb.mxu2 %v4822_v17  ;;  %v6211_v4 = vld [vmem:[%s9642_s2 + $0x504] sm:$0xf]  ;;  %v4755_v5 = vld [vmem:[%s9642_s2 + $0x510] sm:$0xf0]  ;;  %v4886_v11 = vor.u32 %v6243_v59, %v4883_v62  ;;  %v6078_v17 = vld [vmem:[%s9642_s2 + $0xd4] sm:$0xf0] }
  0x58   :  { %1392 = vmatpush.bf16.msra.mxu1 %v4550_v19  ;;  %1405 = vmatpush.bf16.msra.mxu3 %v4678_v23  ;;  %v4758_v15 = vor.u32 %v6211_v4, %v4755_v5  ;;  %v4473_v19 = vld [vmem:[%s9642_s2 + $0x2c8] sm:$0xf]  ;;  %v6174_v23 = vld [vmem:[%s9642_s2 + $0x3d4] sm:$0xf0]  ;;  %v4218_v24 = vor.u32 %v6078_v17, %v4217_v16 }
  0x59   :  { %1380 = vmatpush.bf16.msra.mxu0 %v4406_v30  ;;  %v4474_v27 = vor.u32 %v6142_v20, %v4473_v19  ;;  %v4602_v30 = vor.u32 %v6174_v23, %v4601_v22  ;;  %v4569_v48 = vld [vmem:[%s9642_s2 + $0x388] sm:$0xf]  ;;  %v6166_v49 = vld [vmem:[%s9642_s2 + $0x394] sm:$0xf0] }
  0x5a   :  { %v6102_v52 = vld [vmem:[%s9642_s2 + $0x194] sm:$0xf0] }
  0x5b   :  { %1418 = vmatpush.bf16.msrb.mxu2 %v4806_v29  ;;  %v6074_v29 = vld [vmem:[%s9642_s2 + $0xb4] sm:$0xf0] }
  0x5c   :  { %1393 = vmatpush.bf16.msra.mxu1 %v4534_v31  ;;  %1406 = vmatpush.bf16.msra.mxu3 %v4662_v36  ;;  %v4457_v31 = vld [vmem:[%s9642_s2 + $0x2a8] sm:$0xf]  ;;  %v6170_v36 = vld [vmem:[%s9642_s2 + $0x3b4] sm:$0xf0]  ;;  %v4202_v38 = vor.u32 %v6074_v29, %v4201_v28 }
  0x5d   :  { %1381 = vmatpush.bf16.msra.mxu0 %v4390_v46  ;;  %v4458_v41 = vor.u32 %v6138_v33, %v4457_v31  ;;  %v4586_v44 = vor.u32 %v6170_v36, %v4585_v35  ;;  %v6134_v46 = vld [vmem:[%s9642_s2 + $0x294] sm:$0xf0] }
  0x5f   :  { %1419 = vmatpush.bf16.msrb.mxu2 %v4790_v43  ;;  %v6070_v43 = vld [vmem:[%s9642_s2 + $0x94] sm:$0xf0] }
  0x60   :  { %1394 = vmatpush.bf16.msra.mxu1 %v4518_v47  ;;  %1407 = vmatpush.bf16.msra.mxu3 %v4646_v51  ;;  %v4330_v47 = vor.u32 %v6106_v40, %v4329_v39  ;;  %v4186_v50 = vor.u32 %v6070_v43, %v4185_v42  ;;  %v4313_v51 = vld [vmem:[%s9642_s2 + $0x188] sm:$0xf] }
  0x61   :  { %1382 = vmatpush.bf16.msra.mxu0 %v4374_v2 }
  0x63   :  { %1420 = vmatpush.bf16.msrb.mxu2 %v4774_v60 }
  0x64   :  { %1395 = vmatpush.bf16.msra.mxu1 %v4502_v3  ;;  %1408 = vmatpush.bf16.msra.mxu3 %v4630_v6 }
  0x65   :  { %1466 = vmatpush.bf16.msrb.mxu0 %v4490_v14 }
  0x66   :  { %1383 = vmatmul.bf16.vlgmr.msra.gmra.mxu0 %v6913_v54 }
  0x67   :  { %1421 = vmatpush.bf16.msrb.mxu2 %v4758_v15  ;;  %1409 = vmatmul.bf16.vlgmr.msra.gmra.mxu3 %v7109_v32 }
  0x68   :  { %1440 = vmatpush.bf16.msrb.mxu1 %v4234_v7  ;;  %1434 = vmatpush.bf16.msrb.mxu3 %v4886_v11 }
  0x69   :  { %1396 = vmatmul.bf16.vlgmr.msra.gmra.mxu1 %v6923_v63  ;;  %1467 = vmatpush.bf16.msrb.mxu0 %v4474_v27 }
  0x6a   :  { %1422 = vmatmul.bf16.vlgmr.msrb.gmra.mxu2 %v7120_v37 }
  0x6b   :  { %1479 = vmatpush.bf16.msra.mxu2 %v4618_v18 }
  0x6c   :  { %1453 = vmatpush.bf16.msra.mxu3 %v4362_v21  ;;  %1441 = vmatpush.bf16.msrb.mxu1 %v4218_v24 }
  0x6f   :  { %1480 = vmatpush.bf16.msra.mxu2 %v4602_v30 }
  0x70   :  { %1454 = vmatpush.bf16.msra.mxu3 %v4346_v34  ;;  %1442 = vmatpush.bf16.msrb.mxu1 %v4202_v38 }
  0x71   :  { %18 = vsyncpa [#allocation5], 0  ;;  %1468 = vmatpush.bf16.msrb.mxu0 %v4458_v41  ;;  %v4442_v53 = vor.u32 %v6134_v46, %v4441_v45  ;;  %v4169_v55 = vld [vmem:[%s9642_s2 + $0x68] sm:$0xf]  ;;  %v6066_v57 = vld [vmem:[%s9642_s2 + $0x74] sm:$0xf0]  ;;  %v4570_v58 = vor.u32 %v6166_v49, %v4569_v48  ;;  %v4314_v62 = vor.u32 %v6102_v52, %v4313_v51 }
  0x72   :  { %v4425_v59 = vld [vmem:[%s9642_s2 + $0x268] sm:$0xf]  ;;  %v6130_v60 = vld [vmem:[%s9642_s2 + $0x274] sm:$0xf0]  ;;  %v4170_v2 = vor.u32 %v6066_v57, %v4169_v55  ;;  %v6080_v48 = vld [vmem:[%s9642_s2 + $0xec] sm:$0xf] }
  0x73   :  { %1481 = vmatpush.bf16.msra.mxu2 %v4586_v44  ;;  %v4553_v0 = vld [vmem:[%s9642_s2 + $0x368] sm:$0xf]  ;;  %v6162_v1 = vld [vmem:[%s9642_s2 + $0x374] sm:$0xf0]  ;;  %v4426_v5 = vor.u32 %v6130_v60, %v4425_v59  ;;  %v4235_v49 = vld [vmem:[%s9642_s2 + $0xf8] sm:$0xf0] }
  0x74   :  { %1455 = vmatpush.bf16.msra.mxu3 %v4330_v47  ;;  %1443 = vmatpush.bf16.msrb.mxu1 %v4186_v50  ;;  %v4297_v3 = vld [vmem:[%s9642_s2 + $0x168] sm:$0xf]  ;;  %v6098_v4 = vld [vmem:[%s9642_s2 + $0x174] sm:$0xf0]  ;;  %v4554_v9 = vor.u32 %v6162_v1, %v4553_v0  ;;  %v6112_v60 = vld [vmem:[%s9642_s2 + $0x1ec] sm:$0xf]  ;;  %v4238_v1 = vor.u32 %v6080_v48, %v4235_v49 }
  0x75   :  { %1469 = vmatpush.bf16.msrb.mxu0 %v4442_v53  ;;  %v4153_v6 = vld [vmem:[%s9642_s2 + $0x48] sm:$0xf]  ;;  %v6062_v7 = vld [vmem:[%s9642_s2 + $0x54] sm:$0xf0]  ;;  %v4298_v12 = vor.u32 %v6098_v4, %v4297_v3  ;;  %v6076_v3 = vld [vmem:[%s9642_s2 + $0xcc] sm:$0xf] }
  0x76   :  { %v4409_v10 = vld [vmem:[%s9642_s2 + $0x248] sm:$0xf]  ;;  %v6126_v11 = vld [vmem:[%s9642_s2 + $0x254] sm:$0xf0]  ;;  %v4154_v15 = vor.u32 %v6062_v7, %v4153_v6  ;;  %v4219_v4 = vld [vmem:[%s9642_s2 + $0xd8] sm:$0xf0] }
  0x77   :  { %1482 = vmatpush.bf16.msra.mxu2 %v4570_v58  ;;  %v4537_v13 = vld [vmem:[%s9642_s2 + $0x348] sm:$0xf]  ;;  %v6158_v14 = vld [vmem:[%s9642_s2 + $0x354] sm:$0xf0]  ;;  %v4410_v18 = vor.u32 %v6126_v11, %v4409_v10  ;;  %4896 = vmatmul.msk.bf16.vlgmr.msrb.gmra.mxu3 %vm1254_vm0, %v7048_v61  ;;  %s6607_s29 = smov 64   ;;  %s4097_s22 = sshll.u32 %s9651_s11, 4  ;;  %s4098_s22 = int_to_ptr.hbm [resolvable:$true] %s4097_s22 }
  0x78   :  { %1456 = vmatpush.bf16.msra.mxu3 %v4314_v62  ;;  %1444 = vmatpush.bf16.msrb.mxu1 %v4170_v2  ;;  %v4281_v16 = vld [vmem:[%s9642_s2 + $0x148] sm:$0xf]  ;;  %v6094_v17 = vld [vmem:[%s9642_s2 + $0x154] sm:$0xf0]  ;;  %v4538_v21 = vor.u32 %v6158_v14, %v4537_v13  ;;  %v4363_v62 = vld [vmem:[%s9642_s2 + $0x1f8] sm:$0xf0]  ;;  %v4222_v14 = vor.u32 %v6076_v3, %v4219_v4 }
  0x79   :  { %1470 = vmatpush.bf16.msrb.mxu0 %v4426_v5  ;;  %v4137_v19 = vld [vmem:[%s9642_s2 + $0x28] sm:$0xf]  ;;  %v6058_v20 = vld [vmem:[%s9642_s2 + $0x34] sm:$0xf0]  ;;  %v4282_v24 = vor.u32 %v6094_v17, %v4281_v16  ;;  %v4366_v6 = vor.u32 %v6112_v60, %v4363_v62  ;;  %v4347_v13 = vld [vmem:[%s9642_s2 + $0x1d8] sm:$0xf0] }
  0x7a   :  { %v4393_v22 = vld [vmem:[%s9642_s2 + $0x228] sm:$0xf]  ;;  %v6122_v23 = vld [vmem:[%s9642_s2 + $0x234] sm:$0xf0]  ;;  %v4138_v27 = vor.u32 %v6058_v20, %v4137_v19  ;;  %v6072_v16 = vld [vmem:[%s9642_s2 + $0xac] sm:$0xf] }
  0x7b   :  { %1483 = vmatpush.bf16.msra.mxu2 %v4554_v9  ;;  %v4521_v25 = vld [vmem:[%s9642_s2 + $0x328] sm:$0xf]  ;;  %v6154_v26 = vld [vmem:[%s9642_s2 + $0x334] sm:$0xf0]  ;;  %v4394_v31 = vor.u32 %v6122_v23, %v4393_v22  ;;  %v4203_v17 = vld [vmem:[%s9642_s2 + $0xb8] sm:$0xf0] }
  0x7c   :  { %1457 = vmatpush.bf16.msra.mxu3 %v4298_v12  ;;  %1445 = vmatpush.bf16.msrb.mxu1 %v4154_v15  ;;  %v4265_v28 = vld [vmem:[%s9642_s2 + $0x128] sm:$0xf]  ;;  %v6090_v29 = vld [vmem:[%s9642_s2 + $0x134] sm:$0xf0]  ;;  %v4522_v36 = vor.u32 %v6154_v26, %v4521_v25  ;;  %v6108_v12 = vld [vmem:[%s9642_s2 + $0x1cc] sm:$0xf]  ;;  %v4206_v26 = vor.u32 %v6072_v16, %v4203_v17 }
  0x7d   :  { %v4121_v30 = vld [vmem:[%s9642_s2 + $0x8] sm:$0xf]  ;;  %1471 = vmatpush.bf16.msrb.mxu0 %v4410_v18  ;;  %v6054_v33 = vld [vmem:[%s9642_s2 + $0x14] sm:$0xf0]  ;;  %v4266_v42 = vor.u32 %v6090_v29, %v4265_v28  ;;  %v4350_v19 = vor.u32 %v6108_v12, %v4347_v13  ;;  %v4331_v25 = vld [vmem:[%s9642_s2 + $0x1b8] sm:$0xf0] }
  0x7e   :  { %v4745_v34 = vld [vmem:[%s9642_s2 + $0x4e8] sm:$0xf]  ;;  %v6210_v35 = vld [vmem:[%s9642_s2 + $0x4f4] sm:$0xf0]  ;;  %v4122_v46 = vor.u32 %v6054_v33, %v4121_v30  ;;  %v6068_v28 = vld [vmem:[%s9642_s2 + $0x8c] sm:$0xf] }
  0x7f   :  { %1484 = vmatpush.bf16.msra.mxu2 %v4538_v21  ;;  %v4249_v38 = vld [vmem:[%s9642_s2 + $0x108] sm:$0xf]  ;;  %v6118_v40 = vld [vmem:[%s9642_s2 + $0x214] sm:$0xf0]  ;;  %v4746_v50 = vor.u32 %v6210_v35, %v4745_v34  ;;  %v4187_v29 = vld [vmem:[%s9642_s2 + $0x98] sm:$0xf0] }
  0x80   :  { %v4377_v39 = vld [vmem:[%s9642_s2 + $0x208] sm:$0xf]  ;;  %1458 = vmatpush.bf16.msra.mxu3 %v4282_v24  ;;  %v6150_v43 = vld [vmem:[%s9642_s2 + $0x314] sm:$0xf0]  ;;  %1446 = vmatpush.bf16.msrb.mxu1 %v4138_v27  ;;  %v6104_v24 = vld [vmem:[%s9642_s2 + $0x1ac] sm:$0xf] }
  0x81   :  { %v4505_v41 = vld [vmem:[%s9642_s2 + $0x308] sm:$0xf]  ;;  %v6246_v45 = vld [vmem:[%s9642_s2 + $0x614] sm:$0xf0]  ;;  %1472 = vmatpush.bf16.msrb.mxu0 %v4394_v31  ;;  %v4378_v51 = vor.u32 %v6118_v40, %v4377_v39  ;;  %v4334_v31 = vor.u32 %v6104_v24, %v4331_v25  ;;  %v4315_v39 = vld [vmem:[%s9642_s2 + $0x198] sm:$0xf0]  ;;  %v4190_v40 = vor.u32 %v6068_v28, %v4187_v29 }
  0x82   :  { %v4889_v44 = vld [vmem:[%s9642_s2 + $0x608] sm:$0xf]  ;;  %v6086_v47 = vld [vmem:[%s9642_s2 + $0x114] sm:$0xf0]  ;;  %v4506_v57 = vor.u32 %v6150_v43, %v4505_v41  ;;  %v4171_v43 = vld [vmem:[%s9642_s2 + $0x78] sm:$0xf0] }
  0x83   :  { %v4873_v52 = vld [vmem:[%s9642_s2 + $0x5e8] sm:$0xf]  ;;  %v6242_v53 = vld [vmem:[%s9642_s2 + $0x5f4] sm:$0xf0]  ;;  %1485 = vmatpush.bf16.msra.mxu2 %v4522_v36  ;;  %v4890_v59 = vor.u32 %v6246_v45, %v4889_v44  ;;  %v4250_v0 = vor.u32 %v6086_v47, %v4249_v38  ;;  %v6100_v38 = vld [vmem:[%s9642_s2 + $0x18c] sm:$0xf] }
  0x84   :  { %v4729_v55 = vld [vmem:[%s9642_s2 + $0x4c8] sm:$0xf]  ;;  %v6206_v58 = vld [vmem:[%s9642_s2 + $0x4d4] sm:$0xf0]  ;;  %1459 = vmatpush.bf16.msra.mxu3 %v4266_v42  ;;  %1447 = vmatpush.bf16.msrb.mxu1 %v4122_v46  ;;  %v4874_v2 = vor.u32 %v6242_v53, %v4873_v52  ;;  %v6064_v42 = vld [vmem:[%s9642_s2 + $0x6c] sm:$0xf]  ;;  %v4318_v45 = vor.u32 %v6100_v38, %v4315_v39 }
  0x85   :  { %1473 = vmatpush.bf16.msrb.mxu0 %v4378_v51  ;;  %v4730_v5 = vor.u32 %v6206_v58, %v4729_v55  ;;  %v4857_v7 = vld [vmem:[%s9642_s2 + $0x5c8] sm:$0xf]  ;;  %v6238_v9 = vld [vmem:[%s9642_s2 + $0x5d4] sm:$0xf0]  ;;  %v4299_v51 = vld [vmem:[%s9642_s2 + $0x178] sm:$0xf0]  ;;  %v4174_v52 = vor.u32 %v6064_v42, %v4171_v43 }
  0x86   :  { %v4713_v10 = vld [vmem:[%s9642_s2 + $0x4a8] sm:$0xf]  ;;  %v6202_v11 = vld [vmem:[%s9642_s2 + $0x4b4] sm:$0xf0]  ;;  %v4858_v15 = vor.u32 %v6238_v9, %v4857_v7  ;;  %v6060_v55 = vld [vmem:[%s9642_s2 + $0x4c] sm:$0xf] }
  0x87   :  { %1486 = vmatpush.bf16.msra.mxu2 %v4506_v57  ;;  %v4714_v18 = vor.u32 %v6202_v11, %v4713_v10  ;;  %v4841_v20 = vld [vmem:[%s9642_s2 + $0x5a8] sm:$0xf]  ;;  %v6234_v21 = vld [vmem:[%s9642_s2 + $0x5b4] sm:$0xf0]  ;;  %1448 = vmatmul.bf16.vlgmr.msrb.gmra.mxu1 %v6915_v56  ;;  %v4155_v57 = vld [vmem:[%s9642_s2 + $0x58] sm:$0xf0] }
  0x88   :  { %1492 = vmatpush.bf16.msra.mxu1 %v4746_v50  ;;  %1460 = vmatpush.bf16.msra.mxu3 %v4250_v0  ;;  %v4697_v22 = vld [vmem:[%s9642_s2 + $0x488] sm:$0xf]  ;;  %v6198_v23 = vld [vmem:[%s9642_s2 + $0x494] sm:$0xf0]  ;;  %v4842_v27 = vor.u32 %v6234_v21, %v4841_v20  ;;  %v6096_v50 = vld [vmem:[%s9642_s2 + $0x16c] sm:$0xf]  ;;  %v4158_v4 = vor.u32 %v6060_v55, %v4155_v57 }
  0x89   :  { %1525 = vmatpush.bf16.msra.mxu0 %v4890_v59  ;;  %v4698_v30 = vor.u32 %v6198_v23, %v4697_v22  ;;  %v4825_v33 = vld [vmem:[%s9642_s2 + $0x588] sm:$0xf]  ;;  %v6230_v34 = vld [vmem:[%s9642_s2 + $0x594] sm:$0xf0]  ;;  %v4302_v59 = vor.u32 %v6096_v50, %v4299_v51  ;;  %v4283_v3 = vld [vmem:[%s9642_s2 + $0x158] sm:$0xf0] }
  0x8a   :  { %1474 = vmatmul.bf16.vlgmr.msrb.gmra.mxu0 %v6913_v54  ;;  %1487 = vmatmul.bf16.vlgmr.msra.gmra.mxu2 %v6923_v63  ;;  %v4681_v35 = vld [vmem:[%s9642_s2 + $0x468] sm:$0xf]  ;;  %v6194_v36 = vld [vmem:[%s9642_s2 + $0x474] sm:$0xf0]  ;;  %v4826_v41 = vor.u32 %v6230_v34, %v4825_v33  ;;  %v4139_v7 = vld [vmem:[%s9642_s2 + $0x38] sm:$0xf0] }
  0x8b   :  { %1531 = vmatpush.bf16.msrb.mxu2 %v4238_v1  ;;  %1461 = vmatmul.bf16.vlgmr.msra.gmra.mxu3 %v6945_v8  ;;  %v4682_v44 = vor.u32 %v6194_v36, %v4681_v35  ;;  %v4809_v46 = vld [vmem:[%s9642_s2 + $0x568] sm:$0xf]  ;;  %v6226_v47 = vld [vmem:[%s9642_s2 + $0x574] sm:$0xf0]  ;;  %v4267_v16 = vld [vmem:[%s9642_s2 + $0x138] sm:$0xf0] }
  0x8c   :  { %1505 = vmatpush.bf16.msrb.mxu3 %v4874_v2  ;;  %1493 = vmatpush.bf16.msra.mxu1 %v4730_v5  ;;  %v4665_v48 = vld [vmem:[%s9642_s2 + $0x448] sm:$0xf]  ;;  %v6190_v49 = vld [vmem:[%s9642_s2 + $0x454] sm:$0xf0]  ;;  %v4810_v53 = vor.u32 %v6226_v47, %v4809_v46  ;;  %v6092_v2 = vld [vmem:[%s9642_s2 + $0x14c] sm:$0xf] }
  0x8d   :  { %1544 = vmatpush.bf16.msrb.mxu0 %v4366_v6  ;;  %v4666_v58 = vor.u32 %v6190_v49, %v4665_v48  ;;  %v4793_v60 = vld [vmem:[%s9642_s2 + $0x548] sm:$0xf]  ;;  %v6222_v62 = vld [vmem:[%s9642_s2 + $0x554] sm:$0xf0]  ;;  %v6056_v6 = vld [vmem:[%s9642_s2 + $0x2c] sm:$0xf]  ;;  %v4286_v10 = vor.u32 %v6092_v2, %v4283_v3 }
  0x8e   :  { %v4649_v0 = vld [vmem:[%s9642_s2 + $0x428] sm:$0xf]  ;;  %v6186_v1 = vld [vmem:[%s9642_s2 + $0x434] sm:$0xf0]  ;;  %v4794_v5 = vor.u32 %v6222_v62, %v4793_v60  ;;  %v4142_v17 = vor.u32 %v6056_v6, %v4139_v7  ;;  %v6052_v22 = vld [vmem:[%s9642_s2 + $0xc] sm:$0xf] }
  0x8f   :  { %1532 = vmatpush.bf16.msrb.mxu2 %v4222_v14  ;;  %v4650_v9 = vor.u32 %v6186_v1, %v4649_v0  ;;  %v4777_v11 = vld [vmem:[%s9642_s2 + $0x528] sm:$0xf]  ;;  %v6218_v12 = vld [vmem:[%s9642_s2 + $0x534] sm:$0xf0]  ;;  %v4123_v23 = vld [vmem:[%s9642_s2 + $0x18] sm:$0xf0] }
  0x90   :  { %1506 = vmatpush.bf16.msrb.mxu3 %v4858_v15  ;;  %1494 = vmatpush.bf16.msra.mxu1 %v4714_v18  ;;  %v4633_v13 = vld [vmem:[%s9642_s2 + $0x408] sm:$0xf]  ;;  %v6182_v14 = vld [vmem:[%s9642_s2 + $0x414] sm:$0xf0]  ;;  %v6088_v15 = vld [vmem:[%s9642_s2 + $0x12c] sm:$0xf]  ;;  %v4778_v20 = vor.u32 %v6218_v12, %v4777_v11  ;;  %v4126_v34 = vor.u32 %v6052_v22, %v4123_v23 }
  0x91   :  { %1545 = vmatpush.bf16.msrb.mxu0 %v4350_v19  ;;  %v6144_v18 = vld [vmem:[%s9642_s2 + $0x2ec] sm:$0xf]  ;;  %v4491_v19 = vld [vmem:[%s9642_s2 + $0x2f8] sm:$0xf0]  ;;  %v4761_v21 = vld [vmem:[%s9642_s2 + $0x508] sm:$0xf]  ;;  %v4634_v24 = vor.u32 %v6182_v14, %v4633_v13  ;;  %v4270_v25 = vor.u32 %v6088_v15, %v4267_v16 }
  0x92   :  { %v4619_v28 = vld [vmem:[%s9642_s2 + $0x3f8] sm:$0xf0]  ;;  %v4494_v29 = vor.u32 %v6144_v18, %v4491_v19  ;;  %v6140_v33 = vld [vmem:[%s9642_s2 + $0x2cc] sm:$0xf]  ;;  %vm4045_vm1 = vcmask 1040384   ;;  %vm4049_vm2 = vcmask 1042434  }
  0x93   :  { %1533 = vmatpush.bf16.msrb.mxu2 %v4206_v26  ;;  %v6214_v26 = vld [vmem:[%s9642_s2 + $0x514] sm:$0xf0]  ;;  %v4475_v35 = vld [vmem:[%s9642_s2 + $0x2d8] sm:$0xf0]  ;;  %v6084_v36 = vld [vmem:[%s9642_s2 + $0x10c] sm:$0xf] }
  0x94   :  { %1507 = vmatpush.bf16.msrb.mxu3 %v4842_v27  ;;  %1495 = vmatpush.bf16.msra.mxu1 %v4698_v30  ;;  %v6176_v27 = vld [vmem:[%s9642_s2 + $0x3ec] sm:$0xf]  ;;  %v4251_v38 = vld [vmem:[%s9642_s2 + $0x118] sm:$0xf0]  ;;  %v4762_v39 = vor.u32 %v6214_v26, %v4761_v21  ;;  %vm4053_vm3 = vcmask 1041408   ;;  %vm4068_vm4 = vcmask 1041409  }
  0x95   :  { %1546 = vmatpush.bf16.msrb.mxu0 %v4334_v31  ;;  %v6208_v30 = vld [vmem:[%s9642_s2 + $0x4ec] sm:$0xf]  ;;  %v4747_v31 = vld [vmem:[%s9642_s2 + $0x4f8] sm:$0xf0]  ;;  %v4622_v42 = vor.u32 %v6176_v27, %v4619_v28  ;;  %v4254_v46 = vor.u32 %v6084_v36, %v4251_v38  ;;  %vm4069_vm5 = vmor %vm4068_vm4, %vm4045_vm1  ;;  %vm4071_vm7 = vcmask 1043459   ;;  %vm4055_vm9 = vcmask 1044484  }
  0x96   :  { %v4750_v43 = vor.u32 %v6208_v30, %v4747_v31  ;;  %v4603_v47 = vld [vmem:[%s9642_s2 + $0x3d8] sm:$0xf0]  ;;  %v6204_v48 = vld [vmem:[%s9642_s2 + $0x4cc] sm:$0xf]  ;;  %vm4070_vm6 = vmor %vm4049_vm2, %vm4069_vm5  ;;  %vm4074_vm11 = vcmask 1045509   ;;  %vm4059_vm12 = vcmask 1046534  }
  0x97   :  { %1534 = vmatpush.bf16.msrb.mxu2 %v4190_v40  ;;  %v6240_v40 = vld [vmem:[%s9642_s2 + $0x5ec] sm:$0xf]  ;;  %v4731_v49 = vld [vmem:[%s9642_s2 + $0x4d8] sm:$0xf0]  ;;  %vm4072_vm8 = vmor %vm4071_vm7, %vm4070_vm6  ;;  %vm4076_vm14 = vcmask 129030   ;;  %vm4063_vm15 = vcmask 1045508  }
  0x98   :  { %1508 = vmatpush.bf16.msrb.mxu3 %v4826_v41  ;;  %1496 = vmatpush.bf16.msra.mxu1 %v4682_v44  ;;  %v4875_v41 = vld [vmem:[%s9642_s2 + $0x5f8] sm:$0xf0]  ;;  %v6172_v44 = vld [vmem:[%s9642_s2 + $0x3cc] sm:$0xf]  ;;  %vm4073_vm10 = vmor %vm4055_vm9, %vm4072_vm8  ;;  %s6609_s11 = smov [#allocation2]   ;;  %s4086_s25 = sshll.u32 %s9650_s10, 4  ;;  %s4087_s25 = int_to_ptr.hbm [resolvable:$true] %s4086_s25 }
  0x99   :  { %1547 = vmatpush.bf16.msrb.mxu0 %v4318_v45  ;;  %v4478_v45 = vor.u32 %v6140_v33, %v4475_v35  ;;  %v4878_v50 = vor.u32 %v6240_v40, %v4875_v41  ;;  %v6136_v51 = vld [vmem:[%s9642_s2 + $0x2ac] sm:$0xf]  ;;  %v4859_v55 = vld [vmem:[%s9642_s2 + $0x5d8] sm:$0xf0]  ;;  %v4606_v57 = vor.u32 %v6172_v44, %v4603_v47  ;;  %vm4075_vm13 = vmor %vm4074_vm11, %vm4073_vm10  ;;  %s4084_s23 = sshll.u32 %s6609_s11, 4  ;;  %s4085_s23 = int_to_ptr.vmem [resolvable:$true] %s4084_s23 }
  0x9a   :  { %4897 = vmatmul.msk.bf16.vlgmr.msra.gmra.mxu0 %vm1254_vm0, %v7048_v61  ;;  %v4587_v62 = vld [vmem:[%s9642_s2 + $0x3b8] sm:$0xf0]  ;;  %v6200_v0 = vld [vmem:[%s9642_s2 + $0x4ac] sm:$0xf] }
  0x9b   :  { %1535 = vmatpush.bf16.msrb.mxu2 %v4174_v52  ;;  %v4459_v52 = vld [vmem:[%s9642_s2 + $0x2b8] sm:$0xf0]  ;;  %v6132_v3 = vld [vmem:[%s9642_s2 + $0x28c] sm:$0xf] }
  0x9c   :  { %1509 = vmatpush.bf16.msrb.mxu3 %v4810_v53  ;;  %1497 = vmatpush.bf16.msra.mxu1 %v4666_v58  ;;  %v6236_v53 = vld [vmem:[%s9642_s2 + $0x5cc] sm:$0xf]  ;;  %v4734_v58 = vor.u32 %v6204_v48, %v4731_v49  ;;  %v4462_v60 = vor.u32 %v6136_v51, %v4459_v52  ;;  %v4715_v1 = vld [vmem:[%s9642_s2 + $0x4b8] sm:$0xf0] }
  0x9d   :  { %1548 = vmatpush.bf16.msrb.mxu0 %v4302_v59  ;;  %v6168_v59 = vld [vmem:[%s9642_s2 + $0x3ac] sm:$0xf]  ;;  %v4862_v2 = vor.u32 %v6236_v53, %v4859_v55  ;;  %v4843_v6 = vld [vmem:[%s9642_s2 + $0x5b8] sm:$0xf0] }
  0x9e   :  { %v4590_v7 = vor.u32 %v6168_v59, %v4587_v62  ;;  %v6196_v12 = vld [vmem:[%s9642_s2 + $0x48c] sm:$0xf]  ;;  %v4699_v13 = vld [vmem:[%s9642_s2 + $0x498] sm:$0xf0] }
  0x9f   :  { %1536 = vmatpush.bf16.msrb.mxu2 %v4158_v4  ;;  %v4443_v4 = vld [vmem:[%s9642_s2 + $0x298] sm:$0xf0]  ;;  %v6128_v15 = vld [vmem:[%s9642_s2 + $0x26c] sm:$0xf] }
  0xa0   :  { %1510 = vmatpush.bf16.msrb.mxu3 %v4794_v5  ;;  %1498 = vmatpush.bf16.msra.mxu1 %v4650_v9  ;;  %v6232_v5 = vld [vmem:[%s9642_s2 + $0x5ac] sm:$0xf]  ;;  %v4718_v9 = vor.u32 %v6200_v0, %v4715_v1  ;;  %v4446_v11 = vor.u32 %v6132_v3, %v4443_v4  ;;  %v4427_v16 = vld [vmem:[%s9642_s2 + $0x278] sm:$0xf0] }
  0xa1   :  { %1549 = vmatpush.bf16.msrb.mxu0 %v4286_v10  ;;  %v6164_v10 = vld [vmem:[%s9642_s2 + $0x38c] sm:$0xf]  ;;  %v4846_v14 = vor.u32 %v6232_v5, %v4843_v6  ;;  %v4430_v22 = vor.u32 %v6128_v15, %v4427_v16  ;;  %v4555_v23 = vld [vmem:[%s9642_s2 + $0x378] sm:$0xf0] }
  0xa2   :  { %v6228_v18 = vld [vmem:[%s9642_s2 + $0x58c] sm:$0xf]  ;;  %v4811_v31 = vld [vmem:[%s9642_s2 + $0x578] sm:$0xf0] }
  0xa3   :  { %1537 = vmatpush.bf16.msrb.mxu2 %v4142_v17  ;;  %v6160_v21 = vld [vmem:[%s9642_s2 + $0x36c] sm:$0xf]  ;;  %v4539_v40 = vld [vmem:[%s9642_s2 + $0x358] sm:$0xf0] }
  0xa4   :  { %1511 = vmatpush.bf16.msrb.mxu3 %v4778_v20  ;;  %1499 = vmatpush.bf16.msra.mxu1 %v4634_v24  ;;  %v4702_v20 = vor.u32 %v6196_v12, %v4699_v13  ;;  %v6192_v24 = vld [vmem:[%s9642_s2 + $0x46c] sm:$0xf]  ;;  %v4795_v48 = vld [vmem:[%s9642_s2 + $0x558] sm:$0xf0] }
  0xa5   :  { %1550 = vmatpush.bf16.msrb.mxu0 %v4270_v25  ;;  %v4683_v25 = vld [vmem:[%s9642_s2 + $0x478] sm:$0xf0]  ;;  %v6124_v28 = vld [vmem:[%s9642_s2 + $0x24c] sm:$0xf] }
  0xa6   :  { %v6224_v30 = vld [vmem:[%s9642_s2 + $0x56c] sm:$0xf]  ;;  %v4686_v35 = vor.u32 %v6192_v24, %v4683_v25  ;;  %v4523_v53 = vld [vmem:[%s9642_s2 + $0x338] sm:$0xf0]  ;;  %v6253_v25 = vld [vmem:[%s9644_s4 + $0x30] sm:$0xff] }
  0xa7   :  { %1538 = vmatpush.bf16.msrb.mxu2 %v4126_v34  ;;  %1500 = vmatmul.bf16.vlgmr.msra.gmra.mxu1 %v7109_v32  ;;  %v7790_v17 = vpop.f32.mrf.mxu0  ;;  %v4558_v34 = vor.u32 %v6160_v21, %v4555_v23  ;;  %v6156_v36 = vld [vmem:[%s9642_s2 + $0x34c] sm:$0xf]  ;;  %v4779_v1 = vld [vmem:[%s9642_s2 + $0x538] sm:$0xf0] }
  0xa8   :  { %1557 = vmatpush.bf16.msrb.mxu1 %v4494_v29  ;;  %1512 = vmatpush.bf16.msrb.mxu3 %v4762_v39  ;;  %v4411_v29 = vld [vmem:[%s9642_s2 + $0x258] sm:$0xf0]  ;;  %v6188_v41 = vld [vmem:[%s9642_s2 + $0x44c] sm:$0xf]  ;;  %v4542_v49 = vor.u32 %v6156_v36, %v4539_v40 }
  0xa9   :  { %1551 = vmatpush.bf16.msrb.mxu0 %v4254_v46  ;;  %v4414_v38 = vor.u32 %v6124_v28, %v4411_v29  ;;  %v6120_v44 = vld [vmem:[%s9642_s2 + $0x22c] sm:$0xf]  ;;  %v4891_v3 = vld [vmem:[%s9642_s2 + $0x618] sm:$0xf0]  ;;  %v6261_v29 = vld [vmem:[%s9644_s4 + $0x70] sm:$0xff] }
  0xaa   :  { %1539 = vmatmul.bf16.vlgmr.msrb.gmra.mxu2 %v6915_v56  ;;  %v4571_v56 = vld [vmem:[%s9642_s2 + $0x398] sm:$0xf0]  ;;  %v7810_v27 = vpop.f32.mrf.mxu1  ;;  %v6220_v47 = vld [vmem:[%s9642_s2 + $0x54c] sm:$0xf] }
  0xab   :  { %1583 = vmatpush.bf16.msra.mxu2 %v4750_v43  ;;  %1513 = vmatmul.bf16.vlgmr.msrb.gmra.mxu3 %v7120_v37  ;;  %v4574_v19 = vor.u32 %v6164_v10, %v4571_v56  ;;  %v4814_v43 = vor.u32 %v6224_v30, %v4811_v31  ;;  %v6152_v51 = vld [vmem:[%s9642_s2 + $0x32c] sm:$0xf]  ;;  %v6254_v21 = vld [vmem:[%s9644_s4 + $0x38] sm:$0xff] }
  0xac   :  { %1570 = vmatpush.bf16.msra.mxu3 %v4622_v42  ;;  %1558 = vmatpush.bf16.msrb.mxu1 %v4478_v45  ;;  %v4667_v42 = vld [vmem:[%s9642_s2 + $0x458] sm:$0xf0]  ;;  %v6184_v55 = vld [vmem:[%s9642_s2 + $0x42c] sm:$0xf]  ;;  %v4526_v5 = vor.u32 %v6152_v51, %v4523_v53 }
  0xad   :  { %1596 = vmatpush.bf16.msra.mxu0 %v4878_v50  ;;  %v7824_v33 = vpop.f32.mrf.mxu2  ;;  %v4395_v45 = vld [vmem:[%s9642_s2 + $0x238] sm:$0xf0]  ;;  %v4670_v50 = vor.u32 %v6188_v41, %v4667_v42  ;;  %v6116_v59 = vld [vmem:[%s9642_s2 + $0x20c] sm:$0xf] }
  0xae   :  { %1552 = vmatmul.bf16.vlgmr.msrb.gmra.mxu0 %v6945_v8  ;;  %v4827_v8 = vld [vmem:[%s9642_s2 + $0x598] sm:$0xf0]  ;;  %v7829_v39 = vpop.f32.mrf.mxu3  ;;  %v4398_v52 = vor.u32 %v6120_v44, %v4395_v45  ;;  %v6216_v62 = vld [vmem:[%s9642_s2 + $0x52c] sm:$0xf] }
  0xaf   :  { %1584 = vmatpush.bf16.msra.mxu2 %v4734_v58  ;;  %v4830_v26 = vor.u32 %v6228_v18, %v4827_v8  ;;  %v1269_v46 = vpop.f32.mrf.mxu0  ;;  %v4798_v58 = vor.u32 %v6220_v47, %v4795_v48  ;;  %v6148_v10 = vld [vmem:[%s9642_s2 + $0x30c] sm:$0xf]  ;;  %v4782_v12 = vor.u32 %v6216_v62, %v4779_v1  ;;  %v4763_v18 = vld [vmem:[%s9642_s2 + $0x518] sm:$0xf0]  ;;  %v6247_v47 = vld [vmem:[%s9644_s4] sm:$0xff] }
  0xb0   :  { %1571 = vmatpush.bf16.msra.mxu3 %v4606_v57  ;;  %1559 = vmatpush.bf16.msrb.mxu1 %v4462_v60  ;;  %v4651_v57 = vld [vmem:[%s9642_s2 + $0x438] sm:$0xf0]  ;;  %v6180_v13 = vld [vmem:[%s9642_s2 + $0x40c] sm:$0xf] }
  0xb1   :  { %1597 = vmatpush.bf16.msra.mxu0 %v4862_v2  ;;  %v4379_v60 = vld [vmem:[%s9642_s2 + $0x218] sm:$0xf0]  ;;  %v6244_v2 = vld [vmem:[%s9642_s2 + $0x60c] sm:$0xf]  ;;  %v4654_v6 = vor.u32 %v6184_v55, %v4651_v57 }
  0xb2   :  { %v1282_v0 = vpop.f32.mrf.mxu1  ;;  %v4894_v15 = vor.u32 %v6244_v2, %v4891_v3  ;;  %v6212_v16 = vld [vmem:[%s9642_s2 + $0x50c] sm:$0xf]  ;;  %v6262_v24 = vld [vmem:[%s9644_s4 + $0x78] sm:$0xff] }
  0xb3   :  { %1585 = vmatpush.bf16.msra.mxu2 %v4718_v9  ;;  %v4382_v9 = vor.u32 %v6116_v59, %v4379_v60  ;;  %v6258_v42 = vld [vmem:[%s9644_s4 + $0x58] sm:$0xff] }
  0xb4   :  { %1572 = vmatpush.bf16.msra.mxu3 %v4590_v7  ;;  %1560 = vmatpush.bf16.msrb.mxu1 %v4446_v11  ;;  %v7885_v7 = vld [vmem:[%s9643_s3] sm:$0xf]  ;;  %v4507_v11 = vld [vmem:[%s9642_s2 + $0x318] sm:$0xf0] }
  0xb5   :  { %1598 = vmatpush.bf16.msra.mxu0 %v4846_v14  ;;  %v1295_v4 = vpop.f32.mrf.mxu2  ;;  %v4635_v14 = vld [vmem:[%s9642_s2 + $0x418] sm:$0xf0]  ;;  %v266_v8 = vperm.slane %v7885_v7, 0  ;;  %v267_v55 = vperm.slane %v7885_v7, 1 }
  0xb6   :  { %v1308_v56 = vpop.f32.mrf.mxu3  ;;  %v6270_v3 = vld [vmem:[%s9644_s4 + $0xb8] sm:$0xff]  ;;  %v6269_v4 = vld [vmem:[%s9644_s4 + $0xb0] sm:$0xff] }
  0xb7   :  { %1586 = vmatpush.bf16.msra.mxu2 %v4702_v20  ;;  %v4638_v20 = vor.u32 %v6180_v13, %v4635_v14  ;;  %v1268_v23 = vadd.f32 %v7790_v17, %v266_v8  ;;  %v6252_v17 = vld [vmem:[%s9644_s4 + $0x28] sm:$0xff]  ;;  %v6265_v8 = vld [vmem:[%s9644_s4 + $0x90] sm:$0xff] }
  0xb8   :  { %1573 = vmatpush.bf16.msra.mxu3 %v4574_v19  ;;  %1561 = vmatpush.bf16.msrb.mxu1 %v4430_v22  ;;  %v4510_v19 = vor.u32 %v6148_v10, %v4507_v11  ;;  %v4766_v22 = vor.u32 %v6212_v16, %v4763_v18  ;;  %v6268_v11 = vld [vmem:[%s9644_s4 + $0xa8] sm:$0xff]  ;;  %v6266_v18 = vld [vmem:[%s9644_s4 + $0x98] sm:$0xff] }
  0xb9   :  { %1599 = vmatpush.bf16.msra.mxu0 %v4830_v26  ;;  %v1281_v26 = vadd.f32 %v7810_v27, %v1268_v23 }
  0xbb   :  { %1587 = vmatpush.bf16.msra.mxu2 %v4686_v35  ;;  %v1294_v30 = vadd.f32 %v7824_v33, %v1281_v26 }
  0xbc   :  { %1574 = vmatpush.bf16.msra.mxu3 %v4558_v34  ;;  %1562 = vmatpush.bf16.msrb.mxu1 %v4414_v38  ;;  %v6250_v34 = vld [vmem:[%s9644_s4 + $0x18] sm:$0xff]  ;;  %v6259_v38 = vld [vmem:[%s9644_s4 + $0x60] sm:$0xff] }
  0xbd   :  { %1600 = vmatpush.bf16.msra.mxu0 %v4814_v43  ;;  %v1307_v27 = vadd.f32 %v7829_v39, %v1294_v30  ;;  %v6249_v39 = vld [vmem:[%s9644_s4 + $0x10] sm:$0xff]  ;;  %v6248_v43 = vld [vmem:[%s9644_s4 + $0x8] sm:$0xff] }
  0xbe   :  { %v6277_v30 = vld [vmem:[%s9644_s4 + $0xf0] sm:$0xff] }
  0xbf   :  { %1588 = vmatpush.bf16.msra.mxu2 %v4670_v50 }
  0xc0   :  { %1575 = vmatpush.bf16.msra.mxu3 %v4542_v49  ;;  %1563 = vmatpush.bf16.msrb.mxu1 %v4398_v52  ;;  %v6256_v49 = vld [vmem:[%s9644_s4 + $0x48] sm:$0xff]  ;;  %v6255_v52 = vld [vmem:[%s9644_s4 + $0x40] sm:$0xff] }
  0xc1   :  { %1601 = vmatpush.bf16.msra.mxu0 %v4798_v58 }
  0xc3   :  { %1589 = vmatpush.bf16.msra.mxu2 %v4654_v6  ;;  %v1319_v28 = vpop.f32.mrf.mxu0 }
  0xc4   :  { %1576 = vmatpush.bf16.msra.mxu3 %v4526_v5  ;;  %1564 = vmatpush.bf16.msrb.mxu1 %v4382_v9  ;;  %v1320_v33 = vadd.f32 %v1319_v28, %v1307_v27 }
  0xc5   :  { %1602 = vmatpush.bf16.msra.mxu0 %v4782_v12  ;;  %v6267_v12 = vld [vmem:[%s9644_s4 + $0xa0] sm:$0xff] }
  0xc7   :  { %1565 = vmatmul.bf16.vlgmr.msrb.gmra.mxu1 %v6913_v54  ;;  %1590 = vmatpush.bf16.msra.mxu2 %v4638_v20  ;;  %v1345_v54 = vpop.f32.mrf.mxu2 }
  0xc8   :  { %1616 = vmatpush.bf16.msra.mxu1 %v4894_v15  ;;  %1577 = vmatpush.bf16.msra.mxu3 %v4510_v19 }
  0xc9   :  { %1603 = vmatpush.bf16.msra.mxu0 %v4766_v22  ;;  %v6264_v22 = vld [vmem:[%s9644_s4 + $0x88] sm:$0xff] }
  0xca   :  { %1591 = vmatmul.bf16.vlgmr.msra.gmra.mxu2 %v7109_v32  ;;  %v6251_v32 = vld [vmem:[%s9644_s4 + $0x20] sm:$0xff] }
  0xcb   :  { %1578 = vmatmul.bf16.vlgmr.msra.gmra.mxu3 %v6923_v63  ;;  %v1332_v63 = vpop.f32.mrf.mxu1  ;;  %v1321_v36 = vpop.f32.mrf.mxu0  ;;  %1916 = vmatpush.bf16.msrb.mxu2 %v6270_v3 }
  0xcc   :  { %1890 = vmatpush.bf16.msrb.mxu3 %v6254_v21  ;;  %1903 = vmatpush.bf16.msrb.mxu1 %v6262_v24  ;;  %v1358_v35 = vpop.f32.mrf.mxu3  ;;  %v1333_v41 = vadd.f32 %v1332_v63, %v1320_v33  ;;  %v268_v63 = vperm.slane %v7885_v7, 2  ;;  %v6275_v33 = vld [vmem:[%s9644_s4 + $0xe0] sm:$0xff] }
  0xcd   :  { %1604 = vmatmul.bf16.vlgmr.msra.gmra.mxu0 %v7120_v37  ;;  %v6260_v37 = vld [vmem:[%s9644_s4 + $0x68] sm:$0xff]  ;;  %v1359_v58 = vadd.f32 %v1358_v35, %v267_v55  ;;  %v269_v55 = vperm.slane %v7885_v7, 3 }
  0xce   :  { %v1346_v45 = vadd.f32 %v1345_v54, %v1333_v41  ;;  %v6263_v54 = vld [vmem:[%s9644_s4 + $0x80] sm:$0xff] }
  0xcf   :  { %v1347_v31 = vpop.f32.mrf.mxu2  ;;  %1917 = vmatpush.bf16.msrb.mxu2 %v6269_v4 }
  0xd0   :  { %1891 = vmatpush.bf16.msrb.mxu3 %v6253_v25  ;;  %1904 = vmatpush.bf16.msrb.mxu1 %v6261_v29  ;;  %v1622_v48 = vmax.f32 %v1346_v45, 0.0  ;;  %v6276_v31 = vld [vmem:[%s9644_s4 + $0xe8] sm:$0xff] }
  0xd2   :  { %v1626_v51 = vpack.c.bf16 %v1622_v48, %v1622_v48 }
  0xd3   :  { %v1334_v40 = vpop.f32.mrf.mxu1  ;;  %1918 = vmatpush.bf16.msrb.mxu2 %v6268_v11 }
  0xd4   :  { %1892 = vmatpush.bf16.msrb.mxu3 %v6252_v17  ;;  %1905 = vmatpush.bf16.msrb.mxu1 %v6260_v37  ;;  %v1360_v46 = vpop.f32.mrf.mxu3  ;;  %v6278_v17 = vld [vmem:[%s9644_s4 + $0xf8] sm:$0xff] }
  0xd5   :  { %1929 = vmatpush.bf16.msrb.mxu0 %v6278_v17  ;;  %v6310_v17 = vld [vmem:[%s9646_s6 + $0xf4] sm:$0xf0] }
  0xd7   :  { %4898 = vmatmul.msk.bf16.vlgmr.msra.gmra.mxu1 %vm1254_vm0, %v7048_v61  ;;  %v1371_v44 = vpop.f32.mrf.mxu2  ;;  %v6257_v61 = vld [vmem:[%s9644_s4 + $0x50] sm:$0xff]  ;;  %1919 = vmatpush.bf16.msrb.mxu2 %v6267_v12  ;;  %vm4065_vm0 = vcmask 1043456  }
  0xd8   :  { %1893 = vmatpush.bf16.msrb.mxu3 %v6251_v32  ;;  %1906 = vmatpush.bf16.msrb.mxu1 %v6259_v38  ;;  %v1372_v0 = vadd.f32 %v1371_v44, %v1359_v58  ;;  %v6274_v38 = vld [vmem:[%s9644_s4 + $0xd8] sm:$0xff] }
  0xd9   :  { %1930 = vmatpush.bf16.msrb.mxu0 %v6277_v30  ;;  %v6308_v30 = vld [vmem:[%s9646_s6 + $0xec] sm:$0xf] }
  0xdb   :  { %1920 = vmatpush.bf16.msrb.mxu2 %v6266_v18 }
  0xdc   :  { %1894 = vmatpush.bf16.msrb.mxu3 %v6250_v34  ;;  %1907 = vmatpush.bf16.msrb.mxu1 %v6258_v42 }
  0xdd   :  { %1931 = vmatpush.bf16.msrb.mxu0 %v6276_v31  ;;  %v6303_v31 = vld [vmem:[%s9646_s6 + $0xc4] sm:$0xf] }
  0xdf   :  { %v1373_v50 = vpop.f32.mrf.mxu2  ;;  %1921 = vmatpush.bf16.msrb.mxu2 %v6265_v8 }
  0xe0   :  { %1895 = vmatpush.bf16.msrb.mxu3 %v6249_v39  ;;  %1908 = vmatpush.bf16.msrb.mxu1 %v6257_v61 }
  0xe1   :  { %1932 = vmatpush.bf16.msrb.mxu0 %v6275_v33 }
  0xe3   :  { %v1384_v53 = vpop.f32.mrf.mxu0  ;;  %1922 = vmatpush.bf16.msrb.mxu2 %v6264_v22  ;;  %v5141_v22 = vld [vmem:[%s9646_s6 + $0xe0] sm:$0xf] }
  0xe4   :  { %1896 = vmatpush.bf16.msrb.mxu3 %v6248_v43  ;;  %1909 = vmatpush.bf16.msrb.mxu1 %v6256_v49  ;;  %v1385_v2 = vadd.f32 %v1384_v53, %v1372_v0  ;;  %v6273_v43 = vld [vmem:[%s9644_s4 + $0xd0] sm:$0xff] }
  0xe5   :  { %1933 = vmatpush.bf16.msrb.mxu0 %v6274_v38  ;;  %v5133_v38 = vld [vmem:[%s9646_s6 + $0xc8] sm:$0xf] }
  0xe6   :  { %v1397_v57 = vpop.f32.mrf.mxu1 }
  0xe7   :  { %v1398_v6 = vadd.f32 %v1397_v57, %v1385_v2  ;;  %1923 = vmatpush.bf16.msrb.mxu2 %v6263_v54  ;;  %v5149_v54 = vld [vmem:[%s9646_s6 + $0xe8] sm:$0xf] }
  0xe8   :  { %1897 = vmatpush.bf16.msrb.mxu3 %v6247_v47  ;;  %1910 = vmatpush.bf16.msrb.mxu1 %v6255_v52  ;;  %v6272_v47 = vld [vmem:[%s9644_s4 + $0xc8] sm:$0xff] }
  0xe9   :  { %1934 = vmatpush.bf16.msrb.mxu0 %v6273_v43  ;;  %v5109_v43 = vld [vmem:[%s9646_s6 + $0xa0] sm:$0xf] }
  0xea   :  { %v1410_v59 = vpop.f32.mrf.mxu3 }
  0xeb   :  { %1898 = vmatmul.bf16.vlgmr.msrb.gmra.mxu3 %v1626_v51  ;;  %v1386_v60 = vpop.f32.mrf.mxu0  ;;  %v1411_v10 = vadd.f32 %v1410_v59, %v1398_v6  ;;  %v6271_v51 = vld [vmem:[%s9644_s4 + $0xc0] sm:$0xff] }
  0xed   :  { %v1423_v62 = vpop.f32.mrf.mxu2  ;;  %1935 = vmatpush.bf16.msrb.mxu0 %v6272_v47  ;;  %v5117_v47 = vld [vmem:[%s9646_s6 + $0xa8] sm:$0xf] }
  0xee   :  { %v1399_v1 = vpop.f32.mrf.mxu1  ;;  %v1424_v56 = vadd.f32 %v1423_v62, %v1411_v10 }
  0xf1   :  { %1936 = vmatpush.bf16.msrb.mxu0 %v6271_v51  ;;  %v5119_v51 = vld [vmem:[%s9646_s6 + $0xb8] sm:$0xf0] }
  0xf2   :  { %v1412_v5 = vpop.f32.mrf.mxu3 }
  0xf5   :  { %v1425_v9 = vpop.f32.mrf.mxu2 }
  0xfa   :  { %v1436_v13 = vpop.f32.mrf.mxu3 }
  0xfb   :  { %v1437_v14 = vadd.f32 %v1436_v13, %v1424_v56 }
  0xfd   :  { %v1623_v15 = vmax.f32 %v1437_v14, 0.0 }
  0xff   :  { %v1627_v16 = vpack.c.bf16 %v1623_v15, %v1623_v15 }
 0x101   :  { %1911 = vmatmul.bf16.vlgmr.msrb.gmra.mxu1 %v1627_v16  ;;  %v6538_v16 = vld [vmem:[%s9645_s5] ss:$0 sm:$0xff] }
 0x102   :  { %v1438_v19 = vpop.f32.mrf.mxu3 }
 0x104   :  { %v1449_v21 = vpop.f32.mrf.mxu1 }
 0x105   :  { %v1450_v37 = vadd.f32 %v1449_v21, %v268_v63  ;;  %v5151_v63 = vld [vmem:[%s9646_s6 + $0xf8] sm:$0xf0] }
 0x107   :  { %v1475_v20 = vpop.f32.mrf.mxu0 }
 0x10c   :  { %v1451_v26 = vpop.f32.mrf.mxu1 }
 0x10d   :  { %v1488_v25 = vpop.f32.mrf.mxu2  ;;  %v5143_v26 = vld [vmem:[%s9646_s6 + $0xf0] sm:$0xf0] }
 0x10e   :  { %v1462_v23 = vpop.f32.mrf.mxu3 }
 0x10f   :  { %v1477_v24 = vpop.f32.mrf.mxu0  ;;  %v1463_v34 = vadd.f32 %v1462_v23, %v1450_v37  ;;  %v6309_v23 = vld [vmem:[%s9646_s6 + $0xec] sm:$0xf0]  ;;  %v5154_v37 = vor.u32 %v6308_v30, %v5151_v63  ;;  %v6288_v30 = vld [vmem:[%s9646_s6 + $0x4c] sm:$0xf]  ;;  %v5071_v63 = vld [vmem:[%s9646_s6 + $0x58] sm:$0xf0] }
 0x110   :  { %v6307_v24 = vld [vmem:[%s9646_s6 + $0xe4] sm:$0xf] }
 0x111   :  { %v1476_v36 = vadd.f32 %v1475_v20, %v1463_v34  ;;  %v5127_v34 = vld [vmem:[%s9646_s6 + $0xd0] sm:$0xf0]  ;;  %2193 = vmatpush.bf16.msra.mxu0 %v5154_v37  ;;  %v5074_v37 = vor.u32 %v6288_v30, %v5071_v63  ;;  %v5941_v30 = vld [vmem:[%s9648_s8 + $0x620] sm:$0xf]  ;;  %v6510_v63 = vld [vmem:[%s9648_s8 + $0x638] sm:$0xf0] }
 0x113   :  { %v1489_v40 = vadd.f32 %v1488_v25, %v1476_v36  ;;  %v5142_v25 = vor.u32 %v6309_v23, %v5141_v22  ;;  %v5130_v36 = vor.u32 %v6303_v31, %v5127_v34  ;;  %v5061_v23 = vld [vmem:[%s9646_s6 + $0x40] sm:$0xf]  ;;  %v6285_v31 = vld [vmem:[%s9646_s6 + $0x2c] sm:$0xf0]  ;;  %v6283_v34 = vld [vmem:[%s9646_s6 + $0x24] sm:$0xf] }
 0x115   :  { %v1490_v32 = vpop.f32.mrf.mxu2  ;;  %2154 = vmatpush.bf16.msra.mxu3 %v5142_v25 }
 0x116   :  { %v1464_v28 = vpop.f32.mrf.mxu3  ;;  %v5125_v32 = vld [vmem:[%s9646_s6 + $0xc0] sm:$0xf] }
 0x117   :  { %v1527_v29 = vpop.f32.mrf.mxu0  ;;  %v5146_v28 = vor.u32 %v6307_v24, %v5143_v26  ;;  %v6289_v24 = vld [vmem:[%s9646_s6 + $0x4c] sm:$0xf0]  ;;  %v6287_v26 = vld [vmem:[%s9646_s6 + $0x44] sm:$0xf] }
 0x118   :  { %v5062_v25 = vor.u32 %v6289_v24, %v5061_v23 }
 0x119   :  { %2167 = vmatpush.bf16.msra.mxu1 %v5146_v28 }
 0x11d   :  { %2168 = vmatpush.bf16.msra.mxu1 %v5130_v36  ;;  %v5053_v36 = vld [vmem:[%s9646_s6 + $0x28] sm:$0xf] }
 0x11f   :  { %v1529_v27 = vpop.f32.mrf.mxu0 }
 0x120   :  { %v6305_v27 = vld [vmem:[%s9646_s6 + $0xcc] sm:$0xf0] }
 0x124   :  { %v1501_v35 = vpop.f32.mrf.mxu1 }
 0x125   :  { %v1502_v41 = vadd.f32 %v1501_v35, %v1489_v40  ;;  %v5126_v35 = vor.u32 %v6305_v27, %v5125_v32  ;;  %v6306_v40 = vld [vmem:[%s9646_s6 + $0xd4] sm:$0xf0]  ;;  %v5045_v27 = vld [vmem:[%s9646_s6 + $0x20] sm:$0xf] }
 0x127   :  { %2155 = vmatpush.bf16.msra.mxu3 %v5126_v35  ;;  %v5047_v35 = vld [vmem:[%s9646_s6 + $0x30] sm:$0xf0] }
 0x12b   :  { %v1553_v39 = vpop.f32.mrf.mxu0 }
 0x12c   :  { %v1503_v42 = vpop.f32.mrf.mxu1 }
 0x12d   :  { %v1540_v45 = vpop.f32.mrf.mxu2  ;;  %v5135_v42 = vld [vmem:[%s9646_s6 + $0xd8] sm:$0xf0] }
 0x12e   :  { %v1514_v44 = vpop.f32.mrf.mxu3  ;;  %v1541_v57 = vadd.f32 %v1540_v45, %v269_v55  ;;  %v6299_v45 = vld [vmem:[%s9646_s6 + $0xa4] sm:$0xf]  ;;  %v5093_v55 = vld [vmem:[%s9646_s6 + $0x80] sm:$0xf] }
 0x12f   :  { %v1515_v61 = vadd.f32 %v1514_v44, %v1502_v41  ;;  %v5134_v41 = vor.u32 %v6306_v40, %v5133_v38  ;;  %v6301_v44 = vld [vmem:[%s9646_s6 + $0xac] sm:$0xf0]  ;;  %v6286_v38 = vld [vmem:[%s9646_s6 + $0x34] sm:$0xf0]  ;;  %v5050_v40 = vor.u32 %v6283_v34, %v5047_v35  ;;  %v5717_v35 = vld [vmem:[%s9648_s8 + $0x460] sm:$0xf] }
 0x130   :  { %v1554_v59 = vadd.f32 %v1553_v39, %v1541_v57  ;;  %v6304_v39 = vld [vmem:[%s9646_s6 + $0xcc] sm:$0xf]  ;;  %v6297_v57 = vld [vmem:[%s9646_s6 + $0x8c] sm:$0xf0] }
 0x131   :  { %v1528_v46 = vadd.f32 %v1527_v29, %v1515_v61  ;;  %v5150_v29 = vor.u32 %v6310_v17, %v5149_v54  ;;  %v5138_v61 = vor.u32 %v6304_v39, %v5135_v42  ;;  %v5063_v54 = vld [vmem:[%s9646_s6 + $0x50] sm:$0xf0]  ;;  %v5069_v17 = vld [vmem:[%s9646_s6 + $0x48] sm:$0xf]  ;;  %v5054_v39 = vor.u32 %v6286_v38, %v5053_v36  ;;  %v5055_v42 = vld [vmem:[%s9646_s6 + $0x38] sm:$0xf0] }
 0x132   :  { %v5066_v28 = vor.u32 %v6287_v26, %v5063_v54  ;;  %v6398_v26 = vld [vmem:[%s9648_s8 + $0x2b8] sm:$0xf0]  ;;  %v5942_v38 = vor.u32 %v6510_v63, %v5941_v30  ;;  %v6027_v30 = vld [vmem:[%s9648_s8 + $0x6e4] sm:$0xf0]  ;;  %v5157_v63 = vld [vmem:[%s9648_s8] sm:$0xf] }
 0x133   :  { %v1624_v48 = vmax.f32 %v1528_v46, 0.0  ;;  %v1555_v49 = vpop.f32.mrf.mxu0  ;;  %2180 = vmatpush.bf16.msra.mxu2 %v5150_v29  ;;  %v5111_v46 = vld [vmem:[%s9646_s6 + $0xb0] sm:$0xf0]  ;;  %2194 = vmatpush.bf16.msra.mxu0 %v5138_v61  ;;  %v6290_v29 = vld [vmem:[%s9646_s6 + $0x54] sm:$0xf0] }
 0x134   :  { %v6302_v49 = vld [vmem:[%s9646_s6 + $0xb4] sm:$0xf0]  ;;  %v5070_v32 = vor.u32 %v6290_v29, %v5069_v17  ;;  %v6281_v61 = vld [vmem:[%s9646_s6 + $0xc] sm:$0xf0]  ;;  %v6454_v36 = vld [vmem:[%s9648_s8 + $0x478] sm:$0xf0] }
 0x135   :  { %v1628_v50 = vpack.c.bf16 %v1624_v48, %v1624_v48  ;;  %v1542_v53 = vpop.f32.mrf.mxu2  ;;  %v5110_v48 = vor.u32 %v6301_v44, %v5109_v43  ;;  %v5029_v44 = vld [vmem:[%s9646_s6] sm:$0xf]  ;;  %v5297_v17 = vld [vmem:[%s9648_s8 + $0x118] sm:$0xf] }
 0x136   :  { %v1516_v52 = vpop.f32.mrf.mxu3  ;;  %v5118_v53 = vor.u32 %v6302_v49, %v5117_v47  ;;  %v5031_v47 = vld [vmem:[%s9646_s6 + $0x10] sm:$0xf0]  ;;  %v6282_v49 = vld [vmem:[%s9646_s6 + $0x14] sm:$0xf0] }
 0x137   :  { %1924 = vmatmul.bf16.vlgmr.msrb.gmra.mxu2 %v1628_v50  ;;  %v6300_v50 = vld [vmem:[%s9646_s6 + $0xac] sm:$0xf]  ;;  %v5114_v52 = vor.u32 %v6299_v45, %v5111_v46  ;;  %2156 = vmatpush.bf16.msra.mxu3 %v5110_v48  ;;  %v6279_v45 = vld [vmem:[%s9646_s6 + $0x4] sm:$0xf]  ;;  %v5030_v46 = vor.u32 %v6281_v61, %v5029_v44  ;;  %v5037_v48 = vld [vmem:[%s9646_s6 + $0x8] sm:$0xf] }
 0x138   :  { %2181 = vmatpush.bf16.msra.mxu2 %v5134_v41  ;;  %v6284_v41 = vld [vmem:[%s9646_s6 + $0x2c] sm:$0xf]  ;;  %v5745_v29 = vld [vmem:[%s9648_s8 + $0x498] sm:$0xf] }
 0x139   :  { %2169 = vmatpush.bf16.msra.mxu1 %v5114_v52  ;;  %v5058_v43 = vor.u32 %v6284_v41, %v5055_v42  ;;  %v6280_v52 = vld [vmem:[%s9646_s6 + $0xc] sm:$0xf]  ;;  %v5913_v42 = vld [vmem:[%s9648_s8 + $0x5e8] sm:$0xf] }
 0x13c   :  { %2182 = vmatpush.bf16.msra.mxu2 %v5118_v53  ;;  %v5039_v53 = vld [vmem:[%s9646_s6 + $0x18] sm:$0xf0] }
 0x144   :  { %v1566_v58 = vpop.f32.mrf.mxu1 }
 0x145   :  { %v1567_v62 = vadd.f32 %v1566_v58, %v1554_v59  ;;  %v6295_v58 = vld [vmem:[%s9646_s6 + $0x84] sm:$0xf]  ;;  %v5122_v59 = vor.u32 %v6300_v50, %v5119_v51  ;;  %v5034_v50 = vor.u32 %v6279_v45, %v5031_v47  ;;  %v5038_v51 = vor.u32 %v6282_v49, %v5037_v48  ;;  %v5689_v49 = vld [vmem:[%s9648_s8 + $0x428] sm:$0xf] }
 0x146   :  { %v5718_v45 = vor.u32 %v6454_v36, %v5717_v35  ;;  %v6335_v48 = vld [vmem:[%s9648_s8 + $0xc0] sm:$0xf0]  ;;  %v5355_v35 = vld [vmem:[%s9648_s8 + $0x1a4] sm:$0xf0]  ;;  %v6472_v36 = vld [vmem:[%s9648_s8 + $0x50c] sm:$0xf] }
 0x147   :  { %2195 = vmatpush.bf16.msra.mxu0 %v5122_v59  ;;  %v6025_v59 = vld [vmem:[%s9648_s8 + $0x6c8] sm:$0xf] }
 0x14a   :  { %v1605_v60 = vpop.f32.mrf.mxu0 }
 0x14c   :  { %v1568_v0 = vpop.f32.mrf.mxu1 }
 0x14d   :  { %v1592_v3 = vpop.f32.mrf.mxu2  ;;  %v6298_v0 = vld [vmem:[%s9646_s6 + $0x94] sm:$0xf0] }
 0x14e   :  { %v1579_v1 = vpop.f32.mrf.mxu3 }
 0x14f   :  { %v1580_v2 = vadd.f32 %v1579_v1, %v1567_v62  ;;  %v5101_v62 = vld [vmem:[%s9646_s6 + $0x88] sm:$0xf]  ;;  %v6296_v1 = vld [vmem:[%s9646_s6 + $0x8c] sm:$0xf] }
 0x151   :  { %v1593_v4 = vadd.f32 %v1592_v3, %v1580_v2  ;;  %v5103_v2 = vld [vmem:[%s9646_s6 + $0x98] sm:$0xf0]  ;;  %v5094_v3 = vor.u32 %v6297_v57, %v5093_v55  ;;  %v5042_v55 = vor.u32 %v6280_v52, %v5039_v53  ;;  %v5577_v57 = vld [vmem:[%s9648_s8 + $0x348] sm:$0xf]  ;;  %v5437_v53 = vld [vmem:[%s9648_s8 + $0x230] sm:$0xf] }
 0x152   :  { %v1607_v5 = vpop.f32.mrf.mxu0 }
 0x153   :  { %v1606_v6 = vadd.f32 %v1605_v60, %v1593_v4  ;;  %v5095_v60 = vld [vmem:[%s9646_s6 + $0x90] sm:$0xf0]  ;;  %v5102_v5 = vor.u32 %v6298_v0, %v5101_v62  ;;  %2157 = vmatpush.bf16.msra.mxu3 %v5094_v3  ;;  %v6531_v62 = vld [vmem:[%s9648_s8 + $0x6e0] sm:$0xf0]  ;;  %v5549_v0 = vld [vmem:[%s9648_s8 + $0x310] sm:$0xf] }
 0x154   :  { %v1618_v9 = vpop.f32.mrf.mxu1  ;;  %v5098_v4 = vor.u32 %v6295_v58, %v5095_v60  ;;  %v6419_v58 = vld [vmem:[%s9648_s8 + $0x360] sm:$0xf0]  ;;  %v5997_v3 = vld [vmem:[%s9648_s8 + $0x690] sm:$0xf] }
 0x155   :  { %v1619_v10 = vadd.f32 %v1618_v9, %v1606_v6  ;;  %v1594_v56 = vpop.f32.mrf.mxu2  ;;  %v5106_v6 = vor.u32 %v6296_v1, %v5103_v2  ;;  %2183 = vmatpush.bf16.msra.mxu2 %v5102_v5  ;;  %v5578_v60 = vor.u32 %v6419_v58, %v5577_v57  ;;  %v6412_v1 = vld [vmem:[%s9648_s8 + $0x328] sm:$0xf0]  ;;  %v6026_v2 = vor.u32 %v6531_v62, %v6025_v59  ;;  %v5353_v5 = vld [vmem:[%s9648_s8 + $0x188] sm:$0xf]  ;;  %v5885_v57 = vld [vmem:[%s9648_s8 + $0x5b0] sm:$0xf] }
 0x156   :  { %v1581_v11 = vpop.f32.mrf.mxu3  ;;  %2170 = vmatpush.bf16.msra.mxu1 %v5098_v4  ;;  %v6524_v4 = vld [vmem:[%s9648_s8 + $0x6a8] sm:$0xf0]  ;;  %v5213_v62 = vld [vmem:[%s9648_s8 + $0x70] sm:$0xf] }
 0x157   :  { %v1625_v12 = vmax.f32 %v1619_v10, 0.0  ;;  %2196 = vmatpush.bf16.msra.mxu0 %v5106_v6  ;;  %v5550_v6 = vor.u32 %v6412_v1, %v5549_v0  ;;  %v6496_v58 = vld [vmem:[%s9648_s8 + $0x5c8] sm:$0xf0] }
 0x158   :  { %v6328_v1 = vld [vmem:[%s9648_s8 + $0x88] sm:$0xf0] }
 0x159   :  { %v1629_v13 = vpack.c.bf16 %v1625_v12, %v1625_v12  ;;  %v5077_v12 = vld [vmem:[%s9646_s6 + $0x60] sm:$0xf] }
 0x15b   :  { %1937 = vmatmul.bf16.vlgmr.msrb.gmra.mxu0 %v1629_v13  ;;  %v6293_v13 = vld [vmem:[%s9646_s6 + $0x6c] sm:$0xf0] }
 0x15c   :  { %v1620_v7 = vpop.f32.mrf.mxu1 }
 0x15d   :  { %v6291_v7 = vld [vmem:[%s9646_s6 + $0x64] sm:$0xf] }
 0x16e   :  { %v1899_v14 = vpop.f32.mrf.mxu3 }
 0x16f   :  { %v1900_v18 = vadd.f32 %v6538_v16, %v1899_v14  ;;  %v5078_v14 = vor.u32 %v6293_v13, %v5077_v12  ;;  %v5085_v16 = vld [vmem:[%s9646_s6 + $0x68] sm:$0xf]  ;;  %v5998_v12 = vor.u32 %v6524_v4, %v5997_v3  ;;  %v6440_v3 = vld [vmem:[%s9648_s8 + $0x408] sm:$0xf0]  ;;  %v5886_v4 = vor.u32 %v6496_v58, %v5885_v57  ;;  %v5523_v57 = vld [vmem:[%s9648_s8 + $0x2f4] sm:$0xf0] }
 0x170   :  { %v6514_v58 = vld [vmem:[%s9648_s8 + $0x65c] sm:$0xf] }
 0x171   :  { %2158 = vmatpush.bf16.msra.mxu3 %v5078_v14  ;;  %v5521_v14 = vld [vmem:[%s9648_s8 + $0x2d8] sm:$0xf] }
 0x175   :  { %2159 = vmatpush.bf16.msra.mxu3 %v5062_v25  ;;  %v5493_v25 = vld [vmem:[%s9648_s8 + $0x2a0] sm:$0xf] }
 0x176   :  { %v1901_v15 = vpop.f32.mrf.mxu3  ;;  %v5494_v34 = vor.u32 %v6398_v26, %v5493_v25  ;;  %v6416_v25 = vld [vmem:[%s9648_s8 + $0x34c] sm:$0xf]  ;;  %v5579_v26 = vld [vmem:[%s9648_s8 + $0x364] sm:$0xf0] }
 0x177   :  { %v5079_v15 = vld [vmem:[%s9646_s6 + $0x70] sm:$0xf0] }
 0x17e   :  { %v1912_v8 = vpop.f32.mrf.mxu1 }
 0x17f   :  { %v8018_v19 = vadd.f32 %v1912_v8, %v1900_v18  ;;  %v6294_v18 = vld [vmem:[%s9646_s6 + $0x74] sm:$0xf0]  ;;  %v5082_v8 = vor.u32 %v6291_v7, %v5079_v15  ;;  %v6405_v15 = vld [vmem:[%s9648_s8 + $0x2f0] sm:$0xf0] }
 0x180   :  { %v5522_v23 = vor.u32 %v6405_v15, %v5521_v14  ;;  %v6321_v15 = vld [vmem:[%s9648_s8 + $0x50] sm:$0xf0] }
 0x181   :  { %2171 = vmatpush.bf16.msra.mxu1 %v5082_v8  ;;  %v5325_v8 = vld [vmem:[%s9648_s8 + $0x150] sm:$0xf] }
 0x185   :  { %2172 = vmatpush.bf16.msra.mxu1 %v5066_v28  ;;  %v6349_v28 = vld [vmem:[%s9648_s8 + $0x130] sm:$0xf0] }
 0x186   :  { %v1914_v20 = vpop.f32.mrf.mxu1 }
 0x187   :  { %v6292_v20 = vld [vmem:[%s9646_s6 + $0x6c] sm:$0xf] }
 0x189   :  { %2173 = vmatpush.bf16.msra.mxu1 %v5050_v40  ;;  %v5465_v40 = vld [vmem:[%s9648_s8 + $0x268] sm:$0xf] }
 0x18d   :  { %2174 = vmatpush.bf16.msra.mxu1 %v5034_v50  ;;  %v6447_v50 = vld [vmem:[%s9648_s8 + $0x440] sm:$0xf0] }
 0x191   :  { %3651 = vmatpush.bf16.msrb.mxu1 %v5578_v60  ;;  %v5690_v60 = vor.u32 %v6447_v50, %v5689_v49  ;;  %v5327_v49 = vld [vmem:[%s9648_s8 + $0x16c] sm:$0xf0]  ;;  %v6465_v50 = vld [vmem:[%s9648_s8 + $0x4d4] sm:$0xf] }
 0x195   :  { %3652 = vmatpush.bf16.msrb.mxu1 %v5550_v6  ;;  %v6377_v6 = vld [vmem:[%s9648_s8 + $0x210] sm:$0xf0] }
 0x199   :  { %3653 = vmatpush.bf16.msrb.mxu1 %v5522_v23  ;;  %v5829_v23 = vld [vmem:[%s9648_s8 + $0x540] sm:$0xf] }
 0x19d   :  { %3654 = vmatpush.bf16.msrb.mxu1 %v5494_v34 }
 0x1ba   :  { %v8020_v21 = vpop.f32.mrf.mxu2 }
 0x1bb   :  { %v1926_v9 = vadd.f32 %v8020_v21, %v8018_v19  ;;  %v5086_v19 = vor.u32 %v6294_v18, %v5085_v16  ;;  %v5087_v21 = vld [vmem:[%s9646_s6 + $0x78] sm:$0xf0]  ;;  %v5969_v16 = vld [vmem:[%s9648_s8 + $0x658] sm:$0xf]  ;;  %v6517_v18 = vld [vmem:[%s9648_s8 + $0x670] sm:$0xf0] }
 0x1bc   :  { %v5090_v22 = vor.u32 %v6292_v20, %v5087_v21  ;;  %v5773_v21 = vld [vmem:[%s9648_s8 + $0x4d0] sm:$0xf]  ;;  %v5970_v54 = vor.u32 %v6517_v18, %v5969_v16  ;;  %v5633_v16 = vld [vmem:[%s9648_s8 + $0x3b8] sm:$0xf]  ;;  %v6433_v18 = vld [vmem:[%s9648_s8 + $0x3d0] sm:$0xf0] }
 0x1bd   :  { %2184 = vmatpush.bf16.msra.mxu2 %v5086_v19  ;;  %v6356_v19 = vld [vmem:[%s9648_s8 + $0x168] sm:$0xf0] }
 0x1be   :  { %2197 = vmatpush.bf16.msra.mxu0 %v5090_v22  ;;  %v5326_v20 = vor.u32 %v6356_v19, %v5325_v8  ;;  %v6468_v22 = vld [vmem:[%s9648_s8 + $0x4e8] sm:$0xf0] }
 0x1bf   :  { %v5774_v24 = vor.u32 %v6468_v22, %v5773_v21  ;;  %v6370_v22 = vld [vmem:[%s9648_s8 + $0x1d8] sm:$0xf0] }
 0x1c1   :  { %2185 = vmatpush.bf16.msra.mxu2 %v5070_v32  ;;  %v6461_v32 = vld [vmem:[%s9648_s8 + $0x4b0] sm:$0xf0] }
 0x1c2   :  { %v1927_v33 = vpop.f32.mrf.mxu2  ;;  %2198 = vmatpush.bf16.msra.mxu0 %v5074_v37  ;;  %v5298_v37 = vor.u32 %v6349_v28, %v5297_v17  ;;  %v5634_v28 = vor.u32 %v6433_v18, %v5633_v16  ;;  %v5719_v16 = vld [vmem:[%s9648_s8 + $0x47c] sm:$0xf0] }
 0x1c3   :  { %v5046_v33 = vor.u32 %v6285_v31, %v5045_v27  ;;  %v5746_v27 = vor.u32 %v6461_v32, %v5745_v29  ;;  %v5269_v31 = vld [vmem:[%s9648_s8 + $0xe0] sm:$0xf]  ;;  %v6314_v32 = vld [vmem:[%s9648_s8 + $0x18] sm:$0xf0] }
 0x1c5   :  { %2160 = vmatpush.bf16.msra.mxu3 %v5046_v33  ;;  %2186 = vmatpush.bf16.msra.mxu2 %v5054_v39  ;;  %v6342_v33 = vld [vmem:[%s9648_s8 + $0xf8] sm:$0xf0]  ;;  %v6391_v39 = vld [vmem:[%s9648_s8 + $0x280] sm:$0xf0] }
 0x1c6   :  { %2199 = vmatpush.bf16.msra.mxu0 %v5058_v43  ;;  %v6503_v43 = vld [vmem:[%s9648_s8 + $0x600] sm:$0xf0]  ;;  %v5270_v61 = vor.u32 %v6342_v33, %v5269_v31  ;;  %v5466_v47 = vor.u32 %v6391_v39, %v5465_v40  ;;  %v5582_v40 = vor.u32 %v6416_v25, %v5579_v26 }
 0x1c7   :  { %v5914_v52 = vor.u32 %v6503_v43, %v5913_v42  ;;  %v5551_v42 = vld [vmem:[%s9648_s8 + $0x32c] sm:$0xf0]  ;;  %v6521_v43 = vld [vmem:[%s9648_s8 + $0x694] sm:$0xf] }
 0x1c8   :  { %3655 = vmatpush.bf16.msrb.mxu1 %v5466_v47 }
 0x1c9   :  { %2161 = vmatpush.bf16.msra.mxu3 %v5030_v46  ;;  %2187 = vmatpush.bf16.msra.mxu2 %v5038_v51  ;;  %v5241_v46 = vld [vmem:[%s9648_s8 + $0xa8] sm:$0xf] }
 0x1ca   :  { %2200 = vmatpush.bf16.msra.mxu0 %v5042_v55  ;;  %v6384_v55 = vld [vmem:[%s9648_s8 + $0x248] sm:$0xf0]  ;;  %v5242_v59 = vor.u32 %v6335_v48, %v5241_v46  ;;  %v6353_v48 = vld [vmem:[%s9648_s8 + $0x154] sm:$0xf] }
 0x1cb   :  { %v5438_v0 = vor.u32 %v6384_v55, %v5437_v53  ;;  %v6402_v55 = vld [vmem:[%s9648_s8 + $0x2dc] sm:$0xf] }
 0x1cd   :  { %3656 = vmatpush.bf16.msrb.mxu1 %v5438_v0  ;;  %v6346_v0 = vld [vmem:[%s9648_s8 + $0x11c] sm:$0xf] }
 0x1ce   :  { %3677 = vmatpush.bf16.msrb.mxu0 %v6026_v2  ;;  %v5661_v2 = vld [vmem:[%s9648_s8 + $0x3f0] sm:$0xf] }
 0x1d2   :  { %3678 = vmatpush.bf16.msrb.mxu0 %v5998_v12  ;;  %v5214_v12 = vor.u32 %v6328_v1, %v5213_v62  ;;  %v5299_v1 = vld [vmem:[%s9648_s8 + $0x134] sm:$0xf0] }
 0x1d6   :  { %3679 = vmatpush.bf16.msrb.mxu0 %v5970_v54  ;;  %v6528_v54 = vld [vmem:[%s9648_s8 + $0x6cc] sm:$0xf] }
 0x1d7   :  { %v6030_v39 = vor.u32 %v6528_v54, %v6027_v30  ;;  %v6381_v54 = vld [vmem:[%s9648_s8 + $0x234] sm:$0xf] }
 0x1d8   :  { %v1938_v10 = vpop.f32.mrf.mxu0 }
 0x1d9   :  { %v8120_v11 = vadd.f32 %v1938_v10, %v1926_v9  ;;  %v6363_v9 = vld [vmem:[%s9648_s8 + $0x1a0] sm:$0xf0]  ;;  %v5801_v10 = vld [vmem:[%s9648_s8 + $0x508] sm:$0xf] }
 0x1da   :  { %v5354_v13 = vor.u32 %v6363_v9, %v5353_v5  ;;  %3680 = vmatpush.bf16.msrb.mxu0 %v5942_v38  ;;  %v5409_v5 = vld [vmem:[%s9648_s8 + $0x1f8] sm:$0xf]  ;;  %v5803_v38 = vld [vmem:[%s9648_s8 + $0x524] sm:$0xf0] }
 0x1db   :  { %1942 = vst [vmem:[#allocation4] sm:$0x3] %v8120_v11  ;;  %1943 = vrot.lane.b32.xlu0 %v8120_v11, %s6607_s29  ;;  %v5857_v9 = vld [vmem:[%s9648_s8 + $0x578] sm:$0xf]  ;;  %v5410_v14 = vor.u32 %v6377_v6, %v5409_v5  ;;  %v5806_v47 = vor.u32 %v6472_v36, %v5803_v38  ;;  %v6395_v6 = vld [vmem:[%s9648_s8 + $0x2a4] sm:$0xf] }
 0x1dc   :  { %3638 = vmatpush.bf16.msrb.mxu3 %v5354_v13  ;;  %v5662_v13 = vor.u32 %v6440_v3, %v5661_v2  ;;  %v6458_v2 = vld [vmem:[%s9648_s8 + $0x49c] sm:$0xf]  ;;  %v5747_v3 = vld [vmem:[%s9648_s8 + $0x4b4] sm:$0xf0] }
 0x1dd   :  { %3657 = vmatpush.bf16.msrb.mxu1 %v5410_v14  ;;  %v5271_v14 = vld [vmem:[%s9648_s8 + $0xfc] sm:$0xf0]  ;;  %v6486_v38 = vld [vmem:[%s9648_s8 + $0x57c] sm:$0xf] }
 0x1de   :  { %3681 = vmatpush.bf16.msrb.mxu0 %v5914_v52 }
 0x1e0   :  { %v1940_v56 = vpop.f32.mrf.mxu0  ;;  %3639 = vmatpush.bf16.msrb.mxu3 %v5326_v20  ;;  %v5381_v20 = vld [vmem:[%s9648_s8 + $0x1c0] sm:$0xf] }
 0x1e1   :  { %v6475_v56 = vld [vmem:[%s9648_s8 + $0x520] sm:$0xf0]  ;;  %v5382_v34 = vor.u32 %v6370_v22, %v5381_v20  ;;  %v5467_v20 = vld [vmem:[%s9648_s8 + $0x284] sm:$0xf0] }
 0x1e2   :  { %v5802_v7 = vor.u32 %v6475_v56, %v5801_v10  ;;  %v6489_v10 = vld [vmem:[%s9648_s8 + $0x590] sm:$0xf0]  ;;  %v1948_v56 = vld [vmem:[%s9641_s1] sm:$0x3]  ;;  %3682 = vmatpush.bf16.msrb.mxu0 %v5886_v4  ;;  %v5526_v4 = vor.u32 %v6402_v55, %v5523_v57  ;;  %v5915_v22 = vld [vmem:[%s9648_s8 + $0x604] sm:$0xf0] }
 0x1e3   :  { %v5858_v19 = vor.u32 %v6489_v10, %v5857_v9  ;;  %3658 = vmatpush.bf16.msrb.mxu1 %v5382_v34  ;;  %v5495_v9 = vld [vmem:[%s9648_s8 + $0x2bc] sm:$0xf0]  ;;  %v6507_v10 = vld [vmem:[%s9648_s8 + $0x624] sm:$0xf]  ;;  %v6430_v55 = vld [vmem:[%s9648_s8 + $0x3bc] sm:$0xf] }
 0x1e4   :  { %3664 = vmatpush.bf16.msrb.mxu2 %v5802_v7  ;;  %3640 = vmatpush.bf16.msrb.mxu3 %v5298_v37  ;;  %v5185_v7 = vld [vmem:[%s9648_s8 + $0x38] sm:$0xf]  ;;  %v5605_v37 = vld [vmem:[%s9648_s8 + $0x380] sm:$0xf]  ;;  %v5498_v18 = vor.u32 %v6395_v6, %v5495_v9 }
 0x1e5   :  { %v5186_v17 = vor.u32 %v6321_v15, %v5185_v7  ;;  %v6339_v7 = vld [vmem:[%s9648_s8 + $0xe4] sm:$0xf] }
 0x1e6   :  { %3683 = vmatpush.bf16.msrb.mxu0 %v5858_v19  ;;  %v6451_v15 = vld [vmem:[%s9648_s8 + $0x464] sm:$0xf]  ;;  %v6388_v19 = vld [vmem:[%s9648_s8 + $0x26c] sm:$0xf] }
 0x1e7   :  { %v5470_v25 = vor.u32 %v6388_v19, %v5467_v20 }
 0x1e8   :  { %3665 = vmatpush.bf16.msrb.mxu2 %v5774_v24  ;;  %3641 = vmatpush.bf16.msrb.mxu3 %v5270_v61  ;;  %v6482_v24 = vld [vmem:[%s9648_s8 + $0x558] sm:$0xf0]  ;;  %v5158_v61 = vor.u32 %v6314_v32, %v5157_v63  ;;  %v6332_v32 = vld [vmem:[%s9648_s8 + $0xac] sm:$0xf] }
 0x1e9   :  { %v5830_v33 = vor.u32 %v6482_v24, %v5829_v23  ;;  %v5274_v23 = vor.u32 %v6339_v7, %v5271_v14  ;;  %v5722_v24 = vor.u32 %v6451_v15, %v5719_v16  ;;  %v6033_v14 = vld [vmem:[%s9648_s8 + $0x6d0] sm:$0xf]  ;;  %v6532_v15 = vld [vmem:[%s9648_s8 + $0x6e8] sm:$0xf0] }
 0x1eb   :  { %3684 = vmatpush.bf16.msrb.mxu0 %v5830_v33  ;;  %v6374_v33 = vld [vmem:[%s9648_s8 + $0x1fc] sm:$0xf] }
 0x1ec   :  { %3666 = vmatpush.bf16.msrb.mxu2 %v5746_v27  ;;  %3642 = vmatpush.bf16.msrb.mxu3 %v5242_v59  ;;  %v6360_v27 = vld [vmem:[%s9648_s8 + $0x18c] sm:$0xf]  ;;  %v5971_v59 = vld [vmem:[%s9648_s8 + $0x674] sm:$0xf0] }
 0x1ed   :  { %v5358_v46 = vor.u32 %v6360_v27, %v5355_v35  ;;  %v5974_v5 = vor.u32 %v6514_v58, %v5971_v59  ;;  %v5411_v35 = vld [vmem:[%s9648_s8 + $0x214] sm:$0xf0] }
 0x1ee   :  { %v5414_v36 = vor.u32 %v6374_v33, %v5411_v35  ;;  %v5635_v58 = vld [vmem:[%s9648_s8 + $0x3d4] sm:$0xf0] }
 0x1ef   :  { %v5638_v59 = vor.u32 %v6430_v55, %v5635_v58  ;;  %v6511_v58 = vld [vmem:[%s9648_s8 + $0x640] sm:$0xf0] }
 0x1f0   :  { %3667 = vmatpush.bf16.msrb.mxu2 %v5718_v45  ;;  %3643 = vmatpush.bf16.msrb.mxu3 %v5214_v12  ;;  %v5302_v12 = vor.u32 %v6346_v0, %v5299_v1  ;;  %v6423_v1 = vld [vmem:[%s9648_s8 + $0x384] sm:$0xf] }
 0x1f4   :  { %3668 = vmatpush.bf16.msrb.mxu2 %v5690_v60  ;;  %3644 = vmatpush.bf16.msrb.mxu3 %v5186_v17  ;;  %v5330_v60 = vor.u32 %v6353_v48, %v5327_v49  ;;  %v5439_v17 = vld [vmem:[%s9648_s8 + $0x24c] sm:$0xf0]  ;;  %v6479_v48 = vld [vmem:[%s9648_s8 + $0x544] sm:$0xf] }
 0x1f5   :  { %v5442_v30 = vor.u32 %v6381_v54, %v5439_v17  ;;  %v6005_v54 = vld [vmem:[%s9648_s8 + $0x698] sm:$0xf]  ;;  %v6525_v17 = vld [vmem:[%s9648_s8 + $0x6b0] sm:$0xf0] }
 0x1f6   :  { %v6006_v35 = vor.u32 %v6525_v17, %v6005_v54  ;;  %v6336_v54 = vld [vmem:[%s9648_s8 + $0xc8] sm:$0xf0] }
 0x1f8   :  { %3669 = vmatpush.bf16.msrb.mxu2 %v5662_v13  ;;  %3645 = vmatpush.bf16.msrb.mxu3 %v5158_v61  ;;  %v5750_v13 = vor.u32 %v6458_v2, %v5747_v3  ;;  %v5663_v61 = vld [vmem:[%s9648_s8 + $0x40c] sm:$0xf0]  ;;  %v5607_v2 = vld [vmem:[%s9648_s8 + $0x39c] sm:$0xf0] }
 0x1f9   :  { %v5610_v3 = vor.u32 %v6423_v1, %v5607_v2  ;;  %v5753_v2 = vld [vmem:[%s9648_s8 + $0x4a0] sm:$0xf] }
 0x1fc   :  { %3670 = vmatpush.bf16.msrb.mxu2 %v5634_v28  ;;  %v6493_v28 = vld [vmem:[%s9648_s8 + $0x5b4] sm:$0xf] }
 0x24d   :  { %v1944_v41 = vpop.permute.xlu0 %1943 }
 0x24e   :  { %v1945_v44 = vmul.f32 0.5, %v1944_v41  ;;  %v6409_v41 = vld [vmem:[%s9648_s8 + $0x314] sm:$0xf] }
 0x24f   :  { %v5554_v52 = vor.u32 %v6409_v41, %v5551_v42  ;;  %v6325_v41 = vld [vmem:[%s9648_s8 + $0x74] sm:$0xf]  ;;  %v5215_v42 = vld [vmem:[%s9648_s8 + $0x8c] sm:$0xf0] }
 0x250   :  { %v1946_v51 = vmul.f32 1.442695, %v1945_v44  ;;  %v5999_v44 = vld [vmem:[%s9648_s8 + $0x6ac] sm:$0xf0] }
 0x251   :  { %v6002_v53 = vor.u32 %v6521_v43, %v5999_v44  ;;  %v6437_v43 = vld [vmem:[%s9648_s8 + $0x3f4] sm:$0xf]  ;;  %v5218_v44 = vor.u32 %v6325_v41, %v5215_v42  ;;  %v5977_v41 = vld [vmem:[%s9648_s8 + $0x660] sm:$0xf]  ;;  %v6518_v42 = vld [vmem:[%s9648_s8 + $0x678] sm:$0xf0] }
 0x252   :  { %6539 = vpow2.f32 %v1946_v51  ;;  %v5775_v51 = vld [vmem:[%s9648_s8 + $0x4ec] sm:$0xf0] }
 0x253   :  { %v5778_v62 = vor.u32 %v6465_v50, %v5775_v51  ;;  %v5831_v50 = vld [vmem:[%s9648_s8 + $0x55c] sm:$0xf0] }
 0x254   :  { %v5834_v51 = vor.u32 %v6479_v48, %v5831_v50  ;;  %v5781_v48 = vld [vmem:[%s9648_s8 + $0x4d8] sm:$0xf]  ;;  %v5978_v50 = vor.u32 %v6518_v42, %v5977_v41  ;;  %v6371_v41 = vld [vmem:[%s9648_s8 + $0x1e0] sm:$0xf0]  ;;  %v5837_v42 = vld [vmem:[%s9648_s8 + $0x548] sm:$0xf] }
 0x258   :  { %v6540_v8 = vpop.eup %6539 }
 0x259   :  { %v1949_v21 = vmul.f32 %v6540_v8, %v1948_v56  ;;  %v5943_v56 = vld [vmem:[%s9648_s8 + $0x63c] sm:$0xf0] }
 0x25a   :  { %v5946_v8 = vor.u32 %v6507_v10, %v5943_v56 }
 0x25b   :  { %v1950_v29 = vadd.f32 %v1949_v21, %v8120_v11  ;;  %v6426_v11 = vld [vmem:[%s9648_s8 + $0x398] sm:$0xf0]  ;;  %v6500_v21 = vld [vmem:[%s9648_s8 + $0x5ec] sm:$0xf] }
 0x25c   :  { %v5606_v45 = vor.u32 %v6426_v11, %v5605_v37  ;;  %v5918_v26 = vor.u32 %v6500_v21, %v5915_v22  ;;  %v5243_v37 = vld [vmem:[%s9648_s8 + $0xc4] sm:$0xf0]  ;;  %v6444_v11 = vld [vmem:[%s9648_s8 + $0x42c] sm:$0xf]  ;;  %v6034_v22 = vor.u32 %v6532_v15, %v6033_v14 }
 0x25d   :  { %v1951_v31 = vpack.c.bf16 %v1950_v29, %v1950_v29  ;;  %v5887_v29 = vld [vmem:[%s9648_s8 + $0x5cc] sm:$0xf0]  ;;  %v5246_v27 = vor.u32 %v6332_v32, %v5243_v37  ;;  %v5725_v15 = vld [vmem:[%s9648_s8 + $0x468] sm:$0xf] }
 0x25e   :  { %3671 = vmatpush.bf16.msrb.mxu2 %v5606_v45  ;;  %v5890_v63 = vor.u32 %v6493_v28, %v5887_v29  ;;  %v5666_v45 = vor.u32 %v6437_v43, %v5663_v61  ;;  %v5333_v61 = vld [vmem:[%s9648_s8 + $0x158] sm:$0xf] }
 0x25f   :  { %2162 = vmatmul.bf16.vlgmr.msra.gmra.mxu3 %v1951_v31  ;;  %2175 = vmatmul.bf16.vlgmr.msra.gmra.mxu1 %v1951_v31 }
 0x260   :  { %2188 = vmatmul.bf16.vlgmr.msra.gmra.mxu2 %v1951_v31  ;;  %2201 = vmatmul.bf16.vlgmr.msra.gmra.mxu0 %v1951_v31  ;;  %v5691_v31 = vld [vmem:[%s9648_s8 + $0x444] sm:$0xf0] }
 0x261   :  { %3703 = vmatpush.bf16.msra.mxu1 %v5582_v40  ;;  %3729 = vmatpush.bf16.msra.mxu0 %v6030_v39  ;;  %v5694_v34 = vor.u32 %v6444_v11, %v5691_v31  ;;  %v5859_v40 = vld [vmem:[%s9648_s8 + $0x594] sm:$0xf0]  ;;  %v6476_v31 = vld [vmem:[%s9648_s8 + $0x528] sm:$0xf0] }
 0x262   :  { %3690 = vmatpush.bf16.msra.mxu3 %v5358_v46  ;;  %3716 = vmatpush.bf16.msra.mxu2 %v5806_v47  ;;  %v5862_v39 = vor.u32 %v6486_v38, %v5859_v40  ;;  %v6367_v46 = vld [vmem:[%s9648_s8 + $0x1c4] sm:$0xf]  ;;  %v5383_v47 = vld [vmem:[%s9648_s8 + $0x1dc] sm:$0xf0]  ;;  %v6406_v38 = vld [vmem:[%s9648_s8 + $0x2f8] sm:$0xf0] }
 0x263   :  { %v5386_v49 = vor.u32 %v6367_v46, %v5383_v47 }
 0x265   :  { %3704 = vmatpush.bf16.msra.mxu1 %v5554_v52  ;;  %3730 = vmatpush.bf16.msra.mxu0 %v6002_v53  ;;  %v6318_v52 = vld [vmem:[%s9648_s8 + $0x3c] sm:$0xf]  ;;  %v5187_v53 = vld [vmem:[%s9648_s8 + $0x54] sm:$0xf0] }
 0x266   :  { %3691 = vmatpush.bf16.msra.mxu3 %v5330_v60  ;;  %3717 = vmatpush.bf16.msra.mxu2 %v5778_v62  ;;  %v5190_v57 = vor.u32 %v6318_v52, %v5187_v53  ;;  %v6311_v60 = vld [vmem:[%s9648_s8 + $0x4] sm:$0xf]  ;;  %v5159_v62 = vld [vmem:[%s9648_s8 + $0x1c] sm:$0xf0] }
 0x267   :  { %v5162_v0 = vor.u32 %v6311_v60, %v5159_v62  ;;  %v6399_v52 = vld [vmem:[%s9648_s8 + $0x2c0] sm:$0xf0]  ;;  %v5305_v62 = vld [vmem:[%s9648_s8 + $0x120] sm:$0xf] }
 0x269   :  { %3705 = vmatpush.bf16.msra.mxu1 %v5526_v4  ;;  %3731 = vmatpush.bf16.msra.mxu0 %v5974_v5  ;;  %v1984_v4 = vld [vmem:[%s9647_s7] sm:$0xf] }
 0x26a   :  { %3692 = vmatpush.bf16.msra.mxu3 %v5302_v12  ;;  %3718 = vmatpush.bf16.msra.mxu2 %v5750_v13  ;;  %v1987_v5 = vperm.slane %v1984_v4, 1  ;;  %v1989_v6 = vperm.slane %v1984_v4, 3  ;;  %v5585_v12 = vld [vmem:[%s9648_s8 + $0x350] sm:$0xf]  ;;  %v6420_v13 = vld [vmem:[%s9648_s8 + $0x368] sm:$0xf0] }
 0x26b   :  { %v1988_v19 = vperm.slane %v1984_v4, 2  ;;  %v5586_v20 = vor.u32 %v6420_v13, %v5585_v12  ;;  %v5277_v13 = vld [vmem:[%s9648_s8 + $0xe8] sm:$0xf] }
 0x26d   :  { %3706 = vmatpush.bf16.msra.mxu1 %v5498_v18  ;;  %3732 = vmatpush.bf16.msra.mxu0 %v5946_v8  ;;  %v1986_v18 = vperm.slane %v1984_v4, 0 }
 0x26e   :  { %3693 = vmatpush.bf16.msra.mxu3 %v5274_v23  ;;  %3719 = vmatpush.bf16.msra.mxu2 %v5722_v24  ;;  %v5557_v23 = vld [vmem:[%s9648_s8 + $0x318] sm:$0xf]  ;;  %v6413_v24 = vld [vmem:[%s9648_s8 + $0x330] sm:$0xf0] }
 0x26f   :  { %v5558_v11 = vor.u32 %v6413_v24, %v5557_v23  ;;  %v6497_v23 = vld [vmem:[%s9648_s8 + $0x5d0] sm:$0xf0] }
 0x271   :  { %3707 = vmatpush.bf16.msra.mxu1 %v5470_v25  ;;  %3733 = vmatpush.bf16.msra.mxu0 %v5918_v26 }
 0x272   :  { %3694 = vmatpush.bf16.msra.mxu3 %v5246_v27  ;;  %3720 = vmatpush.bf16.msra.mxu2 %v5694_v34  ;;  %v5809_v27 = vld [vmem:[%s9648_s8 + $0x510] sm:$0xf] }
 0x275   :  { %3708 = vmatpush.bf16.msra.mxu1 %v5442_v30  ;;  %3734 = vmatpush.bf16.msra.mxu0 %v5890_v63  ;;  %v5361_v30 = vld [vmem:[%s9648_s8 + $0x190] sm:$0xf]  ;;  %v6364_v63 = vld [vmem:[%s9648_s8 + $0x1a8] sm:$0xf0] }
 0x276   :  { %3695 = vmatpush.bf16.msra.mxu3 %v5218_v44  ;;  %3721 = vmatpush.bf16.msra.mxu2 %v5666_v45  ;;  %v5810_v44 = vor.u32 %v6476_v31, %v5809_v27  ;;  %v6357_v45 = vld [vmem:[%s9648_s8 + $0x170] sm:$0xf0]  ;;  %v6490_v27 = vld [vmem:[%s9648_s8 + $0x598] sm:$0xf0] }
 0x277   :  { %v5334_v55 = vor.u32 %v6357_v45, %v5333_v61  ;;  %v6417_v45 = vld [vmem:[%s9648_s8 + $0x354] sm:$0xf] }
 0x279   :  { %3709 = vmatpush.bf16.msra.mxu1 %v5414_v36  ;;  %3735 = vmatpush.bf16.msra.mxu0 %v5862_v39  ;;  %v5529_v36 = vld [vmem:[%s9648_s8 + $0x2e0] sm:$0xf]  ;;  %v5362_v39 = vor.u32 %v6364_v63, %v5361_v30 }
 0x27a   :  { %3696 = vmatpush.bf16.msra.mxu3 %v5190_v57  ;;  %3722 = vmatpush.bf16.msra.mxu2 %v5638_v59  ;;  %v5530_v47 = vor.u32 %v6406_v38, %v5529_v36  ;;  %v5949_v57 = vld [vmem:[%s9648_s8 + $0x628] sm:$0xf]  ;;  %v5417_v63 = vld [vmem:[%s9648_s8 + $0x200] sm:$0xf]  ;;  %v5669_v36 = vld [vmem:[%s9648_s8 + $0x3f8] sm:$0xf] }
 0x27b   :  { %v5950_v4 = vor.u32 %v6511_v58, %v5949_v57  ;;  %v6441_v38 = vld [vmem:[%s9648_s8 + $0x410] sm:$0xf0]  ;;  %v6434_v57 = vld [vmem:[%s9648_s8 + $0x3d8] sm:$0xf0] }
 0x27d   :  { %3710 = vmatpush.bf16.msra.mxu1 %v5386_v49  ;;  %3736 = vmatpush.bf16.msra.mxu0 %v5834_v51  ;;  %v6469_v49 = vld [vmem:[%s9648_s8 + $0x4f0] sm:$0xf0]  ;;  %v5501_v51 = vld [vmem:[%s9648_s8 + $0x2a8] sm:$0xf] }
 0x27e   :  { %3697 = vmatpush.bf16.msra.mxu3 %v5162_v0  ;;  %3723 = vmatpush.bf16.msra.mxu2 %v5610_v3  ;;  %v5782_v60 = vor.u32 %v6469_v49, %v5781_v48  ;;  %v6350_v0 = vld [vmem:[%s9648_s8 + $0x138] sm:$0xf0]  ;;  %v5502_v1 = vor.u32 %v6399_v52, %v5501_v51  ;;  %v6529_v48 = vld [vmem:[%s9648_s8 + $0x6d4] sm:$0xf]  ;;  %v5670_v49 = vor.u32 %v6441_v38, %v5669_v36  ;;  %v5193_v51 = vld [vmem:[%s9648_s8 + $0x40] sm:$0xf] }
 0x27f   :  { %v6462_v3 = vld [vmem:[%s9648_s8 + $0x4b8] sm:$0xf0]  ;;  %v6459_v36 = vld [vmem:[%s9648_s8 + $0x4a4] sm:$0xf]  ;;  %v5755_v38 = vld [vmem:[%s9648_s8 + $0x4bc] sm:$0xf0] }
 0x280   :  { %v5754_v12 = vor.u32 %v6462_v3, %v5753_v2  ;;  %v6322_v52 = vld [vmem:[%s9648_s8 + $0x58] sm:$0xf0]  ;;  %v6007_v3 = vld [vmem:[%s9648_s8 + $0x6b4] sm:$0xf0] }
 0x281   :  { %v6522_v2 = vld [vmem:[%s9648_s8 + $0x69c] sm:$0xf] }
 0x2dc   :  { %v2176_v9 = vpop.f32.mrf.mxu1 }
 0x2dd   :  { %v2177_v10 = vadd.f32 %v2176_v9, %v1987_v5  ;;  %v2202_v56 = vpop.f32.mrf.mxu0  ;;  %v5473_v5 = vld [vmem:[%s9648_s8 + $0x270] sm:$0xf]  ;;  %v5306_v9 = vor.u32 %v6350_v0, %v5305_v62  ;;  %v5194_v0 = vor.u32 %v6322_v52, %v5193_v51  ;;  %v5727_v51 = vld [vmem:[%s9648_s8 + $0x484] sm:$0xf0] }
 0x2de   :  { %v2203_v7 = vadd.f32 %v2202_v56, %v1989_v6  ;;  %v6392_v6 = vld [vmem:[%s9648_s8 + $0x288] sm:$0xf0] }
 0x2df   :  { %v2207_v16 = vmax.f32 %v2177_v10, 0.0  ;;  %v5921_v10 = vld [vmem:[%s9648_s8 + $0x5f0] sm:$0xf]  ;;  %v6504_v56 = vld [vmem:[%s9648_s8 + $0x608] sm:$0xf0]  ;;  %v5474_v14 = vor.u32 %v6392_v6, %v5473_v5 }
 0x2e0   :  { %v2209_v8 = vmax.f32 %v2203_v7, 0.0  ;;  %v6343_v7 = vld [vmem:[%s9648_s8 + $0x100] sm:$0xf0]  ;;  %v5165_v5 = vld [vmem:[%s9648_s8 + $0x8] sm:$0xf] }
 0x2e1   :  { %v8623_v21 = vpack.c.bf16 %v2207_v16, %v2207_v16  ;;  %v6455_v16 = vld [vmem:[%s9648_s8 + $0x480] sm:$0xf0] }
 0x2e2   :  { %v8631_v25 = vpack.c.bf16 %v2209_v8, %v2209_v8  ;;  %v2163_v26 = vpop.f32.mrf.mxu3  ;;  %v5445_v8 = vld [vmem:[%s9648_s8 + $0x238] sm:$0xf]  ;;  %v5726_v24 = vor.u32 %v6455_v16, %v5725_v15  ;;  %v6315_v6 = vld [vmem:[%s9648_s8 + $0x20] sm:$0xf0]  ;;  %v6010_v15 = vor.u32 %v6522_v2, %v6007_v3  ;;  %v6445_v2 = vld [vmem:[%s9648_s8 + $0x434] sm:$0xf] }
 0x2e3   :  { %v2164_v28 = vadd.f32 %v2163_v26, %v1986_v18  ;;  %v2189_v29 = vpop.f32.mrf.mxu2  ;;  %3659 = vmatmul.bf16.vlgmr.msrb.gmra.mxu1 %v8623_v21  ;;  %v5922_v18 = vor.u32 %v6504_v56, %v5921_v10  ;;  %v5249_v26 = vld [vmem:[%s9648_s8 + $0xb0] sm:$0xf]  ;;  %v6427_v10 = vld [vmem:[%s9648_s8 + $0x3a0] sm:$0xf0]  ;;  %v6361_v56 = vld [vmem:[%s9648_s8 + $0x194] sm:$0xf]  ;;  %v5166_v16 = vor.u32 %v6315_v6, %v5165_v5 }
 0x2e4   :  { %v2190_v32 = vadd.f32 %v2189_v29, %v1988_v19  ;;  %3685 = vmatmul.bf16.vlgmr.msrb.gmra.mxu0 %v8631_v25  ;;  %3755 = vmatpush.bf16.msrb.mxu1 %v5586_v20  ;;  %v2178_v37 = vpop.f32.mrf.mxu1  ;;  %v6385_v19 = vld [vmem:[%s9648_s8 + $0x250] sm:$0xf0]  ;;  %v5278_v20 = vor.u32 %v6343_v7, %v5277_v13  ;;  %v6448_v29 = vld [vmem:[%s9648_s8 + $0x448] sm:$0xf0]  ;;  %v5699_v3 = vld [vmem:[%s9648_s8 + $0x44c] sm:$0xf0] }
 0x2e5   :  { %v2206_v34 = vmax.f32 %v2164_v28, 0.0  ;;  %3781 = vmatpush.bf16.msrb.mxu0 %v6034_v22  ;;  %v2204_v33 = vpop.f32.mrf.mxu0  ;;  %v5893_v22 = vld [vmem:[%s9648_s8 + $0x5b8] sm:$0xf]  ;;  %v5446_v17 = vor.u32 %v6385_v19, %v5445_v8  ;;  %v5697_v28 = vld [vmem:[%s9648_s8 + $0x430] sm:$0xf]  ;;  %v5250_v37 = vor.u32 %v6336_v54, %v5249_v26 }
 0x2e6   :  { %v2208_v40 = vmax.f32 %v2190_v32, 0.0  ;;  %v5894_v30 = vor.u32 %v6497_v23, %v5893_v22  ;;  %v6378_v32 = vld [vmem:[%s9648_s8 + $0x218] sm:$0xf0]  ;;  %v5698_v31 = vor.u32 %v6448_v29, %v5697_v28  ;;  %v6329_v33 = vld [vmem:[%s9648_s8 + $0x90] sm:$0xf0] }
 0x2e7   :  { %v8665_v43 = vpack.c.bf16 %v2206_v34, %v2206_v34  ;;  %v5221_v34 = vld [vmem:[%s9648_s8 + $0x78] sm:$0xf]  ;;  %v6473_v7 = vld [vmem:[%s9648_s8 + $0x514] sm:$0xf]  ;;  %v5531_v8 = vld [vmem:[%s9648_s8 + $0x2fc] sm:$0xf0] }
 0x2e8   :  { %v8673_v46 = vpack.c.bf16 %v2208_v40, %v2208_v40  ;;  %3756 = vmatpush.bf16.msrb.mxu1 %v5558_v11  ;;  %v5865_v11 = vld [vmem:[%s9648_s8 + $0x580] sm:$0xf]  ;;  %v5389_v40 = vld [vmem:[%s9648_s8 + $0x1c8] sm:$0xf]  ;;  %v5222_v61 = vor.u32 %v6329_v33, %v5221_v34  ;;  %v6515_v22 = vld [vmem:[%s9648_s8 + $0x664] sm:$0xf] }
 0x2e9   :  { %3782 = vmatpush.bf16.msrb.mxu0 %v6006_v35  ;;  %3646 = vmatmul.bf16.vlgmr.msrb.gmra.mxu3 %v8665_v43  ;;  %v5418_v35 = vor.u32 %v6378_v32, %v5417_v63  ;;  %v5979_v23 = vld [vmem:[%s9648_s8 + $0x67c] sm:$0xf0]  ;;  %v6354_v26 = vld [vmem:[%s9648_s8 + $0x15c] sm:$0xf]  ;;  %v5335_v54 = vld [vmem:[%s9648_s8 + $0x174] sm:$0xf0] }
 0x2ea   :  { %3672 = vmatmul.bf16.vlgmr.msrb.gmra.mxu2 %v8673_v46  ;;  %3742 = vmatpush.bf16.msrb.mxu3 %v5362_v39  ;;  %v2165_v53 = vpop.f32.mrf.mxu3  ;;  %v5866_v39 = vor.u32 %v6490_v27, %v5865_v11  ;;  %v6466_v28 = vld [vmem:[%s9648_s8 + $0x4dc] sm:$0xf]  ;;  %v5783_v29 = vld [vmem:[%s9648_s8 + $0x4f4] sm:$0xf0]  ;;  %v6396_v63 = vld [vmem:[%s9648_s8 + $0x2ac] sm:$0xf] }
 0x2eb   :  { %3768 = vmatpush.bf16.msrb.mxu2 %v5810_v44  ;;  %v2191_v59 = vpop.f32.mrf.mxu2  ;;  %v6483_v44 = vld [vmem:[%s9648_s8 + $0x560] sm:$0xf0]  ;;  %v5390_v53 = vor.u32 %v6371_v41, %v5389_v40  ;;  %v5503_v32 = vld [vmem:[%s9648_s8 + $0x2c4] sm:$0xf0]  ;;  %v6508_v11 = vld [vmem:[%s9648_s8 + $0x62c] sm:$0xf] }
 0x2ec   :  { %3757 = vmatpush.bf16.msrb.mxu1 %v5530_v47  ;;  %v5587_v47 = vld [vmem:[%s9648_s8 + $0x36c] sm:$0xf0]  ;;  %v5838_v58 = vor.u32 %v6483_v44, %v5837_v42  ;;  %v5951_v27 = vld [vmem:[%s9648_s8 + $0x644] sm:$0xf0]  ;;  %v6347_v34 = vld [vmem:[%s9648_s8 + $0x124] sm:$0xf] }
 0x2ed   :  { %3783 = vmatpush.bf16.msrb.mxu0 %v5978_v50  ;;  %v6035_v50 = vld [vmem:[%s9648_s8 + $0x6ec] sm:$0xf0]  ;;  %v5590_v59 = vor.u32 %v6417_v45, %v5587_v47  ;;  %v5307_v33 = vld [vmem:[%s9648_s8 + $0x13c] sm:$0xf0]  ;;  %v5954_v40 = vor.u32 %v6508_v11, %v5951_v27  ;;  %v6501_v44 = vld [vmem:[%s9648_s8 + $0x5f4] sm:$0xf]  ;;  %v5758_v45 = vor.u32 %v6459_v36, %v5755_v38 }
 0x2ee   :  { %3743 = vmatpush.bf16.msrb.mxu3 %v5334_v55  ;;  %v5641_v55 = vld [vmem:[%s9648_s8 + $0x3c0] sm:$0xf]  ;;  %v6038_v62 = vor.u32 %v6529_v48, %v6035_v50  ;;  %v5475_v41 = vld [vmem:[%s9648_s8 + $0x28c] sm:$0xf0]  ;;  %v5310_v42 = vor.u32 %v6347_v34, %v5307_v33  ;;  %v6340_v47 = vld [vmem:[%s9648_s8 + $0xec] sm:$0xf] }
 0x2ef   :  { %3769 = vmatpush.bf16.msrb.mxu2 %v5782_v60  ;;  %v6410_v60 = vld [vmem:[%s9648_s8 + $0x31c] sm:$0xf]  ;;  %v5279_v48 = vld [vmem:[%s9648_s8 + $0x104] sm:$0xf0]  ;;  %v6452_v50 = vld [vmem:[%s9648_s8 + $0x46c] sm:$0xf] }
 0x2f0   :  { %3758 = vmatpush.bf16.msrb.mxu1 %v5502_v1  ;;  %v5559_v1 = vld [vmem:[%s9648_s8 + $0x334] sm:$0xf0]  ;;  %v6375_v5 = vld [vmem:[%s9648_s8 + $0x204] sm:$0xf]  ;;  %v5419_v6 = vld [vmem:[%s9648_s8 + $0x21c] sm:$0xf0] }
 0x2f1   :  { %3784 = vmatpush.bf16.msrb.mxu0 %v5950_v4  ;;  %v5642_v4 = vor.u32 %v6434_v57, %v5641_v55  ;;  %v5562_v13 = vor.u32 %v6410_v60, %v5559_v1  ;;  %v5447_v55 = vld [vmem:[%s9648_s8 + $0x254] sm:$0xf0]  ;;  %v5282_v57 = vor.u32 %v6340_v47, %v5279_v48  ;;  %v5730_v60 = vor.u32 %v6452_v50, %v5727_v51  ;;  %v6013_v36 = vld [vmem:[%s9648_s8 + $0x6a0] sm:$0xf]  ;;  %v6526_v38 = vld [vmem:[%s9648_s8 + $0x6b8] sm:$0xf0] }
 0x2f2   :  { %3744 = vmatpush.bf16.msrb.mxu3 %v5306_v9  ;;  %v5613_v9 = vld [vmem:[%s9648_s8 + $0x388] sm:$0xf]  ;;  %v5817_v48 = vld [vmem:[%s9648_s8 + $0x518] sm:$0xf]  ;;  %v6014_v50 = vor.u32 %v6526_v38, %v6013_v36  ;;  %v6449_v38 = vld [vmem:[%s9648_s8 + $0x450] sm:$0xf0] }
 0x2f3   :  { %3770 = vmatpush.bf16.msrb.mxu2 %v5754_v12  ;;  %3711 = vmatmul.bf16.vlgmr.msra.gmra.mxu1 %v8623_v21  ;;  %v5363_v12 = vld [vmem:[%s9648_s8 + $0x1ac] sm:$0xf0]  ;;  %v5614_v19 = vor.u32 %v6427_v10, %v5613_v9  ;;  %v6487_v10 = vld [vmem:[%s9648_s8 + $0x584] sm:$0xf]  ;;  %v5705_v36 = vld [vmem:[%s9648_s8 + $0x438] sm:$0xf] }
 0x2f4   :  { %3737 = vmatmul.bf16.vlgmr.msra.gmra.mxu0 %v8631_v25  ;;  %3759 = vmatpush.bf16.msrb.mxu1 %v5474_v14  ;;  %v5811_v14 = vld [vmem:[%s9648_s8 + $0x52c] sm:$0xf0] }
 0x2f5   :  { %3785 = vmatpush.bf16.msrb.mxu0 %v5922_v18  ;;  %v6403_v18 = vld [vmem:[%s9648_s8 + $0x2e4] sm:$0xf] }
 0x2f6   :  { %3745 = vmatpush.bf16.msrb.mxu3 %v5278_v20  ;;  %v5366_v20 = vor.u32 %v6361_v56, %v5363_v12  ;;  %v5867_v56 = vld [vmem:[%s9648_s8 + $0x59c] sm:$0xf0]  ;;  %v5702_v12 = vor.u32 %v6445_v2, %v5699_v3  ;;  %v6470_v3 = vld [vmem:[%s9648_s8 + $0x4f8] sm:$0xf0] }
 0x2f7   :  { %3771 = vmatpush.bf16.msrb.mxu2 %v5726_v24  ;;  %v5814_v24 = vor.u32 %v6473_v7, %v5811_v14  ;;  %v5223_v7 = vld [vmem:[%s9648_s8 + $0x94] sm:$0xf0]  ;;  %v5422_v14 = vor.u32 %v6375_v5, %v5419_v6  ;;  %v5789_v2 = vld [vmem:[%s9648_s8 + $0x4e0] sm:$0xf]  ;;  %v5509_v5 = vld [vmem:[%s9648_s8 + $0x2b0] sm:$0xf] }
 0x2f8   :  { %3760 = vmatpush.bf16.msrb.mxu1 %v5446_v17  ;;  %v5534_v17 = vor.u32 %v6403_v18, %v5531_v8  ;;  %v6368_v18 = vld [vmem:[%s9648_s8 + $0x1cc] sm:$0xf]  ;;  %v5870_v8 = vor.u32 %v6487_v10, %v5867_v56  ;;  %v5957_v10 = vld [vmem:[%s9648_s8 + $0x630] sm:$0xf] }
 0x2f9   :  { %3786 = vmatpush.bf16.msrb.mxu0 %v5894_v30  ;;  %3698 = vmatmul.bf16.vlgmr.msra.gmra.mxu3 %v8665_v43  ;;  %v5982_v30 = vor.u32 %v6515_v22, %v5979_v23  ;;  %v5839_v22 = vld [vmem:[%s9648_s8 + $0x564] sm:$0xf0]  ;;  %v6400_v6 = vld [vmem:[%s9648_s8 + $0x2c8] sm:$0xf0] }
 0x2fa   :  { %3724 = vmatmul.bf16.vlgmr.msra.gmra.mxu2 %v8673_v46  ;;  %3746 = vmatpush.bf16.msrb.mxu3 %v5250_v37  ;;  %v5338_v37 = vor.u32 %v6354_v26, %v5335_v54  ;;  %v6421_v26 = vld [vmem:[%s9648_s8 + $0x370] sm:$0xf0]  ;;  %v6041_v54 = vld [vmem:[%s9648_s8 + $0x6d8] sm:$0xf]  ;;  %v6512_v56 = vld [vmem:[%s9648_s8 + $0x648] sm:$0xf0] }
 0x2fb   :  { %3772 = vmatpush.bf16.msrb.mxu2 %v5698_v31  ;;  %v5786_v31 = vor.u32 %v6466_v28, %v5783_v29  ;;  %v6533_v28 = vld [vmem:[%s9648_s8 + $0x6f0] sm:$0xf0]  ;;  %v6319_v29 = vld [vmem:[%s9648_s8 + $0x44] sm:$0xf] }
 0x2fc   :  { %3761 = vmatpush.bf16.msrb.mxu1 %v5418_v35  ;;  %v5506_v35 = vor.u32 %v6396_v63, %v5503_v32  ;;  %v6431_v32 = vld [vmem:[%s9648_s8 + $0x3c4] sm:$0xf]  ;;  %v6042_v34 = vor.u32 %v6533_v28, %v6041_v54  ;;  %v6344_v54 = vld [vmem:[%s9648_s8 + $0x108] sm:$0xf0]  ;;  %v5733_v28 = vld [vmem:[%s9648_s8 + $0x470] sm:$0xf] }
 0x2fd   :  { %3787 = vmatpush.bf16.msrb.mxu0 %v5866_v39  ;;  %v6389_v39 = vld [vmem:[%s9648_s8 + $0x274] sm:$0xf] }
 0x2fe   :  { %3747 = vmatpush.bf16.msrb.mxu3 %v5222_v61  ;;  %v5923_v61 = vld [vmem:[%s9648_s8 + $0x60c] sm:$0xf0] }
 0x2ff   :  { %3773 = vmatpush.bf16.msrb.mxu2 %v5670_v49  ;;  %v5478_v49 = vor.u32 %v6389_v39, %v5475_v41  ;;  %v5926_v52 = vor.u32 %v6501_v44, %v5923_v61  ;;  %v6312_v39 = vld [vmem:[%s9648_s8 + $0xc] sm:$0xf]  ;;  %v5167_v41 = vld [vmem:[%s9648_s8 + $0x24] sm:$0xf0]  ;;  %v5369_v61 = vld [vmem:[%s9648_s8 + $0x198] sm:$0xf] }
 0x300   :  { %3762 = vmatpush.bf16.msrb.mxu1 %v5390_v53  ;;  %v6382_v53 = vld [vmem:[%s9648_s8 + $0x23c] sm:$0xf]  ;;  %v5615_v44 = vld [vmem:[%s9648_s8 + $0x3a4] sm:$0xf0]  ;;  %v5170_v51 = vor.u32 %v6312_v39, %v5167_v41  ;;  %v6379_v41 = vld [vmem:[%s9648_s8 + $0x220] sm:$0xf0] }
 0x301   :  { %3788 = vmatpush.bf16.msrb.mxu0 %v5838_v58  ;;  %v6494_v58 = vld [vmem:[%s9648_s8 + $0x5bc] sm:$0xf]  ;;  %v5450_v1 = vor.u32 %v6382_v53, %v5447_v55  ;;  %v6407_v53 = vld [vmem:[%s9648_s8 + $0x300] sm:$0xf0]  ;;  %v5425_v39 = vld [vmem:[%s9648_s8 + $0x208] sm:$0xf] }
 0x302   :  { %3748 = vmatpush.bf16.msrb.mxu3 %v5194_v0  ;;  %v5251_v0 = vld [vmem:[%s9648_s8 + $0xcc] sm:$0xf0] }
 0x303   :  { %3774 = vmatpush.bf16.msrb.mxu2 %v5642_v4  ;;  %3763 = vmatmul.bf16.vlgmr.msrb.gmra.mxu1 %v8623_v21 }
 0x304   :  { %3807 = vmatpush.bf16.msra.mxu1 %v5590_v59  ;;  %3789 = vmatmul.bf16.vlgmr.msrb.gmra.mxu0 %v8631_v25  ;;  %v5895_v59 = vld [vmem:[%s9648_s8 + $0x5d4] sm:$0xf0] }
 0x305   :  { %3833 = vmatpush.bf16.msra.mxu0 %v6038_v62  ;;  %v6333_v62 = vld [vmem:[%s9648_s8 + $0xb4] sm:$0xf]  ;;  %v5898_v4 = vor.u32 %v6494_v58, %v5895_v59  ;;  %v5985_v58 = vld [vmem:[%s9648_s8 + $0x668] sm:$0xf]  ;;  %v6519_v59 = vld [vmem:[%s9648_s8 + $0x680] sm:$0xf0] }
 0x306   :  { %3749 = vmatpush.bf16.msrb.mxu3 %v5166_v16  ;;  %v5254_v9 = vor.u32 %v6333_v62, %v5251_v0  ;;  %v5671_v16 = vld [vmem:[%s9648_s8 + $0x414] sm:$0xf0]  ;;  %v5341_v62 = vld [vmem:[%s9648_s8 + $0x160] sm:$0xf]  ;;  %v6358_v0 = vld [vmem:[%s9648_s8 + $0x178] sm:$0xf0] }
 0x307   :  { %3775 = vmatpush.bf16.msrb.mxu2 %v5614_v19  ;;  %v5391_v19 = vld [vmem:[%s9648_s8 + $0x1e4] sm:$0xf0] }
 0x308   :  { %3808 = vmatpush.bf16.msra.mxu1 %v5562_v13  ;;  %v6326_v13 = vld [vmem:[%s9648_s8 + $0x7c] sm:$0xf]  ;;  %v5394_v63 = vor.u32 %v6368_v18, %v5391_v19  ;;  %v5958_v18 = vor.u32 %v6512_v56, %v5957_v10  ;;  %v6393_v19 = vld [vmem:[%s9648_s8 + $0x290] sm:$0xf0] }
 0x309   :  { %3834 = vmatpush.bf16.msra.mxu0 %v6010_v15  ;;  %3750 = vmatmul.bf16.vlgmr.msrb.gmra.mxu3 %v8665_v43  ;;  %v6438_v15 = vld [vmem:[%s9648_s8 + $0x3fc] sm:$0xf]  ;;  %v5226_v23 = vor.u32 %v6326_v13, %v5223_v7  ;;  %v5313_v13 = vld [vmem:[%s9648_s8 + $0x128] sm:$0xf]  ;;  %v6351_v7 = vld [vmem:[%s9648_s8 + $0x140] sm:$0xf0] }
 0x30a   :  { %3794 = vmatpush.bf16.msra.mxu3 %v5366_v20  ;;  %3776 = vmatmul.bf16.vlgmr.msrb.gmra.mxu2 %v8673_v46  ;;  %v6480_v20 = vld [vmem:[%s9648_s8 + $0x54c] sm:$0xf] }
 0x30b   :  { %3820 = vmatpush.bf16.msra.mxu2 %v5814_v24  ;;  %v5593_v24 = vld [vmem:[%s9648_s8 + $0x358] sm:$0xf]  ;;  %v5842_v11 = vor.u32 %v6480_v20, %v5839_v22  ;;  %v5314_v20 = vor.u32 %v6351_v7, %v5313_v13 }
 0x30c   :  { %3809 = vmatpush.bf16.msra.mxu1 %v5534_v17  ;;  %v5674_v17 = vor.u32 %v6438_v15, %v5671_v16  ;;  %v5594_v27 = vor.u32 %v6421_v26, %v5593_v24  ;;  %v5761_v15 = vld [vmem:[%s9648_s8 + $0x4a8] sm:$0xf]  ;;  %v6463_v16 = vld [vmem:[%s9648_s8 + $0x4c0] sm:$0xf0]  ;;  %v5929_v22 = vld [vmem:[%s9648_s8 + $0x5f8] sm:$0xf] }
 0x30d   :  { %3835 = vmatpush.bf16.msra.mxu0 %v5982_v30  ;;  %v5195_v30 = vld [vmem:[%s9648_s8 + $0x5c] sm:$0xf0]  ;;  %v5762_v24 = vor.u32 %v6463_v16, %v5761_v15  ;;  %v5285_v26 = vld [vmem:[%s9648_s8 + $0xf0] sm:$0xf]  ;;  %v6523_v15 = vld [vmem:[%s9648_s8 + $0x6a4] sm:$0xf] }
 0x30e   :  { %3795 = vmatpush.bf16.msra.mxu3 %v5338_v37  ;;  %v5643_v37 = vld [vmem:[%s9648_s8 + $0x3dc] sm:$0xf0]  ;;  %v5198_v33 = vor.u32 %v6319_v29, %v5195_v30  ;;  %v6456_v29 = vld [vmem:[%s9648_s8 + $0x488] sm:$0xf0] }
 0x30f   :  { %3821 = vmatpush.bf16.msra.mxu2 %v5786_v31  ;;  %v5565_v31 = vld [vmem:[%s9648_s8 + $0x320] sm:$0xf] }
 0x310   :  { %3810 = vmatpush.bf16.msra.mxu1 %v5506_v35  ;;  %v6414_v35 = vld [vmem:[%s9648_s8 + $0x338] sm:$0xf0]  ;;  %v6015_v16 = vld [vmem:[%s9648_s8 + $0x6bc] sm:$0xf0] }
 0x311   :  { %3836 = vmatpush.bf16.msra.mxu0 %v5954_v40  ;;  %v5646_v40 = vor.u32 %v6431_v32, %v5643_v37  ;;  %v5566_v47 = vor.u32 %v6414_v35, %v5565_v31  ;;  %v6386_v32 = vld [vmem:[%s9648_s8 + $0x258] sm:$0xf0]  ;;  %v5286_v37 = vor.u32 %v6344_v54, %v5285_v26  ;;  %v5734_v31 = vor.u32 %v6456_v29, %v5733_v28 }
 0x312   :  { %3796 = vmatpush.bf16.msra.mxu3 %v5310_v42  ;;  %v6424_v42 = vld [vmem:[%s9648_s8 + $0x38c] sm:$0xf]  ;;  %v6474_v54 = vld [vmem:[%s9648_s8 + $0x51c] sm:$0xf]  ;;  %v6018_v28 = vor.u32 %v6523_v15, %v6015_v16  ;;  %v5707_v16 = vld [vmem:[%s9648_s8 + $0x454] sm:$0xf0] }
 0x313   :  { %3822 = vmatpush.bf16.msra.mxu2 %v5758_v45  ;;  %v6365_v45 = vld [vmem:[%s9648_s8 + $0x1b0] sm:$0xf0]  ;;  %v5618_v55 = vor.u32 %v6424_v42, %v5615_v44  ;;  %v5873_v44 = vld [vmem:[%s9648_s8 + $0x588] sm:$0xf]  ;;  %v6446_v15 = vld [vmem:[%s9648_s8 + $0x43c] sm:$0xf] }
 0x314   :  { %3811 = vmatpush.bf16.msra.mxu1 %v5478_v49  ;;  %v6477_v49 = vld [vmem:[%s9648_s8 + $0x530] sm:$0xf0] }
 0x315   :  { %3837 = vmatpush.bf16.msra.mxu0 %v5926_v52  ;;  %v5537_v52 = vld [vmem:[%s9648_s8 + $0x2e8] sm:$0xf] }
 0x316   :  { %3797 = vmatpush.bf16.msra.mxu3 %v5282_v57  ;;  %v5370_v57 = vor.u32 %v6365_v45, %v5369_v61  ;;  %v6491_v61 = vld [vmem:[%s9648_s8 + $0x5a0] sm:$0xf0]  ;;  %v5706_v45 = vor.u32 %v6449_v38, %v5705_v36  ;;  %v5791_v38 = vld [vmem:[%s9648_s8 + $0x4fc] sm:$0xf0] }
 0x317   :  { %3823 = vmatpush.bf16.msra.mxu2 %v5730_v60  ;;  %v5818_v60 = vor.u32 %v6477_v49, %v5817_v48  ;;  %v6330_v48 = vld [vmem:[%s9648_s8 + $0x98] sm:$0xf0]  ;;  %v5426_v49 = vor.u32 %v6379_v41, %v5425_v39  ;;  %v6467_v36 = vld [vmem:[%s9648_s8 + $0x4e4] sm:$0xf]  ;;  %v6397_v39 = vld [vmem:[%s9648_s8 + $0x2b4] sm:$0xf] }
 0x318   :  { %3812 = vmatpush.bf16.msra.mxu1 %v5450_v1  ;;  %v5538_v1 = vor.u32 %v6407_v53, %v5537_v52  ;;  %v5397_v52 = vld [vmem:[%s9648_s8 + $0x1d0] sm:$0xf]  ;;  %v5874_v53 = vor.u32 %v6491_v61, %v5873_v44  ;;  %v6509_v44 = vld [vmem:[%s9648_s8 + $0x634] sm:$0xf] }
 0x319   :  { %3838 = vmatpush.bf16.msra.mxu0 %v5898_v4  ;;  %v5986_v4 = vor.u32 %v6519_v59, %v5985_v58  ;;  %v6484_v58 = vld [vmem:[%s9648_s8 + $0x568] sm:$0xf0]  ;;  %v5511_v41 = vld [vmem:[%s9648_s8 + $0x2cc] sm:$0xf0] }
 0x31a   :  { %3798 = vmatpush.bf16.msra.mxu3 %v5254_v9  ;;  %v5342_v9 = vor.u32 %v6358_v0, %v5341_v62  ;;  %v5595_v62 = vld [vmem:[%s9648_s8 + $0x374] sm:$0xf0]  ;;  %v6530_v0 = vld [vmem:[%s9648_s8 + $0x6dc] sm:$0xf]  ;;  %v5959_v61 = vld [vmem:[%s9648_s8 + $0x64c] sm:$0xf0] }
 0x31b   :  { %3824 = vmatpush.bf16.msra.mxu2 %v5702_v12  ;;  %v5790_v12 = vor.u32 %v6470_v3, %v5789_v2  ;;  %v6043_v2 = vld [vmem:[%s9648_s8 + $0x6f4] sm:$0xf0]  ;;  %v5201_v3 = vld [vmem:[%s9648_s8 + $0x48] sm:$0xf] }
 0x31c   :  { %3813 = vmatpush.bf16.msra.mxu1 %v5422_v14  ;;  %v5510_v14 = vor.u32 %v6400_v6, %v5509_v5  ;;  %v5649_v6 = vld [vmem:[%s9648_s8 + $0x3c8] sm:$0xf]  ;;  %v6046_v13 = vor.u32 %v6530_v0, %v6043_v2  ;;  %v5287_v0 = vld [vmem:[%s9648_s8 + $0x10c] sm:$0xf0]  ;;  %v6453_v2 = vld [vmem:[%s9648_s8 + $0x474] sm:$0xf] }
 0x31d   :  { %3839 = vmatpush.bf16.msra.mxu0 %v5870_v8  ;;  %v5481_v8 = vld [vmem:[%s9648_s8 + $0x278] sm:$0xf] }
 0x31e   :  { %3799 = vmatpush.bf16.msra.mxu3 %v5226_v23  ;;  %v6505_v23 = vld [vmem:[%s9648_s8 + $0x610] sm:$0xf0] }
 0x31f   :  { %3825 = vmatpush.bf16.msra.mxu2 %v5674_v17  ;;  %v5482_v17 = vor.u32 %v6393_v19, %v5481_v8  ;;  %v5930_v30 = vor.u32 %v6505_v23, %v5929_v22  ;;  %v5173_v8 = vld [vmem:[%s9648_s8 + $0x10] sm:$0xf]  ;;  %v6316_v19 = vld [vmem:[%s9648_s8 + $0x28] sm:$0xf0]  ;;  %v6362_v23 = vld [vmem:[%s9648_s8 + $0x19c] sm:$0xf] }
 0x320   :  { %3814 = vmatpush.bf16.msra.mxu1 %v5394_v63  ;;  %v5453_v63 = vld [vmem:[%s9648_s8 + $0x240] sm:$0xf]  ;;  %v6428_v22 = vld [vmem:[%s9648_s8 + $0x3a8] sm:$0xf0]  ;;  %v5174_v29 = vor.u32 %v6316_v19, %v5173_v8  ;;  %v5427_v19 = vld [vmem:[%s9648_s8 + $0x224] sm:$0xf0] }
 0x321   :  { %3840 = vmatpush.bf16.msra.mxu0 %v5842_v11  ;;  %v5901_v11 = vld [vmem:[%s9648_s8 + $0x5c0] sm:$0xf]  ;;  %v5454_v35 = vor.u32 %v6386_v32, %v5453_v63  ;;  %v5539_v63 = vld [vmem:[%s9648_s8 + $0x304] sm:$0xf0]  ;;  %v6376_v8 = vld [vmem:[%s9648_s8 + $0x20c] sm:$0xf] }
 0x322   :  { %3800 = vmatpush.bf16.msra.mxu3 %v5198_v33  ;;  %v6337_v33 = vld [vmem:[%s9648_s8 + $0xd0] sm:$0xf0] }
 0x323   :  { %3826 = vmatpush.bf16.msra.mxu2 %v5646_v40  ;;  %3815 = vmatmul.bf16.vlgmr.msra.gmra.mxu1 %v8623_v21 }
 0x324   :  { %3859 = vmatpush.bf16.msrb.mxu1 %v5594_v27  ;;  %3841 = vmatmul.bf16.vlgmr.msra.gmra.mxu0 %v8631_v25  ;;  %v6498_v27 = vld [vmem:[%s9648_s8 + $0x5d8] sm:$0xf0] }
 0x325   :  { %3885 = vmatpush.bf16.msrb.mxu0 %v6042_v34  ;;  %v5257_v34 = vld [vmem:[%s9648_s8 + $0xb8] sm:$0xf]  ;;  %v5902_v40 = vor.u32 %v6498_v27, %v5901_v11  ;;  %v6516_v11 = vld [vmem:[%s9648_s8 + $0x66c] sm:$0xf]  ;;  %v5987_v27 = vld [vmem:[%s9648_s8 + $0x684] sm:$0xf0] }
 0x326   :  { %3801 = vmatpush.bf16.msra.mxu3 %v5170_v51  ;;  %v5258_v42 = vor.u32 %v6337_v33, %v5257_v34  ;;  %v6442_v51 = vld [vmem:[%s9648_s8 + $0x418] sm:$0xf0]  ;;  %v6355_v34 = vld [vmem:[%s9648_s8 + $0x164] sm:$0xf]  ;;  %v5343_v33 = vld [vmem:[%s9648_s8 + $0x17c] sm:$0xf0] }
 0x327   :  { %3827 = vmatpush.bf16.msra.mxu2 %v5618_v55  ;;  %v6372_v55 = vld [vmem:[%s9648_s8 + $0x1e8] sm:$0xf0] }
 0x328   :  { %3860 = vmatpush.bf16.msrb.mxu1 %v5566_v47  ;;  %v5229_v47 = vld [vmem:[%s9648_s8 + $0x80] sm:$0xf]  ;;  %v5398_v5 = vor.u32 %v6372_v55, %v5397_v52  ;;  %v5962_v52 = vor.u32 %v6509_v44, %v5959_v61  ;;  %v5483_v55 = vld [vmem:[%s9648_s8 + $0x294] sm:$0xf0] }
 0x329   :  { %3886 = vmatpush.bf16.msrb.mxu0 %v6014_v50  ;;  %3802 = vmatmul.bf16.vlgmr.msra.gmra.mxu3 %v8665_v43  ;;  %v5677_v50 = vld [vmem:[%s9648_s8 + $0x400] sm:$0xf]  ;;  %v5230_v59 = vor.u32 %v6330_v48, %v5229_v47  ;;  %v6348_v47 = vld [vmem:[%s9648_s8 + $0x12c] sm:$0xf]  ;;  %v5315_v48 = vld [vmem:[%s9648_s8 + $0x144] sm:$0xf0] }
 0x32a   :  { %3846 = vmatpush.bf16.msrb.mxu3 %v5370_v57  ;;  %3828 = vmatmul.bf16.vlgmr.msra.gmra.mxu2 %v8673_v46  ;;  %v5845_v57 = vld [vmem:[%s9648_s8 + $0x550] sm:$0xf] }
 0x32b   :  { %3872 = vmatpush.bf16.msrb.mxu2 %v5818_v60  ;;  %v6418_v60 = vld [vmem:[%s9648_s8 + $0x35c] sm:$0xf]  ;;  %v5846_v10 = vor.u32 %v6484_v58, %v5845_v57  ;;  %v5318_v57 = vor.u32 %v6348_v47, %v5315_v48 }
 0x32c   :  { %3861 = vmatpush.bf16.msrb.mxu1 %v5538_v1  ;;  %v5678_v1 = vor.u32 %v6442_v51, %v5677_v50  ;;  %v5598_v56 = vor.u32 %v6418_v60, %v5595_v62  ;;  %v6460_v50 = vld [vmem:[%s9648_s8 + $0x4ac] sm:$0xf]  ;;  %v5763_v51 = vld [vmem:[%s9648_s8 + $0x4c4] sm:$0xf0]  ;;  %v6502_v58 = vld [vmem:[%s9648_s8 + $0x5fc] sm:$0xf] }
 0x32d   :  { %3887 = vmatpush.bf16.msrb.mxu0 %v5986_v4  ;;  %v6323_v4 = vld [vmem:[%s9648_s8 + $0x60] sm:$0xf0]  ;;  %v5766_v60 = vor.u32 %v6460_v50, %v5763_v51  ;;  %v6341_v62 = vld [vmem:[%s9648_s8 + $0xf4] sm:$0xf]  ;;  %v6021_v50 = vld [vmem:[%s9648_s8 + $0x6a8] sm:$0xf] }
 0x32e   :  { %3847 = vmatpush.bf16.msrb.mxu3 %v5342_v9  ;;  %v6435_v9 = vld [vmem:[%s9648_s8 + $0x3e0] sm:$0xf0]  ;;  %v5202_v7 = vor.u32 %v6323_v4, %v5201_v3  ;;  %v5735_v3 = vld [vmem:[%s9648_s8 + $0x48c] sm:$0xf0] }
 0x32f   :  { %3873 = vmatpush.bf16.msrb.mxu2 %v5790_v12  ;;  %v6411_v12 = vld [vmem:[%s9648_s8 + $0x324] sm:$0xf] }
 0x330   :  { %3862 = vmatpush.bf16.msrb.mxu1 %v5510_v14  ;;  %v5567_v14 = vld [vmem:[%s9648_s8 + $0x33c] sm:$0xf0]  ;;  %v6527_v51 = vld [vmem:[%s9648_s8 + $0x6c0] sm:$0xf0] }
 0x331   :  { %3888 = vmatpush.bf16.msrb.mxu0 %v5958_v18  ;;  %v5650_v18 = vor.u32 %v6435_v9, %v5649_v6  ;;  %v5570_v26 = vor.u32 %v6411_v12, %v5567_v14  ;;  %v5455_v6 = vld [vmem:[%s9648_s8 + $0x25c] sm:$0xf0]  ;;  %v5290_v9 = vor.u32 %v6341_v62, %v5287_v0  ;;  %v5738_v12 = vor.u32 %v6453_v2, %v5735_v3 }
 0x332   :  { %3848 = vmatpush.bf16.msrb.mxu3 %v5314_v20  ;;  %v5621_v20 = vld [vmem:[%s9648_s8 + $0x390] sm:$0xf]  ;;  %v5825_v0 = vld [vmem:[%s9648_s8 + $0x520] sm:$0xf]  ;;  %v6022_v2 = vor.u32 %v6527_v51, %v6021_v50  ;;  %v6338_v51 = vld [vmem:[%s9648_s8 + $0xd8] sm:$0xf0] }
 0x333   :  { %3874 = vmatpush.bf16.msrb.mxu2 %v5762_v24  ;;  %v5371_v24 = vld [vmem:[%s9648_s8 + $0x1b4] sm:$0xf0]  ;;  %v5622_v32 = vor.u32 %v6428_v22, %v5621_v20  ;;  %v6488_v22 = vld [vmem:[%s9648_s8 + $0x58c] sm:$0xf]  ;;  %v5265_v50 = vld [vmem:[%s9648_s8 + $0xc0] sm:$0xf] }
 0x334   :  { %3863 = vmatpush.bf16.msrb.mxu1 %v5482_v17  ;;  %v5819_v17 = vld [vmem:[%s9648_s8 + $0x534] sm:$0xf0] }
 0x335   :  { %3889 = vmatpush.bf16.msrb.mxu0 %v5930_v30  ;;  %v6404_v30 = vld [vmem:[%s9648_s8 + $0x2ec] sm:$0xf] }
 0x336   :  { %3849 = vmatpush.bf16.msrb.mxu3 %v5286_v37  ;;  %v5374_v37 = vor.u32 %v6362_v23, %v5371_v24  ;;  %v5875_v23 = vld [vmem:[%s9648_s8 + $0x5a4] sm:$0xf0]  ;;  %v5710_v24 = vor.u32 %v6446_v15, %v5707_v16  ;;  %v6471_v16 = vld [vmem:[%s9648_s8 + $0x500] sm:$0xf0] }
 0x337   :  { %3875 = vmatpush.bf16.msrb.mxu2 %v5734_v31  ;;  %v5822_v31 = vor.u32 %v6474_v54, %v5819_v17  ;;  %v5231_v54 = vld [vmem:[%s9648_s8 + $0x9c] sm:$0xf0]  ;;  %v5430_v17 = vor.u32 %v6376_v8, %v5427_v19  ;;  %v5797_v15 = vld [vmem:[%s9648_s8 + $0x4e8] sm:$0xf]  ;;  %v5517_v8 = vld [vmem:[%s9648_s8 + $0x2b8] sm:$0xf] }
 0x338   :  { %3864 = vmatpush.bf16.msrb.mxu1 %v5454_v35  ;;  %v5542_v35 = vor.u32 %v6404_v30, %v5539_v63  ;;  %v6369_v30 = vld [vmem:[%s9648_s8 + $0x1d4] sm:$0xf]  ;;  %v5878_v63 = vor.u32 %v6488_v22, %v5875_v23  ;;  %v5965_v22 = vld [vmem:[%s9648_s8 + $0x638] sm:$0xf] }
 0x339   :  { %3890 = vmatpush.bf16.msrb.mxu0 %v5902_v40  ;;  %v5990_v40 = vor.u32 %v6516_v11, %v5987_v27  ;;  %v5847_v11 = vld [vmem:[%s9648_s8 + $0x56c] sm:$0xf0]  ;;  %v6401_v19 = vld [vmem:[%s9648_s8 + $0x2d0] sm:$0xf0] }
 0x33a   :  { %3850 = vmatpush.bf16.msrb.mxu3 %v5258_v42  ;;  %v5346_v42 = vor.u32 %v6355_v34, %v5343_v33  ;;  %v6422_v34 = vld [vmem:[%s9648_s8 + $0x378] sm:$0xf0]  ;;  %v6049_v33 = vld [vmem:[%s9648_s8 + $0x6e0] sm:$0xf]  ;;  %v6513_v23 = vld [vmem:[%s9648_s8 + $0x650] sm:$0xf0] }
 0x33b   :  { %3876 = vmatpush.bf16.msrb.mxu2 %v5706_v45  ;;  %v5794_v45 = vor.u32 %v6467_v36, %v5791_v38  ;;  %v6534_v36 = vld [vmem:[%s9648_s8 + $0x6f8] sm:$0xf0]  ;;  %v6320_v38 = vld [vmem:[%s9648_s8 + $0x4c] sm:$0xf] }
 0x33c   :  { %3865 = vmatpush.bf16.msrb.mxu1 %v5426_v49  ;;  %v5514_v49 = vor.u32 %v6397_v39, %v5511_v41  ;;  %v6432_v41 = vld [vmem:[%s9648_s8 + $0x3cc] sm:$0xf]  ;;  %v6050_v47 = vor.u32 %v6534_v36, %v6049_v33  ;;  %v6345_v36 = vld [vmem:[%s9648_s8 + $0x110] sm:$0xf0] }
 0x33d   :  { %3891 = vmatpush.bf16.msrb.mxu0 %v5874_v53  ;;  %v6390_v53 = vld [vmem:[%s9648_s8 + $0x27c] sm:$0xf] }
 0x33e   :  { %3851 = vmatpush.bf16.msrb.mxu3 %v5230_v59  ;;  %v5931_v59 = vld [vmem:[%s9648_s8 + $0x614] sm:$0xf0] }
 0x33f   :  { %3877 = vmatpush.bf16.msrb.mxu2 %v5678_v1  ;;  %v5486_v1 = vor.u32 %v6390_v53, %v5483_v55  ;;  %v5934_v4 = vor.u32 %v6502_v58, %v5931_v59  ;;  %v6313_v53 = vld [vmem:[%s9648_s8 + $0x14] sm:$0xf]  ;;  %v5175_v55 = vld [vmem:[%s9648_s8 + $0x2c] sm:$0xf0]  ;;  %v5377_v59 = vld [vmem:[%s9648_s8 + $0x1a0] sm:$0xf] }
 0x340   :  { %3866 = vmatpush.bf16.msrb.mxu1 %v5398_v5  ;;  %v6383_v5 = vld [vmem:[%s9648_s8 + $0x244] sm:$0xf]  ;;  %v5623_v58 = vld [vmem:[%s9648_s8 + $0x3ac] sm:$0xf0]  ;;  %v5178_v3 = vor.u32 %v6313_v53, %v5175_v55  ;;  %v5713_v55 = vld [vmem:[%s9648_s8 + $0x440] sm:$0xf] }
 0x341   :  { %3892 = vmatpush.bf16.msrb.mxu0 %v5846_v10  ;;  %v6495_v10 = vld [vmem:[%s9648_s8 + $0x5c4] sm:$0xf]  ;;  %v5458_v14 = vor.u32 %v6383_v5, %v5455_v6  ;;  %v6408_v5 = vld [vmem:[%s9648_s8 + $0x308] sm:$0xf0] }
 0x342   :  { %3852 = vmatpush.bf16.msrb.mxu3 %v5202_v7  ;;  %v5259_v7 = vld [vmem:[%s9648_s8 + $0xd4] sm:$0xf0] }
 0x343   :  { %3878 = vmatpush.bf16.msrb.mxu2 %v5650_v18  ;;  %3867 = vmatmul.bf16.vlgmr.msrb.gmra.mxu1 %v8623_v21 }
 0x344   :  { %3911 = vmatpush.bf16.msra.mxu1 %v5598_v56  ;;  %3893 = vmatmul.bf16.vlgmr.msrb.gmra.mxu0 %v8631_v25  ;;  %v5903_v56 = vld [vmem:[%s9648_s8 + $0x5dc] sm:$0xf0] }
 0x345   :  { %3937 = vmatpush.bf16.msra.mxu0 %v6046_v13  ;;  %v6334_v13 = vld [vmem:[%s9648_s8 + $0xbc] sm:$0xf]  ;;  %v5906_v18 = vor.u32 %v6495_v10, %v5903_v56  ;;  %v5993_v10 = vld [vmem:[%s9648_s8 + $0x670] sm:$0xf]  ;;  %v6520_v56 = vld [vmem:[%s9648_s8 + $0x688] sm:$0xf0] }
 0x346   :  { %3853 = vmatpush.bf16.msrb.mxu3 %v5174_v29  ;;  %v5262_v20 = vor.u32 %v6334_v13, %v5259_v7  ;;  %v5679_v29 = vld [vmem:[%s9648_s8 + $0x41c] sm:$0xf0]  ;;  %v5349_v13 = vld [vmem:[%s9648_s8 + $0x168] sm:$0xf]  ;;  %v6359_v7 = vld [vmem:[%s9648_s8 + $0x180] sm:$0xf0] }
 0x347   :  { %3879 = vmatpush.bf16.msrb.mxu2 %v5622_v32  ;;  %v5399_v32 = vld [vmem:[%s9648_s8 + $0x1ec] sm:$0xf0] }
 0x348   :  { %3912 = vmatpush.bf16.msra.mxu1 %v5570_v26  ;;  %v6327_v26 = vld [vmem:[%s9648_s8 + $0x84] sm:$0xf]  ;;  %v5402_v39 = vor.u32 %v6369_v30, %v5399_v32  ;;  %v6464_v30 = vld [vmem:[%s9648_s8 + $0x4c8] sm:$0xf0]  ;;  %v5966_v32 = vor.u32 %v6513_v23, %v5965_v22  ;;  %v5209_v23 = vld [vmem:[%s9648_s8 + $0x50] sm:$0xf] }
 0x349   :  { %3938 = vmatpush.bf16.msra.mxu0 %v6018_v28  ;;  %3854 = vmatmul.bf16.vlgmr.msrb.gmra.mxu3 %v8665_v43  ;;  %v6439_v28 = vld [vmem:[%s9648_s8 + $0x404] sm:$0xf]  ;;  %v5234_v27 = vor.u32 %v6327_v26, %v5231_v54  ;;  %v5321_v26 = vld [vmem:[%s9648_s8 + $0x130] sm:$0xf]  ;;  %v6352_v54 = vld [vmem:[%s9648_s8 + $0x148] sm:$0xf0] }
 0x34a   :  { %3898 = vmatpush.bf16.msra.mxu3 %v5374_v37  ;;  %3880 = vmatmul.bf16.vlgmr.msrb.gmra.mxu2 %v8673_v46  ;;  %v6481_v37 = vld [vmem:[%s9648_s8 + $0x554] sm:$0xf] }
 0x34b   :  { %3924 = vmatpush.bf16.msra.mxu2 %v5822_v31  ;;  %v5601_v31 = vld [vmem:[%s9648_s8 + $0x360] sm:$0xf]  ;;  %v5850_v44 = vor.u32 %v6481_v37, %v5847_v11  ;;  %v6394_v11 = vld [vmem:[%s9648_s8 + $0x298] sm:$0xf0] }
 0x34c   :  { %3913 = vmatpush.bf16.msra.mxu1 %v5542_v35  ;;  %v5682_v35 = vor.u32 %v6439_v28, %v5679_v29  ;;  %v5602_v61 = vor.u32 %v6422_v34, %v5601_v31  ;;  %v5518_v28 = vor.u32 %v6401_v19, %v5517_v8  ;;  %v5769_v29 = vld [vmem:[%s9648_s8 + $0x4b0] sm:$0xf]  ;;  %v5489_v37 = vld [vmem:[%s9648_s8 + $0x280] sm:$0xf]  ;;  %v6506_v34 = vld [vmem:[%s9648_s8 + $0x618] sm:$0xf0] }
 0x34d   :  { %3939 = vmatpush.bf16.msra.mxu0 %v5990_v40  ;;  %v5203_v40 = vld [vmem:[%s9648_s8 + $0x64] sm:$0xf0]  ;;  %v5937_v31 = vld [vmem:[%s9648_s8 + $0x600] sm:$0xf]  ;;  %v5770_v33 = vor.u32 %v6464_v30, %v5769_v29  ;;  %v5853_v8 = vld [vmem:[%s9648_s8 + $0x558] sm:$0xf] }
 0x34e   :  { %3899 = vmatpush.bf16.msra.mxu3 %v5346_v42  ;;  %v5651_v42 = vld [vmem:[%s9648_s8 + $0x3e4] sm:$0xf0]  ;;  %v5206_v48 = vor.u32 %v6320_v38, %v5203_v40  ;;  %v5490_v38 = vor.u32 %v6394_v11, %v5489_v37  ;;  %v5741_v40 = vld [vmem:[%s9648_s8 + $0x478] sm:$0xf]  ;;  %v6485_v19 = vld [vmem:[%s9648_s8 + $0x570] sm:$0xf0] }
 0x34f   :  { %3925 = vmatpush.bf16.msra.mxu2 %v5794_v45  ;;  %v5573_v45 = vld [vmem:[%s9648_s8 + $0x328] sm:$0xf] }
 0x350   :  { %3914 = vmatpush.bf16.msra.mxu1 %v5514_v49  ;;  %v6415_v49 = vld [vmem:[%s9648_s8 + $0x340] sm:$0xf0] }
 0x351   :  { %3940 = vmatpush.bf16.msra.mxu0 %v5962_v52  ;;  %v5654_v52 = vor.u32 %v6432_v41, %v5651_v42  ;;  %v5574_v62 = vor.u32 %v6415_v49, %v5573_v45  ;;  %v5938_v41 = vor.u32 %v6506_v34, %v5937_v31  ;;  %v5461_v42 = vld [vmem:[%s9648_s8 + $0x248] sm:$0xf]  ;;  %v5181_v31 = vld [vmem:[%s9648_s8 + $0x18] sm:$0xf]  ;;  %v6317_v34 = vld [vmem:[%s9648_s8 + $0x30] sm:$0xf0] }
 0x352   :  { %3900 = vmatpush.bf16.msra.mxu3 %v5318_v57  ;;  %v6425_v57 = vld [vmem:[%s9648_s8 + $0x394] sm:$0xf]  ;;  %v5909_v45 = vld [vmem:[%s9648_s8 + $0x5c8] sm:$0xf] }
 0x353   :  { %3926 = vmatpush.bf16.msra.mxu2 %v5766_v60  ;;  %v6366_v60 = vld [vmem:[%s9648_s8 + $0x1b8] sm:$0xf0]  ;;  %v5626_v6 = vor.u32 %v6425_v57, %v5623_v58 }
 0x354   :  { %3915 = vmatpush.bf16.msra.mxu1 %v5486_v1  ;;  %v6478_v1 = vld [vmem:[%s9648_s8 + $0x538] sm:$0xf0] }
 0x355   :  { %3941 = vmatpush.bf16.msra.mxu0 %v5934_v4  ;;  %v5545_v4 = vld [vmem:[%s9648_s8 + $0x2f0] sm:$0xf]  ;;  %v6450_v57 = vld [vmem:[%s9648_s8 + $0x458] sm:$0xf0] }
 0x356   :  { %3901 = vmatpush.bf16.msra.mxu3 %v5290_v9  ;;  %v5378_v9 = vor.u32 %v6366_v60, %v5377_v59 }
 0x357   :  { %3927 = vmatpush.bf16.msra.mxu2 %v5738_v12  ;;  %v5826_v12 = vor.u32 %v6478_v1, %v5825_v0  ;;  %v6380_v0 = vld [vmem:[%s9648_s8 + $0x228] sm:$0xf0]  ;;  %v5266_v1 = vor.u32 %v6338_v51, %v5265_v50 }
 0x358   :  { %3916 = vmatpush.bf16.msra.mxu1 %v5458_v14  ;;  %v5546_v14 = vor.u32 %v6408_v5, %v5545_v4  ;;  %v5714_v4 = vor.u32 %v6450_v57, %v5713_v55  ;;  %v5237_v5 = vld [vmem:[%s9648_s8 + $0x88] sm:$0xf] }
 0x359   :  { %3942 = vmatpush.bf16.msra.mxu0 %v5906_v18  ;;  %v5994_v18 = vor.u32 %v6520_v56, %v5993_v10  ;;  %v5685_v56 = vld [vmem:[%s9648_s8 + $0x408] sm:$0xf] }
 0x35a   :  { %3902 = vmatpush.bf16.msra.mxu3 %v5262_v20  ;;  %v5350_v20 = vor.u32 %v6359_v7, %v5349_v13 }
 0x35b   :  { %3928 = vmatpush.bf16.msra.mxu2 %v5710_v24  ;;  %v5798_v24 = vor.u32 %v6471_v16, %v5797_v15  ;;  %v5405_v15 = vld [vmem:[%s9648_s8 + $0x1d8] sm:$0xf]  ;;  %v6373_v16 = vld [vmem:[%s9648_s8 + $0x1f0] sm:$0xf0] }
 0x35c   :  { %3917 = vmatpush.bf16.msra.mxu1 %v5430_v17 }
 0x35d   :  { %3943 = vmatpush.bf16.msra.mxu0 %v5878_v63 }
 0x35e   :  { %3903 = vmatpush.bf16.msra.mxu3 %v5234_v27  ;;  %v5322_v27 = vor.u32 %v6352_v54, %v5321_v26  ;;  %v5406_v54 = vor.u32 %v6373_v16, %v5405_v15 }
 0x35f   :  { %3929 = vmatpush.bf16.msra.mxu2 %v5682_v35  ;;  %v5293_v35 = vld [vmem:[%s9648_s8 + $0xf8] sm:$0xf] }
 0x360   :  { %3918 = vmatpush.bf16.msra.mxu1 %v5402_v39  ;;  %v9488_v17 = vpop.f32.mrf.mxu1  ;;  %v6457_v39 = vld [vmem:[%s9648_s8 + $0x490] sm:$0xf0] }
 0x361   :  { %3944 = vmatpush.bf16.msra.mxu0 %v5850_v44  ;;  %v9497_v63 = vpop.f32.mrf.mxu0  ;;  %v6387_v44 = vld [vmem:[%s9648_s8 + $0x260] sm:$0xf0]  ;;  %v5742_v49 = vor.u32 %v6457_v39, %v5741_v40 }
 0x362   :  { %3904 = vmatpush.bf16.msra.mxu3 %v5206_v48  ;;  %v9538_v48 = vld [vmem:[%s9649_s9] sm:$0x7f]  ;;  %v5462_v53 = vor.u32 %v6387_v44, %v5461_v42 }
 0x363   :  { %3930 = vmatpush.bf16.msra.mxu2 %v5654_v52  ;;  %3919 = vmatmul.bf16.vlgmr.msra.gmra.mxu1 %v8623_v21  ;;  %v2472_v60 = vperm.slane %v9538_v48, 0  ;;  %v2473_v42 = vperm.slane %v9538_v48, 1  ;;  %v2475_v16 = vperm.slane %v9538_v48, 3 }
 0x364   :  { %3963 = vmatpush.bf16.msrb.mxu1 %v5602_v61  ;;  %3945 = vmatmul.bf16.vlgmr.msra.gmra.mxu0 %v8631_v25  ;;  %v5294_v61 = vor.u32 %v6345_v36, %v5293_v35  ;;  %v5629_v35 = vld [vmem:[%s9648_s8 + $0x398] sm:$0xf] }
 0x365   :  { %3989 = vmatpush.bf16.msrb.mxu0 %v6050_v47  ;;  %v6499_v47 = vld [vmem:[%s9648_s8 + $0x5e0] sm:$0xf0] }
 0x366   :  { %3905 = vmatpush.bf16.msra.mxu3 %v5178_v3  ;;  %v5910_v59 = vor.u32 %v6499_v47, %v5909_v45  ;;  %v6492_v3 = vld [vmem:[%s9648_s8 + $0x5a8] sm:$0xf0] }
 0x367   :  { %3931 = vmatpush.bf16.msra.mxu2 %v5626_v6  ;;  %v6331_v6 = vld [vmem:[%s9648_s8 + $0xa0] sm:$0xf0] }
 0x368   :  { %3964 = vmatpush.bf16.msrb.mxu1 %v5574_v62  ;;  %v3662_v52 = vpop.f32.mrf.mxu1  ;;  %v5433_v62 = vld [vmem:[%s9648_s8 + $0x210] sm:$0xf] }
 0x369   :  { %3990 = vmatpush.bf16.msrb.mxu0 %v6022_v2  ;;  %3906 = vmatmul.bf16.vlgmr.msra.gmra.mxu3 %v8665_v43  ;;  %v3688_v58 = vpop.f32.mrf.mxu0  ;;  %v5881_v2 = vld [vmem:[%s9648_s8 + $0x590] sm:$0xf]  ;;  %v5434_v10 = vor.u32 %v6380_v0, %v5433_v62 }
 0x36a   :  { %3950 = vmatpush.bf16.msrb.mxu3 %v5378_v9  ;;  %3932 = vmatmul.bf16.vlgmr.msra.gmra.mxu2 %v8673_v46 }
 0x36b   :  { %3976 = vmatpush.bf16.msrb.mxu2 %v5826_v12  ;;  %v6443_v12 = vld [vmem:[%s9648_s8 + $0x420] sm:$0xf0] }
 0x36c   :  { %3965 = vmatpush.bf16.msrb.mxu1 %v5546_v14  ;;  %v3647_v9 = vpop.f32.mrf.mxu3  ;;  %v5882_v14 = vor.u32 %v6492_v3, %v5881_v2  ;;  %v5686_v22 = vor.u32 %v6443_v12, %v5685_v56 }
 0x36d   :  { %3991 = vmatpush.bf16.msrb.mxu0 %v5994_v18  ;;  %v3648_v13 = vadd.f32 %v3647_v9, %v2472_v60  ;;  %v3673_v7 = vpop.f32.mrf.mxu2  ;;  %v5238_v18 = vor.u32 %v6331_v6, %v5237_v5  ;;  %v2474_v60 = vperm.slane %v9538_v48, 2 }
 0x36e   :  { %3951 = vmatpush.bf16.msrb.mxu3 %v5350_v20 }
 0x36f   :  { %3977 = vmatpush.bf16.msrb.mxu2 %v5798_v24  ;;  %v3661_v20 = vadd.f32 %v9488_v17, %v3648_v13  ;;  %v6324_v24 = vld [vmem:[%s9648_s8 + $0x68] sm:$0xf0] }
 0x370   :  { %3966 = vmatpush.bf16.msrb.mxu1 %v5518_v28  ;;  %v3712_v26 = vpop.f32.mrf.mxu1  ;;  %v5657_v28 = vld [vmem:[%s9648_s8 + $0x3d0] sm:$0xf]  ;;  %v6436_v17 = vld [vmem:[%s9648_s8 + $0x3e8] sm:$0xf0]  ;;  %v5210_v37 = vor.u32 %v6324_v24, %v5209_v23 }
 0x371   :  { %3992 = vmatpush.bf16.msrb.mxu0 %v5966_v32  ;;  %v3674_v29 = vadd.f32 %v3673_v7, %v3661_v20  ;;  %v3738_v30 = vpop.f32.mrf.mxu0  ;;  %v5854_v32 = vor.u32 %v6485_v19, %v5853_v8 }
 0x372   :  { %3952 = vmatpush.bf16.msrb.mxu3 %v5322_v27  ;;  %v5658_v27 = vor.u32 %v6436_v17, %v5657_v28 }
 0x373   :  { %3978 = vmatpush.bf16.msrb.mxu2 %v5770_v33  ;;  %v3687_v11 = vadd.f32 %v9497_v63, %v3674_v29  ;;  %v6429_v63 = vld [vmem:[%s9648_s8 + $0x3b0] sm:$0xf0]  ;;  %s6608_s8 = smov [#allocation4]  }
 0x374   :  { %3967 = vmatpush.bf16.msrb.mxu1 %v5490_v38  ;;  %v3649_v33 = vpop.f32.mrf.mxu3  ;;  %v5182_v38 = vor.u32 %v6317_v34, %v5181_v31  ;;  %v5630_v40 = vor.u32 %v6429_v63, %v5629_v35  ;;  %s4095_s20 = sshll.u32 %s6608_s8, 4  ;;  %s4096_s20 = int_to_ptr.vmem [resolvable:$true] %s4095_s20 }
 0x375   :  { %3993 = vmatpush.bf16.msrb.mxu0 %v5938_v41  ;;  %v3675_v36 = vpop.f32.mrf.mxu2  ;;  %v4002_v47 = vmul.f32 0.5, %v3687_v11  ;;  %4100 = dma.vmem_to_hbm [thread:$0]  %s4096_s20, 32, %s4098_s22, [#allocation5]  }
 0x376   :  { %3953 = vmatpush.bf16.msrb.mxu3 %v5294_v61 }
 0x377   :  { %3979 = vmatpush.bf16.msrb.mxu2 %v5742_v49  ;;  %6541 = vtanh.f32 %v4002_v47 }
 0x378   :  { %3968 = vmatpush.bf16.msrb.mxu1 %v5462_v53  ;;  %v3714_v39 = vpop.f32.mrf.mxu1 }
 0x379   :  { %3994 = vmatpush.bf16.msrb.mxu0 %v5910_v59  ;;  %v3740_v41 = vpop.f32.mrf.mxu0 }
 0x37a   :  { %3954 = vmatpush.bf16.msrb.mxu3 %v5266_v1 }
 0x37b   :  { %3980 = vmatpush.bf16.msrb.mxu2 %v5714_v4 }
 0x37c   :  { %3969 = vmatpush.bf16.msrb.mxu1 %v5434_v10  ;;  %v3699_v44 = vpop.f32.mrf.mxu3 }
 0x37d   :  { %3995 = vmatpush.bf16.msrb.mxu0 %v5882_v14  ;;  %v3700_v61 = vadd.f32 %v3699_v44, %v2473_v42  ;;  %v3725_v45 = vpop.f32.mrf.mxu2  ;;  %v6542_v58 = vpop.eup %6541 }
 0x37e   :  { %3955 = vmatpush.bf16.msrb.mxu3 %v5238_v18  ;;  %v4016_v62 = vmul.f32 0.5, %v6542_v58 }
 0x37f   :  { %3981 = vmatpush.bf16.msrb.mxu2 %v5686_v22  ;;  %v3713_v49 = vadd.f32 %v3712_v26, %v3700_v61 }
 0x380   :  { %3970 = vmatpush.bf16.msrb.mxu1 %v5406_v54  ;;  %v3764_v50 = vpop.f32.mrf.mxu1  ;;  %v4023_v4 = vadd.f32 0.5, %v4016_v62 }
 0x381   :  { %3996 = vmatpush.bf16.msrb.mxu0 %v5854_v32  ;;  %v3790_v51 = vpop.f32.mrf.mxu0 }
 0x382   :  { %3956 = vmatpush.bf16.msrb.mxu3 %v5210_v37 }
 0x383   :  { %3982 = vmatpush.bf16.msrb.mxu2 %v5658_v27  ;;  %3971 = vmatmul.bf16.vlgmr.msrb.gmra.mxu1 %v8623_v21  ;;  %v3726_v21 = vadd.f32 %v3725_v45, %v3713_v49 }
 0x384   :  { %3997 = vmatmul.bf16.vlgmr.msrb.gmra.mxu0 %v8631_v25  ;;  %v3701_v52 = vpop.f32.mrf.mxu3 }
 0x385   :  { %v3739_v25 = vadd.f32 %v3738_v30, %v3726_v21  ;;  %v3727_v55 = vpop.f32.mrf.mxu2 }
 0x386   :  { %3957 = vmatpush.bf16.msrb.mxu3 %v5182_v38 }
 0x387   :  { %3983 = vmatpush.bf16.msrb.mxu2 %v5630_v40  ;;  %v4003_v53 = vmul.f32 0.5, %v3739_v25  ;;  %v2476_v40 = vperm.slane %v9538_v48, 4 }
 0x388   :  { %v3766_v57 = vpop.f32.mrf.mxu1 }
 0x389   :  { %3958 = vmatmul.bf16.vlgmr.msrb.gmra.mxu3 %v8665_v43  ;;  %6543 = vtanh.f32 %v4003_v53  ;;  %v3792_v59 = vpop.f32.mrf.mxu0 }
 0x38a   :  { %3984 = vmatmul.bf16.vlgmr.msrb.gmra.mxu2 %v8673_v46  ;;  %v2477_v59 = vperm.slane %v9538_v48, 5 }
 0x38c   :  { %v3751_v43 = vpop.f32.mrf.mxu3 }
 0x38d   :  { %v3752_v46 = vadd.f32 %v3751_v43, %v2474_v60  ;;  %v3777_v1 = vpop.f32.mrf.mxu2 }
 0x38f   :  { %v6544_v0 = vpop.eup %6543  ;;  %v3765_v3 = vadd.f32 %v3764_v50, %v3752_v46 }
 0x390   :  { %v4017_v2 = vmul.f32 0.5, %v6544_v0 }
 0x391   :  { %v3778_v6 = vadd.f32 %v3777_v1, %v3765_v3 }
 0x392   :  { %v4024_v5 = vadd.f32 0.5, %v4017_v2 }
 0x393   :  { %v3791_v10 = vadd.f32 %v3790_v51, %v3778_v6 }
 0x394   :  { %v4030_v9 = vpack.c.bf16 %v4024_v5, %v4023_v4  ;;  %v3753_v56 = vpop.f32.mrf.mxu3 }
 0x395   :  { %v3779_v12 = vpop.f32.mrf.mxu2  ;;  %v4004_v20 = vmul.f32 0.5, %v3791_v10 }
 0x396   :  { %v4038_v34 = vrot.slane %v4030_v9, 3 }
 0x397   :  { %6545 = vtanh.f32 %v4004_v20 }
 0x398   :  { %v4048_v39 = vsel %vm4045_vm1, %v4030_v9, %v4038_v34  ;;  %v2478_v9 = vperm.slane %v9538_v48, 6  ;;  %vm4077_vm1 = vmor %vm4076_vm14, %vm4075_vm13 }
 0x39d   :  { %v6546_v17 = vpop.eup %6545 }
 0x39e   :  { %v4018_v29 = vmul.f32 0.5, %v6546_v17 }
 0x3a0   :  { %v3816_v13 = vpop.f32.mrf.mxu1  ;;  %v4025_v27 = vadd.f32 0.5, %v4018_v29 }
 0x3a1   :  { %v3842_v7 = vpop.f32.mrf.mxu0 }
 0x3a8   :  { %v3818_v14 = vpop.f32.mrf.mxu1 }
 0x3a9   :  { %v3844_v15 = vpop.f32.mrf.mxu0 }
 0x3ac   :  { %v3803_v18 = vpop.f32.mrf.mxu3 }
 0x3ad   :  { %v3804_v8 = vadd.f32 %v3803_v18, %v2475_v16  ;;  %v3829_v19 = vpop.f32.mrf.mxu2 }
 0x3af   :  { %v3817_v22 = vadd.f32 %v3816_v13, %v3804_v8 }
 0x3b1   :  { %v3830_v23 = vadd.f32 %v3829_v19, %v3817_v22 }
 0x3b3   :  { %v3843_v24 = vadd.f32 %v3842_v7, %v3830_v23 }
 0x3b4   :  { %v3805_v26 = vpop.f32.mrf.mxu3 }
 0x3b5   :  { %v4005_v54 = vmul.f32 0.5, %v3843_v24  ;;  %v3831_v28 = vpop.f32.mrf.mxu2 }
 0x3b7   :  { %6547 = vtanh.f32 %v4005_v54 }
 0x3bd   :  { %v6548_v30 = vpop.eup %6547 }
 0x3be   :  { %v4019_v37 = vmul.f32 0.5, %v6548_v30 }
 0x3c0   :  { %v3868_v32 = vpop.f32.mrf.mxu1  ;;  %v4026_v31 = vadd.f32 0.5, %v4019_v37 }
 0x3c1   :  { %v3894_v11 = vpop.f32.mrf.mxu0 }
 0x3c2   :  { %v4031_v33 = vpack.c.bf16 %v4026_v31, %v4025_v27 }
 0x3c4   :  { %v4039_v35 = vrot.slane %v4031_v33, 6  ;;  %v4040_v63 = vrot.slane %v4031_v33, 1 }
 0x3c6   :  { %v4052_v41 = vsel %vm4049_vm2, %v4039_v35, %v4040_v63 }
 0x3c7   :  { %v9628_v42 = vsel %vm4053_vm3, %v4048_v39, %v4052_v41 }
 0x3c8   :  { %v3870_v36 = vpop.f32.mrf.mxu1 }
 0x3c9   :  { %v3896_v38 = vpop.f32.mrf.mxu0 }
 0x3cc   :  { %v3855_v44 = vpop.f32.mrf.mxu3 }
 0x3cd   :  { %v3856_v61 = vadd.f32 %v3855_v44, %v2476_v40  ;;  %v3881_v45 = vpop.f32.mrf.mxu2 }
 0x3cf   :  { %v3869_v47 = vadd.f32 %v3868_v32, %v3856_v61 }
 0x3d1   :  { %v3882_v49 = vadd.f32 %v3881_v45, %v3869_v47 }
 0x3d3   :  { %v3895_v50 = vadd.f32 %v3894_v11, %v3882_v49 }
 0x3d4   :  { %v3857_v21 = vpop.f32.mrf.mxu3 }
 0x3d5   :  { %v3883_v51 = vpop.f32.mrf.mxu2  ;;  %v4006_v10 = vmul.f32 0.5, %v3895_v50 }
 0x3e0   :  { %v3920_v25 = vpop.f32.mrf.mxu1 }
 0x3e1   :  { %v3946_v52 = vpop.f32.mrf.mxu0 }
 0x3e8   :  { %v3922_v53 = vpop.f32.mrf.mxu1 }
 0x3e9   :  { %v3948_v55 = vpop.f32.mrf.mxu0 }
 0x3ec   :  { %v3907_v57 = vpop.f32.mrf.mxu3 }
 0x3ed   :  { %v3933_v58 = vpop.f32.mrf.mxu2  ;;  %v3908_v43 = vadd.f32 %v3907_v57, %v2477_v59 }
 0x3ef   :  { %v3921_v0 = vadd.f32 %v3920_v25, %v3908_v43 }
 0x3f1   :  { %v3934_v1 = vadd.f32 %v3933_v58, %v3921_v0 }
 0x3f3   :  { %v3947_v3 = vadd.f32 %v3946_v52, %v3934_v1 }
 0x3f4   :  { %v3909_v60 = vpop.f32.mrf.mxu3 }
 0x3f5   :  { %v3935_v62 = vpop.f32.mrf.mxu2  ;;  %v4007_v5 = vmul.f32 0.5, %v3947_v3 }
 0x3f7   :  { %6549 = vtanh.f32 %v4007_v5 }
 0x3f8   :  { %6551 = vtanh.f32 %v4006_v10 }
 0x3fd   :  { %v6550_v15 = vpop.eup %6549 }
 0x3fe   :  { %v6552_v8 = vpop.eup %6551  ;;  %v4021_v22 = vmul.f32 0.5, %v6550_v15 }
 0x3ff   :  { %v4020_v48 = vmul.f32 0.5, %v6552_v8 }
 0x400   :  { %v3972_v46 = vpop.f32.mrf.mxu1  ;;  %v4028_v23 = vadd.f32 0.5, %v4021_v22 }
 0x401   :  { %v3998_v2 = vpop.f32.mrf.mxu0  ;;  %v4027_v24 = vadd.f32 0.5, %v4020_v48 }
 0x403   :  { %v4032_v54 = vpack.c.bf16 %v4028_v23, %v4027_v24 }
 0x405   :  { %v4041_v29 = vrot.slane %v4032_v54, 4  ;;  %v4042_v30 = vrot.slane %v4032_v54, 7 }
 0x407   :  { %v4058_v27 = vsel %vm4055_vm9, %v4041_v29, %v4042_v30 }
 0x408   :  { %v3974_v4 = vpop.f32.mrf.mxu1 }
 0x409   :  { %v4000_v6 = vpop.f32.mrf.mxu0 }
 0x40c   :  { %v3959_v56 = vpop.f32.mrf.mxu3 }
 0x40d   :  { %v3960_v12 = vadd.f32 %v3959_v56, %v2478_v9  ;;  %v3985_v13 = vpop.f32.mrf.mxu2 }
 0x40f   :  { %v3973_v7 = vadd.f32 %v3972_v46, %v3960_v12 }
 0x411   :  { %v3986_v14 = vadd.f32 %v3985_v13, %v3973_v7 }
 0x413   :  { %v3999_v16 = vadd.f32 %v3998_v2, %v3986_v14 }
 0x414   :  { %v3961_v18 = vpop.f32.mrf.mxu3 }
 0x415   :  { %v4008_v19 = vmul.f32 0.5, %v3999_v16  ;;  %v3987_v20 = vpop.f32.mrf.mxu2 }
 0x417   :  { %6553 = vtanh.f32 %v4008_v19 }
 0x41d   :  { %v6554_v26 = vpop.eup %6553 }
 0x41e   :  { %v4022_v28 = vmul.f32 0.5, %v6554_v26 }
 0x420   :  { %v4029_v17 = vadd.f32 0.5, %v4022_v28 }
 0x422   :  { %v4033_v32 = vpack.c.bf16 %v4029_v17, %v4029_v17 }
 0x424   :  { %v4043_v37 = vrot.slane %v4033_v32, 2  ;;  %v4044_v11 = vrot.slane %v4033_v32, 5 }
 0x426   :  { %v4062_v31 = vsel %vm4059_vm12, %v4043_v37, %v4044_v11 }
 0x427   :  { %v4064_v34 = vsel %vm4063_vm15, %v4058_v27, %v4062_v31 }
 0x428   :  { %v4066_v33 = vsel %vm4065_vm0, %v9628_v42, %v4064_v34 }
 0x429   :  { %4078 = vst.msk [vmem:[#allocation2] sm:$0x7f] %vm4077_vm1, %v4066_v33 }
 0x42a   :  { %4089 = dma.vmem_to_hbm [thread:$0]  %s4085_s23, 112, %s4087_s25, [#allocation3]  }
 0x42b   :  { %6603 = dma.done.wait [#allocation3], 112  }
 0x42c   :  { %6604 = vsyncadd [#allocation3], 4294967184 }
 0x42d   :  { %6605 = dma.done.wait [#allocation5], 32  }
 0x42e   :  { %6606 = vsyncadd [#allocation5], 4294967264 }
 0x42f   :  { %4109 = vsyncpa [#allocation3], 1 }
 0x430   :  { %4110 = vsyncpa [#allocation5], 1 }

// kernel: tpu_custom_call.1
= control target key start
LH: loop header
LB: loop body
LE: loop exit
PB: predicated region body
PF: predicated region fallthrough
CT: control target
= control target key end

     0   :  { %17 = vsyncpa [#allocation3], 0  ;;  %vm1254_vm0 = vcmask 130048   ;;  %s9640_s0 = inlined_call_operand.vmem [shape: f32[2,784], index: 0, kind: input, shape index: {}]   ;;  %s9641_s1 = inlined_call_operand.vmem [shape: f32[2,128], index: 1, kind: input, shape index: {}]   ;;  %s9642_s2 = inlined_call_operand.vmem [shape: bf16[784,512], index: 2, kind: input, shape index: {}]   ;;  %s9643_s3 = inlined_call_operand.vmem [shape: f32[1,512], index: 3, kind: input, shape index: {}]   ;;  %s9644_s4 = inlined_call_operand.vmem [shape: bf16[512,128], index: 4, kind: input, shape index: {}]   ;;  %s9645_s5 = inlined_call_operand.vmem [shape: f32[1,128], index: 5, kind: input, shape index: {}]   ;;  %s9646_s6 = inlined_call_operand.vmem [shape: bf16[128,512], index: 6, kind: input, shape index: {}]   ;;  %s9647_s7 = inlined_call_operand.vmem [shape: f32[1,512], index: 7, kind: input, shape index: {}]   ;;  %s9648_s8 = inlined_call_operand.vmem [shape: bf16[512,784], index: 8, kind: input, shape index: {}]   ;;  %s9649_s9 = inlined_call_operand.vmem [shape: f32[1,784], index: 9, kind: input, shape index: {}]   ;;  %s9650_s10 = inlined_call_operand.hbm [shape: bf16[2,784], index: 10, kind: output, shape index: {0}]   ;;  %s9651_s11 = inlined_call_operand.hbm [shape: f32[2,128], index: 11, kind: output, shape index: {1}]  }
   0x1   :  { %v4225_v0 = vld [vmem:[%s9642_s2 + $0xe0] sm:$0xf]  ;;  %v6081_v1 = vld [vmem:[%s9642_s2 + $0xec] sm:$0xf0] }
   0x2   :  { %v4353_v2 = vld [vmem:[%s9642_s2 + $0x1e0] sm:$0xf]  ;;  %v4226_v3 = vor.u32 %v6081_v1, %v4225_v0  ;;  %v6113_v4 = vld [vmem:[%s9642_s2 + $0x1ec] sm:$0xf0] }
   0x3   :  { %v4481_v5 = vld [vmem:[%s9642_s2 + $0x2e0] sm:$0xf]  ;;  %v6145_v6 = vld [vmem:[%s9642_s2 + $0x2ec] sm:$0xf0]  ;;  %v4354_v7 = vor.u32 %v6113_v4, %v4353_v2 }
   0x4   :  { %v4482_v8 = vor.u32 %v6145_v6, %v4481_v5  ;;  %v4609_v9 = vld [vmem:[%s9642_s2 + $0x3e0] sm:$0xf]  ;;  %v6177_v10 = vld [vmem:[%s9642_s2 + $0x3ec] sm:$0xf0]  ;;  %1258 = vmatpush.bf16.msra.mxu0 %v4226_v3 }
   0x5   :  { %v4209_v11 = vld [vmem:[%s9642_s2 + $0xc0] sm:$0xf]  ;;  %v4610_v12 = vor.u32 %v6177_v10, %v4609_v9  ;;  %v6077_v13 = vld [vmem:[%s9642_s2 + $0xcc] sm:$0xf0]  ;;  %1271 = vmatpush.bf16.msra.mxu1 %v4354_v7 }
   0x6   :  { %v4337_v14 = vld [vmem:[%s9642_s2 + $0x1c0] sm:$0xf]  ;;  %v6109_v15 = vld [vmem:[%s9642_s2 + $0x1cc] sm:$0xf0]  ;;  %1284 = vmatpush.bf16.msra.mxu2 %v4482_v8  ;;  %v4210_v16 = vor.u32 %v6077_v13, %v4209_v11 }
   0x7   :  { %v4338_v17 = vor.u32 %v6109_v15, %v4337_v14  ;;  %v4465_v18 = vld [vmem:[%s9642_s2 + $0x2c0] sm:$0xf]  ;;  %v6141_v19 = vld [vmem:[%s9642_s2 + $0x2cc] sm:$0xf0]  ;;  %1297 = vmatpush.bf16.msra.mxu3 %v4610_v12 }
   0x8   :  { %v4593_v20 = vld [vmem:[%s9642_s2 + $0x3c0] sm:$0xf]  ;;  %v4466_v21 = vor.u32 %v6141_v19, %v4465_v18  ;;  %v6173_v22 = vld [vmem:[%s9642_s2 + $0x3cc] sm:$0xf0]  ;;  %1259 = vmatpush.bf16.msra.mxu0 %v4210_v16 }
   0x9   :  { %v4193_v23 = vld [vmem:[%s9642_s2 + $0xa0] sm:$0xf]  ;;  %v6073_v24 = vld [vmem:[%s9642_s2 + $0xac] sm:$0xf0]  ;;  %v4594_v25 = vor.u32 %v6173_v22, %v4593_v20  ;;  %1272 = vmatpush.bf16.msra.mxu1 %v4338_v17 }
   0xa   :  { %v4321_v26 = vld [vmem:[%s9642_s2 + $0x1a0] sm:$0xf]  ;;  %v6105_v27 = vld [vmem:[%s9642_s2 + $0x1ac] sm:$0xf0]  ;;  %v4194_v29 = vor.u32 %v6073_v24, %v4193_v23  ;;  %1285 = vmatpush.bf16.msra.mxu2 %v4466_v21 }
   0xb   :  { %v4449_v28 = vld [vmem:[%s9642_s2 + $0x2a0] sm:$0xf]  ;;  %v6137_v30 = vld [vmem:[%s9642_s2 + $0x2ac] sm:$0xf0]  ;;  %v4322_v33 = vor.u32 %v6105_v27, %v4321_v26  ;;  %1298 = vmatpush.bf16.msra.mxu3 %v4594_v25 }
   0xc   :  { %v4577_v31 = vld [vmem:[%s9642_s2 + $0x3a0] sm:$0xf]  ;;  %v6169_v32 = vld [vmem:[%s9642_s2 + $0x3ac] sm:$0xf0]  ;;  %v4450_v34 = vor.u32 %v6137_v30, %v4449_v28  ;;  %1260 = vmatpush.bf16.msra.mxu0 %v4194_v29 }
   0xd   :  { %v4177_v35 = vld [vmem:[%s9642_s2 + $0x80] sm:$0xf]  ;;  %v6069_v36 = vld [vmem:[%s9642_s2 + $0x8c] sm:$0xf0]  ;;  %v4578_v38 = vor.u32 %v6169_v32, %v4577_v31  ;;  %1273 = vmatpush.bf16.msra.mxu1 %v4322_v33 }
   0xe   :  { %v4305_v37 = vld [vmem:[%s9642_s2 + $0x180] sm:$0xf]  ;;  %v6101_v39 = vld [vmem:[%s9642_s2 + $0x18c] sm:$0xf0]  ;;  %v4178_v44 = vor.u32 %v6069_v36, %v4177_v35  ;;  %1286 = vmatpush.bf16.msra.mxu2 %v4450_v34  ;;  %v6079_v34 = vld [vmem:[%s9642_s2 + $0xe4] sm:$0xf] }
   0xf   :  { %v4433_v40 = vld [vmem:[%s9642_s2 + $0x280] sm:$0xf]  ;;  %v6133_v41 = vld [vmem:[%s9642_s2 + $0x28c] sm:$0xf0]  ;;  %v4306_v45 = vor.u32 %v6101_v39, %v4305_v37  ;;  %1299 = vmatpush.bf16.msra.mxu3 %v4578_v38  ;;  %v4227_v35 = vld [vmem:[%s9642_s2 + $0xf0] sm:$0xf0] }
  0x10   :  { %v4561_v42 = vld [vmem:[%s9642_s2 + $0x380] sm:$0xf]  ;;  %v6165_v43 = vld [vmem:[%s9642_s2 + $0x38c] sm:$0xf0]  ;;  %v4434_v46 = vor.u32 %v6133_v41, %v4433_v40  ;;  %1261 = vmatpush.bf16.msra.mxu0 %v4178_v44  ;;  %v6111_v40 = vld [vmem:[%s9642_s2 + $0x1e4] sm:$0xf] }
  0x11   :  { %v4161_v47 = vld [vmem:[%s9642_s2 + $0x60] sm:$0xf]  ;;  %v6065_v48 = vld [vmem:[%s9642_s2 + $0x6c] sm:$0xf0]  ;;  %v4562_v50 = vor.u32 %v6165_v43, %v4561_v42  ;;  %1274 = vmatpush.bf16.msra.mxu1 %v4306_v45  ;;  %v4355_v41 = vld [vmem:[%s9642_s2 + $0x1f0] sm:$0xf0] }
  0x12   :  { %v4289_v49 = vld [vmem:[%s9642_s2 + $0x160] sm:$0xf]  ;;  %v6097_v51 = vld [vmem:[%s9642_s2 + $0x16c] sm:$0xf0]  ;;  %v4162_v56 = vor.u32 %v6065_v48, %v4161_v47  ;;  %1287 = vmatpush.bf16.msra.mxu2 %v4434_v46  ;;  %v4230_v48 = vor.u32 %v6079_v34, %v4227_v35 }
  0x13   :  { %v4417_v52 = vld [vmem:[%s9642_s2 + $0x260] sm:$0xf]  ;;  %v6129_v53 = vld [vmem:[%s9642_s2 + $0x26c] sm:$0xf0]  ;;  %v4290_v57 = vor.u32 %v6097_v51, %v4289_v49  ;;  %1300 = vmatpush.bf16.msra.mxu3 %v4562_v50  ;;  %v6075_v50 = vld [vmem:[%s9642_s2 + $0xc4] sm:$0xf] }
  0x14   :  { %v4545_v54 = vld [vmem:[%s9642_s2 + $0x360] sm:$0xf]  ;;  %v6161_v55 = vld [vmem:[%s9642_s2 + $0x36c] sm:$0xf0]  ;;  %v4418_v58 = vor.u32 %v6129_v53, %v4417_v52  ;;  %1262 = vmatpush.bf16.msra.mxu0 %v4162_v56  ;;  %v4211_v51 = vld [vmem:[%s9642_s2 + $0xd0] sm:$0xf0] }
  0x15   :  { %v4145_v59 = vld [vmem:[%s9642_s2 + $0x40] sm:$0xf]  ;;  %v6061_v60 = vld [vmem:[%s9642_s2 + $0x4c] sm:$0xf0]  ;;  %v4546_v62 = vor.u32 %v6161_v55, %v4545_v54  ;;  %1275 = vmatpush.bf16.msra.mxu1 %v4290_v57 }
  0x16   :  { %v4273_v61 = vld [vmem:[%s9642_s2 + $0x140] sm:$0xf]  ;;  %v6093_v63 = vld [vmem:[%s9642_s2 + $0x14c] sm:$0xf0]  ;;  %v4146_v4 = vor.u32 %v6061_v60, %v4145_v59  ;;  %1288 = vmatpush.bf16.msra.mxu2 %v4418_v58  ;;  %v4358_v59 = vor.u32 %v6111_v40, %v4355_v41 }
  0x17   :  { %v4401_v0 = vld [vmem:[%s9642_s2 + $0x240] sm:$0xf]  ;;  %v6125_v1 = vld [vmem:[%s9642_s2 + $0x24c] sm:$0xf0]  ;;  %v4274_v6 = vor.u32 %v6093_v63, %v4273_v61  ;;  %1301 = vmatpush.bf16.msra.mxu3 %v4546_v62  ;;  %v6107_v61 = vld [vmem:[%s9642_s2 + $0x1c4] sm:$0xf] }
  0x18   :  { %v4529_v2 = vld [vmem:[%s9642_s2 + $0x340] sm:$0xf]  ;;  %v6157_v3 = vld [vmem:[%s9642_s2 + $0x34c] sm:$0xf0]  ;;  %v4402_v7 = vor.u32 %v6125_v1, %v4401_v0  ;;  %1263 = vmatpush.bf16.msra.mxu0 %v4146_v4  ;;  %v4339_v62 = vld [vmem:[%s9642_s2 + $0x1d0] sm:$0xf0]  ;;  %v4214_v1 = vor.u32 %v6075_v50, %v4211_v51 }
  0x19   :  { %v4129_v5 = vld [vmem:[%s9642_s2 + $0x20] sm:$0xf]  ;;  %v6057_v8 = vld [vmem:[%s9642_s2 + $0x2c] sm:$0xf0]  ;;  %v4530_v11 = vor.u32 %v6157_v3, %v4529_v2  ;;  %1276 = vmatpush.bf16.msra.mxu1 %v4274_v6  ;;  %v6071_v6 = vld [vmem:[%s9642_s2 + $0xa4] sm:$0xf] }
  0x1a   :  { %v4257_v9 = vld [vmem:[%s9642_s2 + $0x120] sm:$0xf]  ;;  %v6089_v10 = vld [vmem:[%s9642_s2 + $0x12c] sm:$0xf0]  ;;  %v4130_v18 = vor.u32 %v6057_v8, %v4129_v5  ;;  %1289 = vmatpush.bf16.msra.mxu2 %v4402_v7  ;;  %v4195_v7 = vld [vmem:[%s9642_s2 + $0xb0] sm:$0xf0] }
  0x1b   :  { %v4385_v12 = vld [vmem:[%s9642_s2 + $0x220] sm:$0xf]  ;;  %v6121_v13 = vld [vmem:[%s9642_s2 + $0x22c] sm:$0xf0]  ;;  %v4258_v22 = vor.u32 %v6089_v10, %v4257_v9  ;;  %1302 = vmatpush.bf16.msra.mxu3 %v4530_v11  ;;  %v4342_v9 = vor.u32 %v6107_v61, %v4339_v62  ;;  %v6103_v11 = vld [vmem:[%s9642_s2 + $0x1a4] sm:$0xf] }
  0x1c   :  { %v4513_v14 = vld [vmem:[%s9642_s2 + $0x320] sm:$0xf]  ;;  %v6153_v15 = vld [vmem:[%s9642_s2 + $0x32c] sm:$0xf0]  ;;  %v4386_v23 = vor.u32 %v6121_v13, %v4385_v12  ;;  %1264 = vmatpush.bf16.msra.mxu0 %v4130_v18  ;;  %v4323_v12 = vld [vmem:[%s9642_s2 + $0x1b0] sm:$0xf0] }
  0x1d   :  { %v4113_v16 = vld [vmem:[%s9642_s2] sm:$0xf]  ;;  %v6053_v17 = vld [vmem:[%s9642_s2 + $0xc] sm:$0xf0]  ;;  %v4514_v26 = vor.u32 %v6153_v15, %v4513_v14  ;;  %1277 = vmatpush.bf16.msra.mxu1 %v4258_v22  ;;  %v4198_v14 = vor.u32 %v6071_v6, %v4195_v7  ;;  %v4326_v22 = vor.u32 %v6103_v11, %v4323_v12  ;;  %v6087_v62 = vld [vmem:[%s9642_s2 + $0x124] sm:$0xf] }
  0x1e   :  { %v4241_v19 = vld [vmem:[%s9642_s2 + $0x100] sm:$0xf]  ;;  %v6085_v20 = vld [vmem:[%s9642_s2 + $0x10c] sm:$0xf0]  ;;  %v4114_v33 = vor.u32 %v6053_v17, %v4113_v16  ;;  %1290 = vmatpush.bf16.msra.mxu2 %v4386_v23  ;;  %v4115_v11 = vld [vmem:[%s9642_s2 + $0x10] sm:$0xf0] }
  0x1f   :  { %v40_v21 = vld [vmem:[%s9640_s0] sm:$0xff]  ;;  %v6117_v25 = vld [vmem:[%s9642_s2 + $0x20c] sm:$0xf0]  ;;  %v4242_v37 = vor.u32 %v6085_v20, %v4241_v19  ;;  %1303 = vmatpush.bf16.msra.mxu3 %v4514_v26  ;;  %v4179_v20 = vld [vmem:[%s9642_s2 + $0x90] sm:$0xf0] }
  0x20   :  { %v4369_v24 = vld [vmem:[%s9642_s2 + $0x200] sm:$0xf]  ;;  %44 = vst [vmem:[#allocation1] ss:$4 sm:$0xff] %v40_v21  ;;  %v6149_v28 = vld [vmem:[%s9642_s2 + $0x30c] sm:$0xf0]  ;;  %1265 = vmatpush.bf16.msra.mxu0 %v4114_v33 }
  0x21   :  { %v4497_v27 = vld [vmem:[%s9642_s2 + $0x300] sm:$0xf]  ;;  %v6209_v30 = vld [vmem:[%s9642_s2 + $0x4ec] sm:$0xf0]  ;;  %v4370_v38 = vor.u32 %v6117_v25, %v4369_v24  ;;  %1278 = vmatpush.bf16.msra.mxu1 %v4242_v37  ;;  %v6067_v19 = vld [vmem:[%s9642_s2 + $0x84] sm:$0xf] }
  0x22   :  { %v4737_v29 = vld [vmem:[%s9642_s2 + $0x4e0] sm:$0xf]  ;;  %v6241_v32 = vld [vmem:[%s9642_s2 + $0x5ec] sm:$0xf0]  ;;  %v4498_v42 = vor.u32 %v6149_v28, %v4497_v27  ;;  %v6099_v21 = vld [vmem:[%s9642_s2 + $0x184] sm:$0xf]  ;;  %v4182_v28 = vor.u32 %v6067_v19, %v4179_v20 }
  0x23   :  { %v4865_v31 = vld [vmem:[%s9642_s2 + $0x5e0] sm:$0xf]  ;;  %v6245_v39 = vld [vmem:[%s9642_s2 + $0x60c] sm:$0xf0]  ;;  %v4738_v43 = vor.u32 %v6209_v30, %v4737_v29  ;;  %1291 = vmatpush.bf16.msra.mxu2 %v4370_v38  ;;  %v4307_v24 = vld [vmem:[%s9642_s2 + $0x190] sm:$0xf0] }
  0x24   :  { %v4881_v36 = vld [vmem:[%s9642_s2 + $0x600] sm:$0xf]  ;;  %v6205_v45 = vld [vmem:[%s9642_s2 + $0x4cc] sm:$0xf0]  ;;  %v4866_v47 = vor.u32 %v6241_v32, %v4865_v31  ;;  %1304 = vmatpush.bf16.msra.mxu3 %v4498_v42  ;;  %v41_v31 = vld [vmem:[%s9640_s0 + $0x8] sm:$0x3f]  ;;  %v4310_v34 = vor.u32 %v6099_v21, %v4307_v24 }
  0x25   :  { %v4721_v44 = vld [vmem:[%s9642_s2 + $0x4c0] sm:$0xf]  ;;  %v6237_v49 = vld [vmem:[%s9642_s2 + $0x5cc] sm:$0xf0]  ;;  %v4882_v55 = vor.u32 %v6245_v39, %v4881_v36  ;;  %1310 = vmatpush.bf16.msrb.mxu0 %v4738_v43  ;;  %v6063_v32 = vld [vmem:[%s9642_s2 + $0x64] sm:$0xf] }
  0x26   :  { %v4849_v46 = vld [vmem:[%s9642_s2 + $0x5c0] sm:$0xf]  ;;  %v4722_v60 = vor.u32 %v6205_v45, %v4721_v44  ;;  %1323 = vmatpush.bf16.msrb.mxu1 %v4866_v47  ;;  %v6201_v3 = vld [vmem:[%s9642_s2 + $0x4ac] sm:$0xf0]  ;;  %v4163_v33 = vld [vmem:[%s9642_s2 + $0x70] sm:$0xf0] }
  0x27   :  { %v49_v52 = vld.sshfl [vmem:[#allocation1 + $0x10] sm:$0xff pattern:$0x73625140]  ;;  %v47_v53 = vld.sshfl [vmem:[#allocation1] sm:$0xff pattern:$0x73625140]  ;;  %v4850_v0 = vor.u32 %v6237_v49, %v4849_v46  ;;  %1343 = vmatpush.bf16.msrb.mxu2 %v4882_v55  ;;  %v4166_v39 = vor.u32 %v6063_v32, %v4163_v33 }
  0x28   :  { %v6913_v54 = vpack.c.bf16 %v49_v52, %v49_v52  ;;  %v6915_v56 = vpack.c.bf16 %v47_v53, %v47_v53  ;;  %v50_v57 = vld.sshfl [vmem:[#allocation1 + $0x18] sm:$0xff pattern:$0x73625140]  ;;  %v48_v58 = vld.sshfl [vmem:[#allocation1 + $0x8] sm:$0xff pattern:$0x73625140]  ;;  %1349 = vmatpush.bf16.msrb.mxu3 %v4230_v48 }
  0x29   :  { %v6923_v63 = vpack.c.bf16 %v50_v57, %v50_v57  ;;  %v4705_v2 = vld [vmem:[%s9642_s2 + $0x4a0] sm:$0xf]  ;;  %v6233_v5 = vld [vmem:[%s9642_s2 + $0x5ac] sm:$0xf0]  ;;  %v6945_v8 = vpack.c.bf16 %v48_v58, %v48_v58  ;;  %1311 = vmatpush.bf16.msrb.mxu0 %v4722_v60  ;;  %46 = vst [vmem:[#allocation1 + $0x20] ss:$4 sm:$0xff] %v41_v31 }
  0x2a   :  { %v4833_v4 = vld [vmem:[%s9642_s2 + $0x5a0] sm:$0xf]  ;;  %1292 = vmatmul.bf16.vlgmr.msra.gmra.mxu2 %v6913_v54  ;;  %1266 = vmatmul.bf16.vlgmr.msra.gmra.mxu0 %v6915_v56  ;;  %v4706_v10 = vor.u32 %v6201_v3, %v4705_v2  ;;  %v6197_v16 = vld [vmem:[%s9642_s2 + $0x48c] sm:$0xf0]  ;;  %v6095_v36 = vld [vmem:[%s9642_s2 + $0x164] sm:$0xf] }
  0x2b   :  { %1305 = vmatmul.bf16.vlgmr.msra.gmra.mxu3 %v6923_v63  ;;  %1362 = vmatpush.bf16.msra.mxu2 %v4358_v59  ;;  %v4834_v13 = vor.u32 %v6233_v5, %v4833_v4  ;;  %v4689_v15 = vld [vmem:[%s9642_s2 + $0x480] sm:$0xf]  ;;  %v6229_v18 = vld [vmem:[%s9642_s2 + $0x58c] sm:$0xf0]  ;;  %v4291_v37 = vld [vmem:[%s9642_s2 + $0x170] sm:$0xf0] }
  0x2c   :  { %1324 = vmatpush.bf16.msrb.mxu1 %v4850_v0  ;;  %1350 = vmatpush.bf16.msrb.mxu3 %v4214_v1  ;;  %v4817_v17 = vld [vmem:[%s9642_s2 + $0x580] sm:$0xf]  ;;  %v4690_v23 = vor.u32 %v6197_v16, %v4689_v15  ;;  %v6193_v26 = vld [vmem:[%s9642_s2 + $0x46c] sm:$0xf0]  ;;  %v6059_v44 = vld [vmem:[%s9642_s2 + $0x44] sm:$0xf]  ;;  %v4294_v47 = vor.u32 %v6095_v36, %v4291_v37 }
  0x2d   :  { %1279 = vmatmul.bf16.vlgmr.msra.gmra.mxu1 %v6945_v8  ;;  %1312 = vmatpush.bf16.msrb.mxu0 %v4706_v10  ;;  %v4673_v25 = vld [vmem:[%s9642_s2 + $0x460] sm:$0xf]  ;;  %v4818_v27 = vor.u32 %v6229_v18, %v4817_v17  ;;  %v6225_v30 = vld [vmem:[%s9642_s2 + $0x56c] sm:$0xf0]  ;;  %v4147_v45 = vld [vmem:[%s9642_s2 + $0x50] sm:$0xf0] }
  0x2e   :  { %v4801_v29 = vld [vmem:[%s9642_s2 + $0x560] sm:$0xf]  ;;  %v4674_v35 = vor.u32 %v6193_v26, %v4673_v25  ;;  %v6189_v41 = vld [vmem:[%s9642_s2 + $0x44c] sm:$0xf0]  ;;  %v6091_v46 = vld [vmem:[%s9642_s2 + $0x144] sm:$0xf]  ;;  %v4150_v53 = vor.u32 %v6059_v44, %v4147_v45 }
  0x2f   :  { %1363 = vmatpush.bf16.msra.mxu2 %v4342_v9  ;;  %v4802_v38 = vor.u32 %v6225_v30, %v4801_v29  ;;  %v4657_v40 = vld [vmem:[%s9642_s2 + $0x440] sm:$0xf]  ;;  %v6221_v43 = vld [vmem:[%s9642_s2 + $0x54c] sm:$0xf0]  ;;  %v4275_v49 = vld [vmem:[%s9642_s2 + $0x150] sm:$0xf0] }
  0x30   :  { %1325 = vmatpush.bf16.msrb.mxu1 %v4834_v13  ;;  %1351 = vmatpush.bf16.msrb.mxu3 %v4198_v14  ;;  %v4785_v42 = vld [vmem:[%s9642_s2 + $0x540] sm:$0xf]  ;;  %v4658_v48 = vor.u32 %v6189_v41, %v4657_v40  ;;  %v6185_v51 = vld [vmem:[%s9642_s2 + $0x42c] sm:$0xf0]  ;;  %v6055_v59 = vld [vmem:[%s9642_s2 + $0x24] sm:$0xf]  ;;  %v4278_v1 = vor.u32 %v6091_v46, %v4275_v49 }
  0x31   :  { %1313 = vmatpush.bf16.msrb.mxu0 %v4690_v23  ;;  %v4641_v50 = vld [vmem:[%s9642_s2 + $0x420] sm:$0xf]  ;;  %v4786_v52 = vor.u32 %v6221_v43, %v4785_v42  ;;  %v53_v57 = vld.sshfl [vmem:[#allocation1 + $0x30] sm:$0xff pattern:$0x73625140] }
  0x32   :  { %v4769_v55 = vld [vmem:[%s9642_s2 + $0x520] sm:$0xf]  ;;  %v6217_v58 = vld [vmem:[%s9642_s2 + $0x52c] sm:$0xf0]  ;;  %v4131_v60 = vld [vmem:[%s9642_s2 + $0x30] sm:$0xf0]  ;;  %v7048_v61 = vpack.c.bf16 %v53_v57, %v53_v57  ;;  %v4642_v2 = vor.u32 %v6185_v51, %v4641_v50 }
  0x33   :  { %1364 = vmatpush.bf16.msra.mxu2 %v4326_v22  ;;  %v4259_v0 = vld [vmem:[%s9642_s2 + $0x130] sm:$0xf0]  ;;  %v4625_v3 = vld [vmem:[%s9642_s2 + $0x400] sm:$0xf]  ;;  %v6181_v4 = vld [vmem:[%s9642_s2 + $0x40c] sm:$0xf0]  ;;  %v4770_v6 = vor.u32 %v6217_v58, %v4769_v55  ;;  %v4134_v7 = vor.u32 %v6055_v59, %v4131_v60 }
  0x34   :  { %1326 = vmatpush.bf16.msrb.mxu1 %v4818_v27  ;;  %1352 = vmatpush.bf16.msrb.mxu3 %v4182_v28  ;;  %v4753_v5 = vld [vmem:[%s9642_s2 + $0x500] sm:$0xf]  ;;  %v6213_v9 = vld [vmem:[%s9642_s2 + $0x50c] sm:$0xf0]  ;;  %v6051_v10 = vld [vmem:[%s9642_s2 + $0x4] sm:$0xf]  ;;  %v4262_v18 = vor.u32 %v6087_v62, %v4259_v0  ;;  %v4626_v19 = vor.u32 %v6181_v4, %v4625_v3 }
  0x35   :  { %1314 = vmatpush.bf16.msrb.mxu0 %v4674_v35  ;;  %v6143_v12 = vld [vmem:[%s9642_s2 + $0x2e4] sm:$0xf]  ;;  %v4483_v13 = vld [vmem:[%s9642_s2 + $0x2f0] sm:$0xf0]  ;;  %v4754_v22 = vor.u32 %v6213_v9, %v4753_v5  ;;  %v4118_v23 = vor.u32 %v6051_v10, %v4115_v11 }
  0x36   :  { %v6175_v14 = vld [vmem:[%s9642_s2 + $0x3e4] sm:$0xf]  ;;  %v4611_v15 = vld [vmem:[%s9642_s2 + $0x3f0] sm:$0xf0]  ;;  %v4486_v26 = vor.u32 %v6143_v12, %v4483_v13 }
  0x37   :  { %1365 = vmatpush.bf16.msra.mxu2 %v4310_v34  ;;  %v6207_v16 = vld [vmem:[%s9642_s2 + $0x4e4] sm:$0xf]  ;;  %v4739_v17 = vld [vmem:[%s9642_s2 + $0x4f0] sm:$0xf0]  ;;  %v4614_v27 = vor.u32 %v6175_v14, %v4611_v15 }
  0x38   :  { %1327 = vmatpush.bf16.msrb.mxu1 %v4802_v38  ;;  %1353 = vmatpush.bf16.msrb.mxu3 %v4166_v39  ;;  %v51_v20 = vld.sshfl [vmem:[#allocation1 + $0x20] sm:$0xff pattern:$0x73625140]  ;;  %v4243_v24 = vld [vmem:[%s9642_s2 + $0x110] sm:$0xf0]  ;;  %v4742_v31 = vor.u32 %v6207_v16, %v4739_v17 }
  0x39   :  { %1315 = vmatpush.bf16.msrb.mxu0 %v4658_v48  ;;  %v6083_v21 = vld [vmem:[%s9642_s2 + $0x104] sm:$0xf]  ;;  %v52_v25 = vld.sshfl [vmem:[#allocation1 + $0x28] sm:$0xff pattern:$0x73625140]  ;;  %v7109_v32 = vpack.c.bf16 %v51_v20, %v51_v20 }
  0x3a   :  { %4895 = vmatmul.msk.bf16.vlgmr.msrb.gmra.mxu2 %vm1254_vm0, %v7048_v61  ;;  %v6239_v28 = vld [vmem:[%s9642_s2 + $0x5e4] sm:$0xf]  ;;  %v4867_v29 = vld [vmem:[%s9642_s2 + $0x5f0] sm:$0xf0]  ;;  %v4246_v36 = vor.u32 %v6083_v21, %v4243_v24  ;;  %v7120_v37 = vpack.c.bf16 %v52_v25, %v52_v25 }
  0x3b   :  { %1366 = vmatpush.bf16.msra.mxu2 %v4294_v47  ;;  %v6139_v30 = vld [vmem:[%s9642_s2 + $0x2c4] sm:$0xf]  ;;  %v4467_v33 = vld [vmem:[%s9642_s2 + $0x2d0] sm:$0xf0]  ;;  %v4870_v40 = vor.u32 %v6239_v28, %v4867_v29 }
  0x3c   :  { %1328 = vmatpush.bf16.msrb.mxu1 %v4786_v52  ;;  %1354 = vmatpush.bf16.msrb.mxu3 %v4150_v53  ;;  %v6171_v34 = vld [vmem:[%s9642_s2 + $0x3c4] sm:$0xf]  ;;  %v4595_v35 = vld [vmem:[%s9642_s2 + $0x3d0] sm:$0xf0]  ;;  %v4470_v41 = vor.u32 %v6139_v30, %v4467_v33 }
  0x3d   :  { %1316 = vmatpush.bf16.msrb.mxu0 %v4642_v2  ;;  %v6203_v38 = vld [vmem:[%s9642_s2 + $0x4c4] sm:$0xf]  ;;  %v4723_v39 = vld [vmem:[%s9642_s2 + $0x4d0] sm:$0xf0]  ;;  %v4598_v42 = vor.u32 %v6171_v34, %v4595_v35 }
  0x3e   :  { %v6235_v43 = vld [vmem:[%s9642_s2 + $0x5c4] sm:$0xf]  ;;  %v4851_v44 = vld [vmem:[%s9642_s2 + $0x5d0] sm:$0xf0]  ;;  %v4726_v46 = vor.u32 %v6203_v38, %v4723_v39 }
  0x3f   :  { %1367 = vmatpush.bf16.msra.mxu2 %v4278_v1  ;;  %v6135_v45 = vld [vmem:[%s9642_s2 + $0x2a4] sm:$0xf]  ;;  %v4451_v47 = vld [vmem:[%s9642_s2 + $0x2b0] sm:$0xf0]  ;;  %v4854_v52 = vor.u32 %v6235_v43, %v4851_v44 }
  0x40   :  { %1329 = vmatpush.bf16.msrb.mxu1 %v4770_v6  ;;  %1355 = vmatpush.bf16.msrb.mxu3 %v4134_v7  ;;  %v6167_v48 = vld [vmem:[%s9642_s2 + $0x3a4] sm:$0xf]  ;;  %v4579_v49 = vld [vmem:[%s9642_s2 + $0x3b0] sm:$0xf0]  ;;  %v4454_v53 = vor.u32 %v6135_v45, %v4451_v47 }
  0x41   :  { %1317 = vmatpush.bf16.msrb.mxu0 %v4626_v19  ;;  %v6199_v50 = vld [vmem:[%s9642_s2 + $0x4a4] sm:$0xf]  ;;  %v4707_v51 = vld [vmem:[%s9642_s2 + $0x4b0] sm:$0xf0]  ;;  %v4582_v55 = vor.u32 %v6167_v48, %v4579_v49 }
  0x42   :  { %v6231_v57 = vld [vmem:[%s9642_s2 + $0x5a4] sm:$0xf]  ;;  %v4835_v58 = vld [vmem:[%s9642_s2 + $0x5b0] sm:$0xf0]  ;;  %v4710_v60 = vor.u32 %v6199_v50, %v4707_v51 }
  0x43   :  { %1368 = vmatpush.bf16.msra.mxu2 %v4262_v18  ;;  %v6131_v59 = vld [vmem:[%s9642_s2 + $0x284] sm:$0xf]  ;;  %v4435_v62 = vld [vmem:[%s9642_s2 + $0x290] sm:$0xf0]  ;;  %v4838_v4 = vor.u32 %v6231_v57, %v4835_v58  ;;  %v4233_v57 = vld [vmem:[%s9642_s2 + $0xe8] sm:$0xf] }
  0x44   :  { %1330 = vmatpush.bf16.msrb.mxu1 %v4754_v22  ;;  %1356 = vmatpush.bf16.msrb.mxu3 %v4118_v23  ;;  %v6163_v0 = vld [vmem:[%s9642_s2 + $0x384] sm:$0xf]  ;;  %v4563_v1 = vld [vmem:[%s9642_s2 + $0x390] sm:$0xf0]  ;;  %v4438_v5 = vor.u32 %v6131_v59, %v4435_v62  ;;  %v6082_v58 = vld [vmem:[%s9642_s2 + $0xf4] sm:$0xf0] }
  0x45   :  { %1375 = vmatpush.bf16.msra.mxu0 %v4486_v26  ;;  %v6195_v2 = vld [vmem:[%s9642_s2 + $0x484] sm:$0xf]  ;;  %v4691_v3 = vld [vmem:[%s9642_s2 + $0x490] sm:$0xf0]  ;;  %v4566_v6 = vor.u32 %v6163_v0, %v4563_v1  ;;  %v4489_v0 = vld [vmem:[%s9642_s2 + $0x2e8] sm:$0xf] }
  0x46   :  { %1318 = vmatmul.bf16.vlgmr.msrb.gmra.mxu0 %v7109_v32  ;;  %v6227_v7 = vld [vmem:[%s9642_s2 + $0x584] sm:$0xf]  ;;  %v4819_v9 = vld [vmem:[%s9642_s2 + $0x590] sm:$0xf0]  ;;  %v4694_v11 = vor.u32 %v6195_v2, %v4691_v3  ;;  %v6146_v1 = vld [vmem:[%s9642_s2 + $0x2f4] sm:$0xf0] }
  0x47   :  { %1369 = vmatpush.bf16.msra.mxu2 %v4246_v36  ;;  %1331 = vmatmul.bf16.vlgmr.msrb.gmra.mxu1 %v7120_v37  ;;  %v6127_v10 = vld [vmem:[%s9642_s2 + $0x264] sm:$0xf]  ;;  %v4419_v12 = vld [vmem:[%s9642_s2 + $0x270] sm:$0xf0]  ;;  %v4822_v17 = vor.u32 %v6227_v7, %v4819_v9  ;;  %v4234_v7 = vor.u32 %v6082_v58, %v4233_v57  ;;  %v4617_v9 = vld [vmem:[%s9642_s2 + $0x3e8] sm:$0xf] }
  0x48   :  { %1388 = vmatpush.bf16.msra.mxu1 %v4614_v27  ;;  %1401 = vmatpush.bf16.msra.mxu3 %v4742_v31  ;;  %v6159_v13 = vld [vmem:[%s9642_s2 + $0x364] sm:$0xf]  ;;  %v4547_v14 = vld [vmem:[%s9642_s2 + $0x370] sm:$0xf0]  ;;  %v4422_v18 = vor.u32 %v6127_v10, %v4419_v12  ;;  %v6178_v10 = vld [vmem:[%s9642_s2 + $0x3f4] sm:$0xf0] }
  0x49   :  { %1357 = vmatmul.bf16.vlgmr.msrb.gmra.mxu3 %v6915_v56  ;;  %1376 = vmatpush.bf16.msra.mxu0 %v4470_v41  ;;  %v6191_v15 = vld [vmem:[%s9642_s2 + $0x464] sm:$0xf]  ;;  %v4675_v16 = vld [vmem:[%s9642_s2 + $0x470] sm:$0xf0]  ;;  %v4550_v19 = vor.u32 %v6159_v13, %v4547_v14  ;;  %v4361_v12 = vld [vmem:[%s9642_s2 + $0x1e8] sm:$0xf]  ;;  %v4490_v14 = vor.u32 %v6146_v1, %v4489_v0 }
  0x4a   :  { %1370 = vmatmul.bf16.vlgmr.msra.gmra.mxu2 %v6945_v8  ;;  %v6223_v20 = vld [vmem:[%s9642_s2 + $0x564] sm:$0xf]  ;;  %v4803_v21 = vld [vmem:[%s9642_s2 + $0x570] sm:$0xf0]  ;;  %v4678_v23 = vor.u32 %v6191_v15, %v4675_v16  ;;  %v6114_v13 = vld [vmem:[%s9642_s2 + $0x1f4] sm:$0xf0] }
  0x4b   :  { %1414 = vmatpush.bf16.msrb.mxu2 %v4870_v40  ;;  %v6123_v22 = vld [vmem:[%s9642_s2 + $0x244] sm:$0xf]  ;;  %v4403_v24 = vld [vmem:[%s9642_s2 + $0x250] sm:$0xf0]  ;;  %v4806_v29 = vor.u32 %v6223_v20, %v4803_v21  ;;  %v4217_v16 = vld [vmem:[%s9642_s2 + $0xc8] sm:$0xf]  ;;  %v4362_v21 = vor.u32 %v6114_v13, %v4361_v12 }
  0x4c   :  { %1389 = vmatpush.bf16.msra.mxu1 %v4598_v42  ;;  %1402 = vmatpush.bf16.msra.mxu3 %v4726_v46  ;;  %v6155_v25 = vld [vmem:[%s9642_s2 + $0x344] sm:$0xf]  ;;  %v4531_v26 = vld [vmem:[%s9642_s2 + $0x350] sm:$0xf0]  ;;  %v4406_v30 = vor.u32 %v6123_v22, %v4403_v24  ;;  %v6142_v20 = vld [vmem:[%s9642_s2 + $0x2d4] sm:$0xf0] }
  0x4d   :  { %1377 = vmatpush.bf16.msra.mxu0 %v4454_v53  ;;  %v6187_v27 = vld [vmem:[%s9642_s2 + $0x444] sm:$0xf]  ;;  %v4659_v28 = vld [vmem:[%s9642_s2 + $0x450] sm:$0xf0]  ;;  %v4534_v31 = vor.u32 %v6155_v25, %v4531_v26  ;;  %v4601_v22 = vld [vmem:[%s9642_s2 + $0x3c8] sm:$0xf] }
  0x4e   :  { %v6219_v33 = vld [vmem:[%s9642_s2 + $0x544] sm:$0xf]  ;;  %v4787_v34 = vld [vmem:[%s9642_s2 + $0x550] sm:$0xf0]  ;;  %v4662_v36 = vor.u32 %v6187_v27, %v4659_v28  ;;  %v4345_v25 = vld [vmem:[%s9642_s2 + $0x1c8] sm:$0xf] }
  0x4f   :  { %1415 = vmatpush.bf16.msrb.mxu2 %v4854_v52  ;;  %v6119_v35 = vld [vmem:[%s9642_s2 + $0x224] sm:$0xf]  ;;  %v4387_v38 = vld [vmem:[%s9642_s2 + $0x230] sm:$0xf0]  ;;  %v4790_v43 = vor.u32 %v6219_v33, %v4787_v34  ;;  %v6110_v26 = vld [vmem:[%s9642_s2 + $0x1d4] sm:$0xf0] }
  0x50   :  { %1390 = vmatpush.bf16.msra.mxu1 %v4582_v55  ;;  %1403 = vmatpush.bf16.msra.mxu3 %v4710_v60  ;;  %v6151_v39 = vld [vmem:[%s9642_s2 + $0x324] sm:$0xf]  ;;  %v4515_v40 = vld [vmem:[%s9642_s2 + $0x330] sm:$0xf0]  ;;  %v4390_v46 = vor.u32 %v6119_v35, %v4387_v38  ;;  %v4201_v28 = vld [vmem:[%s9642_s2 + $0xa8] sm:$0xf]  ;;  %v4346_v34 = vor.u32 %v6110_v26, %v4345_v25 }
  0x51   :  { %1378 = vmatpush.bf16.msra.mxu0 %v4438_v5  ;;  %v6183_v41 = vld [vmem:[%s9642_s2 + $0x424] sm:$0xf]  ;;  %v4643_v42 = vld [vmem:[%s9642_s2 + $0x430] sm:$0xf0]  ;;  %v4518_v47 = vor.u32 %v6151_v39, %v4515_v40  ;;  %v6138_v33 = vld [vmem:[%s9642_s2 + $0x2b4] sm:$0xf0] }
  0x52   :  { %v6215_v44 = vld [vmem:[%s9642_s2 + $0x524] sm:$0xf]  ;;  %v4771_v45 = vld [vmem:[%s9642_s2 + $0x530] sm:$0xf0]  ;;  %v4646_v51 = vor.u32 %v6183_v41, %v4643_v42  ;;  %v4585_v35 = vld [vmem:[%s9642_s2 + $0x3a8] sm:$0xf] }
  0x53   :  { %1416 = vmatpush.bf16.msrb.mxu2 %v4838_v4  ;;  %v6115_v48 = vld [vmem:[%s9642_s2 + $0x204] sm:$0xf]  ;;  %v4371_v49 = vld [vmem:[%s9642_s2 + $0x210] sm:$0xf0]  ;;  %v4774_v60 = vor.u32 %v6215_v44, %v4771_v45  ;;  %v4329_v39 = vld [vmem:[%s9642_s2 + $0x1a8] sm:$0xf] }
  0x54   :  { %1391 = vmatpush.bf16.msra.mxu1 %v4566_v6  ;;  %1404 = vmatpush.bf16.msra.mxu3 %v4694_v11  ;;  %v6147_v50 = vld [vmem:[%s9642_s2 + $0x304] sm:$0xf]  ;;  %v4499_v52 = vld [vmem:[%s9642_s2 + $0x310] sm:$0xf0]  ;;  %v4374_v2 = vor.u32 %v6115_v48, %v4371_v49  ;;  %v6106_v40 = vld [vmem:[%s9642_s2 + $0x1b4] sm:$0xf0] }
  0x55   :  { %1379 = vmatpush.bf16.msra.mxu0 %v4422_v18  ;;  %v6179_v53 = vld [vmem:[%s9642_s2 + $0x404] sm:$0xf]  ;;  %v4627_v55 = vld [vmem:[%s9642_s2 + $0x410] sm:$0xf0]  ;;  %v4502_v3 = vor.u32 %v6147_v50, %v4499_v52  ;;  %v4618_v18 = vor.u32 %v6178_v10, %v4617_v9  ;;  %v4185_v42 = vld [vmem:[%s9642_s2 + $0x88] sm:$0xf] }
  0x56   :  { %v6243_v59 = vld [vmem:[%s9642_s2 + $0x604] sm:$0xf]  ;;  %v4883_v62 = vld [vmem:[%s9642_s2 + $0x610] sm:$0xf0]  ;;  %v4630_v6 = vor.u32 %v6179_v53, %v4627_v55  ;;  %v4441_v45 = vld [vmem:[%s9642_s2 + $0x288] sm:$0xf] }
  0x57   :  { %1417 = vmatpush.bf16.msrb.mxu2 %v4822_v17  ;;  %v6211_v4 = vld [vmem:[%s9642_s2 + $0x504] sm:$0xf]  ;;  %v4755_v5 = vld [vmem:[%s9642_s2 + $0x510] sm:$0xf0]  ;;  %v4886_v11 = vor.u32 %v6243_v59, %v4883_v62  ;;  %v6078_v17 = vld [vmem:[%s9642_s2 + $0xd4] sm:$0xf0] }
  0x58   :  { %1392 = vmatpush.bf16.msra.mxu1 %v4550_v19  ;;  %1405 = vmatpush.bf16.msra.mxu3 %v4678_v23  ;;  %v4758_v15 = vor.u32 %v6211_v4, %v4755_v5  ;;  %v4473_v19 = vld [vmem:[%s9642_s2 + $0x2c8] sm:$0xf]  ;;  %v6174_v23 = vld [vmem:[%s9642_s2 + $0x3d4] sm:$0xf0]  ;;  %v4218_v24 = vor.u32 %v6078_v17, %v4217_v16 }
  0x59   :  { %1380 = vmatpush.bf16.msra.mxu0 %v4406_v30  ;;  %v4474_v27 = vor.u32 %v6142_v20, %v4473_v19  ;;  %v4602_v30 = vor.u32 %v6174_v23, %v4601_v22  ;;  %v4569_v48 = vld [vmem:[%s9642_s2 + $0x388] sm:$0xf]  ;;  %v6166_v49 = vld [vmem:[%s9642_s2 + $0x394] sm:$0xf0] }
  0x5a   :  { %v6102_v52 = vld [vmem:[%s9642_s2 + $0x194] sm:$0xf0] }
  0x5b   :  { %1418 = vmatpush.bf16.msrb.mxu2 %v4806_v29  ;;  %v6074_v29 = vld [vmem:[%s9642_s2 + $0xb4] sm:$0xf0] }
  0x5c   :  { %1393 = vmatpush.bf16.msra.mxu1 %v4534_v31  ;;  %1406 = vmatpush.bf16.msra.mxu3 %v4662_v36  ;;  %v4457_v31 = vld [vmem:[%s9642_s2 + $0x2a8] sm:$0xf]  ;;  %v6170_v36 = vld [vmem:[%s9642_s2 + $0x3b4] sm:$0xf0]  ;;  %v4202_v38 = vor.u32 %v6074_v29, %v4201_v28 }
  0x5d   :  { %1381 = vmatpush.bf16.msra.mxu0 %v4390_v46  ;;  %v4458_v41 = vor.u32 %v6138_v33, %v4457_v31  ;;  %v4586_v44 = vor.u32 %v6170_v36, %v4585_v35  ;;  %v6134_v46 = vld [vmem:[%s9642_s2 + $0x294] sm:$0xf0] }
  0x5f   :  { %1419 = vmatpush.bf16.msrb.mxu2 %v4790_v43  ;;  %v6070_v43 = vld [vmem:[%s9642_s2 + $0x94] sm:$0xf0] }
  0x60   :  { %1394 = vmatpush.bf16.msra.mxu1 %v4518_v47  ;;  %1407 = vmatpush.bf16.msra.mxu3 %v4646_v51  ;;  %v4330_v47 = vor.u32 %v6106_v40, %v4329_v39  ;;  %v4186_v50 = vor.u32 %v6070_v43, %v4185_v42  ;;  %v4313_v51 = vld [vmem:[%s9642_s2 + $0x188] sm:$0xf] }
  0x61   :  { %1382 = vmatpush.bf16.msra.mxu0 %v4374_v2 }
  0x63   :  { %1420 = vmatpush.bf16.msrb.mxu2 %v4774_v60 }
  0x64   :  { %1395 = vmatpush.bf16.msra.mxu1 %v4502_v3  ;;  %1408 = vmatpush.bf16.msra.mxu3 %v4630_v6 }
  0x65   :  { %1466 = vmatpush.bf16.msrb.mxu0 %v4490_v14 }
  0x66   :  { %1383 = vmatmul.bf16.vlgmr.msra.gmra.mxu0 %v6913_v54 }
  0x67   :  { %1421 = vmatpush.bf16.msrb.mxu2 %v4758_v15  ;;  %1409 = vmatmul.bf16.vlgmr.msra.gmra.mxu3 %v7109_v32 }
  0x68   :  { %1440 = vmatpush.bf16.msrb.mxu1 %v4234_v7  ;;  %1434 = vmatpush.bf16.msrb.mxu3 %v4886_v11 }
  0x69   :  { %1396 = vmatmul.bf16.vlgmr.msra.gmra.mxu1 %v6923_v63  ;;  %1467 = vmatpush.bf16.msrb.mxu0 %v4474_v27 }
  0x6a   :  { %1422 = vmatmul.bf16.vlgmr.msrb.gmra.mxu2 %v7120_v37 }
  0x6b   :  { %1479 = vmatpush.bf16.msra.mxu2 %v4618_v18 }
  0x6c   :  { %1453 = vmatpush.bf16.msra.mxu3 %v4362_v21  ;;  %1441 = vmatpush.bf16.msrb.mxu1 %v4218_v24 }
  0x6f   :  { %1480 = vmatpush.bf16.msra.mxu2 %v4602_v30 }
  0x70   :  { %1454 = vmatpush.bf16.msra.mxu3 %v4346_v34  ;;  %1442 = vmatpush.bf16.msrb.mxu1 %v4202_v38 }
  0x71   :  { %18 = vsyncpa [#allocation5], 0  ;;  %1468 = vmatpush.bf16.msrb.mxu0 %v4458_v41  ;;  %v4442_v53 = vor.u32 %v6134_v46, %v4441_v45  ;;  %v4169_v55 = vld [vmem:[%s9642_s2 + $0x68] sm:$0xf]  ;;  %v6066_v57 = vld [vmem:[%s9642_s2 + $0x74] sm:$0xf0]  ;;  %v4570_v58 = vor.u32 %v6166_v49, %v4569_v48  ;;  %v4314_v62 = vor.u32 %v6102_v52, %v4313_v51 }
  0x72   :  { %v4425_v59 = vld [vmem:[%s9642_s2 + $0x268] sm:$0xf]  ;;  %v6130_v60 = vld [vmem:[%s9642_s2 + $0x274] sm:$0xf0]  ;;  %v4170_v2 = vor.u32 %v6066_v57, %v4169_v55  ;;  %v6080_v48 = vld [vmem:[%s9642_s2 + $0xec] sm:$0xf] }
  0x73   :  { %1481 = vmatpush.bf16.msra.mxu2 %v4586_v44  ;;  %v4553_v0 = vld [vmem:[%s9642_s2 + $0x368] sm:$0xf]  ;;  %v6162_v1 = vld [vmem:[%s9642_s2 + $0x374] sm:$0xf0]  ;;  %v4426_v5 = vor.u32 %v6130_v60, %v4425_v59  ;;  %v4235_v49 = vld [vmem:[%s9642_s2 + $0xf8] sm:$0xf0] }
  0x74   :  { %1455 = vmatpush.bf16.msra.mxu3 %v4330_v47  ;;  %1443 = vmatpush.bf16.msrb.mxu1 %v4186_v50  ;;  %v4297_v3 = vld [vmem:[%s9642_s2 + $0x168] sm:$0xf]  ;;  %v6098_v4 = vld [vmem:[%s9642_s2 + $0x174] sm:$0xf0]  ;;  %v4554_v9 = vor.u32 %v6162_v1, %v4553_v0  ;;  %v6112_v60 = vld [vmem:[%s9642_s2 + $0x1ec] sm:$0xf]  ;;  %v4238_v1 = vor.u32 %v6080_v48, %v4235_v49 }
  0x75   :  { %1469 = vmatpush.bf16.msrb.mxu0 %v4442_v53  ;;  %v4153_v6 = vld [vmem:[%s9642_s2 + $0x48] sm:$0xf]  ;;  %v6062_v7 = vld [vmem:[%s9642_s2 + $0x54] sm:$0xf0]  ;;  %v4298_v12 = vor.u32 %v6098_v4, %v4297_v3  ;;  %v6076_v3 = vld [vmem:[%s9642_s2 + $0xcc] sm:$0xf] }
  0x76   :  { %v4409_v10 = vld [vmem:[%s9642_s2 + $0x248] sm:$0xf]  ;;  %v6126_v11 = vld [vmem:[%s9642_s2 + $0x254] sm:$0xf0]  ;;  %v4154_v15 = vor.u32 %v6062_v7, %v4153_v6  ;;  %v4219_v4 = vld [vmem:[%s9642_s2 + $0xd8] sm:$0xf0] }
  0x77   :  { %1482 = vmatpush.bf16.msra.mxu2 %v4570_v58  ;;  %v4537_v13 = vld [vmem:[%s9642_s2 + $0x348] sm:$0xf]  ;;  %v6158_v14 = vld [vmem:[%s9642_s2 + $0x354] sm:$0xf0]  ;;  %v4410_v18 = vor.u32 %v6126_v11, %v4409_v10  ;;  %4896 = vmatmul.msk.bf16.vlgmr.msrb.gmra.mxu3 %vm1254_vm0, %v7048_v61  ;;  %s6607_s29 = smov 64   ;;  %s4097_s22 = sshll.u32 %s9651_s11, 4  ;;  %s4098_s22 = int_to_ptr.hbm [resolvable:$true] %s4097_s22 }
  0x78   :  { %1456 = vmatpush.bf16.msra.mxu3 %v4314_v62  ;;  %1444 = vmatpush.bf16.msrb.mxu1 %v4170_v2  ;;  %v4281_v16 = vld [vmem:[%s9642_s2 + $0x148] sm:$0xf]  ;;  %v6094_v17 = vld [vmem:[%s9642_s2 + $0x154] sm:$0xf0]  ;;  %v4538_v21 = vor.u32 %v6158_v14, %v4537_v13  ;;  %v4363_v62 = vld [vmem:[%s9642_s2 + $0x1f8] sm:$0xf0]  ;;  %v4222_v14 = vor.u32 %v6076_v3, %v4219_v4 }
  0x79   :  { %1470 = vmatpush.bf16.msrb.mxu0 %v4426_v5  ;;  %v4137_v19 = vld [vmem:[%s9642_s2 + $0x28] sm:$0xf]  ;;  %v6058_v20 = vld [vmem:[%s9642_s2 + $0x34] sm:$0xf0]  ;;  %v4282_v24 = vor.u32 %v6094_v17, %v4281_v16  ;;  %v4366_v6 = vor.u32 %v6112_v60, %v4363_v62  ;;  %v4347_v13 = vld [vmem:[%s9642_s2 + $0x1d8] sm:$0xf0] }
  0x7a   :  { %v4393_v22 = vld [vmem:[%s9642_s2 + $0x228] sm:$0xf]  ;;  %v6122_v23 = vld [vmem:[%s9642_s2 + $0x234] sm:$0xf0]  ;;  %v4138_v27 = vor.u32 %v6058_v20, %v4137_v19  ;;  %v6072_v16 = vld [vmem:[%s9642_s2 + $0xac] sm:$0xf] }
  0x7b   :  { %1483 = vmatpush.bf16.msra.mxu2 %v4554_v9  ;;  %v4521_v25 = vld [vmem:[%s9642_s2 + $0x328] sm:$0xf]  ;;  %v6154_v26 = vld [vmem:[%s9642_s2 + $0x334] sm:$0xf0]  ;;  %v4394_v31 = vor.u32 %v6122_v23, %v4393_v22  ;;  %v4203_v17 = vld [vmem:[%s9642_s2 + $0xb8] sm:$0xf0] }
  0x7c   :  { %1457 = vmatpush.bf16.msra.mxu3 %v4298_v12  ;;  %1445 = vmatpush.bf16.msrb.mxu1 %v4154_v15  ;;  %v4265_v28 = vld [vmem:[%s9642_s2 + $0x128] sm:$0xf]  ;;  %v6090_v29 = vld [vmem:[%s9642_s2 + $0x134] sm:$0xf0]  ;;  %v4522_v36 = vor.u32 %v6154_v26, %v4521_v25  ;;  %v6108_v12 = vld [vmem:[%s9642_s2 + $0x1cc] sm:$0xf]  ;;  %v4206_v26 = vor.u32 %v6072_v16, %v4203_v17 }
  0x7d   :  { %v4121_v30 = vld [vmem:[%s9642_s2 + $0x8] sm:$0xf]  ;;  %1471 = vmatpush.bf16.msrb.mxu0 %v4410_v18  ;;  %v6054_v33 = vld [vmem:[%s9642_s2 + $0x14] sm:$0xf0]  ;;  %v4266_v42 = vor.u32 %v6090_v29, %v4265_v28  ;;  %v4350_v19 = vor.u32 %v6108_v12, %v4347_v13  ;;  %v4331_v25 = vld [vmem:[%s9642_s2 + $0x1b8] sm:$0xf0] }
  0x7e   :  { %v4745_v34 = vld [vmem:[%s9642_s2 + $0x4e8] sm:$0xf]  ;;  %v6210_v35 = vld [vmem:[%s9642_s2 + $0x4f4] sm:$0xf0]  ;;  %v4122_v46 = vor.u32 %v6054_v33, %v4121_v30  ;;  %v6068_v28 = vld [vmem:[%s9642_s2 + $0x8c] sm:$0xf] }
  0x7f   :  { %1484 = vmatpush.bf16.msra.mxu2 %v4538_v21  ;;  %v4249_v38 = vld [vmem:[%s9642_s2 + $0x108] sm:$0xf]  ;;  %v6118_v40 = vld [vmem:[%s9642_s2 + $0x214] sm:$0xf0]  ;;  %v4746_v50 = vor.u32 %v6210_v35, %v4745_v34  ;;  %v4187_v29 = vld [vmem:[%s9642_s2 + $0x98] sm:$0xf0] }
  0x80   :  { %v4377_v39 = vld [vmem:[%s9642_s2 + $0x208] sm:$0xf]  ;;  %1458 = vmatpush.bf16.msra.mxu3 %v4282_v24  ;;  %v6150_v43 = vld [vmem:[%s9642_s2 + $0x314] sm:$0xf0]  ;;  %1446 = vmatpush.bf16.msrb.mxu1 %v4138_v27  ;;  %v6104_v24 = vld [vmem:[%s9642_s2 + $0x1ac] sm:$0xf] }
  0x81   :  { %v4505_v41 = vld [vmem:[%s9642_s2 + $0x308] sm:$0xf]  ;;  %v6246_v45 = vld [vmem:[%s9642_s2 + $0x614] sm:$0xf0]  ;;  %1472 = vmatpush.bf16.msrb.mxu0 %v4394_v31  ;;  %v4378_v51 = vor.u32 %v6118_v40, %v4377_v39  ;;  %v4334_v31 = vor.u32 %v6104_v24, %v4331_v25  ;;  %v4315_v39 = vld [vmem:[%s9642_s2 + $0x198] sm:$0xf0]  ;;  %v4190_v40 = vor.u32 %v6068_v28, %v4187_v29 }
  0x82   :  { %v4889_v44 = vld [vmem:[%s9642_s2 + $0x608] sm:$0xf]  ;;  %v6086_v47 = vld [vmem:[%s9642_s2 + $0x114] sm:$0xf0]  ;;  %v4506_v57 = vor.u32 %v6150_v43, %v4505_v41  ;;  %v4171_v43 = vld [vmem:[%s9642_s2 + $0x78] sm:$0xf0] }
  0x83   :  { %v4873_v52 = vld [vmem:[%s9642_s2 + $0x5e8] sm:$0xf]  ;;  %v6242_v53 = vld [vmem:[%s9642_s2 + $0x5f4] sm:$0xf0]  ;;  %1485 = vmatpush.bf16.msra.mxu2 %v4522_v36  ;;  %v4890_v59 = vor.u32 %v6246_v45, %v4889_v44  ;;  %v4250_v0 = vor.u32 %v6086_v47, %v4249_v38  ;;  %v6100_v38 = vld [vmem:[%s9642_s2 + $0x18c] sm:$0xf] }
  0x84   :  { %v4729_v55 = vld [vmem:[%s9642_s2 + $0x4c8] sm:$0xf]  ;;  %v6206_v58 = vld [vmem:[%s9642_s2 + $0x4d4] sm:$0xf0]  ;;  %1459 = vmatpush.bf16.msra.mxu3 %v4266_v42  ;;  %1447 = vmatpush.bf16.msrb.mxu1 %v4122_v46  ;;  %v4874_v2 = vor.u32 %v6242_v53, %v4873_v52  ;;  %v6064_v42 = vld [vmem:[%s9642_s2 + $0x6c] sm:$0xf]  ;;  %v4318_v45 = vor.u32 %v6100_v38, %v4315_v39 }
  0x85   :  { %1473 = vmatpush.bf16.msrb.mxu0 %v4378_v51  ;;  %v4730_v5 = vor.u32 %v6206_v58, %v4729_v55  ;;  %v4857_v7 = vld [vmem:[%s9642_s2 + $0x5c8] sm:$0xf]  ;;  %v6238_v9 = vld [vmem:[%s9642_s2 + $0x5d4] sm:$0xf0]  ;;  %v4299_v51 = vld [vmem:[%s9642_s2 + $0x178] sm:$0xf0]  ;;  %v4174_v52 = vor.u32 %v6064_v42, %v4171_v43 }
  0x86   :  { %v4713_v10 = vld [vmem:[%s9642_s2 + $0x4a8] sm:$0xf]  ;;  %v6202_v11 = vld [vmem:[%s9642_s2 + $0x4b4] sm:$0xf0]  ;;  %v4858_v15 = vor.u32 %v6238_v9, %v4857_v7  ;;  %v6060_v55 = vld [vmem:[%s9642_s2 + $0x4c] sm:$0xf] }
  0x87   :  { %1486 = vmatpush.bf16.msra.mxu2 %v4506_v57  ;;  %v4714_v18 = vor.u32 %v6202_v11, %v4713_v10  ;;  %v4841_v20 = vld [vmem:[%s9642_s2 + $0x5a8] sm:$0xf]  ;;  %v6234_v21 = vld [vmem:[%s9642_s2 + $0x5b4] sm:$0xf0]  ;;  %1448 = vmatmul.bf16.vlgmr.msrb.gmra.mxu1 %v6915_v56  ;;  %v4155_v57 = vld [vmem:[%s9642_s2 + $0x58] sm:$0xf0] }
  0x88   :  { %1492 = vmatpush.bf16.msra.mxu1 %v4746_v50  ;;  %1460 = vmatpush.bf16.msra.mxu3 %v4250_v0  ;;  %v4697_v22 = vld [vmem:[%s9642_s2 + $0x488] sm:$0xf]  ;;  %v6198_v23 = vld [vmem:[%s9642_s2 + $0x494] sm:$0xf0]  ;;  %v4842_v27 = vor.u32 %v6234_v21, %v4841_v20  ;;  %v6096_v50 = vld [vmem:[%s9642_s2 + $0x16c] sm:$0xf]  ;;  %v4158_v4 = vor.u32 %v6060_v55, %v4155_v57 }
  0x89   :  { %1525 = vmatpush.bf16.msra.mxu0 %v4890_v59  ;;  %v4698_v30 = vor.u32 %v6198_v23, %v4697_v22  ;;  %v4825_v33 = vld [vmem:[%s9642_s2 + $0x588] sm:$0xf]  ;;  %v6230_v34 = vld [vmem:[%s9642_s2 + $0x594] sm:$0xf0]  ;;  %v4302_v59 = vor.u32 %v6096_v50, %v4299_v51  ;;  %v4283_v3 = vld [vmem:[%s9642_s2 + $0x158] sm:$0xf0] }
  0x8a   :  { %1474 = vmatmul.bf16.vlgmr.msrb.gmra.mxu0 %v6913_v54  ;;  %1487 = vmatmul.bf16.vlgmr.msra.gmra.mxu2 %v6923_v63  ;;  %v4681_v35 = vld [vmem:[%s9642_s2 + $0x468] sm:$0xf]  ;;  %v6194_v36 = vld [vmem:[%s9642_s2 + $0x474] sm:$0xf0]  ;;  %v4826_v41 = vor.u32 %v6230_v34, %v4825_v33  ;;  %v4139_v7 = vld [vmem:[%s9642_s2 + $0x38] sm:$0xf0] }
  0x8b   :  { %1531 = vmatpush.bf16.msrb.mxu2 %v4238_v1  ;;  %1461 = vmatmul.bf16.vlgmr.msra.gmra.mxu3 %v6945_v8  ;;  %v4682_v44 = vor.u32 %v6194_v36, %v4681_v35  ;;  %v4809_v46 = vld [vmem:[%s9642_s2 + $0x568] sm:$0xf]  ;;  %v6226_v47 = vld [vmem:[%s9642_s2 + $0x574] sm:$0xf0]  ;;  %v4267_v16 = vld [vmem:[%s9642_s2 + $0x138] sm:$0xf0] }
  0x8c   :  { %1505 = vmatpush.bf16.msrb.mxu3 %v4874_v2  ;;  %1493 = vmatpush.bf16.msra.mxu1 %v4730_v5  ;;  %v4665_v48 = vld [vmem:[%s9642_s2 + $0x448] sm:$0xf]  ;;  %v6190_v49 = vld [vmem:[%s9642_s2 + $0x454] sm:$0xf0]  ;;  %v4810_v53 = vor.u32 %v6226_v47, %v4809_v46  ;;  %v6092_v2 = vld [vmem:[%s9642_s2 + $0x14c] sm:$0xf] }
  0x8d   :  { %1544 = vmatpush.bf16.msrb.mxu0 %v4366_v6  ;;  %v4666_v58 = vor.u32 %v6190_v49, %v4665_v48  ;;  %v4793_v60 = vld [vmem:[%s9642_s2 + $0x548] sm:$0xf]  ;;  %v6222_v62 = vld [vmem:[%s9642_s2 + $0x554] sm:$0xf0]  ;;  %v6056_v6 = vld [vmem:[%s9642_s2 + $0x2c] sm:$0xf]  ;;  %v4286_v10 = vor.u32 %v6092_v2, %v4283_v3 }
  0x8e   :  { %v4649_v0 = vld [vmem:[%s9642_s2 + $0x428] sm:$0xf]  ;;  %v6186_v1 = vld [vmem:[%s9642_s2 + $0x434] sm:$0xf0]  ;;  %v4794_v5 = vor.u32 %v6222_v62, %v4793_v60  ;;  %v4142_v17 = vor.u32 %v6056_v6, %v4139_v7  ;;  %v6052_v22 = vld [vmem:[%s9642_s2 + $0xc] sm:$0xf] }
  0x8f   :  { %1532 = vmatpush.bf16.msrb.mxu2 %v4222_v14  ;;  %v4650_v9 = vor.u32 %v6186_v1, %v4649_v0  ;;  %v4777_v11 = vld [vmem:[%s9642_s2 + $0x528] sm:$0xf]  ;;  %v6218_v12 = vld [vmem:[%s9642_s2 + $0x534] sm:$0xf0]  ;;  %v4123_v23 = vld [vmem:[%s9642_s2 + $0x18] sm:$0xf0] }
  0x90   :  { %1506 = vmatpush.bf16.msrb.mxu3 %v4858_v15  ;;  %1494 = vmatpush.bf16.msra.mxu1 %v4714_v18  ;;  %v4633_v13 = vld [vmem:[%s9642_s2 + $0x408] sm:$0xf]  ;;  %v6182_v14 = vld [vmem:[%s9642_s2 + $0x414] sm:$0xf0]  ;;  %v6088_v15 = vld [vmem:[%s9642_s2 + $0x12c] sm:$0xf]  ;;  %v4778_v20 = vor.u32 %v6218_v12, %v4777_v11  ;;  %v4126_v34 = vor.u32 %v6052_v22, %v4123_v23 }
  0x91   :  { %1545 = vmatpush.bf16.msrb.mxu0 %v4350_v19  ;;  %v6144_v18 = vld [vmem:[%s9642_s2 + $0x2ec] sm:$0xf]  ;;  %v4491_v19 = vld [vmem:[%s9642_s2 + $0x2f8] sm:$0xf0]  ;;  %v4761_v21 = vld [vmem:[%s9642_s2 + $0x508] sm:$0xf]  ;;  %v4634_v24 = vor.u32 %v6182_v14, %v4633_v13  ;;  %v4270_v25 = vor.u32 %v6088_v15, %v4267_v16 }
  0x92   :  { %v4619_v28 = vld [vmem:[%s9642_s2 + $0x3f8] sm:$0xf0]  ;;  %v4494_v29 = vor.u32 %v6144_v18, %v4491_v19  ;;  %v6140_v33 = vld [vmem:[%s9642_s2 + $0x2cc] sm:$0xf]  ;;  %vm4045_vm1 = vcmask 1040384   ;;  %vm4049_vm2 = vcmask 1042434  }
  0x93   :  { %1533 = vmatpush.bf16.msrb.mxu2 %v4206_v26  ;;  %v6214_v26 = vld [vmem:[%s9642_s2 + $0x514] sm:$0xf0]  ;;  %v4475_v35 = vld [vmem:[%s9642_s2 + $0x2d8] sm:$0xf0]  ;;  %v6084_v36 = vld [vmem:[%s9642_s2 + $0x10c] sm:$0xf] }
  0x94   :  { %1507 = vmatpush.bf16.msrb.mxu3 %v4842_v27  ;;  %1495 = vmatpush.bf16.msra.mxu1 %v4698_v30  ;;  %v6176_v27 = vld [vmem:[%s9642_s2 + $0x3ec] sm:$0xf]  ;;  %v4251_v38 = vld [vmem:[%s9642_s2 + $0x118] sm:$0xf0]  ;;  %v4762_v39 = vor.u32 %v6214_v26, %v4761_v21  ;;  %vm4053_vm3 = vcmask 1041408   ;;  %vm4068_vm4 = vcmask 1041409  }
  0x95   :  { %1546 = vmatpush.bf16.msrb.mxu0 %v4334_v31  ;;  %v6208_v30 = vld [vmem:[%s9642_s2 + $0x4ec] sm:$0xf]  ;;  %v4747_v31 = vld [vmem:[%s9642_s2 + $0x4f8] sm:$0xf0]  ;;  %v4622_v42 = vor.u32 %v6176_v27, %v4619_v28  ;;  %v4254_v46 = vor.u32 %v6084_v36, %v4251_v38  ;;  %vm4069_vm5 = vmor %vm4068_vm4, %vm4045_vm1  ;;  %vm4071_vm7 = vcmask 1043459   ;;  %vm4055_vm9 = vcmask 1044484  }
  0x96   :  { %v4750_v43 = vor.u32 %v6208_v30, %v4747_v31  ;;  %v4603_v47 = vld [vmem:[%s9642_s2 + $0x3d8] sm:$0xf0]  ;;  %v6204_v48 = vld [vmem:[%s9642_s2 + $0x4cc] sm:$0xf]  ;;  %vm4070_vm6 = vmor %vm4049_vm2, %vm4069_vm5  ;;  %vm4074_vm11 = vcmask 1045509   ;;  %vm4059_vm12 = vcmask 1046534  }
  0x97   :  { %1534 = vmatpush.bf16.msrb.mxu2 %v4190_v40  ;;  %v6240_v40 = vld [vmem:[%s9642_s2 + $0x5ec] sm:$0xf]  ;;  %v4731_v49 = vld [vmem:[%s9642_s2 + $0x4d8] sm:$0xf0]  ;;  %vm4072_vm8 = vmor %vm4071_vm7, %vm4070_vm6  ;;  %vm4076_vm14 = vcmask 129030   ;;  %vm4063_vm15 = vcmask 1045508  }
  0x98   :  { %1508 = vmatpush.bf16.msrb.mxu3 %v4826_v41  ;;  %1496 = vmatpush.bf16.msra.mxu1 %v4682_v44  ;;  %v4875_v41 = vld [vmem:[%s9642_s2 + $0x5f8] sm:$0xf0]  ;;  %v6172_v44 = vld [vmem:[%s9642_s2 + $0x3cc] sm:$0xf]  ;;  %vm4073_vm10 = vmor %vm4055_vm9, %vm4072_vm8  ;;  %s6609_s11 = smov [#allocation2]   ;;  %s4086_s25 = sshll.u32 %s9650_s10, 4  ;;  %s4087_s25 = int_to_ptr.hbm [resolvable:$true] %s4086_s25 }
  0x99   :  { %1547 = vmatpush.bf16.msrb.mxu0 %v4318_v45  ;;  %v4478_v45 = vor.u32 %v6140_v33, %v4475_v35  ;;  %v4878_v50 = vor.u32 %v6240_v40, %v4875_v41  ;;  %v6136_v51 = vld [vmem:[%s9642_s2 + $0x2ac] sm:$0xf]  ;;  %v4859_v55 = vld [vmem:[%s9642_s2 + $0x5d8] sm:$0xf0]  ;;  %v4606_v57 = vor.u32 %v6172_v44, %v4603_v47  ;;  %vm4075_vm13 = vmor %vm4074_vm11, %vm4073_vm10  ;;  %s4084_s23 = sshll.u32 %s6609_s11, 4  ;;  %s4085_s23 = int_to_ptr.vmem [resolvable:$true] %s4084_s23 }
  0x9a   :  { %4897 = vmatmul.msk.bf16.vlgmr.msra.gmra.mxu0 %vm1254_vm0, %v7048_v61  ;;  %v4587_v62 = vld [vmem:[%s9642_s2 + $0x3b8] sm:$0xf0]  ;;  %v6200_v0 = vld [vmem:[%s9642_s2 + $0x4ac] sm:$0xf] }
  0x9b   :  { %1535 = vmatpush.bf16.msrb.mxu2 %v4174_v52  ;;  %v4459_v52 = vld [vmem:[%s9642_s2 + $0x2b8] sm:$0xf0]  ;;  %v6132_v3 = vld [vmem:[%s9642_s2 + $0x28c] sm:$0xf] }
  0x9c   :  { %1509 = vmatpush.bf16.msrb.mxu3 %v4810_v53  ;;  %1497 = vmatpush.bf16.msra.mxu1 %v4666_v58  ;;  %v6236_v53 = vld [vmem:[%s9642_s2 + $0x5cc] sm:$0xf]  ;;  %v4734_v58 = vor.u32 %v6204_v48, %v4731_v49  ;;  %v4462_v60 = vor.u32 %v6136_v51, %v4459_v52  ;;  %v4715_v1 = vld [vmem:[%s9642_s2 + $0x4b8] sm:$0xf0] }
  0x9d   :  { %1548 = vmatpush.bf16.msrb.mxu0 %v4302_v59  ;;  %v6168_v59 = vld [vmem:[%s9642_s2 + $0x3ac] sm:$0xf]  ;;  %v4862_v2 = vor.u32 %v6236_v53, %v4859_v55  ;;  %v4843_v6 = vld [vmem:[%s9642_s2 + $0x5b8] sm:$0xf0] }
  0x9e   :  { %v4590_v7 = vor.u32 %v6168_v59, %v4587_v62  ;;  %v6196_v12 = vld [vmem:[%s9642_s2 + $0x48c] sm:$0xf]  ;;  %v4699_v13 = vld [vmem:[%s9642_s2 + $0x498] sm:$0xf0] }
  0x9f   :  { %1536 = vmatpush.bf16.msrb.mxu2 %v4158_v4  ;;  %v4443_v4 = vld [vmem:[%s9642_s2 + $0x298] sm:$0xf0]  ;;  %v6128_v15 = vld [vmem:[%s9642_s2 + $0x26c] sm:$0xf] }
  0xa0   :  { %1510 = vmatpush.bf16.msrb.mxu3 %v4794_v5  ;;  %1498 = vmatpush.bf16.msra.mxu1 %v4650_v9  ;;  %v6232_v5 = vld [vmem:[%s9642_s2 + $0x5ac] sm:$0xf]  ;;  %v4718_v9 = vor.u32 %v6200_v0, %v4715_v1  ;;  %v4446_v11 = vor.u32 %v6132_v3, %v4443_v4  ;;  %v4427_v16 = vld [vmem:[%s9642_s2 + $0x278] sm:$0xf0] }
  0xa1   :  { %1549 = vmatpush.bf16.msrb.mxu0 %v4286_v10  ;;  %v6164_v10 = vld [vmem:[%s9642_s2 + $0x38c] sm:$0xf]  ;;  %v4846_v14 = vor.u32 %v6232_v5, %v4843_v6  ;;  %v4430_v22 = vor.u32 %v6128_v15, %v4427_v16  ;;  %v4555_v23 = vld [vmem:[%s9642_s2 + $0x378] sm:$0xf0] }
  0xa2   :  { %v6228_v18 = vld [vmem:[%s9642_s2 + $0x58c] sm:$0xf]  ;;  %v4811_v31 = vld [vmem:[%s9642_s2 + $0x578] sm:$0xf0] }
  0xa3   :  { %1537 = vmatpush.bf16.msrb.mxu2 %v4142_v17  ;;  %v6160_v21 = vld [vmem:[%s9642_s2 + $0x36c] sm:$0xf]  ;;  %v4539_v40 = vld [vmem:[%s9642_s2 + $0x358] sm:$0xf0] }
  0xa4   :  { %1511 = vmatpush.bf16.msrb.mxu3 %v4778_v20  ;;  %1499 = vmatpush.bf16.msra.mxu1 %v4634_v24  ;;  %v4702_v20 = vor.u32 %v6196_v12, %v4699_v13  ;;  %v6192_v24 = vld [vmem:[%s9642_s2 + $0x46c] sm:$0xf]  ;;  %v4795_v48 = vld [vmem:[%s9642_s2 + $0x558] sm:$0xf0] }
  0xa5   :  { %1550 = vmatpush.bf16.msrb.mxu0 %v4270_v25  ;;  %v4683_v25 = vld [vmem:[%s9642_s2 + $0x478] sm:$0xf0]  ;;  %v6124_v28 = vld [vmem:[%s9642_s2 + $0x24c] sm:$0xf] }
  0xa6   :  { %v6224_v30 = vld [vmem:[%s9642_s2 + $0x56c] sm:$0xf]  ;;  %v4686_v35 = vor.u32 %v6192_v24, %v4683_v25  ;;  %v4523_v53 = vld [vmem:[%s9642_s2 + $0x338] sm:$0xf0]  ;;  %v6253_v25 = vld [vmem:[%s9644_s4 + $0x30] sm:$0xff] }
  0xa7   :  { %1538 = vmatpush.bf16.msrb.mxu2 %v4126_v34  ;;  %1500 = vmatmul.bf16.vlgmr.msra.gmra.mxu1 %v7109_v32  ;;  %v7790_v17 = vpop.f32.mrf.mxu0  ;;  %v4558_v34 = vor.u32 %v6160_v21, %v4555_v23  ;;  %v6156_v36 = vld [vmem:[%s9642_s2 + $0x34c] sm:$0xf]  ;;  %v4779_v1 = vld [vmem:[%s9642_s2 + $0x538] sm:$0xf0] }
  0xa8   :  { %1557 = vmatpush.bf16.msrb.mxu1 %v4494_v29  ;;  %1512 = vmatpush.bf16.msrb.mxu3 %v4762_v39  ;;  %v4411_v29 = vld [vmem:[%s9642_s2 + $0x258] sm:$0xf0]  ;;  %v6188_v41 = vld [vmem:[%s9642_s2 + $0x44c] sm:$0xf]  ;;  %v4542_v49 = vor.u32 %v6156_v36, %v4539_v40 }
  0xa9   :  { %1551 = vmatpush.bf16.msrb.mxu0 %v4254_v46  ;;  %v4414_v38 = vor.u32 %v6124_v28, %v4411_v29  ;;  %v6120_v44 = vld [vmem:[%s9642_s2 + $0x22c] sm:$0xf]  ;;  %v4891_v3 = vld [vmem:[%s9642_s2 + $0x618] sm:$0xf0]  ;;  %v6261_v29 = vld [vmem:[%s9644_s4 + $0x70] sm:$0xff] }
  0xaa   :  { %1539 = vmatmul.bf16.vlgmr.msrb.gmra.mxu2 %v6915_v56  ;;  %v4571_v56 = vld [vmem:[%s9642_s2 + $0x398] sm:$0xf0]  ;;  %v7810_v27 = vpop.f32.mrf.mxu1  ;;  %v6220_v47 = vld [vmem:[%s9642_s2 + $0x54c] sm:$0xf] }
  0xab   :  { %1583 = vmatpush.bf16.msra.mxu2 %v4750_v43  ;;  %1513 = vmatmul.bf16.vlgmr.msrb.gmra.mxu3 %v7120_v37  ;;  %v4574_v19 = vor.u32 %v6164_v10, %v4571_v56  ;;  %v4814_v43 = vor.u32 %v6224_v30, %v4811_v31  ;;  %v6152_v51 = vld [vmem:[%s9642_s2 + $0x32c] sm:$0xf]  ;;  %v6254_v21 = vld [vmem:[%s9644_s4 + $0x38] sm:$0xff] }
  0xac   :  { %1570 = vmatpush.bf16.msra.mxu3 %v4622_v42  ;;  %1558 = vmatpush.bf16.msrb.mxu1 %v4478_v45  ;;  %v4667_v42 = vld [vmem:[%s9642_s2 + $0x458] sm:$0xf0]  ;;  %v6184_v55 = vld [vmem:[%s9642_s2 + $0x42c] sm:$0xf]  ;;  %v4526_v5 = vor.u32 %v6152_v51, %v4523_v53 }
  0xad   :  { %1596 = vmatpush.bf16.msra.mxu0 %v4878_v50  ;;  %v7824_v33 = vpop.f32.mrf.mxu2  ;;  %v4395_v45 = vld [vmem:[%s9642_s2 + $0x238] sm:$0xf0]  ;;  %v4670_v50 = vor.u32 %v6188_v41, %v4667_v42  ;;  %v6116_v59 = vld [vmem:[%s9642_s2 + $0x20c] sm:$0xf] }
  0xae   :  { %1552 = vmatmul.bf16.vlgmr.msrb.gmra.mxu0 %v6945_v8  ;;  %v4827_v8 = vld [vmem:[%s9642_s2 + $0x598] sm:$0xf0]  ;;  %v7829_v39 = vpop.f32.mrf.mxu3  ;;  %v4398_v52 = vor.u32 %v6120_v44, %v4395_v45  ;;  %v6216_v62 = vld [vmem:[%s9642_s2 + $0x52c] sm:$0xf] }
  0xaf   :  { %1584 = vmatpush.bf16.msra.mxu2 %v4734_v58  ;;  %v4830_v26 = vor.u32 %v6228_v18, %v4827_v8  ;;  %v1269_v46 = vpop.f32.mrf.mxu0  ;;  %v4798_v58 = vor.u32 %v6220_v47, %v4795_v48  ;;  %v6148_v10 = vld [vmem:[%s9642_s2 + $0x30c] sm:$0xf]  ;;  %v4782_v12 = vor.u32 %v6216_v62, %v4779_v1  ;;  %v4763_v18 = vld [vmem:[%s9642_s2 + $0x518] sm:$0xf0]  ;;  %v6247_v47 = vld [vmem:[%s9644_s4] sm:$0xff] }
  0xb0   :  { %1571 = vmatpush.bf16.msra.mxu3 %v4606_v57  ;;  %1559 = vmatpush.bf16.msrb.mxu1 %v4462_v60  ;;  %v4651_v57 = vld [vmem:[%s9642_s2 + $0x438] sm:$0xf0]  ;;  %v6180_v13 = vld [vmem:[%s9642_s2 + $0x40c] sm:$0xf] }
  0xb1   :  { %1597 = vmatpush.bf16.msra.mxu0 %v4862_v2  ;;  %v4379_v60 = vld [vmem:[%s9642_s2 + $0x218] sm:$0xf0]  ;;  %v6244_v2 = vld [vmem:[%s9642_s2 + $0x60c] sm:$0xf]  ;;  %v4654_v6 = vor.u32 %v6184_v55, %v4651_v57 }
  0xb2   :  { %v1282_v0 = vpop.f32.mrf.mxu1  ;;  %v4894_v15 = vor.u32 %v6244_v2, %v4891_v3  ;;  %v6212_v16 = vld [vmem:[%s9642_s2 + $0x50c] sm:$0xf]  ;;  %v6262_v24 = vld [vmem:[%s9644_s4 + $0x78] sm:$0xff] }
  0xb3   :  { %1585 = vmatpush.bf16.msra.mxu2 %v4718_v9  ;;  %v4382_v9 = vor.u32 %v6116_v59, %v4379_v60  ;;  %v6258_v42 = vld [vmem:[%s9644_s4 + $0x58] sm:$0xff] }
  0xb4   :  { %1572 = vmatpush.bf16.msra.mxu3 %v4590_v7  ;;  %1560 = vmatpush.bf16.msrb.mxu1 %v4446_v11  ;;  %v7885_v7 = vld [vmem:[%s9643_s3] sm:$0xf]  ;;  %v4507_v11 = vld [vmem:[%s9642_s2 + $0x318] sm:$0xf0] }
  0xb5   :  { %1598 = vmatpush.bf16.msra.mxu0 %v4846_v14  ;;  %v1295_v4 = vpop.f32.mrf.mxu2  ;;  %v4635_v14 = vld [vmem:[%s9642_s2 + $0x418] sm:$0xf0]  ;;  %v266_v8 = vperm.slane %v7885_v7, 0  ;;  %v267_v55 = vperm.slane %v7885_v7, 1 }
  0xb6   :  { %v1308_v56 = vpop.f32.mrf.mxu3  ;;  %v6270_v3 = vld [vmem:[%s9644_s4 + $0xb8] sm:$0xff]  ;;  %v6269_v4 = vld [vmem:[%s9644_s4 + $0xb0] sm:$0xff] }
  0xb7   :  { %1586 = vmatpush.bf16.msra.mxu2 %v4702_v20  ;;  %v4638_v20 = vor.u32 %v6180_v13, %v4635_v14  ;;  %v1268_v23 = vadd.f32 %v7790_v17, %v266_v8  ;;  %v6252_v17 = vld [vmem:[%s9644_s4 + $0x28] sm:$0xff]  ;;  %v6265_v8 = vld [vmem:[%s9644_s4 + $0x90] sm:$0xff] }
  0xb8   :  { %1573 = vmatpush.bf16.msra.mxu3 %v4574_v19  ;;  %1561 = vmatpush.bf16.msrb.mxu1 %v4430_v22  ;;  %v4510_v19 = vor.u32 %v6148_v10, %v4507_v11  ;;  %v4766_v22 = vor.u32 %v6212_v16, %v4763_v18  ;;  %v6268_v11 = vld [vmem:[%s9644_s4 + $0xa8] sm:$0xff]  ;;  %v6266_v18 = vld [vmem:[%s9644_s4 + $0x98] sm:$0xff] }
  0xb9   :  { %1599 = vmatpush.bf16.msra.mxu0 %v4830_v26  ;;  %v1281_v26 = vadd.f32 %v7810_v27, %v1268_v23 }
  0xbb   :  { %1587 = vmatpush.bf16.msra.mxu2 %v4686_v35  ;;  %v1294_v30 = vadd.f32 %v7824_v33, %v1281_v26 }
  0xbc   :  { %1574 = vmatpush.bf16.msra.mxu3 %v4558_v34  ;;  %1562 = vmatpush.bf16.msrb.mxu1 %v4414_v38  ;;  %v6250_v34 = vld [vmem:[%s9644_s4 + $0x18] sm:$0xff]  ;;  %v6259_v38 = vld [vmem:[%s9644_s4 + $0x60] sm:$0xff] }
  0xbd   :  { %1600 = vmatpush.bf16.msra.mxu0 %v4814_v43  ;;  %v1307_v27 = vadd.f32 %v7829_v39, %v1294_v30  ;;  %v6249_v39 = vld [vmem:[%s9644_s4 + $0x10] sm:$0xff]  ;;  %v6248_v43 = vld [vmem:[%s9644_s4 + $0x8] sm:$0xff] }
  0xbe   :  { %v6277_v30 = vld [vmem:[%s9644_s4 + $0xf0] sm:$0xff] }
  0xbf   :  { %1588 = vmatpush.bf16.msra.mxu2 %v4670_v50 }
  0xc0   :  { %1575 = vmatpush.bf16.msra.mxu3 %v4542_v49  ;;  %1563 = vmatpush.bf16.msrb.mxu1 %v4398_v52  ;;  %v6256_v49 = vld [vmem:[%s9644_s4 + $0x48] sm:$0xff]  ;;  %v6255_v52 = vld [vmem:[%s9644_s4 + $0x40] sm:$0xff] }
  0xc1   :  { %1601 = vmatpush.bf16.msra.mxu0 %v4798_v58 }
  0xc3   :  { %1589 = vmatpush.bf16.msra.mxu2 %v4654_v6  ;;  %v1319_v28 = vpop.f32.mrf.mxu0 }
  0xc4   :  { %1576 = vmatpush.bf16.msra.mxu3 %v4526_v5  ;;  %1564 = vmatpush.bf16.msrb.mxu1 %v4382_v9  ;;  %v1320_v33 = vadd.f32 %v1319_v28, %v1307_v27 }
  0xc5   :  { %1602 = vmatpush.bf16.msra.mxu0 %v4782_v12  ;;  %v6267_v12 = vld [vmem:[%s9644_s4 + $0xa0] sm:$0xff] }
  0xc7   :  { %1565 = vmatmul.bf16.vlgmr.msrb.gmra.mxu1 %v6913_v54  ;;  %1590 = vmatpush.bf16.msra.mxu2 %v4638_v20  ;;  %v1345_v54 = vpop.f32.mrf.mxu2 }
  0xc8   :  { %1616 = vmatpush.bf16.msra.mxu1 %v4894_v15  ;;  %1577 = vmatpush.bf16.msra.mxu3 %v4510_v19 }
  0xc9   :  { %1603 = vmatpush.bf16.msra.mxu0 %v4766_v22  ;;  %v6264_v22 = vld [vmem:[%s9644_s4 + $0x88] sm:$0xff] }
  0xca   :  { %1591 = vmatmul.bf16.vlgmr.msra.gmra.mxu2 %v7109_v32  ;;  %v6251_v32 = vld [vmem:[%s9644_s4 + $0x20] sm:$0xff] }
  0xcb   :  { %1578 = vmatmul.bf16.vlgmr.msra.gmra.mxu3 %v6923_v63  ;;  %v1332_v63 = vpop.f32.mrf.mxu1  ;;  %v1321_v36 = vpop.f32.mrf.mxu0  ;;  %1916 = vmatpush.bf16.msrb.mxu2 %v6270_v3 }
  0xcc   :  { %1890 = vmatpush.bf16.msrb.mxu3 %v6254_v21  ;;  %1903 = vmatpush.bf16.msrb.mxu1 %v6262_v24  ;;  %v1358_v35 = vpop.f32.mrf.mxu3  ;;  %v1333_v41 = vadd.f32 %v1332_v63, %v1320_v33  ;;  %v268_v63 = vperm.slane %v7885_v7, 2  ;;  %v6275_v33 = vld [vmem:[%s9644_s4 + $0xe0] sm:$0xff] }
  0xcd   :  { %1604 = vmatmul.bf16.vlgmr.msra.gmra.mxu0 %v7120_v37  ;;  %v6260_v37 = vld [vmem:[%s9644_s4 + $0x68] sm:$0xff]  ;;  %v1359_v58 = vadd.f32 %v1358_v35, %v267_v55  ;;  %v269_v55 = vperm.slane %v7885_v7, 3 }
  0xce   :  { %v1346_v45 = vadd.f32 %v1345_v54, %v1333_v41  ;;  %v6263_v54 = vld [vmem:[%s9644_s4 + $0x80] sm:$0xff] }
  0xcf   :  { %v1347_v31 = vpop.f32.mrf.mxu2  ;;  %1917 = vmatpush.bf16.msrb.mxu2 %v6269_v4 }
  0xd0   :  { %1891 = vmatpush.bf16.msrb.mxu3 %v6253_v25  ;;  %1904 = vmatpush.bf16.msrb.mxu1 %v6261_v29  ;;  %v1622_v48 = vmax.f32 %v1346_v45, 0.0  ;;  %v6276_v31 = vld [vmem:[%s9644_s4 + $0xe8] sm:$0xff] }
  0xd2   :  { %v1626_v51 = vpack.c.bf16 %v1622_v48, %v1622_v48 }
  0xd3   :  { %v1334_v40 = vpop.f32.mrf.mxu1  ;;  %1918 = vmatpush.bf16.msrb.mxu2 %v6268_v11 }
  0xd4   :  { %1892 = vmatpush.bf16.msrb.mxu3 %v6252_v17  ;;  %1905 = vmatpush.bf16.msrb.mxu1 %v6260_v37  ;;  %v1360_v46 = vpop.f32.mrf.mxu3  ;;  %v6278_v17 = vld [vmem:[%s9644_s4 + $0xf8] sm:$0xff] }
  0xd5   :  { %1929 = vmatpush.bf16.msrb.mxu0 %v6278_v17  ;;  %v6310_v17 = vld [vmem:[%s9646_s6 + $0xf4] sm:$0xf0] }
  0xd7   :  { %4898 = vmatmul.msk.bf16.vlgmr.msra.gmra.mxu1 %vm1254_vm0, %v7048_v61  ;;  %v1371_v44 = vpop.f32.mrf.mxu2  ;;  %v6257_v61 = vld [vmem:[%s9644_s4 + $0x50] sm:$0xff]  ;;  %1919 = vmatpush.bf16.msrb.mxu2 %v6267_v12  ;;  %vm4065_vm0 = vcmask 1043456  }
  0xd8   :  { %1893 = vmatpush.bf16.msrb.mxu3 %v6251_v32  ;;  %1906 = vmatpush.bf16.msrb.mxu1 %v6259_v38  ;;  %v1372_v0 = vadd.f32 %v1371_v44, %v1359_v58  ;;  %v6274_v38 = vld [vmem:[%s9644_s4 + $0xd8] sm:$0xff] }
  0xd9   :  { %1930 = vmatpush.bf16.msrb.mxu0 %v6277_v30  ;;  %v6308_v30 = vld [vmem:[%s9646_s6 + $0xec] sm:$0xf] }
  0xdb   :  { %1920 = vmatpush.bf16.msrb.mxu2 %v6266_v18 }
  0xdc   :  { %1894 = vmatpush.bf16.msrb.mxu3 %v6250_v34  ;;  %1907 = vmatpush.bf16.msrb.mxu1 %v6258_v42 }
  0xdd   :  { %1931 = vmatpush.bf16.msrb.mxu0 %v6276_v31  ;;  %v6303_v31 = vld [vmem:[%s9646_s6 + $0xc4] sm:$0xf] }
  0xdf   :  { %v1373_v50 = vpop.f32.mrf.mxu2  ;;  %1921 = vmatpush.bf16.msrb.mxu2 %v6265_v8 }
  0xe0   :  { %1895 = vmatpush.bf16.msrb.mxu3 %v6249_v39  ;;  %1908 = vmatpush.bf16.msrb.mxu1 %v6257_v61 }
  0xe1   :  { %1932 = vmatpush.bf16.msrb.mxu0 %v6275_v33 }
  0xe3   :  { %v1384_v53 = vpop.f32.mrf.mxu0  ;;  %1922 = vmatpush.bf16.msrb.mxu2 %v6264_v22  ;;  %v5141_v22 = vld [vmem:[%s9646_s6 + $0xe0] sm:$0xf] }
  0xe4   :  { %1896 = vmatpush.bf16.msrb.mxu3 %v6248_v43  ;;  %1909 = vmatpush.bf16.msrb.mxu1 %v6256_v49  ;;  %v1385_v2 = vadd.f32 %v1384_v53, %v1372_v0  ;;  %v6273_v43 = vld [vmem:[%s9644_s4 + $0xd0] sm:$0xff] }
  0xe5   :  { %1933 = vmatpush.bf16.msrb.mxu0 %v6274_v38  ;;  %v5133_v38 = vld [vmem:[%s9646_s6 + $0xc8] sm:$0xf] }
  0xe6   :  { %v1397_v57 = vpop.f32.mrf.mxu1 }
  0xe7   :  { %v1398_v6 = vadd.f32 %v1397_v57, %v1385_v2  ;;  %1923 = vmatpush.bf16.msrb.mxu2 %v6263_v54  ;;  %v5149_v54 = vld [vmem:[%s9646_s6 + $0xe8] sm:$0xf] }
  0xe8   :  { %1897 = vmatpush.bf16.msrb.mxu3 %v6247_v47  ;;  %1910 = vmatpush.bf16.msrb.mxu1 %v6255_v52  ;;  %v6272_v47 = vld [vmem:[%s9644_s4 + $0xc8] sm:$0xff] }
  0xe9   :  { %1934 = vmatpush.bf16.msrb.mxu0 %v6273_v43  ;;  %v5109_v43 = vld [vmem:[%s9646_s6 + $0xa0] sm:$0xf] }
  0xea   :  { %v1410_v59 = vpop.f32.mrf.mxu3 }
  0xeb   :  { %1898 = vmatmul.bf16.vlgmr.msrb.gmra.mxu3 %v1626_v51  ;;  %v1386_v60 = vpop.f32.mrf.mxu0  ;;  %v1411_v10 = vadd.f32 %v1410_v59, %v1398_v6  ;;  %v6271_v51 = vld [vmem:[%s9644_s4 + $0xc0] sm:$0xff] }
  0xed   :  { %v1423_v62 = vpop.f32.mrf.mxu2  ;;  %1935 = vmatpush.bf16.msrb.mxu0 %v6272_v47  ;;  %v5117_v47 = vld [vmem:[%s9646_s6 + $0xa8] sm:$0xf] }
  0xee   :  { %v1399_v1 = vpop.f32.mrf.mxu1  ;;  %v1424_v56 = vadd.f32 %v1423_v62, %v1411_v10 }
  0xf1   :  { %1936 = vmatpush.bf16.msrb.mxu0 %v6271_v51  ;;  %v5119_v51 = vld [vmem:[%s9646_s6 + $0xb8] sm:$0xf0] }
  0xf2   :  { %v1412_v5 = vpop.f32.mrf.mxu3 }
  0xf5   :  { %v1425_v9 = vpop.f32.mrf.mxu2 }
  0xfa   :  { %v1436_v13 = vpop.f32.mrf.mxu3 }
  0xfb   :  { %v1437_v14 = vadd.f32 %v1436_v13, %v1424_v56 }
  0xfd   :  { %v1623_v15 = vmax.f32 %v1437_v14, 0.0 }
  0xff   :  { %v1627_v16 = vpack.c.bf16 %v1623_v15, %v1623_v15 }
 0x101   :  { %1911 = vmatmul.bf16.vlgmr.msrb.gmra.mxu1 %v1627_v16  ;;  %v6538_v16 = vld [vmem:[%s9645_s5] ss:$0 sm:$0xff] }
 0x102   :  { %v1438_v19 = vpop.f32.mrf.mxu3 }
 0x104   :  { %v1449_v21 = vpop.f32.mrf.mxu1 }
 0x105   :  { %v1450_v37 = vadd.f32 %v1449_v21, %v268_v63  ;;  %v5151_v63 = vld [vmem:[%s9646_s6 + $0xf8] sm:$0xf0] }
 0x107   :  { %v1475_v20 = vpop.f32.mrf.mxu0 }
 0x10c   :  { %v1451_v26 = vpop.f32.mrf.mxu1 }
 0x10d   :  { %v1488_v25 = vpop.f32.mrf.mxu2  ;;  %v5143_v26 = vld [vmem:[%s9646_s6 + $0xf0] sm:$0xf0] }
 0x10e   :  { %v1462_v23 = vpop.f32.mrf.mxu3 }
 0x10f   :  { %v1477_v24 = vpop.f32.mrf.mxu0  ;;  %v1463_v34 = vadd.f32 %v1462_v23, %v1450_v37  ;;  %v6309_v23 = vld [vmem:[%s9646_s6 + $0xec] sm:$0xf0]  ;;  %v5154_v37 = vor.u32 %v6308_v30, %v5151_v63  ;;  %v6288_v30 = vld [vmem:[%s9646_s6 + $0x4c] sm:$0xf]  ;;  %v5071_v63 = vld [vmem:[%s9646_s6 + $0x58] sm:$0xf0] }
 0x110   :  { %v6307_v24 = vld [vmem:[%s9646_s6 + $0xe4] sm:$0xf] }
 0x111   :  { %v1476_v36 = vadd.f32 %v1475_v20, %v1463_v34  ;;  %v5127_v34 = vld [vmem:[%s9646_s6 + $0xd0] sm:$0xf0]  ;;  %2193 = vmatpush.bf16.msra.mxu0 %v5154_v37  ;;  %v5074_v37 = vor.u32 %v6288_v30, %v5071_v63  ;;  %v5941_v30 = vld [vmem:[%s9648_s8 + $0x620] sm:$0xf]  ;;  %v6510_v63 = vld [vmem:[%s9648_s8 + $0x638] sm:$0xf0] }
 0x113   :  { %v1489_v40 = vadd.f32 %v1488_v25, %v1476_v36  ;;  %v5142_v25 = vor.u32 %v6309_v23, %v5141_v22  ;;  %v5130_v36 = vor.u32 %v6303_v31, %v5127_v34  ;;  %v5061_v23 = vld [vmem:[%s9646_s6 + $0x40] sm:$0xf]  ;;  %v6285_v31 = vld [vmem:[%s9646_s6 + $0x2c] sm:$0xf0]  ;;  %v6283_v34 = vld [vmem:[%s9646_s6 + $0x24] sm:$0xf] }
 0x115   :  { %v1490_v32 = vpop.f32.mrf.mxu2  ;;  %2154 = vmatpush.bf16.msra.mxu3 %v5142_v25 }
 0x116   :  { %v1464_v28 = vpop.f32.mrf.mxu3  ;;  %v5125_v32 = vld [vmem:[%s9646_s6 + $0xc0] sm:$0xf] }
 0x117   :  { %v1527_v29 = vpop.f32.mrf.mxu0  ;;  %v5146_v28 = vor.u32 %v6307_v24, %v5143_v26  ;;  %v6289_v24 = vld [vmem:[%s9646_s6 + $0x4c] sm:$0xf0]  ;;  %v6287_v26 = vld [vmem:[%s9646_s6 + $0x44] sm:$0xf] }
 0x118   :  { %v5062_v25 = vor.u32 %v6289_v24, %v5061_v23 }
 0x119   :  { %2167 = vmatpush.bf16.msra.mxu1 %v5146_v28 }
 0x11d   :  { %2168 = vmatpush.bf16.msra.mxu1 %v5130_v36  ;;  %v5053_v36 = vld [vmem:[%s9646_s6 + $0x28] sm:$0xf] }
 0x11f   :  { %v1529_v27 = vpop.f32.mrf.mxu0 }
 0x120   :  { %v6305_v27 = vld [vmem:[%s9646_s6 + $0xcc] sm:$0xf0] }
 0x124   :  { %v1501_v35 = vpop.f32.mrf.mxu1 }
 0x125   :  { %v1502_v41 = vadd.f32 %v1501_v35, %v1489_v40  ;;  %v5126_v35 = vor.u32 %v6305_v27, %v5125_v32  ;;  %v6306_v40 = vld [vmem:[%s9646_s6 + $0xd4] sm:$0xf0]  ;;  %v5045_v27 = vld [vmem:[%s9646_s6 + $0x20] sm:$0xf] }
 0x127   :  { %2155 = vmatpush.bf16.msra.mxu3 %v5126_v35  ;;  %v5047_v35 = vld [vmem:[%s9646_s6 + $0x30] sm:$0xf0] }
 0x12b   :  { %v1553_v39 = vpop.f32.mrf.mxu0 }
 0x12c   :  { %v1503_v42 = vpop.f32.mrf.mxu1 }
 0x12d   :  { %v1540_v45 = vpop.f32.mrf.mxu2  ;;  %v5135_v42 = vld [vmem:[%s9646_s6 + $0xd8] sm:$0xf0] }
 0x12e   :  { %v1514_v44 = vpop.f32.mrf.mxu3  ;;  %v1541_v57 = vadd.f32 %v1540_v45, %v269_v55  ;;  %v6299_v45 = vld [vmem:[%s9646_s6 + $0xa4] sm:$0xf]  ;;  %v5093_v55 = vld [vmem:[%s9646_s6 + $0x80] sm:$0xf] }
 0x12f   :  { %v1515_v61 = vadd.f32 %v1514_v44, %v1502_v41  ;;  %v5134_v41 = vor.u32 %v6306_v40, %v5133_v38  ;;  %v6301_v44 = vld [vmem:[%s9646_s6 + $0xac] sm:$0xf0]  ;;  %v6286_v38 = vld [vmem:[%s9646_s6 + $0x34] sm:$0xf0]  ;;  %v5050_v40 = vor.u32 %v6283_v34, %v5047_v35  ;;  %v5717_v35 = vld [vmem:[%s9648_s8 + $0x460] sm:$0xf] }
 0x130   :  { %v1554_v59 = vadd.f32 %v1553_v39, %v1541_v57  ;;  %v6304_v39 = vld [vmem:[%s9646_s6 + $0xcc] sm:$0xf]  ;;  %v6297_v57 = vld [vmem:[%s9646_s6 + $0x8c] sm:$0xf0] }
 0x131   :  { %v1528_v46 = vadd.f32 %v1527_v29, %v1515_v61  ;;  %v5150_v29 = vor.u32 %v6310_v17, %v5149_v54  ;;  %v5138_v61 = vor.u32 %v6304_v39, %v5135_v42  ;;  %v5063_v54 = vld [vmem:[%s9646_s6 + $0x50] sm:$0xf0]  ;;  %v5069_v17 = vld [vmem:[%s9646_s6 + $0x48] sm:$0xf]  ;;  %v5054_v39 = vor.u32 %v6286_v38, %v5053_v36  ;;  %v5055_v42 = vld [vmem:[%s9646_s6 + $0x38] sm:$0xf0] }
 0x132   :  { %v5066_v28 = vor.u32 %v6287_v26, %v5063_v54  ;;  %v6398_v26 = vld [vmem:[%s9648_s8 + $0x2b8] sm:$0xf0]  ;;  %v5942_v38 = vor.u32 %v6510_v63, %v5941_v30  ;;  %v6027_v30 = vld [vmem:[%s9648_s8 + $0x6e4] sm:$0xf0]  ;;  %v5157_v63 = vld [vmem:[%s9648_s8] sm:$0xf] }
 0x133   :  { %v1624_v48 = vmax.f32 %v1528_v46, 0.0  ;;  %v1555_v49 = vpop.f32.mrf.mxu0  ;;  %2180 = vmatpush.bf16.msra.mxu2 %v5150_v29  ;;  %v5111_v46 = vld [vmem:[%s9646_s6 + $0xb0] sm:$0xf0]  ;;  %2194 = vmatpush.bf16.msra.mxu0 %v5138_v61  ;;  %v6290_v29 = vld [vmem:[%s9646_s6 + $0x54] sm:$0xf0] }
 0x134   :  { %v6302_v49 = vld [vmem:[%s9646_s6 + $0xb4] sm:$0xf0]  ;;  %v5070_v32 = vor.u32 %v6290_v29, %v5069_v17  ;;  %v6281_v61 = vld [vmem:[%s9646_s6 + $0xc] sm:$0xf0]  ;;  %v6454_v36 = vld [vmem:[%s9648_s8 + $0x478] sm:$0xf0] }
 0x135   :  { %v1628_v50 = vpack.c.bf16 %v1624_v48, %v1624_v48  ;;  %v1542_v53 = vpop.f32.mrf.mxu2  ;;  %v5110_v48 = vor.u32 %v6301_v44, %v5109_v43  ;;  %v5029_v44 = vld [vmem:[%s9646_s6] sm:$0xf]  ;;  %v5297_v17 = vld [vmem:[%s9648_s8 + $0x118] sm:$0xf] }
 0x136   :  { %v1516_v52 = vpop.f32.mrf.mxu3  ;;  %v5118_v53 = vor.u32 %v6302_v49, %v5117_v47  ;;  %v5031_v47 = vld [vmem:[%s9646_s6 + $0x10] sm:$0xf0]  ;;  %v6282_v49 = vld [vmem:[%s9646_s6 + $0x14] sm:$0xf0] }
 0x137   :  { %1924 = vmatmul.bf16.vlgmr.msrb.gmra.mxu2 %v1628_v50  ;;  %v6300_v50 = vld [vmem:[%s9646_s6 + $0xac] sm:$0xf]  ;;  %v5114_v52 = vor.u32 %v6299_v45, %v5111_v46  ;;  %2156 = vmatpush.bf16.msra.mxu3 %v5110_v48  ;;  %v6279_v45 = vld [vmem:[%s9646_s6 + $0x4] sm:$0xf]  ;;  %v5030_v46 = vor.u32 %v6281_v61, %v5029_v44  ;;  %v5037_v48 = vld [vmem:[%s9646_s6 + $0x8] sm:$0xf] }
 0x138   :  { %2181 = vmatpush.bf16.msra.mxu2 %v5134_v41  ;;  %v6284_v41 = vld [vmem:[%s9646_s6 + $0x2c] sm:$0xf]  ;;  %v5745_v29 = vld [vmem:[%s9648_s8 + $0x498] sm:$0xf] }
 0x139   :  { %2169 = vmatpush.bf16.msra.mxu1 %v5114_v52  ;;  %v5058_v43 = vor.u32 %v6284_v41, %v5055_v42  ;;  %v6280_v52 = vld [vmem:[%s9646_s6 + $0xc] sm:$0xf]  ;;  %v5913_v42 = vld [vmem:[%s9648_s8 + $0x5e8] sm:$0xf] }
 0x13c   :  { %2182 = vmatpush.bf16.msra.mxu2 %v5118_v53  ;;  %v5039_v53 = vld [vmem:[%s9646_s6 + $0x18] sm:$0xf0] }
 0x144   :  { %v1566_v58 = vpop.f32.mrf.mxu1 }
 0x145   :  { %v1567_v62 = vadd.f32 %v1566_v58, %v1554_v59  ;;  %v6295_v58 = vld [vmem:[%s9646_s6 + $0x84] sm:$0xf]  ;;  %v5122_v59 = vor.u32 %v6300_v50, %v5119_v51  ;;  %v5034_v50 = vor.u32 %v6279_v45, %v5031_v47  ;;  %v5038_v51 = vor.u32 %v6282_v49, %v5037_v48  ;;  %v5689_v49 = vld [vmem:[%s9648_s8 + $0x428] sm:$0xf] }
 0x146   :  { %v5718_v45 = vor.u32 %v6454_v36, %v5717_v35  ;;  %v6335_v48 = vld [vmem:[%s9648_s8 + $0xc0] sm:$0xf0]  ;;  %v5355_v35 = vld [vmem:[%s9648_s8 + $0x1a4] sm:$0xf0]  ;;  %v6472_v36 = vld [vmem:[%s9648_s8 + $0x50c] sm:$0xf] }
 0x147   :  { %2195 = vmatpush.bf16.msra.mxu0 %v5122_v59  ;;  %v6025_v59 = vld [vmem:[%s9648_s8 + $0x6c8] sm:$0xf] }
 0x14a   :  { %v1605_v60 = vpop.f32.mrf.mxu0 }
 0x14c   :  { %v1568_v0 = vpop.f32.mrf.mxu1 }
 0x14d   :  { %v1592_v3 = vpop.f32.mrf.mxu2  ;;  %v6298_v0 = vld [vmem:[%s9646_s6 + $0x94] sm:$0xf0] }
 0x14e   :  { %v1579_v1 = vpop.f32.mrf.mxu3 }
 0x14f   :  { %v1580_v2 = vadd.f32 %v1579_v1, %v1567_v62  ;;  %v5101_v62 = vld [vmem:[%s9646_s6 + $0x88] sm:$0xf]  ;;  %v6296_v1 = vld [vmem:[%s9646_s6 + $0x8c] sm:$0xf] }
 0x151   :  { %v1593_v4 = vadd.f32 %v1592_v3, %v1580_v2  ;;  %v5103_v2 = vld [vmem:[%s9646_s6 + $0x98] sm:$0xf0]  ;;  %v5094_v3 = vor.u32 %v6297_v57, %v5093_v55  ;;  %v5042_v55 = vor.u32 %v6280_v52, %v5039_v53  ;;  %v5577_v57 = vld [vmem:[%s9648_s8 + $0x348] sm:$0xf]  ;;  %v5437_v53 = vld [vmem:[%s9648_s8 + $0x230] sm:$0xf] }
 0x152   :  { %v1607_v5 = vpop.f32.mrf.mxu0 }
 0x153   :  { %v1606_v6 = vadd.f32 %v1605_v60, %v1593_v4  ;;  %v5095_v60 = vld [vmem:[%s9646_s6 + $0x90] sm:$0xf0]  ;;  %v5102_v5 = vor.u32 %v6298_v0, %v5101_v62  ;;  %2157 = vmatpush.bf16.msra.mxu3 %v5094_v3  ;;  %v6531_v62 = vld [vmem:[%s9648_s8 + $0x6e0] sm:$0xf0]  ;;  %v5549_v0 = vld [vmem:[%s9648_s8 + $0x310] sm:$0xf] }
 0x154   :  { %v1618_v9 = vpop.f32.mrf.mxu1  ;;  %v5098_v4 = vor.u32 %v6295_v58, %v5095_v60  ;;  %v6419_v58 = vld [vmem:[%s9648_s8 + $0x360] sm:$0xf0]  ;;  %v5997_v3 = vld [vmem:[%s9648_s8 + $0x690] sm:$0xf] }
 0x155   :  { %v1619_v10 = vadd.f32 %v1618_v9, %v1606_v6  ;;  %v1594_v56 = vpop.f32.mrf.mxu2  ;;  %v5106_v6 = vor.u32 %v6296_v1, %v5103_v2  ;;  %2183 = vmatpush.bf16.msra.mxu2 %v5102_v5  ;;  %v5578_v60 = vor.u32 %v6419_v58, %v5577_v57  ;;  %v6412_v1 = vld [vmem:[%s9648_s8 + $0x328] sm:$0xf0]  ;;  %v6026_v2 = vor.u32 %v6531_v62, %v6025_v59  ;;  %v5353_v5 = vld [vmem:[%s9648_s8 + $0x188] sm:$0xf]  ;;  %v5885_v57 = vld [vmem:[%s9648_s8 + $0x5b0] sm:$0xf] }
 0x156   :  { %v1581_v11 = vpop.f32.mrf.mxu3  ;;  %2170 = vmatpush.bf16.msra.mxu1 %v5098_v4  ;;  %v6524_v4 = vld [vmem:[%s9648_s8 + $0x6a8] sm:$0xf0]  ;;  %v5213_v62 = vld [vmem:[%s9648_s8 + $0x70] sm:$0xf] }
 0x157   :  { %v1625_v12 = vmax.f32 %v1619_v10, 0.0  ;;  %2196 = vmatpush.bf16.msra.mxu0 %v5106_v6  ;;  %v5550_v6 = vor.u32 %v6412_v1, %v5549_v0  ;;  %v6496_v58 = vld [vmem:[%s9648_s8 + $0x5c8] sm:$0xf0] }
 0x158   :  { %v6328_v1 = vld [vmem:[%s9648_s8 + $0x88] sm:$0xf0] }
 0x159   :  { %v1629_v13 = vpack.c.bf16 %v1625_v12, %v1625_v12  ;;  %v5077_v12 = vld [vmem:[%s9646_s6 + $0x60] sm:$0xf] }
 0x15b   :  { %1937 = vmatmul.bf16.vlgmr.msrb.gmra.mxu0 %v1629_v13  ;;  %v6293_v13 = vld [vmem:[%s9646_s6 + $0x6c] sm:$0xf0] }
 0x15c   :  { %v1620_v7 = vpop.f32.mrf.mxu1 }
 0x15d   :  { %v6291_v7 = vld [vmem:[%s9646_s6 + $0x64] sm:$0xf] }
 0x16e   :  { %v1899_v14 = vpop.f32.mrf.mxu3 }
 0x16f   :  { %v1900_v18 = vadd.f32 %v6538_v16, %v1899_v14  ;;  %v5078_v14 = vor.u32 %v6293_v13, %v5077_v12  ;;  %v5085_v16 = vld [vmem:[%s9646_s6 + $0x68] sm:$0xf]  ;;  %v5998_v12 = vor.u32 %v6524_v4, %v5997_v3  ;;  %v6440_v3 = vld [vmem:[%s9648_s8 + $0x408] sm:$0xf0]  ;;  %v5886_v4 = vor.u32 %v6496_v58, %v5885_v57  ;;  %v5523_v57 = vld [vmem:[%s9648_s8 + $0x2f4] sm:$0xf0] }
 0x170   :  { %v6514_v58 = vld [vmem:[%s9648_s8 + $0x65c] sm:$0xf] }
 0x171   :  { %2158 = vmatpush.bf16.msra.mxu3 %v5078_v14  ;;  %v5521_v14 = vld [vmem:[%s9648_s8 + $0x2d8] sm:$0xf] }
 0x175   :  { %2159 = vmatpush.bf16.msra.mxu3 %v5062_v25  ;;  %v5493_v25 = vld [vmem:[%s9648_s8 + $0x2a0] sm:$0xf] }
 0x176   :  { %v1901_v15 = vpop.f32.mrf.mxu3  ;;  %v5494_v34 = vor.u32 %v6398_v26, %v5493_v25  ;;  %v6416_v25 = vld [vmem:[%s9648_s8 + $0x34c] sm:$0xf]  ;;  %v5579_v26 = vld [vmem:[%s9648_s8 + $0x364] sm:$0xf0] }
 0x177   :  { %v5079_v15 = vld [vmem:[%s9646_s6 + $0x70] sm:$0xf0] }
 0x17e   :  { %v1912_v8 = vpop.f32.mrf.mxu1 }
 0x17f   :  { %v8018_v19 = vadd.f32 %v1912_v8, %v1900_v18  ;;  %v6294_v18 = vld [vmem:[%s9646_s6 + $0x74] sm:$0xf0]  ;;  %v5082_v8 = vor.u32 %v6291_v7, %v5079_v15  ;;  %v6405_v15 = vld [vmem:[%s9648_s8 + $0x2f0] sm:$0xf0] }
 0x180   :  { %v5522_v23 = vor.u32 %v6405_v15, %v5521_v14  ;;  %v6321_v15 = vld [vmem:[%s9648_s8 + $0x50] sm:$0xf0] }
 0x181   :  { %2171 = vmatpush.bf16.msra.mxu1 %v5082_v8  ;;  %v5325_v8 = vld [vmem:[%s9648_s8 + $0x150] sm:$0xf] }
 0x185   :  { %2172 = vmatpush.bf16.msra.mxu1 %v5066_v28  ;;  %v6349_v28 = vld [vmem:[%s9648_s8 + $0x130] sm:$0xf0] }
 0x186   :  { %v1914_v20 = vpop.f32.mrf.mxu1 }
 0x187   :  { %v6292_v20 = vld [vmem:[%s9646_s6 + $0x6c] sm:$0xf] }
 0x189   :  { %2173 = vmatpush.bf16.msra.mxu1 %v5050_v40  ;;  %v5465_v40 = vld [vmem:[%s9648_s8 + $0x268] sm:$0xf] }
 0x18d   :  { %2174 = vmatpush.bf16.msra.mxu1 %v5034_v50  ;;  %v6447_v50 = vld [vmem:[%s9648_s8 + $0x440] sm:$0xf0] }
 0x191   :  { %3651 = vmatpush.bf16.msrb.mxu1 %v5578_v60  ;;  %v5690_v60 = vor.u32 %v6447_v50, %v5689_v49  ;;  %v5327_v49 = vld [vmem:[%s9648_s8 + $0x16c] sm:$0xf0]  ;;  %v6465_v50 = vld [vmem:[%s9648_s8 + $0x4d4] sm:$0xf] }
 0x195   :  { %3652 = vmatpush.bf16.msrb.mxu1 %v5550_v6  ;;  %v6377_v6 = vld [vmem:[%s9648_s8 + $0x210] sm:$0xf0] }
 0x199   :  { %3653 = vmatpush.bf16.msrb.mxu1 %v5522_v23  ;;  %v5829_v23 = vld [vmem:[%s9648_s8 + $0x540] sm:$0xf] }
 0x19d   :  { %3654 = vmatpush.bf16.msrb.mxu1 %v5494_v34 }
 0x1ba   :  { %v8020_v21 = vpop.f32.mrf.mxu2 }
 0x1bb   :  { %v1926_v9 = vadd.f32 %v8020_v21, %v8018_v19  ;;  %v5086_v19 = vor.u32 %v6294_v18, %v5085_v16  ;;  %v5087_v21 = vld [vmem:[%s9646_s6 + $0x78] sm:$0xf0]  ;;  %v5969_v16 = vld [vmem:[%s9648_s8 + $0x658] sm:$0xf]  ;;  %v6517_v18 = vld [vmem:[%s9648_s8 + $0x670] sm:$0xf0] }
 0x1bc   :  { %v5090_v22 = vor.u32 %v6292_v20, %v5087_v21  ;;  %v5773_v21 = vld [vmem:[%s9648_s8 + $0x4d0] sm:$0xf]  ;;  %v5970_v54 = vor.u32 %v6517_v18, %v5969_v16  ;;  %v5633_v16 = vld [vmem:[%s9648_s8 + $0x3b8] sm:$0xf]  ;;  %v6433_v18 = vld [vmem:[%s9648_s8 + $0x3d0] sm:$0xf0] }
 0x1bd   :  { %2184 = vmatpush.bf16.msra.mxu2 %v5086_v19  ;;  %v6356_v19 = vld [vmem:[%s9648_s8 + $0x168] sm:$0xf0] }
 0x1be   :  { %2197 = vmatpush.bf16.msra.mxu0 %v5090_v22  ;;  %v5326_v20 = vor.u32 %v6356_v19, %v5325_v8  ;;  %v6468_v22 = vld [vmem:[%s9648_s8 + $0x4e8] sm:$0xf0] }
 0x1bf   :  { %v5774_v24 = vor.u32 %v6468_v22, %v5773_v21  ;;  %v6370_v22 = vld [vmem:[%s9648_s8 + $0x1d8] sm:$0xf0] }
 0x1c1   :  { %2185 = vmatpush.bf16.msra.mxu2 %v5070_v32  ;;  %v6461_v32 = vld [vmem:[%s9648_s8 + $0x4b0] sm:$0xf0] }
 0x1c2   :  { %v1927_v33 = vpop.f32.mrf.mxu2  ;;  %2198 = vmatpush.bf16.msra.mxu0 %v5074_v37  ;;  %v5298_v37 = vor.u32 %v6349_v28, %v5297_v17  ;;  %v5634_v28 = vor.u32 %v6433_v18, %v5633_v16  ;;  %v5719_v16 = vld [vmem:[%s9648_s8 + $0x47c] sm:$0xf0] }
 0x1c3   :  { %v5046_v33 = vor.u32 %v6285_v31, %v5045_v27  ;;  %v5746_v27 = vor.u32 %v6461_v32, %v5745_v29  ;;  %v5269_v31 = vld [vmem:[%s9648_s8 + $0xe0] sm:$0xf]  ;;  %v6314_v32 = vld [vmem:[%s9648_s8 + $0x18] sm:$0xf0] }
 0x1c5   :  { %2160 = vmatpush.bf16.msra.mxu3 %v5046_v33  ;;  %2186 = vmatpush.bf16.msra.mxu2 %v5054_v39  ;;  %v6342_v33 = vld [vmem:[%s9648_s8 + $0xf8] sm:$0xf0]  ;;  %v6391_v39 = vld [vmem:[%s9648_s8 + $0x280] sm:$0xf0] }
 0x1c6   :  { %2199 = vmatpush.bf16.msra.mxu0 %v5058_v43  ;;  %v6503_v43 = vld [vmem:[%s9648_s8 + $0x600] sm:$0xf0]  ;;  %v5270_v61 = vor.u32 %v6342_v33, %v5269_v31  ;;  %v5466_v47 = vor.u32 %v6391_v39, %v5465_v40  ;;  %v5582_v40 = vor.u32 %v6416_v25, %v5579_v26 }
 0x1c7   :  { %v5914_v52 = vor.u32 %v6503_v43, %v5913_v42  ;;  %v5551_v42 = vld [vmem:[%s9648_s8 + $0x32c] sm:$0xf0]  ;;  %v6521_v43 = vld [vmem:[%s9648_s8 + $0x694] sm:$0xf] }
 0x1c8   :  { %3655 = vmatpush.bf16.msrb.mxu1 %v5466_v47 }
 0x1c9   :  { %2161 = vmatpush.bf16.msra.mxu3 %v5030_v46  ;;  %2187 = vmatpush.bf16.msra.mxu2 %v5038_v51  ;;  %v5241_v46 = vld [vmem:[%s9648_s8 + $0xa8] sm:$0xf] }
 0x1ca   :  { %2200 = vmatpush.bf16.msra.mxu0 %v5042_v55  ;;  %v6384_v55 = vld [vmem:[%s9648_s8 + $0x248] sm:$0xf0]  ;;  %v5242_v59 = vor.u32 %v6335_v48, %v5241_v46  ;;  %v6353_v48 = vld [vmem:[%s9648_s8 + $0x154] sm:$0xf] }
 0x1cb   :  { %v5438_v0 = vor.u32 %v6384_v55, %v5437_v53  ;;  %v6402_v55 = vld [vmem:[%s9648_s8 + $0x2dc] sm:$0xf] }
 0x1cd   :  { %3656 = vmatpush.bf16.msrb.mxu1 %v5438_v0  ;;  %v6346_v0 = vld [vmem:[%s9648_s8 + $0x11c] sm:$0xf] }
 0x1ce   :  { %3677 = vmatpush.bf16.msrb.mxu0 %v6026_v2  ;;  %v5661_v2 = vld [vmem:[%s9648_s8 + $0x3f0] sm:$0xf] }
 0x1d2   :  { %3678 = vmatpush.bf16.msrb.mxu0 %v5998_v12  ;;  %v5214_v12 = vor.u32 %v6328_v1, %v5213_v62  ;;  %v5299_v1 = vld [vmem:[%s9648_s8 + $0x134] sm:$0xf0] }
 0x1d6   :  { %3679 = vmatpush.bf16.msrb.mxu0 %v5970_v54  ;;  %v6528_v54 = vld [vmem:[%s9648_s8 + $0x6cc] sm:$0xf] }
 0x1d7   :  { %v6030_v39 = vor.u32 %v6528_v54, %v6027_v30  ;;  %v6381_v54 = vld [vmem:[%s9648_s8 + $0x234] sm:$0xf] }
 0x1d8   :  { %v1938_v10 = vpop.f32.mrf.mxu0 }
 0x1d9   :  { %v8120_v11 = vadd.f32 %v1938_v10, %v1926_v9  ;;  %v6363_v9 = vld [vmem:[%s9648_s8 + $0x1a0] sm:$0xf0]  ;;  %v5801_v10 = vld [vmem:[%s9648_s8 + $0x508] sm:$0xf] }
 0x1da   :  { %v5354_v13 = vor.u32 %v6363_v9, %v5353_v5  ;;  %3680 = vmatpush.bf16.msrb.mxu0 %v5942_v38  ;;  %v5409_v5 = vld [vmem:[%s9648_s8 + $0x1f8] sm:$0xf]  ;;  %v5803_v38 = vld [vmem:[%s9648_s8 + $0x524] sm:$0xf0] }
 0x1db   :  { %1942 = vst [vmem:[#allocation4] sm:$0x3] %v8120_v11  ;;  %1943 = vrot.lane.b32.xlu0 %v8120_v11, %s6607_s29  ;;  %v5857_v9 = vld [vmem:[%s9648_s8 + $0x578] sm:$0xf]  ;;  %v5410_v14 = vor.u32 %v6377_v6, %v5409_v5  ;;  %v5806_v47 = vor.u32 %v6472_v36, %v5803_v38  ;;  %v6395_v6 = vld [vmem:[%s9648_s8 + $0x2a4] sm:$0xf] }
 0x1dc   :  { %3638 = vmatpush.bf16.msrb.mxu3 %v5354_v13  ;;  %v5662_v13 = vor.u32 %v6440_v3, %v5661_v2  ;;  %v6458_v2 = vld [vmem:[%s9648_s8 + $0x49c] sm:$0xf]  ;;  %v5747_v3 = vld [vmem:[%s9648_s8 + $0x4b4] sm:$0xf0] }
 0x1dd   :  { %3657 = vmatpush.bf16.msrb.mxu1 %v5410_v14  ;;  %v5271_v14 = vld [vmem:[%s9648_s8 + $0xfc] sm:$0xf0]  ;;  %v6486_v38 = vld [vmem:[%s9648_s8 + $0x57c] sm:$0xf] }
 0x1de   :  { %3681 = vmatpush.bf16.msrb.mxu0 %v5914_v52 }
 0x1e0   :  { %v1940_v56 = vpop.f32.mrf.mxu0  ;;  %3639 = vmatpush.bf16.msrb.mxu3 %v5326_v20  ;;  %v5381_v20 = vld [vmem:[%s9648_s8 + $0x1c0] sm:$0xf] }
 0x1e1   :  { %v6475_v56 = vld [vmem:[%s9648_s8 + $0x520] sm:$0xf0]  ;;  %v5382_v34 = vor.u32 %v6370_v22, %v5381_v20  ;;  %v5467_v20 = vld [vmem:[%s9648_s8 + $0x284] sm:$0xf0] }
 0x1e2   :  { %v5802_v7 = vor.u32 %v6475_v56, %v5801_v10  ;;  %v6489_v10 = vld [vmem:[%s9648_s8 + $0x590] sm:$0xf0]  ;;  %v1948_v56 = vld [vmem:[%s9641_s1] sm:$0x3]  ;;  %3682 = vmatpush.bf16.msrb.mxu0 %v5886_v4  ;;  %v5526_v4 = vor.u32 %v6402_v55, %v5523_v57  ;;  %v5915_v22 = vld [vmem:[%s9648_s8 + $0x604] sm:$0xf0] }
 0x1e3   :  { %v5858_v19 = vor.u32 %v6489_v10, %v5857_v9  ;;  %3658 = vmatpush.bf16.msrb.mxu1 %v5382_v34  ;;  %v5495_v9 = vld [vmem:[%s9648_s8 + $0x2bc] sm:$0xf0]  ;;  %v6507_v10 = vld [vmem:[%s9648_s8 + $0x624] sm:$0xf]  ;;  %v6430_v55 = vld [vmem:[%s9648_s8 + $0x3bc] sm:$0xf] }
 0x1e4   :  { %3664 = vmatpush.bf16.msrb.mxu2 %v5802_v7  ;;  %3640 = vmatpush.bf16.msrb.mxu3 %v5298_v37  ;;  %v5185_v7 = vld [vmem:[%s9648_s8 + $0x38] sm:$0xf]  ;;  %v5605_v37 = vld [vmem:[%s9648_s8 + $0x380] sm:$0xf]  ;;  %v5498_v18 = vor.u32 %v6395_v6, %v5495_v9 }
 0x1e5   :  { %v5186_v17 = vor.u32 %v6321_v15, %v5185_v7  ;;  %v6339_v7 = vld [vmem:[%s9648_s8 + $0xe4] sm:$0xf] }
 0x1e6   :  { %3683 = vmatpush.bf16.msrb.mxu0 %v5858_v19  ;;  %v6451_v15 = vld [vmem:[%s9648_s8 + $0x464] sm:$0xf]  ;;  %v6388_v19 = vld [vmem:[%s9648_s8 + $0x26c] sm:$0xf] }
 0x1e7   :  { %v5470_v25 = vor.u32 %v6388_v19, %v5467_v20 }
 0x1e8   :  { %3665 = vmatpush.bf16.msrb.mxu2 %v5774_v24  ;;  %3641 = vmatpush.bf16.msrb.mxu3 %v5270_v61  ;;  %v6482_v24 = vld [vmem:[%s9648_s8 + $0x558] sm:$0xf0]  ;;  %v5158_v61 = vor.u32 %v6314_v32, %v5157_v63  ;;  %v6332_v32 = vld [vmem:[%s9648_s8 + $0xac] sm:$0xf] }
 0x1e9   :  { %v5830_v33 = vor.u32 %v6482_v24, %v5829_v23  ;;  %v5274_v23 = vor.u32 %v6339_v7, %v5271_v14  ;;  %v5722_v24 = vor.u32 %v6451_v15, %v5719_v16  ;;  %v6033_v14 = vld [vmem:[%s9648_s8 + $0x6d0] sm:$0xf]  ;;  %v6532_v15 = vld [vmem:[%s9648_s8 + $0x6e8] sm:$0xf0] }
 0x1eb   :  { %3684 = vmatpush.bf16.msrb.mxu0 %v5830_v33  ;;  %v6374_v33 = vld [vmem:[%s9648_s8 + $0x1fc] sm:$0xf] }
 0x1ec   :  { %3666 = vmatpush.bf16.msrb.mxu2 %v5746_v27  ;;  %3642 = vmatpush.bf16.msrb.mxu3 %v5242_v59  ;;  %v6360_v27 = vld [vmem:[%s9648_s8 + $0x18c] sm:$0xf]  ;;  %v5971_v59 = vld [vmem:[%s9648_s8 + $0x674] sm:$0xf0] }
 0x1ed   :  { %v5358_v46 = vor.u32 %v6360_v27, %v5355_v35  ;;  %v5974_v5 = vor.u32 %v6514_v58, %v5971_v59  ;;  %v5411_v35 = vld [vmem:[%s9648_s8 + $0x214] sm:$0xf0] }
 0x1ee   :  { %v5414_v36 = vor.u32 %v6374_v33, %v5411_v35  ;;  %v5635_v58 = vld [vmem:[%s9648_s8 + $0x3d4] sm:$0xf0] }
 0x1ef   :  { %v5638_v59 = vor.u32 %v6430_v55, %v5635_v58  ;;  %v6511_v58 = vld [vmem:[%s9648_s8 + $0x640] sm:$0xf0] }
 0x1f0   :  { %3667 = vmatpush.bf16.msrb.mxu2 %v5718_v45  ;;  %3643 = vmatpush.bf16.msrb.mxu3 %v5214_v12  ;;  %v5302_v12 = vor.u32 %v6346_v0, %v5299_v1  ;;  %v6423_v1 = vld [vmem:[%s9648_s8 + $0x384] sm:$0xf] }
 0x1f4   :  { %3668 = vmatpush.bf16.msrb.mxu2 %v5690_v60  ;;  %3644 = vmatpush.bf16.msrb.mxu3 %v5186_v17  ;;  %v5330_v60 = vor.u32 %v6353_v48, %v5327_v49  ;;  %v5439_v17 = vld [vmem:[%s9648_s8 + $0x24c] sm:$0xf0]  ;;  %v6479_v48 = vld [vmem:[%s9648_s8 + $0x544] sm:$0xf] }
 0x1f5   :  { %v5442_v30 = vor.u32 %v6381_v54, %v5439_v17  ;;  %v6005_v54 = vld [vmem:[%s9648_s8 + $0x698] sm:$0xf]  ;;  %v6525_v17 = vld [vmem:[%s9648_s8 + $0x6b0] sm:$0xf0] }
 0x1f6   :  { %v6006_v35 = vor.u32 %v6525_v17, %v6005_v54  ;;  %v6336_v54 = vld [vmem:[%s9648_s8 + $0xc8] sm:$0xf0] }
 0x1f8   :  { %3669 = vmatpush.bf16.msrb.mxu2 %v5662_v13  ;;  %3645 = vmatpush.bf16.msrb.mxu3 %v5158_v61  ;;  %v5750_v13 = vor.u32 %v6458_v2, %v5747_v3  ;;  %v5663_v61 = vld [vmem:[%s9648_s8 + $0x40c] sm:$0xf0]  ;;  %v5607_v2 = vld [vmem:[%s9648_s8 + $0x39c] sm:$0xf0] }
 0x1f9   :  { %v5610_v3 = vor.u32 %v6423_v1, %v5607_v2  ;;  %v5753_v2 = vld [vmem:[%s9648_s8 + $0x4a0] sm:$0xf] }
 0x1fc   :  { %3670 = vmatpush.bf16.msrb.mxu2 %v5634_v28  ;;  %v6493_v28 = vld [vmem:[%s9648_s8 + $0x5b4] sm:$0xf] }
 0x24d   :  { %v1944_v41 = vpop.permute.xlu0 %1943 }
 0x24e   :  { %v1945_v44 = vmul.f32 0.5, %v1944_v41  ;;  %v6409_v41 = vld [vmem:[%s9648_s8 + $0x314] sm:$0xf] }
 0x24f   :  { %v5554_v52 = vor.u32 %v6409_v41, %v5551_v42  ;;  %v6325_v41 = vld [vmem:[%s9648_s8 + $0x74] sm:$0xf]  ;;  %v5215_v42 = vld [vmem:[%s9648_s8 + $0x8c] sm:$0xf0] }
 0x250   :  { %v1946_v51 = vmul.f32 1.442695, %v1945_v44  ;;  %v5999_v44 = vld [vmem:[%s9648_s8 + $0x6ac] sm:$0xf0] }
 0x251   :  { %v6002_v53 = vor.u32 %v6521_v43, %v5999_v44  ;;  %v6437_v43 = vld [vmem:[%s9648_s8 + $0x3f4] sm:$0xf]  ;;  %v5218_v44 = vor.u32 %v6325_v41, %v5215_v42  ;;  %v5977_v41 = vld [vmem:[%s9648_s8 + $0x660] sm:$0xf]  ;;  %v6518_v42 = vld [vmem:[%s9648_s8 + $0x678] sm:$0xf0] }
 0x252   :  { %6539 = vpow2.f32 %v1946_v51  ;;  %v5775_v51 = vld [vmem:[%s9648_s8 + $0x4ec] sm:$0xf0] }
 0x253   :  { %v5778_v62 = vor.u32 %v6465_v50, %v5775_v51  ;;  %v5831_v50 = vld [vmem:[%s9648_s8 + $0x55c] sm:$0xf0] }
 0x254   :  { %v5834_v51 = vor.u32 %v6479_v48, %v5831_v50  ;;  %v5781_v48 = vld [vmem:[%s9648_s8 + $0x4d8] sm:$0xf]  ;;  %v5978_v50 = vor.u32 %v6518_v42, %v5977_v41  ;;  %v6371_v41 = vld [vmem:[%s9648_s8 + $0x1e0] sm:$0xf0]  ;;  %v5837_v42 = vld [vmem:[%s9648_s8 + $0x548] sm:$0xf] }
 0x258   :  { %v6540_v8 = vpop.eup %6539 }
 0x259   :  { %v1949_v21 = vmul.f32 %v6540_v8, %v1948_v56  ;;  %v5943_v56 = vld [vmem:[%s9648_s8 + $0x63c] sm:$0xf0] }
 0x25a   :  { %v5946_v8 = vor.u32 %v6507_v10, %v5943_v56 }
 0x25b   :  { %v1950_v29 = vadd.f32 %v1949_v21, %v8120_v11  ;;  %v6426_v11 = vld [vmem:[%s9648_s8 + $0x398] sm:$0xf0]  ;;  %v6500_v21 = vld [vmem:[%s9648_s8 + $0x5ec] sm:$0xf] }
 0x25c   :  { %v5606_v45 = vor.u32 %v6426_v11, %v5605_v37  ;;  %v5918_v26 = vor.u32 %v6500_v21, %v5915_v22  ;;  %v5243_v37 = vld [vmem:[%s9648_s8 + $0xc4] sm:$0xf0]  ;;  %v6444_v11 = vld [vmem:[%s9648_s8 + $0x42c] sm:$0xf]  ;;  %v6034_v22 = vor.u32 %v6532_v15, %v6033_v14 }
 0x25d   :  { %v1951_v31 = vpack.c.bf16 %v1950_v29, %v1950_v29  ;;  %v5887_v29 = vld [vmem:[%s9648_s8 + $0x5cc] sm:$0xf0]  ;;  %v5246_v27 = vor.u32 %v6332_v32, %v5243_v37  ;;  %v5725_v15 = vld [vmem:[%s9648_s8 + $0x468] sm:$0xf] }
 0x25e   :  { %3671 = vmatpush.bf16.msrb.mxu2 %v5606_v45  ;;  %v5890_v63 = vor.u32 %v6493_v28, %v5887_v29  ;;  %v5666_v45 = vor.u32 %v6437_v43, %v5663_v61  ;;  %v5333_v61 = vld [vmem:[%s9648_s8 + $0x158] sm:$0xf] }
 0x25f   :  { %2162 = vmatmul.bf16.vlgmr.msra.gmra.mxu3 %v1951_v31  ;;  %2175 = vmatmul.bf16.vlgmr.msra.gmra.mxu1 %v1951_v31 }
 0x260   :  { %2188 = vmatmul.bf16.vlgmr.msra.gmra.mxu2 %v1951_v31  ;;  %2201 = vmatmul.bf16.vlgmr.msra.gmra.mxu0 %v1951_v31  ;;  %v5691_v31 = vld [vmem:[%s9648_s8 + $0x444] sm:$0xf0] }
 0x261   :  { %3703 = vmatpush.bf16.msra.mxu1 %v5582_v40  ;;  %3729 = vmatpush.bf16.msra.mxu0 %v6030_v39  ;;  %v5694_v34 = vor.u32 %v6444_v11, %v5691_v31  ;;  %v5859_v40 = vld [vmem:[%s9648_s8 + $0x594] sm:$0xf0]  ;;  %v6476_v31 = vld [vmem:[%s9648_s8 + $0x528] sm:$0xf0] }
 0x262   :  { %3690 = vmatpush.bf16.msra.mxu3 %v5358_v46  ;;  %3716 = vmatpush.bf16.msra.mxu2 %v5806_v47  ;;  %v5862_v39 = vor.u32 %v6486_v38, %v5859_v40  ;;  %v6367_v46 = vld [vmem:[%s9648_s8 + $0x1c4] sm:$0xf]  ;;  %v5383_v47 = vld [vmem:[%s9648_s8 + $0x1dc] sm:$0xf0]  ;;  %v6406_v38 = vld [vmem:[%s9648_s8 + $0x2f8] sm:$0xf0] }
 0x263   :  { %v5386_v49 = vor.u32 %v6367_v46, %v5383_v47 }
 0x265   :  { %3704 = vmatpush.bf16.msra.mxu1 %v5554_v52  ;;  %3730 = vmatpush.bf16.msra.mxu0 %v6002_v53  ;;  %v6318_v52 = vld [vmem:[%s9648_s8 + $0x3c] sm:$0xf]  ;;  %v5187_v53 = vld [vmem:[%s9648_s8 + $0x54] sm:$0xf0] }
 0x266   :  { %3691 = vmatpush.bf16.msra.mxu3 %v5330_v60  ;;  %3717 = vmatpush.bf16.msra.mxu2 %v5778_v62  ;;  %v5190_v57 = vor.u32 %v6318_v52, %v5187_v53  ;;  %v6311_v60 = vld [vmem:[%s9648_s8 + $0x4] sm:$0xf]  ;;  %v5159_v62 = vld [vmem:[%s9648_s8 + $0x1c] sm:$0xf0] }
 0x267   :  { %v5162_v0 = vor.u32 %v6311_v60, %v5159_v62  ;;  %v6399_v52 = vld [vmem:[%s9648_s8 + $0x2c0] sm:$0xf0]  ;;  %v5305_v62 = vld [vmem:[%s9648_s8 + $0x120] sm:$0xf] }
 0x269   :  { %3705 = vmatpush.bf16.msra.mxu1 %v5526_v4  ;;  %3731 = vmatpush.bf16.msra.mxu0 %v5974_v5  ;;  %v1984_v4 = vld [vmem:[%s9647_s7] sm:$0xf] }
 0x26a   :  { %3692 = vmatpush.bf16.msra.mxu3 %v5302_v12  ;;  %3718 = vmatpush.bf16.msra.mxu2 %v5750_v13  ;;  %v1987_v5 = vperm.slane %v1984_v4, 1  ;;  %v1989_v6 = vperm.slane %v1984_v4, 3  ;;  %v5585_v12 = vld [vmem:[%s9648_s8 + $0x350] sm:$0xf]  ;;  %v6420_v13 = vld [vmem:[%s9648_s8 + $0x368] sm:$0xf0] }
 0x26b   :  { %v1988_v19 = vperm.slane %v1984_v4, 2  ;;  %v5586_v20 = vor.u32 %v6420_v13, %v5585_v12  ;;  %v5277_v13 = vld [vmem:[%s9648_s8 + $0xe8] sm:$0xf] }
 0x26d   :  { %3706 = vmatpush.bf16.msra.mxu1 %v5498_v18  ;;  %3732 = vmatpush.bf16.msra.mxu0 %v5946_v8  ;;  %v1986_v18 = vperm.slane %v1984_v4, 0 }
 0x26e   :  { %3693 = vmatpush.bf16.msra.mxu3 %v5274_v23  ;;  %3719 = vmatpush.bf16.msra.mxu2 %v5722_v24  ;;  %v5557_v23 = vld [vmem:[%s9648_s8 + $0x318] sm:$0xf]  ;;  %v6413_v24 = vld [vmem:[%s9648_s8 + $0x330] sm:$0xf0] }
 0x26f   :  { %v5558_v11 = vor.u32 %v6413_v24, %v5557_v23  ;;  %v6497_v23 = vld [vmem:[%s9648_s8 + $0x5d0] sm:$0xf0] }
 0x271   :  { %3707 = vmatpush.bf16.msra.mxu1 %v5470_v25  ;;  %3733 = vmatpush.bf16.msra.mxu0 %v5918_v26 }
 0x272   :  { %3694 = vmatpush.bf16.msra.mxu3 %v5246_v27  ;;  %3720 = vmatpush.bf16.msra.mxu2 %v5694_v34  ;;  %v5809_v27 = vld [vmem:[%s9648_s8 + $0x510] sm:$0xf] }
 0x275   :  { %3708 = vmatpush.bf16.msra.mxu1 %v5442_v30  ;;  %3734 = vmatpush.bf16.msra.mxu0 %v5890_v63  ;;  %v5361_v30 = vld [vmem:[%s9648_s8 + $0x190] sm:$0xf]  ;;  %v6364_v63 = vld [vmem:[%s9648_s8 + $0x1a8] sm:$0xf0] }
 0x276   :  { %3695 = vmatpush.bf16.msra.mxu3 %v5218_v44  ;;  %3721 = vmatpush.bf16.msra.mxu2 %v5666_v45  ;;  %v5810_v44 = vor.u32 %v6476_v31, %v5809_v27  ;;  %v6357_v45 = vld [vmem:[%s9648_s8 + $0x170] sm:$0xf0]  ;;  %v6490_v27 = vld [vmem:[%s9648_s8 + $0x598] sm:$0xf0] }
 0x277   :  { %v5334_v55 = vor.u32 %v6357_v45, %v5333_v61  ;;  %v6417_v45 = vld [vmem:[%s9648_s8 + $0x354] sm:$0xf] }
 0x279   :  { %3709 = vmatpush.bf16.msra.mxu1 %v5414_v36  ;;  %3735 = vmatpush.bf16.msra.mxu0 %v5862_v39  ;;  %v5529_v36 = vld [vmem:[%s9648_s8 + $0x2e0] sm:$0xf]  ;;  %v5362_v39 = vor.u32 %v6364_v63, %v5361_v30 }
 0x27a   :  { %3696 = vmatpush.bf16.msra.mxu3 %v5190_v57  ;;  %3722 = vmatpush.bf16.msra.mxu2 %v5638_v59  ;;  %v5530_v47 = vor.u32 %v6406_v38, %v5529_v36  ;;  %v5949_v57 = vld [vmem:[%s9648_s8 + $0x628] sm:$0xf]  ;;  %v5417_v63 = vld [vmem:[%s9648_s8 + $0x200] sm:$0xf]  ;;  %v5669_v36 = vld [vmem:[%s9648_s8 + $0x3f8] sm:$0xf] }
 0x27b   :  { %v5950_v4 = vor.u32 %v6511_v58, %v5949_v57  ;;  %v6441_v38 = vld [vmem:[%s9648_s8 + $0x410] sm:$0xf0]  ;;  %v6434_v57 = vld [vmem:[%s9648_s8 + $0x3d8] sm:$0xf0] }
 0x27d   :  { %3710 = vmatpush.bf16.msra.mxu1 %v5386_v49  ;;  %3736 = vmatpush.bf16.msra.mxu0 %v5834_v51  ;;  %v6469_v49 = vld [vmem:[%s9648_s8 + $0x4f0] sm:$0xf0]  ;;  %v5501_v51 = vld [vmem:[%s9648_s8 + $0x2a8] sm:$0xf] }
 0x27e   :  { %3697 = vmatpush.bf16.msra.mxu3 %v5162_v0  ;;  %3723 = vmatpush.bf16.msra.mxu2 %v5610_v3  ;;  %v5782_v60 = vor.u32 %v6469_v49, %v5781_v48  ;;  %v6350_v0 = vld [vmem:[%s9648_s8 + $0x138] sm:$0xf0]  ;;  %v5502_v1 = vor.u32 %v6399_v52, %v5501_v51  ;;  %v6529_v48 = vld [vmem:[%s9648_s8 + $0x6d4] sm:$0xf]  ;;  %v5670_v49 = vor.u32 %v6441_v38, %v5669_v36  ;;  %v5193_v51 = vld [vmem:[%s9648_s8 + $0x40] sm:$0xf] }
 0x27f   :  { %v6462_v3 = vld [vmem:[%s9648_s8 + $0x4b8] sm:$0xf0]  ;;  %v6459_v36 = vld [vmem:[%s9648_s8 + $0x4a4] sm:$0xf]  ;;  %v5755_v38 = vld [vmem:[%s9648_s8 + $0x4bc] sm:$0xf0] }
 0x280   :  { %v5754_v12 = vor.u32 %v6462_v3, %v5753_v2  ;;  %v6322_v52 = vld [vmem:[%s9648_s8 + $0x58] sm:$0xf0]  ;;  %v6007_v3 = vld [vmem:[%s9648_s8 + $0x6b4] sm:$0xf0] }
 0x281   :  { %v6522_v2 = vld [vmem:[%s9648_s8 + $0x69c] sm:$0xf] }
 0x2dc   :  { %v2176_v9 = vpop.f32.mrf.mxu1 }
 0x2dd   :  { %v2177_v10 = vadd.f32 %v2176_v9, %v1987_v5  ;;  %v2202_v56 = vpop.f32.mrf.mxu0  ;;  %v5473_v5 = vld [vmem:[%s9648_s8 + $0x270] sm:$0xf]  ;;  %v5306_v9 = vor.u32 %v6350_v0, %v5305_v62  ;;  %v5194_v0 = vor.u32 %v6322_v52, %v5193_v51  ;;  %v5727_v51 = vld [vmem:[%s9648_s8 + $0x484] sm:$0xf0] }
 0x2de   :  { %v2203_v7 = vadd.f32 %v2202_v56, %v1989_v6  ;;  %v6392_v6 = vld [vmem:[%s9648_s8 + $0x288] sm:$0xf0] }
 0x2df   :  { %v2207_v16 = vmax.f32 %v2177_v10, 0.0  ;;  %v5921_v10 = vld [vmem:[%s9648_s8 + $0x5f0] sm:$0xf]  ;;  %v6504_v56 = vld [vmem:[%s9648_s8 + $0x608] sm:$0xf0]  ;;  %v5474_v14 = vor.u32 %v6392_v6, %v5473_v5 }
 0x2e0   :  { %v2209_v8 = vmax.f32 %v2203_v7, 0.0  ;;  %v6343_v7 = vld [vmem:[%s9648_s8 + $0x100] sm:$0xf0]  ;;  %v5165_v5 = vld [vmem:[%s9648_s8 + $0x8] sm:$0xf] }
 0x2e1   :  { %v8623_v21 = vpack.c.bf16 %v2207_v16, %v2207_v16  ;;  %v6455_v16 = vld [vmem:[%s9648_s8 + $0x480] sm:$0xf0] }
 0x2e2   :  { %v8631_v25 = vpack.c.bf16 %v2209_v8, %v2209_v8  ;;  %v2163_v26 = vpop.f32.mrf.mxu3  ;;  %v5445_v8 = vld [vmem:[%s9648_s8 + $0x238] sm:$0xf]  ;;  %v5726_v24 = vor.u32 %v6455_v16, %v5725_v15  ;;  %v6315_v6 = vld [vmem:[%s9648_s8 + $0x20] sm:$0xf0]  ;;  %v6010_v15 = vor.u32 %v6522_v2, %v6007_v3  ;;  %v6445_v2 = vld [vmem:[%s9648_s8 + $0x434] sm:$0xf] }
 0x2e3   :  { %v2164_v28 = vadd.f32 %v2163_v26, %v1986_v18  ;;  %v2189_v29 = vpop.f32.mrf.mxu2  ;;  %3659 = vmatmul.bf16.vlgmr.msrb.gmra.mxu1 %v8623_v21  ;;  %v5922_v18 = vor.u32 %v6504_v56, %v5921_v10  ;;  %v5249_v26 = vld [vmem:[%s9648_s8 + $0xb0] sm:$0xf]  ;;  %v6427_v10 = vld [vmem:[%s9648_s8 + $0x3a0] sm:$0xf0]  ;;  %v6361_v56 = vld [vmem:[%s9648_s8 + $0x194] sm:$0xf]  ;;  %v5166_v16 = vor.u32 %v6315_v6, %v5165_v5 }
 0x2e4   :  { %v2190_v32 = vadd.f32 %v2189_v29, %v1988_v19  ;;  %3685 = vmatmul.bf16.vlgmr.msrb.gmra.mxu0 %v8631_v25  ;;  %3755 = vmatpush.bf16.msrb.mxu1 %v5586_v20  ;;  %v2178_v37 = vpop.f32.mrf.mxu1  ;;  %v6385_v19 = vld [vmem:[%s9648_s8 + $0x250] sm:$0xf0]  ;;  %v5278_v20 = vor.u32 %v6343_v7, %v5277_v13  ;;  %v6448_v29 = vld [vmem:[%s9648_s8 + $0x448] sm:$0xf0]  ;;  %v5699_v3 = vld [vmem:[%s9648_s8 + $0x44c] sm:$0xf0] }
 0x2e5   :  { %v2206_v34 = vmax.f32 %v2164_v28, 0.0  ;;  %3781 = vmatpush.bf16.msrb.mxu0 %v6034_v22  ;;  %v2204_v33 = vpop.f32.mrf.mxu0  ;;  %v5893_v22 = vld [vmem:[%s9648_s8 + $0x5b8] sm:$0xf]  ;;  %v5446_v17 = vor.u32 %v6385_v19, %v5445_v8  ;;  %v5697_v28 = vld [vmem:[%s9648_s8 + $0x430] sm:$0xf]  ;;  %v5250_v37 = vor.u32 %v6336_v54, %v5249_v26 }
 0x2e6   :  { %v2208_v40 = vmax.f32 %v2190_v32, 0.0  ;;  %v5894_v30 = vor.u32 %v6497_v23, %v5893_v22  ;;  %v6378_v32 = vld [vmem:[%s9648_s8 + $0x218] sm:$0xf0]  ;;  %v5698_v31 = vor.u32 %v6448_v29, %v5697_v28  ;;  %v6329_v33 = vld [vmem:[%s9648_s8 + $0x90] sm:$0xf0] }
 0x2e7   :  { %v8665_v43 = vpack.c.bf16 %v2206_v34, %v2206_v34  ;;  %v5221_v34 = vld [vmem:[%s9648_s8 + $0x78] sm:$0xf]  ;;  %v6473_v7 = vld [vmem:[%s9648_s8 + $0x514] sm:$0xf]  ;;  %v5531_v8 = vld [vmem:[%s9648_s8 + $0x2fc] sm:$0xf0] }
 0x2e8   :  { %v8673_v46 = vpack.c.bf16 %v2208_v40, %v2208_v40  ;;  %3756 = vmatpush.bf16.msrb.mxu1 %v5558_v11  ;;  %v5865_v11 = vld [vmem:[%s9648_s8 + $0x580] sm:$0xf]  ;;  %v5389_v40 = vld [vmem:[%s9648_s8 + $0x1c8] sm:$0xf]  ;;  %v5222_v61 = vor.u32 %v6329_v33, %v5221_v34  ;;  %v6515_v22 = vld [vmem:[%s9648_s8 + $0x664] sm:$0xf] }
 0x2e9   :  { %3782 = vmatpush.bf16.msrb.mxu0 %v6006_v35  ;;  %3646 = vmatmul.bf16.vlgmr.msrb.gmra.mxu3 %v8665_v43  ;;  %v5418_v35 = vor.u32 %v6378_v32, %v5417_v63  ;;  %v5979_v23 = vld [vmem:[%s9648_s8 + $0x67c] sm:$0xf0]  ;;  %v6354_v26 = vld [vmem:[%s9648_s8 + $0x15c] sm:$0xf]  ;;  %v5335_v54 = vld [vmem:[%s9648_s8 + $0x174] sm:$0xf0] }
 0x2ea   :  { %3672 = vmatmul.bf16.vlgmr.msrb.gmra.mxu2 %v8673_v46  ;;  %3742 = vmatpush.bf16.msrb.mxu3 %v5362_v39  ;;  %v2165_v53 = vpop.f32.mrf.mxu3  ;;  %v5866_v39 = vor.u32 %v6490_v27, %v5865_v11  ;;  %v6466_v28 = vld [vmem:[%s9648_s8 + $0x4dc] sm:$0xf]  ;;  %v5783_v29 = vld [vmem:[%s9648_s8 + $0x4f4] sm:$0xf0]  ;;  %v6396_v63 = vld [vmem:[%s9648_s8 + $0x2ac] sm:$0xf] }
 0x2eb   :  { %3768 = vmatpush.bf16.msrb.mxu2 %v5810_v44  ;;  %v2191_v59 = vpop.f32.mrf.mxu2  ;;  %v6483_v44 = vld [vmem:[%s9648_s8 + $0x560] sm:$0xf0]  ;;  %v5390_v53 = vor.u32 %v6371_v41, %v5389_v40  ;;  %v5503_v32 = vld [vmem:[%s9648_s8 + $0x2c4] sm:$0xf0]  ;;  %v6508_v11 = vld [vmem:[%s9648_s8 + $0x62c] sm:$0xf] }
 0x2ec   :  { %3757 = vmatpush.bf16.msrb.mxu1 %v5530_v47  ;;  %v5587_v47 = vld [vmem:[%s9648_s8 + $0x36c] sm:$0xf0]  ;;  %v5838_v58 = vor.u32 %v6483_v44, %v5837_v42  ;;  %v5951_v27 = vld [vmem:[%s9648_s8 + $0x644] sm:$0xf0]  ;;  %v6347_v34 = vld [vmem:[%s9648_s8 + $0x124] sm:$0xf] }
 0x2ed   :  { %3783 = vmatpush.bf16.msrb.mxu0 %v5978_v50  ;;  %v6035_v50 = vld [vmem:[%s9648_s8 + $0x6ec] sm:$0xf0]  ;;  %v5590_v59 = vor.u32 %v6417_v45, %v5587_v47  ;;  %v5307_v33 = vld [vmem:[%s9648_s8 + $0x13c] sm:$0xf0]  ;;  %v5954_v40 = vor.u32 %v6508_v11, %v5951_v27  ;;  %v6501_v44 = vld [vmem:[%s9648_s8 + $0x5f4] sm:$0xf]  ;;  %v5758_v45 = vor.u32 %v6459_v36, %v5755_v38 }
 0x2ee   :  { %3743 = vmatpush.bf16.msrb.mxu3 %v5334_v55  ;;  %v5641_v55 = vld [vmem:[%s9648_s8 + $0x3c0] sm:$0xf]  ;;  %v6038_v62 = vor.u32 %v6529_v48, %v6035_v50  ;;  %v5475_v41 = vld [vmem:[%s9648_s8 + $0x28c] sm:$0xf0]  ;;  %v5310_v42 = vor.u32 %v6347_v34, %v5307_v33  ;;  %v6340_v47 = vld [vmem:[%s9648_s8 + $0xec] sm:$0xf] }
 0x2ef   :  { %3769 = vmatpush.bf16.msrb.mxu2 %v5782_v60  ;;  %v6410_v60 = vld [vmem:[%s9648_s8 + $0x31c] sm:$0xf]  ;;  %v5279_v48 = vld [vmem:[%s9648_s8 + $0x104] sm:$0xf0]  ;;  %v6452_v50 = vld [vmem:[%s9648_s8 + $0x46c] sm:$0xf] }
 0x2f0   :  { %3758 = vmatpush.bf16.msrb.mxu1 %v5502_v1  ;;  %v5559_v1 = vld [vmem:[%s9648_s8 + $0x334] sm:$0xf0]  ;;  %v6375_v5 = vld [vmem:[%s9648_s8 + $0x204] sm:$0xf]  ;;  %v5419_v6 = vld [vmem:[%s9648_s8 + $0x21c] sm:$0xf0] }
 0x2f1   :  { %3784 = vmatpush.bf16.msrb.mxu0 %v5950_v4  ;;  %v5642_v4 = vor.u32 %v6434_v57, %v5641_v55  ;;  %v5562_v13 = vor.u32 %v6410_v60, %v5559_v1  ;;  %v5447_v55 = vld [vmem:[%s9648_s8 + $0x254] sm:$0xf0]  ;;  %v5282_v57 = vor.u32 %v6340_v47, %v5279_v48  ;;  %v5730_v60 = vor.u32 %v6452_v50, %v5727_v51  ;;  %v6013_v36 = vld [vmem:[%s9648_s8 + $0x6a0] sm:$0xf]  ;;  %v6526_v38 = vld [vmem:[%s9648_s8 + $0x6b8] sm:$0xf0] }
 0x2f2   :  { %3744 = vmatpush.bf16.msrb.mxu3 %v5306_v9  ;;  %v5613_v9 = vld [vmem:[%s9648_s8 + $0x388] sm:$0xf]  ;;  %v5817_v48 = vld [vmem:[%s9648_s8 + $0x518] sm:$0xf]  ;;  %v6014_v50 = vor.u32 %v6526_v38, %v6013_v36  ;;  %v6449_v38 = vld [vmem:[%s9648_s8 + $0x450] sm:$0xf0] }
 0x2f3   :  { %3770 = vmatpush.bf16.msrb.mxu2 %v5754_v12  ;;  %3711 = vmatmul.bf16.vlgmr.msra.gmra.mxu1 %v8623_v21  ;;  %v5363_v12 = vld [vmem:[%s9648_s8 + $0x1ac] sm:$0xf0]  ;;  %v5614_v19 = vor.u32 %v6427_v10, %v5613_v9  ;;  %v6487_v10 = vld [vmem:[%s9648_s8 + $0x584] sm:$0xf]  ;;  %v5705_v36 = vld [vmem:[%s9648_s8 + $0x438] sm:$0xf] }
 0x2f4   :  { %3737 = vmatmul.bf16.vlgmr.msra.gmra.mxu0 %v8631_v25  ;;  %3759 = vmatpush.bf16.msrb.mxu1 %v5474_v14  ;;  %v5811_v14 = vld [vmem:[%s9648_s8 + $0x52c] sm:$0xf0] }
 0x2f5   :  { %3785 = vmatpush.bf16.msrb.mxu0 %v5922_v18  ;;  %v6403_v18 = vld [vmem:[%s9648_s8 + $0x2e4] sm:$0xf] }
 0x2f6   :  { %3745 = vmatpush.bf16.msrb.mxu3 %v5278_v20  ;;  %v5366_v20 = vor.u32 %v6361_v56, %v5363_v12  ;;  %v5867_v56 = vld [vmem:[%s9648_s8 + $0x59c] sm:$0xf0]  ;;  %v5702_v12 = vor.u32 %v6445_v2, %v5699_v3  ;;  %v6470_v3 = vld [vmem:[%s9648_s8 + $0x4f8] sm:$0xf0] }
 0x2f7   :  { %3771 = vmatpush.bf16.msrb.mxu2 %v5726_v24  ;;  %v5814_v24 = vor.u32 %v6473_v7, %v5811_v14  ;;  %v5223_v7 = vld [vmem:[%s9648_s8 + $0x94] sm:$0xf0]  ;;  %v5422_v14 = vor.u32 %v6375_v5, %v5419_v6  ;;  %v5789_v2 = vld [vmem:[%s9648_s8 + $0x4e0] sm:$0xf]  ;;  %v5509_v5 = vld [vmem:[%s9648_s8 + $0x2b0] sm:$0xf] }
 0x2f8   :  { %3760 = vmatpush.bf16.msrb.mxu1 %v5446_v17  ;;  %v5534_v17 = vor.u32 %v6403_v18, %v5531_v8  ;;  %v6368_v18 = vld [vmem:[%s9648_s8 + $0x1cc] sm:$0xf]  ;;  %v5870_v8 = vor.u32 %v6487_v10, %v5867_v56  ;;  %v5957_v10 = vld [vmem:[%s9648_s8 + $0x630] sm:$0xf] }
 0x2f9   :  { %3786 = vmatpush.bf16.msrb.mxu0 %v5894_v30  ;;  %3698 = vmatmul.bf16.vlgmr.msra.gmra.mxu3 %v8665_v43  ;;  %v5982_v30 = vor.u32 %v6515_v22, %v5979_v23  ;;  %v5839_v22 = vld [vmem:[%s9648_s8 + $0x564] sm:$0xf0]  ;;  %v6400_v6 = vld [vmem:[%s9648_s8 + $0x2c8] sm:$0xf0] }
 0x2fa   :  { %3724 = vmatmul.bf16.vlgmr.msra.gmra.mxu2 %v8673_v46  ;;  %3746 = vmatpush.bf16.msrb.mxu3 %v5250_v37  ;;  %v5338_v37 = vor.u32 %v6354_v26, %v5335_v54  ;;  %v6421_v26 = vld [vmem:[%s9648_s8 + $0x370] sm:$0xf0]  ;;  %v6041_v54 = vld [vmem:[%s9648_s8 + $0x6d8] sm:$0xf]  ;;  %v6512_v56 = vld [vmem:[%s9648_s8 + $0x648] sm:$0xf0] }
 0x2fb   :  { %3772 = vmatpush.bf16.msrb.mxu2 %v5698_v31  ;;  %v5786_v31 = vor.u32 %v6466_v28, %v5783_v29  ;;  %v6533_v28 = vld [vmem:[%s9648_s8 + $0x6f0] sm:$0xf0]  ;;  %v6319_v29 = vld [vmem:[%s9648_s8 + $0x44] sm:$0xf] }
 0x2fc   :  { %3761 = vmatpush.bf16.msrb.mxu1 %v5418_v35  ;;  %v5506_v35 = vor.u32 %v6396_v63, %v5503_v32  ;;  %v6431_v32 = vld [vmem:[%s9648_s8 + $0x3c4] sm:$0xf]  ;;  %v6042_v34 = vor.u32 %v6533_v28, %v6041_v54  ;;  %v6344_v54 = vld [vmem:[%s9648_s8 + $0x108] sm:$0xf0]  ;;  %v5733_v28 = vld [vmem:[%s9648_s8 + $0x470] sm:$0xf] }
 0x2fd   :  { %3787 = vmatpush.bf16.msrb.mxu0 %v5866_v39  ;;  %v6389_v39 = vld [vmem:[%s9648_s8 + $0x274] sm:$0xf] }
 0x2fe   :  { %3747 = vmatpush.bf16.msrb.mxu3 %v5222_v61  ;;  %v5923_v61 = vld [vmem:[%s9648_s8 + $0x60c] sm:$0xf0] }
 0x2ff   :  { %3773 = vmatpush.bf16.msrb.mxu2 %v5670_v49  ;;  %v5478_v49 = vor.u32 %v6389_v39, %v5475_v41  ;;  %v5926_v52 = vor.u32 %v6501_v44, %v5923_v61  ;;  %v6312_v39 = vld [vmem:[%s9648_s8 + $0xc] sm:$0xf]  ;;  %v5167_v41 = vld [vmem:[%s9648_s8 + $0x24] sm:$0xf0]  ;;  %v5369_v61 = vld [vmem:[%s9648_s8 + $0x198] sm:$0xf] }
 0x300   :  { %3762 = vmatpush.bf16.msrb.mxu1 %v5390_v53  ;;  %v6382_v53 = vld [vmem:[%s9648_s8 + $0x23c] sm:$0xf]  ;;  %v5615_v44 = vld [vmem:[%s9648_s8 + $0x3a4] sm:$0xf0]  ;;  %v5170_v51 = vor.u32 %v6312_v39, %v5167_v41  ;;  %v6379_v41 = vld [vmem:[%s9648_s8 + $0x220] sm:$0xf0] }
 0x301   :  { %3788 = vmatpush.bf16.msrb.mxu0 %v5838_v58  ;;  %v6494_v58 = vld [vmem:[%s9648_s8 + $0x5bc] sm:$0xf]  ;;  %v5450_v1 = vor.u32 %v6382_v53, %v5447_v55  ;;  %v6407_v53 = vld [vmem:[%s9648_s8 + $0x300] sm:$0xf0]  ;;  %v5425_v39 = vld [vmem:[%s9648_s8 + $0x208] sm:$0xf] }
 0x302   :  { %3748 = vmatpush.bf16.msrb.mxu3 %v5194_v0  ;;  %v5251_v0 = vld [vmem:[%s9648_s8 + $0xcc] sm:$0xf0] }
 0x303   :  { %3774 = vmatpush.bf16.msrb.mxu2 %v5642_v4  ;;  %3763 = vmatmul.bf16.vlgmr.msrb.gmra.mxu1 %v8623_v21 }
 0x304   :  { %3807 = vmatpush.bf16.msra.mxu1 %v5590_v59  ;;  %3789 = vmatmul.bf16.vlgmr.msrb.gmra.mxu0 %v8631_v25  ;;  %v5895_v59 = vld [vmem:[%s9648_s8 + $0x5d4] sm:$0xf0] }
 0x305   :  { %3833 = vmatpush.bf16.msra.mxu0 %v6038_v62  ;;  %v6333_v62 = vld [vmem:[%s9648_s8 + $0xb4] sm:$0xf]  ;;  %v5898_v4 = vor.u32 %v6494_v58, %v5895_v59  ;;  %v5985_v58 = vld [vmem:[%s9648_s8 + $0x668] sm:$0xf]  ;;  %v6519_v59 = vld [vmem:[%s9648_s8 + $0x680] sm:$0xf0] }
 0x306   :  { %3749 = vmatpush.bf16.msrb.mxu3 %v5166_v16  ;;  %v5254_v9 = vor.u32 %v6333_v62, %v5251_v0  ;;  %v5671_v16 = vld [vmem:[%s9648_s8 + $0x414] sm:$0xf0]  ;;  %v5341_v62 = vld [vmem:[%s9648_s8 + $0x160] sm:$0xf]  ;;  %v6358_v0 = vld [vmem:[%s9648_s8 + $0x178] sm:$0xf0] }
 0x307   :  { %3775 = vmatpush.bf16.msrb.mxu2 %v5614_v19  ;;  %v5391_v19 = vld [vmem:[%s9648_s8 + $0x1e4] sm:$0xf0] }
 0x308   :  { %3808 = vmatpush.bf16.msra.mxu1 %v5562_v13  ;;  %v6326_v13 = vld [vmem:[%s9648_s8 + $0x7c] sm:$0xf]  ;;  %v5394_v63 = vor.u32 %v6368_v18, %v5391_v19  ;;  %v5958_v18 = vor.u32 %v6512_v56, %v5957_v10  ;;  %v6393_v19 = vld [vmem:[%s9648_s8 + $0x290] sm:$0xf0] }
 0x309   :  { %3834 = vmatpush.bf16.msra.mxu0 %v6010_v15  ;;  %3750 = vmatmul.bf16.vlgmr.msrb.gmra.mxu3 %v8665_v43  ;;  %v6438_v15 = vld [vmem:[%s9648_s8 + $0x3fc] sm:$0xf]  ;;  %v5226_v23 = vor.u32 %v6326_v13, %v5223_v7  ;;  %v5313_v13 = vld [vmem:[%s9648_s8 + $0x128] sm:$0xf]  ;;  %v6351_v7 = vld [vmem:[%s9648_s8 + $0x140] sm:$0xf0] }
 0x30a   :  { %3794 = vmatpush.bf16.msra.mxu3 %v5366_v20  ;;  %3776 = vmatmul.bf16.vlgmr.msrb.gmra.mxu2 %v8673_v46  ;;  %v6480_v20 = vld [vmem:[%s9648_s8 + $0x54c] sm:$0xf] }
 0x30b   :  { %3820 = vmatpush.bf16.msra.mxu2 %v5814_v24  ;;  %v5593_v24 = vld [vmem:[%s9648_s8 + $0x358] sm:$0xf]  ;;  %v5842_v11 = vor.u32 %v6480_v20, %v5839_v22  ;;  %v5314_v20 = vor.u32 %v6351_v7, %v5313_v13 }
 0x30c   :  { %3809 = vmatpush.bf16.msra.mxu1 %v5534_v17  ;;  %v5674_v17 = vor.u32 %v6438_v15, %v5671_v16  ;;  %v5594_v27 = vor.u32 %v6421_v26, %v5593_v24  ;;  %v5761_v15 = vld [vmem:[%s9648_s8 + $0x4a8] sm:$0xf]  ;;  %v6463_v16 = vld [vmem:[%s9648_s8 + $0x4c0] sm:$0xf0]  ;;  %v5929_v22 = vld [vmem:[%s9648_s8 + $0x5f8] sm:$0xf] }
 0x30d   :  { %3835 = vmatpush.bf16.msra.mxu0 %v5982_v30  ;;  %v5195_v30 = vld [vmem:[%s9648_s8 + $0x5c] sm:$0xf0]  ;;  %v5762_v24 = vor.u32 %v6463_v16, %v5761_v15  ;;  %v5285_v26 = vld [vmem:[%s9648_s8 + $0xf0] sm:$0xf]  ;;  %v6523_v15 = vld [vmem:[%s9648_s8 + $0x6a4] sm:$0xf] }
 0x30e   :  { %3795 = vmatpush.bf16.msra.mxu3 %v5338_v37  ;;  %v5643_v37 = vld [vmem:[%s9648_s8 + $0x3dc] sm:$0xf0]  ;;  %v5198_v33 = vor.u32 %v6319_v29, %v5195_v30  ;;  %v6456_v29 = vld [vmem:[%s9648_s8 + $0x488] sm:$0xf0] }
 0x30f   :  { %3821 = vmatpush.bf16.msra.mxu2 %v5786_v31  ;;  %v5565_v31 = vld [vmem:[%s9648_s8 + $0x320] sm:$0xf] }
 0x310   :  { %3810 = vmatpush.bf16.msra.mxu1 %v5506_v35  ;;  %v6414_v35 = vld [vmem:[%s9648_s8 + $0x338] sm:$0xf0]  ;;  %v6015_v16 = vld [vmem:[%s9648_s8 + $0x6bc] sm:$0xf0] }
 0x311   :  { %3836 = vmatpush.bf16.msra.mxu0 %v5954_v40  ;;  %v5646_v40 = vor.u32 %v6431_v32, %v5643_v37  ;;  %v5566_v47 = vor.u32 %v6414_v35, %v5565_v31  ;;  %v6386_v32 = vld [vmem:[%s9648_s8 + $0x258] sm:$0xf0]  ;;  %v5286_v37 = vor.u32 %v6344_v54, %v5285_v26  ;;  %v5734_v31 = vor.u32 %v6456_v29, %v5733_v28 }
 0x312   :  { %3796 = vmatpush.bf16.msra.mxu3 %v5310_v42  ;;  %v6424_v42 = vld [vmem:[%s9648_s8 + $0x38c] sm:$0xf]  ;;  %v6474_v54 = vld [vmem:[%s9648_s8 + $0x51c] sm:$0xf]  ;;  %v6018_v28 = vor.u32 %v6523_v15, %v6015_v16  ;;  %v5707_v16 = vld [vmem:[%s9648_s8 + $0x454] sm:$0xf0] }
 0x313   :  { %3822 = vmatpush.bf16.msra.mxu2 %v5758_v45  ;;  %v6365_v45 = vld [vmem:[%s9648_s8 + $0x1b0] sm:$0xf0]  ;;  %v5618_v55 = vor.u32 %v6424_v42, %v5615_v44  ;;  %v5873_v44 = vld [vmem:[%s9648_s8 + $0x588] sm:$0xf]  ;;  %v6446_v15 = vld [vmem:[%s9648_s8 + $0x43c] sm:$0xf] }
 0x314   :  { %3811 = vmatpush.bf16.msra.mxu1 %v5478_v49  ;;  %v6477_v49 = vld [vmem:[%s9648_s8 + $0x530] sm:$0xf0] }
 0x315   :  { %3837 = vmatpush.bf16.msra.mxu0 %v5926_v52  ;;  %v5537_v52 = vld [vmem:[%s9648_s8 + $0x2e8] sm:$0xf] }
 0x316   :  { %3797 = vmatpush.bf16.msra.mxu3 %v5282_v57  ;;  %v5370_v57 = vor.u32 %v6365_v45, %v5369_v61  ;;  %v6491_v61 = vld [vmem:[%s9648_s8 + $0x5a0] sm:$0xf0]  ;;  %v5706_v45 = vor.u32 %v6449_v38, %v5705_v36  ;;  %v5791_v38 = vld [vmem:[%s9648_s8 + $0x4fc] sm:$0xf0] }
 0x317   :  { %3823 = vmatpush.bf16.msra.mxu2 %v5730_v60  ;;  %v5818_v60 = vor.u32 %v6477_v49, %v5817_v48  ;;  %v6330_v48 = vld [vmem:[%s9648_s8 + $0x98] sm:$0xf0]  ;;  %v5426_v49 = vor.u32 %v6379_v41, %v5425_v39  ;;  %v6467_v36 = vld [vmem:[%s9648_s8 + $0x4e4] sm:$0xf]  ;;  %v6397_v39 = vld [vmem:[%s9648_s8 + $0x2b4] sm:$0xf] }
 0x318   :  { %3812 = vmatpush.bf16.msra.mxu1 %v5450_v1  ;;  %v5538_v1 = vor.u32 %v6407_v53, %v5537_v52  ;;  %v5397_v52 = vld [vmem:[%s9648_s8 + $0x1d0] sm:$0xf]  ;;  %v5874_v53 = vor.u32 %v6491_v61, %v5873_v44  ;;  %v6509_v44 = vld [vmem:[%s9648_s8 + $0x634] sm:$0xf] }
 0x319   :  { %3838 = vmatpush.bf16.msra.mxu0 %v5898_v4  ;;  %v5986_v4 = vor.u32 %v6519_v59, %v5985_v58  ;;  %v6484_v58 = vld [vmem:[%s9648_s8 + $0x568] sm:$0xf0]  ;;  %v5511_v41 = vld [vmem:[%s9648_s8 + $0x2cc] sm:$0xf0] }
 0x31a   :  { %3798 = vmatpush.bf16.msra.mxu3 %v5254_v9  ;;  %v5342_v9 = vor.u32 %v6358_v0, %v5341_v62  ;;  %v5595_v62 = vld [vmem:[%s9648_s8 + $0x374] sm:$0xf0]  ;;  %v6530_v0 = vld [vmem:[%s9648_s8 + $0x6dc] sm:$0xf]  ;;  %v5959_v61 = vld [vmem:[%s9648_s8 + $0x64c] sm:$0xf0] }
 0x31b   :  { %3824 = vmatpush.bf16.msra.mxu2 %v5702_v12  ;;  %v5790_v12 = vor.u32 %v6470_v3, %v5789_v2  ;;  %v6043_v2 = vld [vmem:[%s9648_s8 + $0x6f4] sm:$0xf0]  ;;  %v5201_v3 = vld [vmem:[%s9648_s8 + $0x48] sm:$0xf] }
 0x31c   :  { %3813 = vmatpush.bf16.msra.mxu1 %v5422_v14  ;;  %v5510_v14 = vor.u32 %v6400_v6, %v5509_v5  ;;  %v5649_v6 = vld [vmem:[%s9648_s8 + $0x3c8] sm:$0xf]  ;;  %v6046_v13 = vor.u32 %v6530_v0, %v6043_v2  ;;  %v5287_v0 = vld [vmem:[%s9648_s8 + $0x10c] sm:$0xf0]  ;;  %v6453_v2 = vld [vmem:[%s9648_s8 + $0x474] sm:$0xf] }
 0x31d   :  { %3839 = vmatpush.bf16.msra.mxu0 %v5870_v8  ;;  %v5481_v8 = vld [vmem:[%s9648_s8 + $0x278] sm:$0xf] }
 0x31e   :  { %3799 = vmatpush.bf16.msra.mxu3 %v5226_v23  ;;  %v6505_v23 = vld [vmem:[%s9648_s8 + $0x610] sm:$0xf0] }
 0x31f   :  { %3825 = vmatpush.bf16.msra.mxu2 %v5674_v17  ;;  %v5482_v17 = vor.u32 %v6393_v19, %v5481_v8  ;;  %v5930_v30 = vor.u32 %v6505_v23, %v5929_v22  ;;  %v5173_v8 = vld [vmem:[%s9648_s8 + $0x10] sm:$0xf]  ;;  %v6316_v19 = vld [vmem:[%s9648_s8 + $0x28] sm:$0xf0]  ;;  %v6362_v23 = vld [vmem:[%s9648_s8 + $0x19c] sm:$0xf] }
 0x320   :  { %3814 = vmatpush.bf16.msra.mxu1 %v5394_v63  ;;  %v5453_v63 = vld [vmem:[%s9648_s8 + $0x240] sm:$0xf]  ;;  %v6428_v22 = vld [vmem:[%s9648_s8 + $0x3a8] sm:$0xf0]  ;;  %v5174_v29 = vor.u32 %v6316_v19, %v5173_v8  ;;  %v5427_v19 = vld [vmem:[%s9648_s8 + $0x224] sm:$0xf0] }
 0x321   :  { %3840 = vmatpush.bf16.msra.mxu0 %v5842_v11  ;;  %v5901_v11 = vld [vmem:[%s9648_s8 + $0x5c0] sm:$0xf]  ;;  %v5454_v35 = vor.u32 %v6386_v32, %v5453_v63  ;;  %v5539_v63 = vld [vmem:[%s9648_s8 + $0x304] sm:$0xf0]  ;;  %v6376_v8 = vld [vmem:[%s9648_s8 + $0x20c] sm:$0xf] }
 0x322   :  { %3800 = vmatpush.bf16.msra.mxu3 %v5198_v33  ;;  %v6337_v33 = vld [vmem:[%s9648_s8 + $0xd0] sm:$0xf0] }
 0x323   :  { %3826 = vmatpush.bf16.msra.mxu2 %v5646_v40  ;;  %3815 = vmatmul.bf16.vlgmr.msra.gmra.mxu1 %v8623_v21 }
 0x324   :  { %3859 = vmatpush.bf16.msrb.mxu1 %v5594_v27  ;;  %3841 = vmatmul.bf16.vlgmr.msra.gmra.mxu0 %v8631_v25  ;;  %v6498_v27 = vld [vmem:[%s9648_s8 + $0x5d8] sm:$0xf0] }
 0x325   :  { %3885 = vmatpush.bf16.msrb.mxu0 %v6042_v34  ;;  %v5257_v34 = vld [vmem:[%s9648_s8 + $0xb8] sm:$0xf]  ;;  %v5902_v40 = vor.u32 %v6498_v27, %v5901_v11  ;;  %v6516_v11 = vld [vmem:[%s9648_s8 + $0x66c] sm:$0xf]  ;;  %v5987_v27 = vld [vmem:[%s9648_s8 + $0x684] sm:$0xf0] }
 0x326   :  { %3801 = vmatpush.bf16.msra.mxu3 %v5170_v51  ;;  %v5258_v42 = vor.u32 %v6337_v33, %v5257_v34  ;;  %v6442_v51 = vld [vmem:[%s9648_s8 + $0x418] sm:$0xf0]  ;;  %v6355_v34 = vld [vmem:[%s9648_s8 + $0x164] sm:$0xf]  ;;  %v5343_v33 = vld [vmem:[%s9648_s8 + $0x17c] sm:$0xf0] }
 0x327   :  { %3827 = vmatpush.bf16.msra.mxu2 %v5618_v55  ;;  %v6372_v55 = vld [vmem:[%s9648_s8 + $0x1e8] sm:$0xf0] }
 0x328   :  { %3860 = vmatpush.bf16.msrb.mxu1 %v5566_v47  ;;  %v5229_v47 = vld [vmem:[%s9648_s8 + $0x80] sm:$0xf]  ;;  %v5398_v5 = vor.u32 %v6372_v55, %v5397_v52  ;;  %v5962_v52 = vor.u32 %v6509_v44, %v5959_v61  ;;  %v5483_v55 = vld [vmem:[%s9648_s8 + $0x294] sm:$0xf0] }
 0x329   :  { %3886 = vmatpush.bf16.msrb.mxu0 %v6014_v50  ;;  %3802 = vmatmul.bf16.vlgmr.msra.gmra.mxu3 %v8665_v43  ;;  %v5677_v50 = vld [vmem:[%s9648_s8 + $0x400] sm:$0xf]  ;;  %v5230_v59 = vor.u32 %v6330_v48, %v5229_v47  ;;  %v6348_v47 = vld [vmem:[%s9648_s8 + $0x12c] sm:$0xf]  ;;  %v5315_v48 = vld [vmem:[%s9648_s8 + $0x144] sm:$0xf0] }
 0x32a   :  { %3846 = vmatpush.bf16.msrb.mxu3 %v5370_v57  ;;  %3828 = vmatmul.bf16.vlgmr.msra.gmra.mxu2 %v8673_v46  ;;  %v5845_v57 = vld [vmem:[%s9648_s8 + $0x550] sm:$0xf] }
 0x32b   :  { %3872 = vmatpush.bf16.msrb.mxu2 %v5818_v60  ;;  %v6418_v60 = vld [vmem:[%s9648_s8 + $0x35c] sm:$0xf]  ;;  %v5846_v10 = vor.u32 %v6484_v58, %v5845_v57  ;;  %v5318_v57 = vor.u32 %v6348_v47, %v5315_v48 }
 0x32c   :  { %3861 = vmatpush.bf16.msrb.mxu1 %v5538_v1  ;;  %v5678_v1 = vor.u32 %v6442_v51, %v5677_v50  ;;  %v5598_v56 = vor.u32 %v6418_v60, %v5595_v62  ;;  %v6460_v50 = vld [vmem:[%s9648_s8 + $0x4ac] sm:$0xf]  ;;  %v5763_v51 = vld [vmem:[%s9648_s8 + $0x4c4] sm:$0xf0]  ;;  %v6502_v58 = vld [vmem:[%s9648_s8 + $0x5fc] sm:$0xf] }
 0x32d   :  { %3887 = vmatpush.bf16.msrb.mxu0 %v5986_v4  ;;  %v6323_v4 = vld [vmem:[%s9648_s8 + $0x60] sm:$0xf0]  ;;  %v5766_v60 = vor.u32 %v6460_v50, %v5763_v51  ;;  %v6341_v62 = vld [vmem:[%s9648_s8 + $0xf4] sm:$0xf]  ;;  %v6021_v50 = vld [vmem:[%s9648_s8 + $0x6a8] sm:$0xf] }
 0x32e   :  { %3847 = vmatpush.bf16.msrb.mxu3 %v5342_v9  ;;  %v6435_v9 = vld [vmem:[%s9648_s8 + $0x3e0] sm:$0xf0]  ;;  %v5202_v7 = vor.u32 %v6323_v4, %v5201_v3  ;;  %v5735_v3 = vld [vmem:[%s9648_s8 + $0x48c] sm:$0xf0] }
 0x32f   :  { %3873 = vmatpush.bf16.msrb.mxu2 %v5790_v12  ;;  %v6411_v12 = vld [vmem:[%s9648_s8 + $0x324] sm:$0xf] }
 0x330   :  { %3862 = vmatpush.bf16.msrb.mxu1 %v5510_v14  ;;  %v5567_v14 = vld [vmem:[%s9648_s8 + $0x33c] sm:$0xf0]  ;;  %v6527_v51 = vld [vmem:[%s9648_s8 + $0x6c0] sm:$0xf0] }
 0x331   :  { %3888 = vmatpush.bf16.msrb.mxu0 %v5958_v18  ;;  %v5650_v18 = vor.u32 %v6435_v9, %v5649_v6  ;;  %v5570_v26 = vor.u32 %v6411_v12, %v5567_v14  ;;  %v5455_v6 = vld [vmem:[%s9648_s8 + $0x25c] sm:$0xf0]  ;;  %v5290_v9 = vor.u32 %v6341_v62, %v5287_v0  ;;  %v5738_v12 = vor.u32 %v6453_v2, %v5735_v3 }
 0x332   :  { %3848 = vmatpush.bf16.msrb.mxu3 %v5314_v20  ;;  %v5621_v20 = vld [vmem:[%s9648_s8 + $0x390] sm:$0xf]  ;;  %v5825_v0 = vld [vmem:[%s9648_s8 + $0x520] sm:$0xf]  ;;  %v6022_v2 = vor.u32 %v6527_v51, %v6021_v50  ;;  %v6338_v51 = vld [vmem:[%s9648_s8 + $0xd8] sm:$0xf0] }
 0x333   :  { %3874 = vmatpush.bf16.msrb.mxu2 %v5762_v24  ;;  %v5371_v24 = vld [vmem:[%s9648_s8 + $0x1b4] sm:$0xf0]  ;;  %v5622_v32 = vor.u32 %v6428_v22, %v5621_v20  ;;  %v6488_v22 = vld [vmem:[%s9648_s8 + $0x58c] sm:$0xf]  ;;  %v5265_v50 = vld [vmem:[%s9648_s8 + $0xc0] sm:$0xf] }
 0x334   :  { %3863 = vmatpush.bf16.msrb.mxu1 %v5482_v17  ;;  %v5819_v17 = vld [vmem:[%s9648_s8 + $0x534] sm:$0xf0] }
 0x335   :  { %3889 = vmatpush.bf16.msrb.mxu0 %v5930_v30  ;;  %v6404_v30 = vld [vmem:[%s9648_s8 + $0x2ec] sm:$0xf] }
 0x336   :  { %3849 = vmatpush.bf16.msrb.mxu3 %v5286_v37  ;;  %v5374_v37 = vor.u32 %v6362_v23, %v5371_v24  ;;  %v5875_v23 = vld [vmem:[%s9648_s8 + $0x5a4] sm:$0xf0]  ;;  %v5710_v24 = vor.u32 %v6446_v15, %v5707_v16  ;;  %v6471_v16 = vld [vmem:[%s9648_s8 + $0x500] sm:$0xf0] }
 0x337   :  { %3875 = vmatpush.bf16.msrb.mxu2 %v5734_v31  ;;  %v5822_v31 = vor.u32 %v6474_v54, %v5819_v17  ;;  %v5231_v54 = vld [vmem:[%s9648_s8 + $0x9c] sm:$0xf0]  ;;  %v5430_v17 = vor.u32 %v6376_v8, %v5427_v19  ;;  %v5797_v15 = vld [vmem:[%s9648_s8 + $0x4e8] sm:$0xf]  ;;  %v5517_v8 = vld [vmem:[%s9648_s8 + $0x2b8] sm:$0xf] }
 0x338   :  { %3864 = vmatpush.bf16.msrb.mxu1 %v5454_v35  ;;  %v5542_v35 = vor.u32 %v6404_v30, %v5539_v63  ;;  %v6369_v30 = vld [vmem:[%s9648_s8 + $0x1d4] sm:$0xf]  ;;  %v5878_v63 = vor.u32 %v6488_v22, %v5875_v23  ;;  %v5965_v22 = vld [vmem:[%s9648_s8 + $0x638] sm:$0xf] }
 0x339   :  { %3890 = vmatpush.bf16.msrb.mxu0 %v5902_v40  ;;  %v5990_v40 = vor.u32 %v6516_v11, %v5987_v27  ;;  %v5847_v11 = vld [vmem:[%s9648_s8 + $0x56c] sm:$0xf0]  ;;  %v6401_v19 = vld [vmem:[%s9648_s8 + $0x2d0] sm:$0xf0] }
 0x33a   :  { %3850 = vmatpush.bf16.msrb.mxu3 %v5258_v42  ;;  %v5346_v42 = vor.u32 %v6355_v34, %v5343_v33  ;;  %v6422_v34 = vld [vmem:[%s9648_s8 + $0x378] sm:$0xf0]  ;;  %v6049_v33 = vld [vmem:[%s9648_s8 + $0x6e0] sm:$0xf]  ;;  %v6513_v23 = vld [vmem:[%s9648_s8 + $0x650] sm:$0xf0] }
 0x33b   :  { %3876 = vmatpush.bf16.msrb.mxu2 %v5706_v45  ;;  %v5794_v45 = vor.u32 %v6467_v36, %v5791_v38  ;;  %v6534_v36 = vld [vmem:[%s9648_s8 + $0x6f8] sm:$0xf0]  ;;  %v6320_v38 = vld [vmem:[%s9648_s8 + $0x4c] sm:$0xf] }
 0x33c   :  { %3865 = vmatpush.bf16.msrb.mxu1 %v5426_v49  ;;  %v5514_v49 = vor.u32 %v6397_v39, %v5511_v41  ;;  %v6432_v41 = vld [vmem:[%s9648_s8 + $0x3cc] sm:$0xf]  ;;  %v6050_v47 = vor.u32 %v6534_v36, %v6049_v33  ;;  %v6345_v36 = vld [vmem:[%s9648_s8 + $0x110] sm:$0xf0] }
 0x33d   :  { %3891 = vmatpush.bf16.msrb.mxu0 %v5874_v53  ;;  %v6390_v53 = vld [vmem:[%s9648_s8 + $0x27c] sm:$0xf] }
 0x33e   :  { %3851 = vmatpush.bf16.msrb.mxu3 %v5230_v59  ;;  %v5931_v59 = vld [vmem:[%s9648_s8 + $0x614] sm:$0xf0] }
 0x33f   :  { %3877 = vmatpush.bf16.msrb.mxu2 %v5678_v1  ;;  %v5486_v1 = vor.u32 %v6390_v53, %v5483_v55  ;;  %v5934_v4 = vor.u32 %v6502_v58, %v5931_v59  ;;  %v6313_v53 = vld [vmem:[%s9648_s8 + $0x14] sm:$0xf]  ;;  %v5175_v55 = vld [vmem:[%s9648_s8 + $0x2c] sm:$0xf0]  ;;  %v5377_v59 = vld [vmem:[%s9648_s8 + $0x1a0] sm:$0xf] }
 0x340   :  { %3866 = vmatpush.bf16.msrb.mxu1 %v5398_v5  ;;  %v6383_v5 = vld [vmem:[%s9648_s8 + $0x244] sm:$0xf]  ;;  %v5623_v58 = vld [vmem:[%s9648_s8 + $0x3ac] sm:$0xf0]  ;;  %v5178_v3 = vor.u32 %v6313_v53, %v5175_v55  ;;  %v5713_v55 = vld [vmem:[%s9648_s8 + $0x440] sm:$0xf] }
 0x341   :  { %3892 = vmatpush.bf16.msrb.mxu0 %v5846_v10  ;;  %v6495_v10 = vld [vmem:[%s9648_s8 + $0x5c4] sm:$0xf]  ;;  %v5458_v14 = vor.u32 %v6383_v5, %v5455_v6  ;;  %v6408_v5 = vld [vmem:[%s9648_s8 + $0x308] sm:$0xf0] }
 0x342   :  { %3852 = vmatpush.bf16.msrb.mxu3 %v5202_v7  ;;  %v5259_v7 = vld [vmem:[%s9648_s8 + $0xd4] sm:$0xf0] }
 0x343   :  { %3878 = vmatpush.bf16.msrb.mxu2 %v5650_v18  ;;  %3867 = vmatmul.bf16.vlgmr.msrb.gmra.mxu1 %v8623_v21 }
 0x344   :  { %3911 = vmatpush.bf16.msra.mxu1 %v5598_v56  ;;  %3893 = vmatmul.bf16.vlgmr.msrb.gmra.mxu0 %v8631_v25  ;;  %v5903_v56 = vld [vmem:[%s9648_s8 + $0x5dc] sm:$0xf0] }
 0x345   :  { %3937 = vmatpush.bf16.msra.mxu0 %v6046_v13  ;;  %v6334_v13 = vld [vmem:[%s9648_s8 + $0xbc] sm:$0xf]  ;;  %v5906_v18 = vor.u32 %v6495_v10, %v5903_v56  ;;  %v5993_v10 = vld [vmem:[%s9648_s8 + $0x670] sm:$0xf]  ;;  %v6520_v56 = vld [vmem:[%s9648_s8 + $0x688] sm:$0xf0] }
 0x346   :  { %3853 = vmatpush.bf16.msrb.mxu3 %v5174_v29  ;;  %v5262_v20 = vor.u32 %v6334_v13, %v5259_v7  ;;  %v5679_v29 = vld [vmem:[%s9648_s8 + $0x41c] sm:$0xf0]  ;;  %v5349_v13 = vld [vmem:[%s9648_s8 + $0x168] sm:$0xf]  ;;  %v6359_v7 = vld [vmem:[%s9648_s8 + $0x180] sm:$0xf0] }
 0x347   :  { %3879 = vmatpush.bf16.msrb.mxu2 %v5622_v32  ;;  %v5399_v32 = vld [vmem:[%s9648_s8 + $0x1ec] sm:$0xf0] }
 0x348   :  { %3912 = vmatpush.bf16.msra.mxu1 %v5570_v26  ;;  %v6327_v26 = vld [vmem:[%s9648_s8 + $0x84] sm:$0xf]  ;;  %v5402_v39 = vor.u32 %v6369_v30, %v5399_v32  ;;  %v6464_v30 = vld [vmem:[%s9648_s8 + $0x4c8] sm:$0xf0]  ;;  %v5966_v32 = vor.u32 %v6513_v23, %v5965_v22  ;;  %v5209_v23 = vld [vmem:[%s9648_s8 + $0x50] sm:$0xf] }
 0x349   :  { %3938 = vmatpush.bf16.msra.mxu0 %v6018_v28  ;;  %3854 = vmatmul.bf16.vlgmr.msrb.gmra.mxu3 %v8665_v43  ;;  %v6439_v28 = vld [vmem:[%s9648_s8 + $0x404] sm:$0xf]  ;;  %v5234_v27 = vor.u32 %v6327_v26, %v5231_v54  ;;  %v5321_v26 = vld [vmem:[%s9648_s8 + $0x130] sm:$0xf]  ;;  %v6352_v54 = vld [vmem:[%s9648_s8 + $0x148] sm:$0xf0] }
 0x34a   :  { %3898 = vmatpush.bf16.msra.mxu3 %v5374_v37  ;;  %3880 = vmatmul.bf16.vlgmr.msrb.gmra.mxu2 %v8673_v46  ;;  %v6481_v37 = vld [vmem:[%s9648_s8 + $0x554] sm:$0xf] }
 0x34b   :  { %3924 = vmatpush.bf16.msra.mxu2 %v5822_v31  ;;  %v5601_v31 = vld [vmem:[%s9648_s8 + $0x360] sm:$0xf]  ;;  %v5850_v44 = vor.u32 %v6481_v37, %v5847_v11  ;;  %v6394_v11 = vld [vmem:[%s9648_s8 + $0x298] sm:$0xf0] }
 0x34c   :  { %3913 = vmatpush.bf16.msra.mxu1 %v5542_v35  ;;  %v5682_v35 = vor.u32 %v6439_v28, %v5679_v29  ;;  %v5602_v61 = vor.u32 %v6422_v34, %v5601_v31  ;;  %v5518_v28 = vor.u32 %v6401_v19, %v5517_v8  ;;  %v5769_v29 = vld [vmem:[%s9648_s8 + $0x4b0] sm:$0xf]  ;;  %v5489_v37 = vld [vmem:[%s9648_s8 + $0x280] sm:$0xf]  ;;  %v6506_v34 = vld [vmem:[%s9648_s8 + $0x618] sm:$0xf0] }
 0x34d   :  { %3939 = vmatpush.bf16.msra.mxu0 %v5990_v40  ;;  %v5203_v40 = vld [vmem:[%s9648_s8 + $0x64] sm:$0xf0]  ;;  %v5937_v31 = vld [vmem:[%s9648_s8 + $0x600] sm:$0xf]  ;;  %v5770_v33 = vor.u32 %v6464_v30, %v5769_v29  ;;  %v5853_v8 = vld [vmem:[%s9648_s8 + $0x558] sm:$0xf] }
 0x34e   :  { %3899 = vmatpush.bf16.msra.mxu3 %v5346_v42  ;;  %v5651_v42 = vld [vmem:[%s9648_s8 + $0x3e4] sm:$0xf0]  ;;  %v5206_v48 = vor.u32 %v6320_v38, %v5203_v40  ;;  %v5490_v38 = vor.u32 %v6394_v11, %v5489_v37  ;;  %v5741_v40 = vld [vmem:[%s9648_s8 + $0x478] sm:$0xf]  ;;  %v6485_v19 = vld [vmem:[%s9648_s8 + $0x570] sm:$0xf0] }
 0x34f   :  { %3925 = vmatpush.bf16.msra.mxu2 %v5794_v45  ;;  %v5573_v45 = vld [vmem:[%s9648_s8 + $0x328] sm:$0xf] }
 0x350   :  { %3914 = vmatpush.bf16.msra.mxu1 %v5514_v49  ;;  %v6415_v49 = vld [vmem:[%s9648_s8 + $0x340] sm:$0xf0] }
 0x351   :  { %3940 = vmatpush.bf16.msra.mxu0 %v5962_v52  ;;  %v5654_v52 = vor.u32 %v6432_v41, %v5651_v42  ;;  %v5574_v62 = vor.u32 %v6415_v49, %v5573_v45  ;;  %v5938_v41 = vor.u32 %v6506_v34, %v5937_v31  ;;  %v5461_v42 = vld [vmem:[%s9648_s8 + $0x248] sm:$0xf]  ;;  %v5181_v31 = vld [vmem:[%s9648_s8 + $0x18] sm:$0xf]  ;;  %v6317_v34 = vld [vmem:[%s9648_s8 + $0x30] sm:$0xf0] }
 0x352   :  { %3900 = vmatpush.bf16.msra.mxu3 %v5318_v57  ;;  %v6425_v57 = vld [vmem:[%s9648_s8 + $0x394] sm:$0xf]  ;;  %v5909_v45 = vld [vmem:[%s9648_s8 + $0x5c8] sm:$0xf] }
 0x353   :  { %3926 = vmatpush.bf16.msra.mxu2 %v5766_v60  ;;  %v6366_v60 = vld [vmem:[%s9648_s8 + $0x1b8] sm:$0xf0]  ;;  %v5626_v6 = vor.u32 %v6425_v57, %v5623_v58 }
 0x354   :  { %3915 = vmatpush.bf16.msra.mxu1 %v5486_v1  ;;  %v6478_v1 = vld [vmem:[%s9648_s8 + $0x538] sm:$0xf0] }
 0x355   :  { %3941 = vmatpush.bf16.msra.mxu0 %v5934_v4  ;;  %v5545_v4 = vld [vmem:[%s9648_s8 + $0x2f0] sm:$0xf]  ;;  %v6450_v57 = vld [vmem:[%s9648_s8 + $0x458] sm:$0xf0] }
 0x356   :  { %3901 = vmatpush.bf16.msra.mxu3 %v5290_v9  ;;  %v5378_v9 = vor.u32 %v6366_v60, %v5377_v59 }
 0x357   :  { %3927 = vmatpush.bf16.msra.mxu2 %v5738_v12  ;;  %v5826_v12 = vor.u32 %v6478_v1, %v5825_v0  ;;  %v6380_v0 = vld [vmem:[%s9648_s8 + $0x228] sm:$0xf0]  ;;  %v5266_v1 = vor.u32 %v6338_v51, %v5265_v50 }
 0x358   :  { %3916 = vmatpush.bf16.msra.mxu1 %v5458_v14  ;;  %v5546_v14 = vor.u32 %v6408_v5, %v5545_v4  ;;  %v5714_v4 = vor.u32 %v6450_v57, %v5713_v55  ;;  %v5237_v5 = vld [vmem:[%s9648_s8 + $0x88] sm:$0xf] }
 0x359   :  { %3942 = vmatpush.bf16.msra.mxu0 %v5906_v18  ;;  %v5994_v18 = vor.u32 %v6520_v56, %v5993_v10  ;;  %v5685_v56 = vld [vmem:[%s9648_s8 + $0x408] sm:$0xf] }
 0x35a   :  { %3902 = vmatpush.bf16.msra.mxu3 %v5262_v20  ;;  %v5350_v20 = vor.u32 %v6359_v7, %v5349_v13 }
 0x35b   :  { %3928 = vmatpush.bf16.msra.mxu2 %v5710_v24  ;;  %v5798_v24 = vor.u32 %v6471_v16, %v5797_v15  ;;  %v5405_v15 = vld [vmem:[%s9648_s8 + $0x1d8] sm:$0xf]  ;;  %v6373_v16 = vld [vmem:[%s9648_s8 + $0x1f0] sm:$0xf0] }
 0x35c   :  { %3917 = vmatpush.bf16.msra.mxu1 %v5430_v17 }
 0x35d   :  { %3943 = vmatpush.bf16.msra.mxu0 %v5878_v63 }
 0x35e   :  { %3903 = vmatpush.bf16.msra.mxu3 %v5234_v27  ;;  %v5322_v27 = vor.u32 %v6352_v54, %v5321_v26  ;;  %v5406_v54 = vor.u32 %v6373_v16, %v5405_v15 }
 0x35f   :  { %3929 = vmatpush.bf16.msra.mxu2 %v5682_v35  ;;  %v5293_v35 = vld [vmem:[%s9648_s8 + $0xf8] sm:$0xf] }
 0x360   :  { %3918 = vmatpush.bf16.msra.mxu1 %v5402_v39  ;;  %v9488_v17 = vpop.f32.mrf.mxu1  ;;  %v6457_v39 = vld [vmem:[%s9648_s8 + $0x490] sm:$0xf0] }
 0x361   :  { %3944 = vmatpush.bf16.msra.mxu0 %v5850_v44  ;;  %v9497_v63 = vpop.f32.mrf.mxu0  ;;  %v6387_v44 = vld [vmem:[%s9648_s8 + $0x260] sm:$0xf0]  ;;  %v5742_v49 = vor.u32 %v6457_v39, %v5741_v40 }
 0x362   :  { %3904 = vmatpush.bf16.msra.mxu3 %v5206_v48  ;;  %v9538_v48 = vld [vmem:[%s9649_s9] sm:$0x7f]  ;;  %v5462_v53 = vor.u32 %v6387_v44, %v5461_v42 }
 0x363   :  { %3930 = vmatpush.bf16.msra.mxu2 %v5654_v52  ;;  %3919 = vmatmul.bf16.vlgmr.msra.gmra.mxu1 %v8623_v21  ;;  %v2472_v60 = vperm.slane %v9538_v48, 0  ;;  %v2473_v42 = vperm.slane %v9538_v48, 1  ;;  %v2475_v16 = vperm.slane %v9538_v48, 3 }
 0x364   :  { %3963 = vmatpush.bf16.msrb.mxu1 %v5602_v61  ;;  %3945 = vmatmul.bf16.vlgmr.msra.gmra.mxu0 %v8631_v25  ;;  %v5294_v61 = vor.u32 %v6345_v36, %v5293_v35  ;;  %v5629_v35 = vld [vmem:[%s9648_s8 + $0x398] sm:$0xf] }
 0x365   :  { %3989 = vmatpush.bf16.msrb.mxu0 %v6050_v47  ;;  %v6499_v47 = vld [vmem:[%s9648_s8 + $0x5e0] sm:$0xf0] }
 0x366   :  { %3905 = vmatpush.bf16.msra.mxu3 %v5178_v3  ;;  %v5910_v59 = vor.u32 %v6499_v47, %v5909_v45  ;;  %v6492_v3 = vld [vmem:[%s9648_s8 + $0x5a8] sm:$0xf0] }
 0x367   :  { %3931 = vmatpush.bf16.msra.mxu2 %v5626_v6  ;;  %v6331_v6 = vld [vmem:[%s9648_s8 + $0xa0] sm:$0xf0] }
 0x368   :  { %3964 = vmatpush.bf16.msrb.mxu1 %v5574_v62  ;;  %v3662_v52 = vpop.f32.mrf.mxu1  ;;  %v5433_v62 = vld [vmem:[%s9648_s8 + $0x210] sm:$0xf] }
 0x369   :  { %3990 = vmatpush.bf16.msrb.mxu0 %v6022_v2  ;;  %3906 = vmatmul.bf16.vlgmr.msra.gmra.mxu3 %v8665_v43  ;;  %v3688_v58 = vpop.f32.mrf.mxu0  ;;  %v5881_v2 = vld [vmem:[%s9648_s8 + $0x590] sm:$0xf]  ;;  %v5434_v10 = vor.u32 %v6380_v0, %v5433_v62 }
 0x36a   :  { %3950 = vmatpush.bf16.msrb.mxu3 %v5378_v9  ;;  %3932 = vmatmul.bf16.vlgmr.msra.gmra.mxu2 %v8673_v46 }
 0x36b   :  { %3976 = vmatpush.bf16.msrb.mxu2 %v5826_v12  ;;  %v6443_v12 = vld [vmem:[%s9648_s8 + $0x420] sm:$0xf0] }
 0x36c   :  { %3965 = vmatpush.bf16.msrb.mxu1 %v5546_v14  ;;  %v3647_v9 = vpop.f32.mrf.mxu3  ;;  %v5882_v14 = vor.u32 %v6492_v3, %v5881_v2  ;;  %v5686_v22 = vor.u32 %v6443_v12, %v5685_v56 }
 0x36d   :  { %3991 = vmatpush.bf16.msrb.mxu0 %v5994_v18  ;;  %v3648_v13 = vadd.f32 %v3647_v9, %v2472_v60  ;;  %v3673_v7 = vpop.f32.mrf.mxu2  ;;  %v5238_v18 = vor.u32 %v6331_v6, %v5237_v5  ;;  %v2474_v60 = vperm.slane %v9538_v48, 2 }
 0x36e   :  { %3951 = vmatpush.bf16.msrb.mxu3 %v5350_v20 }
 0x36f   :  { %3977 = vmatpush.bf16.msrb.mxu2 %v5798_v24  ;;  %v3661_v20 = vadd.f32 %v9488_v17, %v3648_v13  ;;  %v6324_v24 = vld [vmem:[%s9648_s8 + $0x68] sm:$0xf0] }
 0x370   :  { %3966 = vmatpush.bf16.msrb.mxu1 %v5518_v28  ;;  %v3712_v26 = vpop.f32.mrf.mxu1  ;;  %v5657_v28 = vld [vmem:[%s9648_s8 + $0x3d0] sm:$0xf]  ;;  %v6436_v17 = vld [vmem:[%s9648_s8 + $0x3e8] sm:$0xf0]  ;;  %v5210_v37 = vor.u32 %v6324_v24, %v5209_v23 }
 0x371   :  { %3992 = vmatpush.bf16.msrb.mxu0 %v5966_v32  ;;  %v3674_v29 = vadd.f32 %v3673_v7, %v3661_v20  ;;  %v3738_v30 = vpop.f32.mrf.mxu0  ;;  %v5854_v32 = vor.u32 %v6485_v19, %v5853_v8 }
 0x372   :  { %3952 = vmatpush.bf16.msrb.mxu3 %v5322_v27  ;;  %v5658_v27 = vor.u32 %v6436_v17, %v5657_v28 }
 0x373   :  { %3978 = vmatpush.bf16.msrb.mxu2 %v5770_v33  ;;  %v3687_v11 = vadd.f32 %v9497_v63, %v3674_v29  ;;  %v6429_v63 = vld [vmem:[%s9648_s8 + $0x3b0] sm:$0xf0]  ;;  %s6608_s8 = smov [#allocation4]  }
 0x374   :  { %3967 = vmatpush.bf16.msrb.mxu1 %v5490_v38  ;;  %v3649_v33 = vpop.f32.mrf.mxu3  ;;  %v5182_v38 = vor.u32 %v6317_v34, %v5181_v31  ;;  %v5630_v40 = vor.u32 %v6429_v63, %v5629_v35  ;;  %s4095_s20 = sshll.u32 %s6608_s8, 4  ;;  %s4096_s20 = int_to_ptr.vmem [resolvable:$true] %s4095_s20 }
 0x375   :  { %3993 = vmatpush.bf16.msrb.mxu0 %v5938_v41  ;;  %v3675_v36 = vpop.f32.mrf.mxu2  ;;  %v4002_v47 = vmul.f32 0.5, %v3687_v11  ;;  %4100 = dma.vmem_to_hbm [thread:$0]  %s4096_s20, 32, %s4098_s22, [#allocation5]  }
 0x376   :  { %3953 = vmatpush.bf16.msrb.mxu3 %v5294_v61 }
 0x377   :  { %3979 = vmatpush.bf16.msrb.mxu2 %v5742_v49  ;;  %6541 = vtanh.f32 %v4002_v47 }
 0x378   :  { %3968 = vmatpush.bf16.msrb.mxu1 %v5462_v53  ;;  %v3714_v39 = vpop.f32.mrf.mxu1 }
 0x379   :  { %3994 = vmatpush.bf16.msrb.mxu0 %v5910_v59  ;;  %v3740_v41 = vpop.f32.mrf.mxu0 }
 0x37a   :  { %3954 = vmatpush.bf16.msrb.mxu3 %v5266_v1 }
 0x37b   :  { %3980 = vmatpush.bf16.msrb.mxu2 %v5714_v4 }
 0x37c   :  { %3969 = vmatpush.bf16.msrb.mxu1 %v5434_v10  ;;  %v3699_v44 = vpop.f32.mrf.mxu3 }
 0x37d   :  { %3995 = vmatpush.bf16.msrb.mxu0 %v5882_v14  ;;  %v3700_v61 = vadd.f32 %v3699_v44, %v2473_v42  ;;  %v3725_v45 = vpop.f32.mrf.mxu2  ;;  %v6542_v58 = vpop.eup %6541 }
 0x37e   :  { %3955 = vmatpush.bf16.msrb.mxu3 %v5238_v18  ;;  %v4016_v62 = vmul.f32 0.5, %v6542_v58 }
 0x37f   :  { %3981 = vmatpush.bf16.msrb.mxu2 %v5686_v22  ;;  %v3713_v49 = vadd.f32 %v3712_v26, %v3700_v61 }
 0x380   :  { %3970 = vmatpush.bf16.msrb.mxu1 %v5406_v54  ;;  %v3764_v50 = vpop.f32.mrf.mxu1  ;;  %v4023_v4 = vadd.f32 0.5, %v4016_v62 }
 0x381   :  { %3996 = vmatpush.bf16.msrb.mxu0 %v5854_v32  ;;  %v3790_v51 = vpop.f32.mrf.mxu0 }
 0x382   :  { %3956 = vmatpush.bf16.msrb.mxu3 %v5210_v37 }
 0x383   :  { %3982 = vmatpush.bf16.msrb.mxu2 %v5658_v27  ;;  %3971 = vmatmul.bf16.vlgmr.msrb.gmra.mxu1 %v8623_v21  ;;  %v3726_v21 = vadd.f32 %v3725_v45, %v3713_v49 }
 0x384   :  { %3997 = vmatmul.bf16.vlgmr.msrb.gmra.mxu0 %v8631_v25  ;;  %v3701_v52 = vpop.f32.mrf.mxu3 }
 0x385   :  { %v3739_v25 = vadd.f32 %v3738_v30, %v3726_v21  ;;  %v3727_v55 = vpop.f32.mrf.mxu2 }
 0x386   :  { %3957 = vmatpush.bf16.msrb.mxu3 %v5182_v38 }
 0x387   :  { %3983 = vmatpush.bf16.msrb.mxu2 %v5630_v40  ;;  %v4003_v53 = vmul.f32 0.5, %v3739_v25  ;;  %v2476_v40 = vperm.slane %v9538_v48, 4 }
 0x388   :  { %v3766_v57 = vpop.f32.mrf.mxu1 }
 0x389   :  { %3958 = vmatmul.bf16.vlgmr.msrb.gmra.mxu3 %v8665_v43  ;;  %6543 = vtanh.f32 %v4003_v53  ;;  %v3792_v59 = vpop.f32.mrf.mxu0 }
 0x38a   :  { %3984 = vmatmul.bf16.vlgmr.msrb.gmra.mxu2 %v8673_v46  ;;  %v2477_v59 = vperm.slane %v9538_v48, 5 }
 0x38c   :  { %v3751_v43 = vpop.f32.mrf.mxu3 }
 0x38d   :  { %v3752_v46 = vadd.f32 %v3751_v43, %v2474_v60  ;;  %v3777_v1 = vpop.f32.mrf.mxu2 }
 0x38f   :  { %v6544_v0 = vpop.eup %6543  ;;  %v3765_v3 = vadd.f32 %v3764_v50, %v3752_v46 }
 0x390   :  { %v4017_v2 = vmul.f32 0.5, %v6544_v0 }
 0x391   :  { %v3778_v6 = vadd.f32 %v3777_v1, %v3765_v3 }
 0x392   :  { %v4024_v5 = vadd.f32 0.5, %v4017_v2 }
 0x393   :  { %v3791_v10 = vadd.f32 %v3790_v51, %v3778_v6 }
 0x394   :  { %v4030_v9 = vpack.c.bf16 %v4024_v5, %v4023_v4  ;;  %v3753_v56 = vpop.f32.mrf.mxu3 }
 0x395   :  { %v3779_v12 = vpop.f32.mrf.mxu2  ;;  %v4004_v20 = vmul.f32 0.5, %v3791_v10 }
 0x396   :  { %v4038_v34 = vrot.slane %v4030_v9, 3 }
 0x397   :  { %6545 = vtanh.f32 %v4004_v20 }
 0x398   :  { %v4048_v39 = vsel %vm4045_vm1, %v4030_v9, %v4038_v34  ;;  %v2478_v9 = vperm.slane %v9538_v48, 6  ;;  %vm4077_vm1 = vmor %vm4076_vm14, %vm4075_vm13 }
 0x39d   :  { %v6546_v17 = vpop.eup %6545 }
 0x39e   :  { %v4018_v29 = vmul.f32 0.5, %v6546_v17 }
 0x3a0   :  { %v3816_v13 = vpop.f32.mrf.mxu1  ;;  %v4025_v27 = vadd.f32 0.5, %v4018_v29 }
 0x3a1   :  { %v3842_v7 = vpop.f32.mrf.mxu0 }
 0x3a8   :  { %v3818_v14 = vpop.f32.mrf.mxu1 }
 0x3a9   :  { %v3844_v15 = vpop.f32.mrf.mxu0 }
 0x3ac   :  { %v3803_v18 = vpop.f32.mrf.mxu3 }
 0x3ad   :  { %v3804_v8 = vadd.f32 %v3803_v18, %v2475_v16  ;;  %v3829_v19 = vpop.f32.mrf.mxu2 }
 0x3af   :  { %v3817_v22 = vadd.f32 %v3816_v13, %v3804_v8 }
 0x3b1   :  { %v3830_v23 = vadd.f32 %v3829_v19, %v3817_v22 }
 0x3b3   :  { %v3843_v24 = vadd.f32 %v3842_v7, %v3830_v23 }
 0x3b4   :  { %v3805_v26 = vpop.f32.mrf.mxu3 }
 0x3b5   :  { %v4005_v54 = vmul.f32 0.5, %v3843_v24  ;;  %v3831_v28 = vpop.f32.mrf.mxu2 }
 0x3b7   :  { %6547 = vtanh.f32 %v4005_v54 }
 0x3bd   :  { %v6548_v30 = vpop.eup %6547 }
 0x3be   :  { %v4019_v37 = vmul.f32 0.5, %v6548_v30 }
 0x3c0   :  { %v3868_v32 = vpop.f32.mrf.mxu1  ;;  %v4026_v31 = vadd.f32 0.5, %v4019_v37 }
 0x3c1   :  { %v3894_v11 = vpop.f32.mrf.mxu0 }
 0x3c2   :  { %v4031_v33 = vpack.c.bf16 %v4026_v31, %v4025_v27 }
 0x3c4   :  { %v4039_v35 = vrot.slane %v4031_v33, 6  ;;  %v4040_v63 = vrot.slane %v4031_v33, 1 }
 0x3c6   :  { %v4052_v41 = vsel %vm4049_vm2, %v4039_v35, %v4040_v63 }
 0x3c7   :  { %v9628_v42 = vsel %vm4053_vm3, %v4048_v39, %v4052_v41 }
 0x3c8   :  { %v3870_v36 = vpop.f32.mrf.mxu1 }
 0x3c9   :  { %v3896_v38 = vpop.f32.mrf.mxu0 }
 0x3cc   :  { %v3855_v44 = vpop.f32.mrf.mxu3 }
 0x3cd   :  { %v3856_v61 = vadd.f32 %v3855_v44, %v2476_v40  ;;  %v3881_v45 = vpop.f32.mrf.mxu2 }
 0x3cf   :  { %v3869_v47 = vadd.f32 %v3868_v32, %v3856_v61 }
 0x3d1   :  { %v3882_v49 = vadd.f32 %v3881_v45, %v3869_v47 }
 0x3d3   :  { %v3895_v50 = vadd.f32 %v3894_v11, %v3882_v49 }
 0x3d4   :  { %v3857_v21 = vpop.f32.mrf.mxu3 }
 0x3d5   :  { %v3883_v51 = vpop.f32.mrf.mxu2  ;;  %v4006_v10 = vmul.f32 0.5, %v3895_v50 }
 0x3e0   :  { %v3920_v25 = vpop.f32.mrf.mxu1 }
 0x3e1   :  { %v3946_v52 = vpop.f32.mrf.mxu0 }
 0x3e8   :  { %v3922_v53 = vpop.f32.mrf.mxu1 }
 0x3e9   :  { %v3948_v55 = vpop.f32.mrf.mxu0 }
 0x3ec   :  { %v3907_v57 = vpop.f32.mrf.mxu3 }
 0x3ed   :  { %v3933_v58 = vpop.f32.mrf.mxu2  ;;  %v3908_v43 = vadd.f32 %v3907_v57, %v2477_v59 }
 0x3ef   :  { %v3921_v0 = vadd.f32 %v3920_v25, %v3908_v43 }
 0x3f1   :  { %v3934_v1 = vadd.f32 %v3933_v58, %v3921_v0 }
 0x3f3   :  { %v3947_v3 = vadd.f32 %v3946_v52, %v3934_v1 }
 0x3f4   :  { %v3909_v60 = vpop.f32.mrf.mxu3 }
 0x3f5   :  { %v3935_v62 = vpop.f32.mrf.mxu2  ;;  %v4007_v5 = vmul.f32 0.5, %v3947_v3 }
 0x3f7   :  { %6549 = vtanh.f32 %v4007_v5 }
 0x3f8   :  { %6551 = vtanh.f32 %v4006_v10 }
 0x3fd   :  { %v6550_v15 = vpop.eup %6549 }
 0x3fe   :  { %v6552_v8 = vpop.eup %6551  ;;  %v4021_v22 = vmul.f32 0.5, %v6550_v15 }
 0x3ff   :  { %v4020_v48 = vmul.f32 0.5, %v6552_v8 }
 0x400   :  { %v3972_v46 = vpop.f32.mrf.mxu1  ;;  %v4028_v23 = vadd.f32 0.5, %v4021_v22 }
 0x401   :  { %v3998_v2 = vpop.f32.mrf.mxu0  ;;  %v4027_v24 = vadd.f32 0.5, %v4020_v48 }
 0x403   :  { %v4032_v54 = vpack.c.bf16 %v4028_v23, %v4027_v24 }
 0x405   :  { %v4041_v29 = vrot.slane %v4032_v54, 4  ;;  %v4042_v30 = vrot.slane %v4032_v54, 7 }
 0x407   :  { %v4058_v27 = vsel %vm4055_vm9, %v4041_v29, %v4042_v30 }
 0x408   :  { %v3974_v4 = vpop.f32.mrf.mxu1 }
 0x409   :  { %v4000_v6 = vpop.f32.mrf.mxu0 }
 0x40c   :  { %v3959_v56 = vpop.f32.mrf.mxu3 }
 0x40d   :  { %v3960_v12 = vadd.f32 %v3959_v56, %v2478_v9  ;;  %v3985_v13 = vpop.f32.mrf.mxu2 }
 0x40f   :  { %v3973_v7 = vadd.f32 %v3972_v46, %v3960_v12 }
 0x411   :  { %v3986_v14 = vadd.f32 %v3985_v13, %v3973_v7 }
 0x413   :  { %v3999_v16 = vadd.f32 %v3998_v2, %v3986_v14 }
 0x414   :  { %v3961_v18 = vpop.f32.mrf.mxu3 }
 0x415   :  { %v4008_v19 = vmul.f32 0.5, %v3999_v16  ;;  %v3987_v20 = vpop.f32.mrf.mxu2 }
 0x417   :  { %6553 = vtanh.f32 %v4008_v19 }
 0x41d   :  { %v6554_v26 = vpop.eup %6553 }
 0x41e   :  { %v4022_v28 = vmul.f32 0.5, %v6554_v26 }
 0x420   :  { %v4029_v17 = vadd.f32 0.5, %v4022_v28 }
 0x422   :  { %v4033_v32 = vpack.c.bf16 %v4029_v17, %v4029_v17 }
 0x424   :  { %v4043_v37 = vrot.slane %v4033_v32, 2  ;;  %v4044_v11 = vrot.slane %v4033_v32, 5 }
 0x426   :  { %v4062_v31 = vsel %vm4059_vm12, %v4043_v37, %v4044_v11 }
 0x427   :  { %v4064_v34 = vsel %vm4063_vm15, %v4058_v27, %v4062_v31 }
 0x428   :  { %v4066_v33 = vsel %vm4065_vm0, %v9628_v42, %v4064_v34 }
 0x429   :  { %4078 = vst.msk [vmem:[#allocation2] sm:$0x7f] %vm4077_vm1, %v4066_v33 }
 0x42a   :  { %4089 = dma.vmem_to_hbm [thread:$0]  %s4085_s23, 112, %s4087_s25, [#allocation3]  }
 0x42b   :  { %6603 = dma.done.wait [#allocation3], 112  }
 0x42c   :  { %6604 = vsyncadd [#allocation3], 4294967184 }
 0x42d   :  { %6605 = dma.done.wait [#allocation5], 32  }
 0x42e   :  { %6606 = vsyncadd [#allocation5], 4294967264 }
 0x42f   :  { %4109 = vsyncpa [#allocation3], 1 }
 0x430   :  { %4110 = vsyncpa [#allocation5], 1 }

</bundles_post_ra>
